<compile_context>
chip_gen: v5e
topology: v5e:2x2
jax: 0.10.0
libtpu: 0.0.40
codegen_flags: <defaults>
</compile_context>

<pallas_src>
import functools

import jax
import jax.numpy as jnp
from jax import lax
from jax.experimental import pallas as pl
from jax.experimental.pallas import tpu as pltpu


_VMEM_LIMIT_BYTES = 48 * 1024 * 1024   # safe on v7x (64 MiB phys), raised vs 32 MiB default


def _round_up(x, m):
    return ((x + m - 1) // m) * m


def _pick_t_block(t, bp, hp, budget_bytes=8 << 20, cap=32):
    """Timesteps per sequential grid step, sized from a VMEM budget.

    Only the pipelined (double-buffered) gx + seq blocks scale with t_block;
    choose the largest block <= cap that fits, then split T as evenly as
    possible (minimal padding)."""
    per_step = 2 * bp * (4 * hp + hp) * 2          # bf16 gx + seq, x2 buffers
    cap = max(1, min(cap, budget_bytes // max(per_step, 1)))
    n_blk = -(-t // cap)                           # ceil
    t_block = -(-t // n_blk)                       # minimal block covering t in n_blk blocks
    return t_block


# ---------------------------------------------------------------------------
# Tiled dense matmul (+ optional bias), bf16 operands, f32 accumulation,
# K-tiled with an f32 VMEM accumulator (init/finalize via pl.when).
# ---------------------------------------------------------------------------

def _matmul_kernel(x_ref, w_ref, b_ref, o_ref, acc_ref):
    @pl.when(pl.program_id(2) == 0)
    def _():
        acc_ref[...] = jnp.zeros_like(acc_ref)

    acc_ref[...] += jnp.dot(x_ref[...], w_ref[...],
                            preferred_element_type=jnp.float32)

    @pl.when(pl.program_id(2) == pl.num_programs(2) - 1)
    def _():
        o_ref[...] = (acc_ref[...] + b_ref[...]).astype(o_ref.dtype)


def pallas_matmul(x, w_t, bias=None, out_dtype=jnp.float32,
                  tile_m=256, tile_n=512, tile_k=512):
    """x: (M, K), w_t: (K, N), bias: (N,) or None -> (M, N) in out_dtype."""
    m, k = x.shape
    _, n = w_t.shape
    tm = min(tile_m, _round_up(m, 8))
    tn = min(tile_n, _round_up(n, 128))
    tk = min(tile_k, _round_up(k, 128))
    mp = _round_up(m, tm)
    np_ = _round_up(n, tn)
    kp = _round_up(k, tk)

    xp = jnp.pad(x.astype(jnp.bfloat16), ((0, mp - m), (0, kp - k)))
    wp = jnp.pad(w_t.astype(jnp.bfloat16), ((0, kp - k), (0, np_ - n)))
    if bias is None:
        bp_ = jnp.zeros((1, np_), jnp.float32)
    else:
        bp_ = jnp.pad(bias.astype(jnp.float32), (0, np_ - n)).reshape(1, np_)

    cost = pl.CostEstimate(
        flops=2 * mp * np_ * kp,
        transcendentals=0,
        bytes_accessed=(mp * kp * 2 + kp * np_ * 2 + np_ * 4
                        + mp * np_ * jnp.dtype(out_dtype).itemsize))

    out = pl.pallas_call(
        _matmul_kernel,
        out_shape=jax.ShapeDtypeStruct((mp, np_), out_dtype),
        grid_spec=pltpu.PrefetchScalarGridSpec(
            num_scalar_prefetch=0,
            grid=(mp // tm, np_ // tn, kp // tk),
            in_specs=[
                pl.BlockSpec((tm, tk), lambda i, j, kk: (i, kk)),
                pl.BlockSpec((tk, tn), lambda i, j, kk: (kk, j)),
                pl.BlockSpec((1, tn), lambda i, j, kk: (0, j)),
            ],
            out_specs=pl.BlockSpec((tm, tn), lambda i, j, kk: (i, j)),
            scratch_shapes=[pltpu.VMEM((tm, tn), jnp.float32)],
        ),
        compiler_params=pltpu.CompilerParams(
            dimension_semantics=("parallel", "parallel", "arbitrary"),
            vmem_limit_bytes=_VMEM_LIMIT_BYTES),
        cost_estimate=cost,
    )(xp, wp, bp_)
    return out[:m, :n]


# ---------------------------------------------------------------------------
# Recurrent LSTM kernel: grid = (batch blocks ["parallel"], time blocks
# ["arbitrary"]).  Inputs are the precomputed x-gates (bf16); only
# h @ W_hh^T (bf16 operands, f32 accumulate) is done per step.
# ---------------------------------------------------------------------------

def _lstm_scan_kernel(gx_ref, whh_ref, h0_ref, c0_ref, seq_ref, hN_ref,
                      h_s, c_s, *, t_true, needs_mask):
    tb = pl.program_id(1)                 # time-block index (sequential axis)
    t_block = gx_ref.shape[0]
    hp = h_s.shape[-1]                    # padded hidden (multiple of 128)

    @pl.when(tb == 0)
    def _():
        h_s[...] = h0_ref[...]
        c_s[...] = c0_ref[...]

    t0 = tb * t_block

    def step(tt, carry):
        h, c = carry
        gates = gx_ref[tt].astype(jnp.float32) + jnp.dot(
            h.astype(jnp.bfloat16), whh_ref[...],
            preferred_element_type=jnp.float32)              # (Bt, 4Hp), f32
        # Gate slices are lane-block aligned (hp is a multiple of 128).
        i_g = jax.nn.sigmoid(gates[:, 0 * hp:1 * hp])
        f_g = jax.nn.sigmoid(gates[:, 1 * hp:2 * hp])
        g_g = jnp.tanh(gates[:, 2 * hp:3 * hp])
        o_g = jax.nn.sigmoid(gates[:, 3 * hp:4 * hp])
        c_new = f_g * c + i_g * g_g
        h_new = o_g * jnp.tanh(c_new)
        if needs_mask:
            # Freeze the state on padded timesteps (t >= true sequence len).
            valid = (t0 + tt) < t_true
            h_new = jnp.where(valid, h_new, h)
            c_new = jnp.where(valid, c_new, c)
        seq_ref[tt] = h_new.astype(seq_ref.dtype)
        return h_new, c_new

    h_fin, c_fin = lax.fori_loop(0, t_block, step, (h_s[...], c_s[...]),
                                 unroll=True)
    h_s[...] = h_fin
    c_s[...] = c_fin

    # Resident output block: only the final time block's value matters.
    @pl.when(tb == pl.num_programs(1) - 1)
    def _():
        hN_ref[...] = h_fin


def lstm_layer(x_seq, layer_params, h0, c0):
    """One LSTM layer over a padded, time-major sequence.

    x_seq: (T, Bp, Hp) bf16/f32 activations.
    Returns (seq (T, Bp, Hp) bf16, h_final (Bp, Hp) f32)."""
    t, bp, hp = x_seq.shape
    g = 4 * hp

    # Hoisted time-invariant gate contribution for ALL timesteps at once.
    gates_x = pallas_matmul(
        x_seq.reshape(t * bp, hp), layer_params["w_ih_t"],
        bias=layer_params["bias"], out_dtype=jnp.bfloat16).reshape(t, bp, g)

    t_block = _pick_t_block(t, bp, hp)
    n_time = -(-t // t_block)
    t_pad = n_time * t_block
    if t_pad > t:
        gates_x = jnp.pad(gates_x, ((0, t_pad - t), (0, 0), (0, 0)))

    # Batch-block parallel axis (2-way when Bp >= 16 -> both v7x TCs busy).
    b_tile = bp // 2 if (bp % 16 == 0) else bp
    n_batch = bp // b_tile

    kernel = functools.partial(_lstm_scan_kernel, t_true=t,
                               needs_mask=(t_pad > t))

    cost = pl.CostEstimate(
        flops=int(2 * t_pad * bp * hp * g + 10 * t_pad * bp * hp),
        transcendentals=int(5 * t_pad * bp * hp),
        bytes_accessed=int(t_pad * bp * g * 2 + hp * g * 2
                           + 2 * bp * hp * 4 + t_pad * bp * hp * 2
                           + bp * hp * 4))

    grid_spec = pltpu.PrefetchScalarGridSpec(
        num_scalar_prefetch=0,
        grid=(n_batch, n_time),
        in_specs=[
            pl.BlockSpec((t_block, b_tile, g), lambda i, j: (j, i, 0)),
            pl.BlockSpec((hp, g), lambda i, j: (0, 0)),
            pl.BlockSpec((b_tile, hp), lambda i, j: (i, 0)),
            pl.BlockSpec((b_tile, hp), lambda i, j: (i, 0)),
        ],
        out_specs=[
            pl.BlockSpec((t_block, b_tile, hp), lambda i, j: (j, i, 0)),
            pl.BlockSpec((b_tile, hp), lambda i, j: (i, 0)),
        ],
        scratch_shapes=[
            pltpu.VMEM((b_tile, hp), jnp.float32),
            pltpu.VMEM((b_tile, hp), jnp.float32),
        ],
    )

    seq, h_n = pl.pallas_call(
        kernel,
        out_shape=(
            jax.ShapeDtypeStruct((t_pad, bp, hp), jnp.bfloat16),
            jax.ShapeDtypeStruct((bp, hp), jnp.float32),
        ),
        grid_spec=grid_spec,
        compiler_params=pltpu.CompilerParams(
            dimension_semantics=("parallel", "arbitrary"),
            vmem_limit_bytes=_VMEM_LIMIT_BYTES),
        cost_estimate=cost,
    )(gates_x, layer_params["w_hh_t"], h0, c0)

    if t_pad > t:
        seq = seq[:t]
    return seq, h_n


# ---------------------------------------------------------------------------
# Parameters: PyTorch-layout init + one-time transpose/pad/bf16 preparation
# ---------------------------------------------------------------------------

def init_params(key, n_layers, hidden, src_in, tgt_in):
    scale = 1.0 / jnp.sqrt(hidden)

    def unif(k, shape):
        return jax.random.uniform(k, shape, jnp.float32, -scale, scale)

    keys = iter(jax.random.split(key, 4 + 8 * n_layers * 2))
    params = {
        "w_enc": unif(next(keys), (hidden, src_in)),   # linear_enc.weight
        "w_dec": unif(next(keys), (hidden, tgt_in)),   # linear_dec.weight
        "w2":    unif(next(keys), (1, hidden)),        # linear2.weight
        "enc_lstm": [],
        "dec_lstm": [],
    }
    for which in ("enc_lstm", "dec_lstm"):
        for _ in range(n_layers):
            params[which].append({
                "w_ih": unif(next(keys), (4 * hidden, hidden)),
                "w_hh": unif(next(keys), (4 * hidden, hidden)),
                "b_ih": unif(next(keys), (4 * hidden,)),
                "b_hh": unif(next(keys), (4 * hidden,)),
            })
    return params


def prepare_params(params, hidden):
    """One-time transpose + zero-pad to lane/sublane layouts; weights -> bf16."""
    h = hidden
    hp = _round_up(h, 128)

    def pad_gate_w(w):
        # (4H, H) PyTorch gate-stacked [i|f|g|o] -> (Hp, 4Hp) for x @ result,
        # each gate in its own lane-aligned Hp-wide column block.
        w4 = jnp.pad(w.reshape(4, h, h).astype(jnp.float32),
                     ((0, 0), (0, hp - h), (0, hp - h)))
        return jnp.transpose(w4, (2, 0, 1)).reshape(hp, 4 * hp).astype(jnp.bfloat16)

    def pad_gate_b(b_ih, b_hh):
        b = (b_ih + b_hh).astype(jnp.float32).reshape(4, h)
        return jnp.pad(b, ((0, 0), (0, hp - h))).reshape(4 * hp)

    prepped = {
        "w_enc_t": jnp.pad(params["w_enc"].T.astype(jnp.float32),
                           ((0, 0), (0, hp - h))).astype(jnp.bfloat16),
        "w_dec_t": jnp.pad(params["w_dec"].T.astype(jnp.float32),
                           ((0, 0), (0, hp - h))).astype(jnp.bfloat16),
        "w2_t": jnp.pad(params["w2"].T.astype(jnp.float32),
                        ((0, hp - h), (0, 0))).astype(jnp.bfloat16),
        "enc_lstm": [],
        "dec_lstm": [],
    }
    for which in ("enc_lstm", "dec_lstm"):
        for p in params[which]:
            prepped[which].append({
                "w_ih_t": pad_gate_w(p["w_ih"]),
                "w_hh_t": pad_gate_w(p["w_hh"]),
                "bias": pad_gate_b(p["b_ih"], p["b_hh"]),   # f32
            })
    return prepped


# ---------------------------------------------------------------------------
# Forward pass (matches RNN.forward of the PyTorch module)
# ---------------------------------------------------------------------------

def rnn_forward(prepped, x_en, x_de, n_layers, hidden):
    """x_en: (B, S_en, src_in), x_de: (B, S_de, tgt_in) -> (B, S_de, 1)."""
    b, s_en, _ = x_en.shape
    _, s_de, _ = x_de.shape
    hp = _round_up(hidden, 128)
    bp = _round_up(b, 8)

    def project_time_major(x, w_t):
        # Transpose/pad the SMALL raw input first, so the projection matmul
        # writes the (S, Bp, Hp) layout the scan consumes (no post-matmul
        # transpose/pad HBM pass).
        _, s, _ = x.shape
        xt = jnp.transpose(x, (1, 0, 2))                    # (S, B, in)
        xt = jnp.pad(xt, ((0, 0), (0, bp - b), (0, 0)))     # (S, Bp, in)
        y = pallas_matmul(xt.reshape(s * bp, xt.shape[-1]), w_t,
                          out_dtype=jnp.bfloat16)           # (S*Bp, Hp)
        return y.reshape(s, bp, hp)

    en = project_time_major(x_en, prepped["w_enc_t"])
    de = project_time_major(x_de, prepped["w_dec_t"])

    zeros = jnp.zeros((bp, hp), jnp.float32)

    # Encoder: (h0, c0) = (zeros, zeros); keep final hidden per layer.
    layer_in = en
    enc_h_finals = []
    for l in range(n_layers):
        layer_in, h_n = lstm_layer(layer_in, prepped["enc_lstm"][l],
                                   zeros, zeros)
        enc_h_finals.append(h_n)

    # Decoder: the module passes (hidden, hidden) -> encoder final h is used
    # as BOTH the initial hidden and the initial cell state per layer.
    layer_in = de
    for l in range(n_layers):
        h0 = enc_h_finals[l]
        layer_in, _ = lstm_layer(layer_in, prepped["dec_lstm"][l], h0, h0)

    # linear2 (bias-free) then transpose(0, 1): (S_de, B, 1) -> (B, S_de, 1)
    out = pallas_matmul(layer_in.reshape(s_de * bp, hp), prepped["w2_t"],
                        out_dtype=jnp.float32)
    out = out.reshape(s_de, bp, 1)[:, :b, :].transpose(1, 0, 2)
    return out


# ---------------------------------------------------------------------------
# Pure-JAX f32 reference (for correctness check)
# ---------------------------------------------------------------------------

def _lstm_layer_ref(x_seq, p, h0, c0):
    def step(carry, x_t):
        h, c = carry
        gates = x_t @ p["w_ih"].T + h @ p["w_hh"].T + p["b_ih"] + p["b_hh"]
        i, f, g, o = jnp.split(gates, 4, axis=-1)
        i, f, o = jax.nn.sigmoid(i), jax.nn.sigmoid(f), jax.nn.sigmoid(o)
        g = jnp.tanh(g)
        c = f * c + i * g
        h = o * jnp.tanh(c)
        return (h, c), h
    (h_n, c_n), seq = jax.lax.scan(step, (h0, c0), x_seq)
    return seq, h_n, c_n


def rnn_forward_ref(params, x_en, x_de, n_layers, hidden):
    b = x_en.shape[0]
    en = (x_en @ params["w_enc"].T).transpose(1, 0, 2)
    de = (x_de @ params["w_dec"].T).transpose(1, 0, 2)
    zeros = jnp.zeros((b, hidden), jnp.float32)
    layer_in, h_finals = en, []
    for l in range(n_layers):
        layer_in, h_n, _ = _lstm_layer_ref(layer_in, params["enc_lstm"][l],
                                           zeros, zeros)
        h_finals.append(h_n)
    layer_in = de
    for l in range(n_layers):
        h0 = h_finals[l]
        layer_in, _, _ = _lstm_layer_ref(layer_in, params["dec_lstm"][l],
                                         h0, h0)
    out = layer_in @ params["w2"].T
    return out.transpose(1, 0, 2)


# ---------------------------------------------------------------------------
if __name__ == "__main__":
    n_layers = 2
    hidden = 32
    src_input_size = 16
    tgt_input_size = 12
    B, S_en, S_de = 2, 8, 6

    key = jax.random.PRNGKey(0)
    k_par, k_en, k_de = jax.random.split(key, 3)
    params = init_params(k_par, n_layers, hidden, src_input_size,
                         tgt_input_size)
    prepped = prepare_params(params, hidden)   # one-time transpose/pad/bf16

    x_en = jax.random.normal(k_en, (B, S_en, src_input_size), jnp.float32)
    x_de = jax.random.normal(k_de, (B, S_de, tgt_input_size), jnp.float32)

    fwd = jax.jit(functools.partial(rnn_forward, n_layers=n_layers,
                                    hidden=hidden))
    out = jax.block_until_ready(fwd(prepped, x_en, x_de))
    assert out.shape == (B, S_de, 1), out.shape

    ref = rnn_forward_ref(params, x_en, x_de, n_layers, hidden)
    max_err = float(jnp.max(jnp.abs(out - ref)))
    # bf16 MXU operands / bf16 HBM activations -> looser tolerance than f32.
    assert jnp.allclose(out, ref, atol=3e-2, rtol=3e-2), max_err

    print("KERNEL_OK")
</pallas_src>

<mosaic_0001>
module attributes {stable_mosaic.version = 11 : i64} {
  func.func @_matmul_kernel(%arg0: i32, %arg1: i32, %arg2: i32, %arg3: memref<48x128xbf16, #tpu.memory_space<vmem>>, %arg4: memref<128x128xbf16, #tpu.memory_space<vmem>>, %arg5: memref<1x128xf32, #tpu.memory_space<vmem>>, %arg6: memref<48x128xbf16, #tpu.memory_space<vmem>>, %arg7: memref<48x128xf32, #tpu.memory_space<vmem>>) attributes {dimension_semantics = [#tpu.dimension_semantics<parallel>, #tpu.dimension_semantics<parallel>, #tpu.dimension_semantics<arbitrary>], iteration_bounds = array<i64: 1, 1, 1>, scalar_prefetch = 0 : i64, scratch_operands = 1 : i64, tpu.core_type = #tpu.core_type<tc>, window_params = [{transform_indices = @transform_0, window_bounds = array<i64: 48, 128>}, {transform_indices = @transform_1, window_bounds = array<i64: 128, 128>}, {transform_indices = @transform_2, window_bounds = array<i64: 1, 128>}, {transform_indices = @transform_3, window_bounds = array<i64: 48, 128>}]} {
    %c0_i32 = arith.constant 0 : i32
    %0 = arith.cmpi eq, %arg2, %c0_i32 : i32
    %1 = arith.extui %0 : i1 to i32
    %c0_i32_0 = arith.constant 0 : i32
    %2 = arith.cmpi ne, %1, %c0_i32_0 : i32
    scf.if %2 {
      %cst_10 = arith.constant 0.000000e+00 : f32
      %12 = vector.broadcast %cst_10 : f32 to vector<48x128xf32>
      %c0_11 = arith.constant 0 : index
      %c0_12 = arith.constant 0 : index
      %13 = vector.load %arg7[%c0_11, %c0_12] : memref<48x128xf32, #tpu.memory_space<vmem>>, vector<48x128xf32>
      tpu.vector_store %arg7[%c0_11, %c0_12], %12 {strides = array<i32>} : memref<48x128xf32, #tpu.memory_space<vmem>>, vector<48x128xf32>,
    } else {
    }
    %c0 = arith.constant 0 : index
    %c0_1 = arith.constant 0 : index
    %3 = vector.load %arg7[%c0, %c0_1] : memref<48x128xf32, #tpu.memory_space<vmem>>, vector<48x128xf32>
    %c0_2 = arith.constant 0 : index
    %c0_3 = arith.constant 0 : index
    %4 = vector.load %arg3[%c0_2, %c0_3] : memref<48x128xbf16, #tpu.memory_space<vmem>>, vector<48x128xbf16>
    %c0_4 = arith.constant 0 : index
    %c0_5 = arith.constant 0 : index
    %5 = vector.load %arg4[%c0_4, %c0_5] : memref<128x128xbf16, #tpu.memory_space<vmem>>, vector<128x128xbf16>
    %cst = arith.constant dense<0.000000e+00> : vector<48x128xf32>
    %6 = tpu.matmul %4, %5, %cst {dimension_numbers = #tpu.dot_dimension_numbers<[1], [0], [0], [1], [0, 0, 1, 1], [], []>} : vector<48x128xbf16>, vector<128x128xbf16>, vector<48x128xf32> -> vector<48x128xf32>
    %7 = arith.addf %3, %6 : vector<48x128xf32>
    %c0_6 = arith.constant 0 : index
    %c0_7 = arith.constant 0 : index
    %8 = vector.load %arg7[%c0_6, %c0_7] : memref<48x128xf32, #tpu.memory_space<vmem>>, vector<48x128xf32>
    tpu.vector_store %arg7[%c0_6, %c0_7], %7 {strides = array<i32>} : memref<48x128xf32, #tpu.memory_space<vmem>>, vector<48x128xf32>,
    %c0_i32_8 = arith.constant 0 : i32
    %9 = arith.cmpi eq, %arg2, %c0_i32_8 : i32
    %10 = arith.extui %9 : i1 to i32
    %c0_i32_9 = arith.constant 0 : i32
    %11 = arith.cmpi ne, %10, %c0_i32_9 : i32
    scf.if %11 {
      %c0_10 = arith.constant 0 : index
      %c0_11 = arith.constant 0 : index
      %12 = vector.load %arg7[%c0_10, %c0_11] : memref<48x128xf32, #tpu.memory_space<vmem>>, vector<48x128xf32>
      %c0_12 = arith.constant 0 : index
      %c0_13 = arith.constant 0 : index
      %13 = vector.load %arg5[%c0_12, %c0_13] : memref<1x128xf32, #tpu.memory_space<vmem>>, vector<1x128xf32>
      %14 = vector.broadcast %13 : vector<1x128xf32> to vector<48x128xf32>
      %15 = arith.addf %12, %14 : vector<48x128xf32>
      %16 = arith.truncf %15 : vector<48x128xf32> to vector<48x128xbf16>
      %c0_14 = arith.constant 0 : index
      %c0_15 = arith.constant 0 : index
      %17 = vector.load %arg6[%c0_14, %c0_15] : memref<48x128xbf16, #tpu.memory_space<vmem>>, vector<48x128xbf16>
      tpu.vector_store %arg6[%c0_14, %c0_15], %16 {strides = array<i32>} : memref<48x128xbf16, #tpu.memory_space<vmem>>, vector<48x128xbf16>,
    } else {
    }
    return
  }
  func.func @transform_0(%arg0: i32, %arg1: i32, %arg2: i32) -> (i32, i32) {
    %c0_i32 = arith.constant 0 : i32
    return %arg0, %arg2 : i32, i32
  }
  func.func @transform_1(%arg0: i32, %arg1: i32, %arg2: i32) -> (i32, i32) {
    %c0_i32 = arith.constant 0 : i32
    return %arg2, %arg1 : i32, i32
  }
  func.func @transform_2(%arg0: i32, %arg1: i32, %arg2: i32) -> (i32, i32) {
    %c0_i32 = arith.constant 0 : i32
    %c0_i32_0 = arith.constant 0 : i32
    return %c0_i32, %arg1 : i32, i32
  }
  func.func @transform_3(%arg0: i32, %arg1: i32, %arg2: i32) -> (i32, i32) {
    %c0_i32 = arith.constant 0 : i32
    return %arg0, %arg1 : i32, i32
  }
}

module attributes {stable_mosaic.version = 11 : i64} {
  func.func @_matmul_kernel(%arg0: i32, %arg1: i32, %arg2: i32, %arg3: memref<64x128xbf16, #tpu.memory_space<vmem>>, %arg4: memref<128x128xbf16, #tpu.memory_space<vmem>>, %arg5: memref<1x128xf32, #tpu.memory_space<vmem>>, %arg6: memref<64x128xbf16, #tpu.memory_space<vmem>>, %arg7: memref<64x128xf32, #tpu.memory_space<vmem>>) attributes {dimension_semantics = [#tpu.dimension_semantics<parallel>, #tpu.dimension_semantics<parallel>, #tpu.dimension_semantics<arbitrary>], iteration_bounds = array<i64: 1, 1, 1>, scalar_prefetch = 0 : i64, scratch_operands = 1 : i64, tpu.core_type = #tpu.core_type<tc>, window_params = [{transform_indices = @transform_0, window_bounds = array<i64: 64, 128>}, {transform_indices = @transform_1, window_bounds = array<i64: 128, 128>}, {transform_indices = @transform_2, window_bounds = array<i64: 1, 128>}, {transform_indices = @transform_3, window_bounds = array<i64: 64, 128>}]} {
    %c0_i32 = arith.constant 0 : i32
    %0 = arith.cmpi eq, %arg2, %c0_i32 : i32
    %1 = arith.extui %0 : i1 to i32
    %c0_i32_0 = arith.constant 0 : i32
    %2 = arith.cmpi ne, %1, %c0_i32_0 : i32
    scf.if %2 {
      %cst_10 = arith.constant 0.000000e+00 : f32
      %12 = vector.broadcast %cst_10 : f32 to vector<64x128xf32>
      %c0_11 = arith.constant 0 : index
      %c0_12 = arith.constant 0 : index
      %13 = vector.load %arg7[%c0_11, %c0_12] : memref<64x128xf32, #tpu.memory_space<vmem>>, vector<64x128xf32>
      tpu.vector_store %arg7[%c0_11, %c0_12], %12 {strides = array<i32>} : memref<64x128xf32, #tpu.memory_space<vmem>>, vector<64x128xf32>,
    } else {
    }
    %c0 = arith.constant 0 : index
    %c0_1 = arith.constant 0 : index
    %3 = vector.load %arg7[%c0, %c0_1] : memref<64x128xf32, #tpu.memory_space<vmem>>, vector<64x128xf32>
    %c0_2 = arith.constant 0 : index
    %c0_3 = arith.constant 0 : index
    %4 = vector.load %arg3[%c0_2, %c0_3] : memref<64x128xbf16, #tpu.memory_space<vmem>>, vector<64x128xbf16>
    %c0_4 = arith.constant 0 : index
    %c0_5 = arith.constant 0 : index
    %5 = vector.load %arg4[%c0_4, %c0_5] : memref<128x128xbf16, #tpu.memory_space<vmem>>, vector<128x128xbf16>
    %cst = arith.constant dense<0.000000e+00> : vector<64x128xf32>
    %6 = tpu.matmul %4, %5, %cst {dimension_numbers = #tpu.dot_dimension_numbers<[1], [0], [0], [1], [0, 0, 1, 1], [], []>} : vector<64x128xbf16>, vector<128x128xbf16>, vector<64x128xf32> -> vector<64x128xf32>
    %7 = arith.addf %3, %6 : vector<64x128xf32>
    %c0_6 = arith.constant 0 : index
    %c0_7 = arith.constant 0 : index
    %8 = vector.load %arg7[%c0_6, %c0_7] : memref<64x128xf32, #tpu.memory_space<vmem>>, vector<64x128xf32>
    tpu.vector_store %arg7[%c0_6, %c0_7], %7 {strides = array<i32>} : memref<64x128xf32, #tpu.memory_space<vmem>>, vector<64x128xf32>,
    %c0_i32_8 = arith.constant 0 : i32
    %9 = arith.cmpi eq, %arg2, %c0_i32_8 : i32
    %10 = arith.extui %9 : i1 to i32
    %c0_i32_9 = arith.constant 0 : i32
    %11 = arith.cmpi ne, %10, %c0_i32_9 : i32
    scf.if %11 {
      %c0_10 = arith.constant 0 : index
      %c0_11 = arith.constant 0 : index
      %12 = vector.load %arg7[%c0_10, %c0_11] : memref<64x128xf32, #tpu.memory_space<vmem>>, vector<64x128xf32>
      %c0_12 = arith.constant 0 : index
      %c0_13 = arith.constant 0 : index
      %13 = vector.load %arg5[%c0_12, %c0_13] : memref<1x128xf32, #tpu.memory_space<vmem>>, vector<1x128xf32>
      %14 = vector.broadcast %13 : vector<1x128xf32> to vector<64x128xf32>
      %15 = arith.addf %12, %14 : vector<64x128xf32>
      %16 = arith.truncf %15 : vector<64x128xf32> to vector<64x128xbf16>
      %c0_14 = arith.constant 0 : index
      %c0_15 = arith.constant 0 : index
      %17 = vector.load %arg6[%c0_14, %c0_15] : memref<64x128xbf16, #tpu.memory_space<vmem>>, vector<64x128xbf16>
      tpu.vector_store %arg6[%c0_14, %c0_15], %16 {strides = array<i32>} : memref<64x128xbf16, #tpu.memory_space<vmem>>, vector<64x128xbf16>,
    } else {
    }
    return
  }
  func.func @transform_0(%arg0: i32, %arg1: i32, %arg2: i32) -> (i32, i32) {
    %c0_i32 = arith.constant 0 : i32
    return %arg0, %arg2 : i32, i32
  }
  func.func @transform_1(%arg0: i32, %arg1: i32, %arg2: i32) -> (i32, i32) {
    %c0_i32 = arith.constant 0 : i32
    return %arg2, %arg1 : i32, i32
  }
  func.func @transform_2(%arg0: i32, %arg1: i32, %arg2: i32) -> (i32, i32) {
    %c0_i32 = arith.constant 0 : i32
    %c0_i32_0 = arith.constant 0 : i32
    return %c0_i32, %arg1 : i32, i32
  }
  func.func @transform_3(%arg0: i32, %arg1: i32, %arg2: i32) -> (i32, i32) {
    %c0_i32 = arith.constant 0 : i32
    return %arg0, %arg1 : i32, i32
  }
}

module attributes {stable_mosaic.version = 11 : i64} {
  func.func @_matmul_kernel(%arg0: i32, %arg1: i32, %arg2: i32, %arg3: memref<64x128xbf16, #tpu.memory_space<vmem>>, %arg4: memref<128x512xbf16, #tpu.memory_space<vmem>>, %arg5: memref<1x512xf32, #tpu.memory_space<vmem>>, %arg6: memref<64x512xbf16, #tpu.memory_space<vmem>>, %arg7: memref<64x512xf32, #tpu.memory_space<vmem>>) attributes {dimension_semantics = [#tpu.dimension_semantics<parallel>, #tpu.dimension_semantics<parallel>, #tpu.dimension_semantics<arbitrary>], iteration_bounds = array<i64: 1, 1, 1>, scalar_prefetch = 0 : i64, scratch_operands = 1 : i64, tpu.core_type = #tpu.core_type<tc>, window_params = [{transform_indices = @transform_0, window_bounds = array<i64: 64, 128>}, {transform_indices = @transform_1, window_bounds = array<i64: 128, 512>}, {transform_indices = @transform_2, window_bounds = array<i64: 1, 512>}, {transform_indices = @transform_3, window_bounds = array<i64: 64, 512>}]} {
    %c0_i32 = arith.constant 0 : i32
    %0 = arith.cmpi eq, %arg2, %c0_i32 : i32
    %1 = arith.extui %0 : i1 to i32
    %c0_i32_0 = arith.constant 0 : i32
    %2 = arith.cmpi ne, %1, %c0_i32_0 : i32
    scf.if %2 {
      %cst_10 = arith.constant 0.000000e+00 : f32
      %12 = vector.broadcast %cst_10 : f32 to vector<64x512xf32>
      %c0_11 = arith.constant 0 : index
      %c0_12 = arith.constant 0 : index
      %13 = vector.load %arg7[%c0_11, %c0_12] : memref<64x512xf32, #tpu.memory_space<vmem>>, vector<64x512xf32>
      tpu.vector_store %arg7[%c0_11, %c0_12], %12 {strides = array<i32>} : memref<64x512xf32, #tpu.memory_space<vmem>>, vector<64x512xf32>,
    } else {
    }
    %c0 = arith.constant 0 : index
    %c0_1 = arith.constant 0 : index
    %3 = vector.load %arg7[%c0, %c0_1] : memref<64x512xf32, #tpu.memory_space<vmem>>, vector<64x512xf32>
    %c0_2 = arith.constant 0 : index
    %c0_3 = arith.constant 0 : index
    %4 = vector.load %arg3[%c0_2, %c0_3] : memref<64x128xbf16, #tpu.memory_space<vmem>>, vector<64x128xbf16>
    %c0_4 = arith.constant 0 : index
    %c0_5 = arith.constant 0 : index
    %5 = vector.load %arg4[%c0_4, %c0_5] : memref<128x512xbf16, #tpu.memory_space<vmem>>, vector<128x512xbf16>
    %cst = arith.constant dense<0.000000e+00> : vector<64x512xf32>
    %6 = tpu.matmul %4, %5, %cst {dimension_numbers = #tpu.dot_dimension_numbers<[1], [0], [0], [1], [0, 0, 1, 1], [], []>} : vector<64x128xbf16>, vector<128x512xbf16>, vector<64x512xf32> -> vector<64x512xf32>
    %7 = arith.addf %3, %6 : vector<64x512xf32>
    %c0_6 = arith.constant 0 : index
    %c0_7 = arith.constant 0 : index
    %8 = vector.load %arg7[%c0_6, %c0_7] : memref<64x512xf32, #tpu.memory_space<vmem>>, vector<64x512xf32>
    tpu.vector_store %arg7[%c0_6, %c0_7], %7 {strides = array<i32>} : memref<64x512xf32, #tpu.memory_space<vmem>>, vector<64x512xf32>,
    %c0_i32_8 = arith.constant 0 : i32
    %9 = arith.cmpi eq, %arg2, %c0_i32_8 : i32
    %10 = arith.extui %9 : i1 to i32
    %c0_i32_9 = arith.constant 0 : i32
    %11 = arith.cmpi ne, %10, %c0_i32_9 : i32
    scf.if %11 {
      %c0_10 = arith.constant 0 : index
      %c0_11 = arith.constant 0 : index
      %12 = vector.load %arg7[%c0_10, %c0_11] : memref<64x512xf32, #tpu.memory_space<vmem>>, vector<64x512xf32>
      %c0_12 = arith.constant 0 : index
      %c0_13 = arith.constant 0 : index
      %13 = vector.load %arg5[%c0_12, %c0_13] : memref<1x512xf32, #tpu.memory_space<vmem>>, vector<1x512xf32>
      %14 = vector.broadcast %13 : vector<1x512xf32> to vector<64x512xf32>
      %15 = arith.addf %12, %14 : vector<64x512xf32>
      %16 = arith.truncf %15 : vector<64x512xf32> to vector<64x512xbf16>
      %c0_14 = arith.constant 0 : index
      %c0_15 = arith.constant 0 : index
      %17 = vector.load %arg6[%c0_14, %c0_15] : memref<64x512xbf16, #tpu.memory_space<vmem>>, vector<64x512xbf16>
      tpu.vector_store %arg6[%c0_14, %c0_15], %16 {strides = array<i32>} : memref<64x512xbf16, #tpu.memory_space<vmem>>, vector<64x512xbf16>,
    } else {
    }
    return
  }
  func.func @transform_0(%arg0: i32, %arg1: i32, %arg2: i32) -> (i32, i32) {
    %c0_i32 = arith.constant 0 : i32
    return %arg0, %arg2 : i32, i32
  }
  func.func @transform_1(%arg0: i32, %arg1: i32, %arg2: i32) -> (i32, i32) {
    %c0_i32 = arith.constant 0 : i32
    return %arg2, %arg1 : i32, i32
  }
  func.func @transform_2(%arg0: i32, %arg1: i32, %arg2: i32) -> (i32, i32) {
    %c0_i32 = arith.constant 0 : i32
    %c0_i32_0 = arith.constant 0 : i32
    return %c0_i32, %arg1 : i32, i32
  }
  func.func @transform_3(%arg0: i32, %arg1: i32, %arg2: i32) -> (i32, i32) {
    %c0_i32 = arith.constant 0 : i32
    return %arg0, %arg1 : i32, i32
  }
}

module attributes {stable_mosaic.version = 11 : i64} {
  func.func @_lstm_scan_kernel(%arg0: i32, %arg1: i32, %arg2: memref<8x8x512xbf16, #tpu.memory_space<vmem>>, %arg3: memref<128x512xbf16, #tpu.memory_space<vmem>>, %arg4: memref<8x128xf32, #tpu.memory_space<vmem>>, %arg5: memref<8x128xf32, #tpu.memory_space<vmem>>, %arg6: memref<8x8x128xbf16, #tpu.memory_space<vmem>>, %arg7: memref<8x128xf32, #tpu.memory_space<vmem>>, %arg8: memref<8x128xf32, #tpu.memory_space<vmem>>, %arg9: memref<8x128xf32, #tpu.memory_space<vmem>>) attributes {dimension_semantics = [#tpu.dimension_semantics<parallel>, #tpu.dimension_semantics<arbitrary>], iteration_bounds = array<i64: 1, 1>, scalar_prefetch = 0 : i64, scratch_operands = 2 : i64, tpu.core_type = #tpu.core_type<tc>, window_params = [{transform_indices = @transform_0, window_bounds = array<i64: 8, 8, 512>}, {pipeline_mode = #tpu.pipeline_mode<synchronous>, transform_indices = @transform_1, window_bounds = array<i64: 128, 512>}, {transform_indices = @transform_2, window_bounds = array<i64: 8, 128>}, {transform_indices = @transform_3, window_bounds = array<i64: 8, 128>}, {transform_indices = @transform_4, window_bounds = array<i64: 8, 8, 128>}, {transform_indices = @transform_5, window_bounds = array<i64: 8, 128>}]} {
    %c0_i32 = arith.constant 0 : i32
    %0 = arith.cmpi eq, %arg1, %c0_i32 : i32
    %1 = arith.extui %0 : i1 to i32
    %c0_i32_0 = arith.constant 0 : i32
    %2 = arith.cmpi ne, %1, %c0_i32_0 : i32
    scf.if %2 {
      %c0_90 = arith.constant 0 : index
      %c0_91 = arith.constant 0 : index
      %314 = vector.load %arg4[%c0_90, %c0_91] : memref<8x128xf32, #tpu.memory_space<vmem>>, vector<8x128xf32>
      %c0_92 = arith.constant 0 : index
      %c0_93 = arith.constant 0 : index
      %315 = vector.load %arg8[%c0_92, %c0_93] : memref<8x128xf32, #tpu.memory_space<vmem>>, vector<8x128xf32>
      tpu.vector_store %arg8[%c0_92, %c0_93], %314 {strides = array<i32>} : memref<8x128xf32, #tpu.memory_space<vmem>>, vector<8x128xf32>,
      %c0_94 = arith.constant 0 : index
      %c0_95 = arith.constant 0 : index
      %316 = vector.load %arg5[%c0_94, %c0_95] : memref<8x128xf32, #tpu.memory_space<vmem>>, vector<8x128xf32>
      %c0_96 = arith.constant 0 : index
      %c0_97 = arith.constant 0 : index
      %317 = vector.load %arg9[%c0_96, %c0_97] : memref<8x128xf32, #tpu.memory_space<vmem>>, vector<8x128xf32>
      tpu.vector_store %arg9[%c0_96, %c0_97], %316 {strides = array<i32>} : memref<8x128xf32, #tpu.memory_space<vmem>>, vector<8x128xf32>,
    } else {
    }
    %c0 = arith.constant 0 : index
    %c0_1 = arith.constant 0 : index
    %3 = vector.load %arg8[%c0, %c0_1] : memref<8x128xf32, #tpu.memory_space<vmem>>, vector<8x128xf32>
    %c0_2 = arith.constant 0 : index
    %c0_3 = arith.constant 0 : index
    %4 = vector.load %arg9[%c0_2, %c0_3] : memref<8x128xf32, #tpu.memory_space<vmem>>, vector<8x128xf32>
    %c0_i32_4 = arith.constant 0 : i32
    %5 = arith.index_cast %c0_i32_4 : i32 to index
    %c0_5 = arith.constant 0 : index
    %c0_6 = arith.constant 0 : index
    %6 = vector.load %arg2[%5, %c0_5, %c0_6] : memref<8x8x512xbf16, #tpu.memory_space<vmem>>, vector<1x8x512xbf16>
    %7 = vector.shape_cast %6 : vector<1x8x512xbf16> to vector<8x512xbf16>
    %8 = arith.extf %7 : vector<8x512xbf16> to vector<8x512xf32>
    %9 = arith.truncf %3 : vector<8x128xf32> to vector<8x128xbf16>
    %c0_7 = arith.constant 0 : index
    %c0_8 = arith.constant 0 : index
    %10 = vector.load %arg3[%c0_7, %c0_8] : memref<128x512xbf16, #tpu.memory_space<vmem>>, vector<128x512xbf16>
    %cst = arith.constant dense<0.000000e+00> : vector<8x512xf32>
    %11 = tpu.matmul %9, %10, %cst {dimension_numbers = #tpu.dot_dimension_numbers<[1], [0], [0], [1], [0, 0, 1, 1], [], []>} : vector<8x128xbf16>, vector<128x512xbf16>, vector<8x512xf32> -> vector<8x512xf32>
    %12 = arith.addf %8, %11 : vector<8x512xf32>
    %13 = vector.extract_strided_slice %12 {offsets = [0, 0], sizes = [8, 128], strides = [1, 1]} : vector<8x512xf32> to vector<8x128xf32>
    %14 = arith.negf %13 : vector<8x128xf32>
    %15 = math.exp %14 : vector<8x128xf32>
    %cst_9 = arith.constant 1.000000e+00 : f32
    %16 = vector.broadcast %cst_9 : f32 to vector<8x128xf32>
    %17 = arith.addf %16, %15 : vector<8x128xf32>
    %18 = arith.divf %16, %17 : vector<8x128xf32>
    %19 = vector.extract_strided_slice %12 {offsets = [0, 128], sizes = [8, 128], strides = [1, 1]} : vector<8x512xf32> to vector<8x128xf32>
    %20 = arith.negf %19 : vector<8x128xf32>
    %21 = math.exp %20 : vector<8x128xf32>
    %cst_10 = arith.constant 1.000000e+00 : f32
    %22 = vector.broadcast %cst_10 : f32 to vector<8x128xf32>
    %23 = arith.addf %22, %21 : vector<8x128xf32>
    %24 = arith.divf %22, %23 : vector<8x128xf32>
    %25 = vector.extract_strided_slice %12 {offsets = [0, 256], sizes = [8, 128], strides = [1, 1]} : vector<8x512xf32> to vector<8x128xf32>
    %26 = math.tanh %25 : vector<8x128xf32>
    %27 = vector.extract_strided_slice %12 {offsets = [0, 384], sizes = [8, 128], strides = [1, 1]} : vector<8x512xf32> to vector<8x128xf32>
    %28 = arith.negf %27 : vector<8x128xf32>
    %29 = math.exp %28 : vector<8x128xf32>
    %cst_11 = arith.constant 1.000000e+00 : f32
    %30 = vector.broadcast %cst_11 : f32 to vector<8x128xf32>
    %31 = arith.addf %30, %29 : vector<8x128xf32>
    %32 = arith.divf %30, %31 : vector<8x128xf32>
    %33 = arith.mulf %24, %4 : vector<8x128xf32>
    %34 = arith.mulf %18, %26 : vector<8x128xf32>
    %35 = arith.addf %33, %34 : vector<8x128xf32>
    %36 = math.tanh %35 : vector<8x128xf32>
    %37 = arith.mulf %32, %36 : vector<8x128xf32>
    %38 = arith.truncf %37 : vector<8x128xf32> to vector<8x128xbf16>
    %39 = arith.index_cast %c0_i32_4 : i32 to index
    %c0_12 = arith.constant 0 : index
    %c0_13 = arith.constant 0 : index
    %40 = vector.load %arg6[%39, %c0_12, %c0_13] : memref<8x8x128xbf16, #tpu.memory_space<vmem>>, vector<1x8x128xbf16>
    %41 = vector.shape_cast %40 : vector<1x8x128xbf16> to vector<8x128xbf16>
    %42 = vector.shape_cast %38 : vector<8x128xbf16> to vector<1x8x128xbf16>
    tpu.vector_store %arg6[%39, %c0_12, %c0_13], %42 {strides = array<i32>} : memref<8x8x128xbf16, #tpu.memory_space<vmem>>, vector<1x8x128xbf16>,
    %c1_i32 = arith.constant 1 : i32
    %43 = arith.index_cast %c1_i32 : i32 to index
    %c0_14 = arith.constant 0 : index
    %c0_15 = arith.constant 0 : index
    %44 = vector.load %arg2[%43, %c0_14, %c0_15] : memref<8x8x512xbf16, #tpu.memory_space<vmem>>, vector<1x8x512xbf16>
    %45 = vector.shape_cast %44 : vector<1x8x512xbf16> to vector<8x512xbf16>
    %46 = arith.extf %45 : vector<8x512xbf16> to vector<8x512xf32>
    %47 = arith.truncf %37 : vector<8x128xf32> to vector<8x128xbf16>
    %c0_16 = arith.constant 0 : index
    %c0_17 = arith.constant 0 : index
    %48 = vector.load %arg3[%c0_16, %c0_17] : memref<128x512xbf16, #tpu.memory_space<vmem>>, vector<128x512xbf16>
    %cst_18 = arith.constant dense<0.000000e+00> : vector<8x512xf32>
    %49 = tpu.matmul %47, %48, %cst_18 {dimension_numbers = #tpu.dot_dimension_numbers<[1], [0], [0], [1], [0, 0, 1, 1], [], []>} : vector<8x128xbf16>, vector<128x512xbf16>, vector<8x512xf32> -> vector<8x512xf32>
    %50 = arith.addf %46, %49 : vector<8x512xf32>
    %51 = vector.extract_strided_slice %50 {offsets = [0, 0], sizes = [8, 128], strides = [1, 1]} : vector<8x512xf32> to vector<8x128xf32>
    %52 = arith.negf %51 : vector<8x128xf32>
    %53 = math.exp %52 : vector<8x128xf32>
    %cst_19 = arith.constant 1.000000e+00 : f32
    %54 = vector.broadcast %cst_19 : f32 to vector<8x128xf32>
    %55 = arith.addf %54, %53 : vector<8x128xf32>
    %56 = arith.divf %54, %55 : vector<8x128xf32>
    %57 = vector.extract_strided_slice %50 {offsets = [0, 128], sizes = [8, 128], strides = [1, 1]} : vector<8x512xf32> to vector<8x128xf32>
    %58 = arith.negf %57 : vector<8x128xf32>
    %59 = math.exp %58 : vector<8x128xf32>
    %cst_20 = arith.constant 1.000000e+00 : f32
    %60 = vector.broadcast %cst_20 : f32 to vector<8x128xf32>
    %61 = arith.addf %60, %59 : vector<8x128xf32>
    %62 = arith.divf %60, %61 : vector<8x128xf32>
    %63 = vector.extract_strided_slice %50 {offsets = [0, 256], sizes = [8, 128], strides = [1, 1]} : vector<8x512xf32> to vector<8x128xf32>
    %64 = math.tanh %63 : vector<8x128xf32>
    %65 = vector.extract_strided_slice %50 {offsets = [0, 384], sizes = [8, 128], strides = [1, 1]} : vector<8x512xf32> to vector<8x128xf32>
    %66 = arith.negf %65 : vector<8x128xf32>
    %67 = math.exp %66 : vector<8x128xf32>
    %cst_21 = arith.constant 1.000000e+00 : f32
    %68 = vector.broadcast %cst_21 : f32 to vector<8x128xf32>
    %69 = arith.addf %68, %67 : vector<8x128xf32>
    %70 = arith.divf %68, %69 : vector<8x128xf32>
    %71 = arith.mulf %62, %35 : vector<8x128xf32>
    %72 = arith.mulf %56, %64 : vector<8x128xf32>
    %73 = arith.addf %71, %72 : vector<8x128xf32>
    %74 = math.tanh %73 : vector<8x128xf32>
    %75 = arith.mulf %70, %74 : vector<8x128xf32>
    %76 = arith.truncf %75 : vector<8x128xf32> to vector<8x128xbf16>
    %77 = arith.index_cast %c1_i32 : i32 to index
    %c0_22 = arith.constant 0 : index
    %c0_23 = arith.constant 0 : index
    %78 = vector.load %arg6[%77, %c0_22, %c0_23] : memref<8x8x128xbf16, #tpu.memory_space<vmem>>, vector<1x8x128xbf16>
    %79 = vector.shape_cast %78 : vector<1x8x128xbf16> to vector<8x128xbf16>
    %80 = vector.shape_cast %76 : vector<8x128xbf16> to vector<1x8x128xbf16>
    tpu.vector_store %arg6[%77, %c0_22, %c0_23], %80 {strides = array<i32>} : memref<8x8x128xbf16, #tpu.memory_space<vmem>>, vector<1x8x128xbf16>,
    %c2_i32 = arith.constant 2 : i32
    %81 = arith.index_cast %c2_i32 : i32 to index
    %c0_24 = arith.constant 0 : index
    %c0_25 = arith.constant 0 : index
    %82 = vector.load %arg2[%81, %c0_24, %c0_25] : memref<8x8x512xbf16, #tpu.memory_space<vmem>>, vector<1x8x512xbf16>
    %83 = vector.shape_cast %82 : vector<1x8x512xbf16> to vector<8x512xbf16>
    %84 = arith.extf %83 : vector<8x512xbf16> to vector<8x512xf32>
    %85 = arith.truncf %75 : vector<8x128xf32> to vector<8x128xbf16>
    %c0_26 = arith.constant 0 : index
    %c0_27 = arith.constant 0 : index
    %86 = vector.load %arg3[%c0_26, %c0_27] : memref<128x512xbf16, #tpu.memory_space<vmem>>, vector<128x512xbf16>
    %cst_28 = arith.constant dense<0.000000e+00> : vector<8x512xf32>
    %87 = tpu.matmul %85, %86, %cst_28 {dimension_numbers = #tpu.dot_dimension_numbers<[1], [0], [0], [1], [0, 0, 1, 1], [], []>} : vector<8x128xbf16>, vector<128x512xbf16>, vector<8x512xf32> -> vector<8x512xf32>
    %88 = arith.addf %84, %87 : vector<8x512xf32>
    %89 = vector.extract_strided_slice %88 {offsets = [0, 0], sizes = [8, 128], strides = [1, 1]} : vector<8x512xf32> to vector<8x128xf32>
    %90 = arith.negf %89 : vector<8x128xf32>
    %91 = math.exp %90 : vector<8x128xf32>
    %cst_29 = arith.constant 1.000000e+00 : f32
    %92 = vector.broadcast %cst_29 : f32 to vector<8x128xf32>
    %93 = arith.addf %92, %91 : vector<8x128xf32>
    %94 = arith.divf %92, %93 : vector<8x128xf32>
    %95 = vector.extract_strided_slice %88 {offsets = [0, 128], sizes = [8, 128], strides = [1, 1]} : vector<8x512xf32> to vector<8x128xf32>
    %96 = arith.negf %95 : vector<8x128xf32>
    %97 = math.exp %96 : vector<8x128xf32>
    %cst_30 = arith.constant 1.000000e+00 : f32
    %98 = vector.broadcast %cst_30 : f32 to vector<8x128xf32>
    %99 = arith.addf %98, %97 : vector<8x128xf32>
    %100 = arith.divf %98, %99 : vector<8x128xf32>
    %101 = vector.extract_strided_slice %88 {offsets = [0, 256], sizes = [8, 128], strides = [1, 1]} : vector<8x512xf32> to vector<8x128xf32>
    %102 = math.tanh %101 : vector<8x128xf32>
    %103 = vector.extract_strided_slice %88 {offsets = [0, 384], sizes = [8, 128], strides = [1, 1]} : vector<8x512xf32> to vector<8x128xf32>
    %104 = arith.negf %103 : vector<8x128xf32>
    %105 = math.exp %104 : vector<8x128xf32>
    %cst_31 = arith.constant 1.000000e+00 : f32
    %106 = vector.broadcast %cst_31 : f32 to vector<8x128xf32>
    %107 = arith.addf %106, %105 : vector<8x128xf32>
    %108 = arith.divf %106, %107 : vector<8x128xf32>
    %109 = arith.mulf %100, %73 : vector<8x128xf32>
    %110 = arith.mulf %94, %102 : vector<8x128xf32>
    %111 = arith.addf %109, %110 : vector<8x128xf32>
    %112 = math.tanh %111 : vector<8x128xf32>
    %113 = arith.mulf %108, %112 : vector<8x128xf32>
    %114 = arith.truncf %113 : vector<8x128xf32> to vector<8x128xbf16>
    %115 = arith.index_cast %c2_i32 : i32 to index
    %c0_32 = arith.constant 0 : index
    %c0_33 = arith.constant 0 : index
    %116 = vector.load %arg6[%115, %c0_32, %c0_33] : memref<8x8x128xbf16, #tpu.memory_space<vmem>>, vector<1x8x128xbf16>
    %117 = vector.shape_cast %116 : vector<1x8x128xbf16> to vector<8x128xbf16>
    %118 = vector.shape_cast %114 : vector<8x128xbf16> to vector<1x8x128xbf16>
    tpu.vector_store %arg6[%115, %c0_32, %c0_33], %118 {strides = array<i32>} : memref<8x8x128xbf16, #tpu.memory_space<vmem>>, vector<1x8x128xbf16>,
    %c3_i32 = arith.constant 3 : i32
    %119 = arith.index_cast %c3_i32 : i32 to index
    %c0_34 = arith.constant 0 : index
    %c0_35 = arith.constant 0 : index
    %120 = vector.load %arg2[%119, %c0_34, %c0_35] : memref<8x8x512xbf16, #tpu.memory_space<vmem>>, vector<1x8x512xbf16>
    %121 = vector.shape_cast %120 : vector<1x8x512xbf16> to vector<8x512xbf16>
    %122 = arith.extf %121 : vector<8x512xbf16> to vector<8x512xf32>
    %123 = arith.truncf %113 : vector<8x128xf32> to vector<8x128xbf16>
    %c0_36 = arith.constant 0 : index
    %c0_37 = arith.constant 0 : index
    %124 = vector.load %arg3[%c0_36, %c0_37] : memref<128x512xbf16, #tpu.memory_space<vmem>>, vector<128x512xbf16>
    %cst_38 = arith.constant dense<0.000000e+00> : vector<8x512xf32>
    %125 = tpu.matmul %123, %124, %cst_38 {dimension_numbers = #tpu.dot_dimension_numbers<[1], [0], [0], [1], [0, 0, 1, 1], [], []>} : vector<8x128xbf16>, vector<128x512xbf16>, vector<8x512xf32> -> vector<8x512xf32>
    %126 = arith.addf %122, %125 : vector<8x512xf32>
    %127 = vector.extract_strided_slice %126 {offsets = [0, 0], sizes = [8, 128], strides = [1, 1]} : vector<8x512xf32> to vector<8x128xf32>
    %128 = arith.negf %127 : vector<8x128xf32>
    %129 = math.exp %128 : vector<8x128xf32>
    %cst_39 = arith.constant 1.000000e+00 : f32
    %130 = vector.broadcast %cst_39 : f32 to vector<8x128xf32>
    %131 = arith.addf %130, %129 : vector<8x128xf32>
    %132 = arith.divf %130, %131 : vector<8x128xf32>
    %133 = vector.extract_strided_slice %126 {offsets = [0, 128], sizes = [8, 128], strides = [1, 1]} : vector<8x512xf32> to vector<8x128xf32>
    %134 = arith.negf %133 : vector<8x128xf32>
    %135 = math.exp %134 : vector<8x128xf32>
    %cst_40 = arith.constant 1.000000e+00 : f32
    %136 = vector.broadcast %cst_40 : f32 to vector<8x128xf32>
    %137 = arith.addf %136, %135 : vector<8x128xf32>
    %138 = arith.divf %136, %137 : vector<8x128xf32>
    %139 = vector.extract_strided_slice %126 {offsets = [0, 256], sizes = [8, 128], strides = [1, 1]} : vector<8x512xf32> to vector<8x128xf32>
    %140 = math.tanh %139 : vector<8x128xf32>
    %141 = vector.extract_strided_slice %126 {offsets = [0, 384], sizes = [8, 128], strides = [1, 1]} : vector<8x512xf32> to vector<8x128xf32>
    %142 = arith.negf %141 : vector<8x128xf32>
    %143 = math.exp %142 : vector<8x128xf32>
    %cst_41 = arith.constant 1.000000e+00 : f32
    %144 = vector.broadcast %cst_41 : f32 to vector<8x128xf32>
    %145 = arith.addf %144, %143 : vector<8x128xf32>
    %146 = arith.divf %144, %145 : vector<8x128xf32>
    %147 = arith.mulf %138, %111 : vector<8x128xf32>
    %148 = arith.mulf %132, %140 : vector<8x128xf32>
    %149 = arith.addf %147, %148 : vector<8x128xf32>
    %150 = math.tanh %149 : vector<8x128xf32>
    %151 = arith.mulf %146, %150 : vector<8x128xf32>
    %152 = arith.truncf %151 : vector<8x128xf32> to vector<8x128xbf16>
    %153 = arith.index_cast %c3_i32 : i32 to index
    %c0_42 = arith.constant 0 : index
    %c0_43 = arith.constant 0 : index
    %154 = vector.load %arg6[%153, %c0_42, %c0_43] : memref<8x8x128xbf16, #tpu.memory_space<vmem>>, vector<1x8x128xbf16>
    %155 = vector.shape_cast %154 : vector<1x8x128xbf16> to vector<8x128xbf16>
    %156 = vector.shape_cast %152 : vector<8x128xbf16> to vector<1x8x128xbf16>
    tpu.vector_store %arg6[%153, %c0_42, %c0_43], %156 {strides = array<i32>} : memref<8x8x128xbf16, #tpu.memory_space<vmem>>, vector<1x8x128xbf16>,
    %c4_i32 = arith.constant 4 : i32
    %157 = arith.index_cast %c4_i32 : i32 to index
    %c0_44 = arith.constant 0 : index
    %c0_45 = arith.constant 0 : index
    %158 = vector.load %arg2[%157, %c0_44, %c0_45] : memref<8x8x512xbf16, #tpu.memory_space<vmem>>, vector<1x8x512xbf16>
    %159 = vector.shape_cast %158 : vector<1x8x512xbf16> to vector<8x512xbf16>
    %160 = arith.extf %159 : vector<8x512xbf16> to vector<8x512xf32>
    %161 = arith.truncf %151 : vector<8x128xf32> to vector<8x128xbf16>
    %c0_46 = arith.constant 0 : index
    %c0_47 = arith.constant 0 : index
    %162 = vector.load %arg3[%c0_46, %c0_47] : memref<128x512xbf16, #tpu.memory_space<vmem>>, vector<128x512xbf16>
    %cst_48 = arith.constant dense<0.000000e+00> : vector<8x512xf32>
    %163 = tpu.matmul %161, %162, %cst_48 {dimension_numbers = #tpu.dot_dimension_numbers<[1], [0], [0], [1], [0, 0, 1, 1], [], []>} : vector<8x128xbf16>, vector<128x512xbf16>, vector<8x512xf32> -> vector<8x512xf32>
    %164 = arith.addf %160, %163 : vector<8x512xf32>
    %165 = vector.extract_strided_slice %164 {offsets = [0, 0], sizes = [8, 128], strides = [1, 1]} : vector<8x512xf32> to vector<8x128xf32>
    %166 = arith.negf %165 : vector<8x128xf32>
    %167 = math.exp %166 : vector<8x128xf32>
    %cst_49 = arith.constant 1.000000e+00 : f32
    %168 = vector.broadcast %cst_49 : f32 to vector<8x128xf32>
    %169 = arith.addf %168, %167 : vector<8x128xf32>
    %170 = arith.divf %168, %169 : vector<8x128xf32>
    %171 = vector.extract_strided_slice %164 {offsets = [0, 128], sizes = [8, 128], strides = [1, 1]} : vector<8x512xf32> to vector<8x128xf32>
    %172 = arith.negf %171 : vector<8x128xf32>
    %173 = math.exp %172 : vector<8x128xf32>
    %cst_50 = arith.constant 1.000000e+00 : f32
    %174 = vector.broadcast %cst_50 : f32 to vector<8x128xf32>
    %175 = arith.addf %174, %173 : vector<8x128xf32>
    %176 = arith.divf %174, %175 : vector<8x128xf32>
    %177 = vector.extract_strided_slice %164 {offsets = [0, 256], sizes = [8, 128], strides = [1, 1]} : vector<8x512xf32> to vector<8x128xf32>
    %178 = math.tanh %177 : vector<8x128xf32>
    %179 = vector.extract_strided_slice %164 {offsets = [0, 384], sizes = [8, 128], strides = [1, 1]} : vector<8x512xf32> to vector<8x128xf32>
    %180 = arith.negf %179 : vector<8x128xf32>
    %181 = math.exp %180 : vector<8x128xf32>
    %cst_51 = arith.constant 1.000000e+00 : f32
    %182 = vector.broadcast %cst_51 : f32 to vector<8x128xf32>
    %183 = arith.addf %182, %181 : vector<8x128xf32>
    %184 = arith.divf %182, %183 : vector<8x128xf32>
    %185 = arith.mulf %176, %149 : vector<8x128xf32>
    %186 = arith.mulf %170, %178 : vector<8x128xf32>
    %187 = arith.addf %185, %186 : vector<8x128xf32>
    %188 = math.tanh %187 : vector<8x128xf32>
    %189 = arith.mulf %184, %188 : vector<8x128xf32>
    %190 = arith.truncf %189 : vector<8x128xf32> to vector<8x128xbf16>
    %191 = arith.index_cast %c4_i32 : i32 to index
    %c0_52 = arith.constant 0 : index
    %c0_53 = arith.constant 0 : index
    %192 = vector.load %arg6[%191, %c0_52, %c0_53] : memref<8x8x128xbf16, #tpu.memory_space<vmem>>, vector<1x8x128xbf16>
    %193 = vector.shape_cast %192 : vector<1x8x128xbf16> to vector<8x128xbf16>
    %194 = vector.shape_cast %190 : vector<8x128xbf16> to vector<1x8x128xbf16>
    tpu.vector_store %arg6[%191, %c0_52, %c0_53], %194 {strides = array<i32>} : memref<8x8x128xbf16, #tpu.memory_space<vmem>>, vector<1x8x128xbf16>,
    %c5_i32 = arith.constant 5 : i32
    %195 = arith.index_cast %c5_i32 : i32 to index
    %c0_54 = arith.constant 0 : index
    %c0_55 = arith.constant 0 : index
    %196 = vector.load %arg2[%195, %c0_54, %c0_55] : memref<8x8x512xbf16, #tpu.memory_space<vmem>>, vector<1x8x512xbf16>
    %197 = vector.shape_cast %196 : vector<1x8x512xbf16> to vector<8x512xbf16>
    %198 = arith.extf %197 : vector<8x512xbf16> to vector<8x512xf32>
    %199 = arith.truncf %189 : vector<8x128xf32> to vector<8x128xbf16>
    %c0_56 = arith.constant 0 : index
    %c0_57 = arith.constant 0 : index
    %200 = vector.load %arg3[%c0_56, %c0_57] : memref<128x512xbf16, #tpu.memory_space<vmem>>, vector<128x512xbf16>
    %cst_58 = arith.constant dense<0.000000e+00> : vector<8x512xf32>
    %201 = tpu.matmul %199, %200, %cst_58 {dimension_numbers = #tpu.dot_dimension_numbers<[1], [0], [0], [1], [0, 0, 1, 1], [], []>} : vector<8x128xbf16>, vector<128x512xbf16>, vector<8x512xf32> -> vector<8x512xf32>
    %202 = arith.addf %198, %201 : vector<8x512xf32>
    %203 = vector.extract_strided_slice %202 {offsets = [0, 0], sizes = [8, 128], strides = [1, 1]} : vector<8x512xf32> to vector<8x128xf32>
    %204 = arith.negf %203 : vector<8x128xf32>
    %205 = math.exp %204 : vector<8x128xf32>
    %cst_59 = arith.constant 1.000000e+00 : f32
    %206 = vector.broadcast %cst_59 : f32 to vector<8x128xf32>
    %207 = arith.addf %206, %205 : vector<8x128xf32>
    %208 = arith.divf %206, %207 : vector<8x128xf32>
    %209 = vector.extract_strided_slice %202 {offsets = [0, 128], sizes = [8, 128], strides = [1, 1]} : vector<8x512xf32> to vector<8x128xf32>
    %210 = arith.negf %209 : vector<8x128xf32>
    %211 = math.exp %210 : vector<8x128xf32>
    %cst_60 = arith.constant 1.000000e+00 : f32
    %212 = vector.broadcast %cst_60 : f32 to vector<8x128xf32>
    %213 = arith.addf %212, %211 : vector<8x128xf32>
    %214 = arith.divf %212, %213 : vector<8x128xf32>
    %215 = vector.extract_strided_slice %202 {offsets = [0, 256], sizes = [8, 128], strides = [1, 1]} : vector<8x512xf32> to vector<8x128xf32>
    %216 = math.tanh %215 : vector<8x128xf32>
    %217 = vector.extract_strided_slice %202 {offsets = [0, 384], sizes = [8, 128], strides = [1, 1]} : vector<8x512xf32> to vector<8x128xf32>
    %218 = arith.negf %217 : vector<8x128xf32>
    %219 = math.exp %218 : vector<8x128xf32>
    %cst_61 = arith.constant 1.000000e+00 : f32
    %220 = vector.broadcast %cst_61 : f32 to vector<8x128xf32>
    %221 = arith.addf %220, %219 : vector<8x128xf32>
    %222 = arith.divf %220, %221 : vector<8x128xf32>
    %223 = arith.mulf %214, %187 : vector<8x128xf32>
    %224 = arith.mulf %208, %216 : vector<8x128xf32>
    %225 = arith.addf %223, %224 : vector<8x128xf32>
    %226 = math.tanh %225 : vector<8x128xf32>
    %227 = arith.mulf %222, %226 : vector<8x128xf32>
    %228 = arith.truncf %227 : vector<8x128xf32> to vector<8x128xbf16>
    %229 = arith.index_cast %c5_i32 : i32 to index
    %c0_62 = arith.constant 0 : index
    %c0_63 = arith.constant 0 : index
    %230 = vector.load %arg6[%229, %c0_62, %c0_63] : memref<8x8x128xbf16, #tpu.memory_space<vmem>>, vector<1x8x128xbf16>
    %231 = vector.shape_cast %230 : vector<1x8x128xbf16> to vector<8x128xbf16>
    %232 = vector.shape_cast %228 : vector<8x128xbf16> to vector<1x8x128xbf16>
    tpu.vector_store %arg6[%229, %c0_62, %c0_63], %232 {strides = array<i32>} : memref<8x8x128xbf16, #tpu.memory_space<vmem>>, vector<1x8x128xbf16>,
    %c6_i32 = arith.constant 6 : i32
    %233 = arith.index_cast %c6_i32 : i32 to index
    %c0_64 = arith.constant 0 : index
    %c0_65 = arith.constant 0 : index
    %234 = vector.load %arg2[%233, %c0_64, %c0_65] : memref<8x8x512xbf16, #tpu.memory_space<vmem>>, vector<1x8x512xbf16>
    %235 = vector.shape_cast %234 : vector<1x8x512xbf16> to vector<8x512xbf16>
    %236 = arith.extf %235 : vector<8x512xbf16> to vector<8x512xf32>
    %237 = arith.truncf %227 : vector<8x128xf32> to vector<8x128xbf16>
    %c0_66 = arith.constant 0 : index
    %c0_67 = arith.constant 0 : index
    %238 = vector.load %arg3[%c0_66, %c0_67] : memref<128x512xbf16, #tpu.memory_space<vmem>>, vector<128x512xbf16>
    %cst_68 = arith.constant dense<0.000000e+00> : vector<8x512xf32>
    %239 = tpu.matmul %237, %238, %cst_68 {dimension_numbers = #tpu.dot_dimension_numbers<[1], [0], [0], [1], [0, 0, 1, 1], [], []>} : vector<8x128xbf16>, vector<128x512xbf16>, vector<8x512xf32> -> vector<8x512xf32>
    %240 = arith.addf %236, %239 : vector<8x512xf32>
    %241 = vector.extract_strided_slice %240 {offsets = [0, 0], sizes = [8, 128], strides = [1, 1]} : vector<8x512xf32> to vector<8x128xf32>
    %242 = arith.negf %241 : vector<8x128xf32>
    %243 = math.exp %242 : vector<8x128xf32>
    %cst_69 = arith.constant 1.000000e+00 : f32
    %244 = vector.broadcast %cst_69 : f32 to vector<8x128xf32>
    %245 = arith.addf %244, %243 : vector<8x128xf32>
    %246 = arith.divf %244, %245 : vector<8x128xf32>
    %247 = vector.extract_strided_slice %240 {offsets = [0, 128], sizes = [8, 128], strides = [1, 1]} : vector<8x512xf32> to vector<8x128xf32>
    %248 = arith.negf %247 : vector<8x128xf32>
    %249 = math.exp %248 : vector<8x128xf32>
    %cst_70 = arith.constant 1.000000e+00 : f32
    %250 = vector.broadcast %cst_70 : f32 to vector<8x128xf32>
    %251 = arith.addf %250, %249 : vector<8x128xf32>
    %252 = arith.divf %250, %251 : vector<8x128xf32>
    %253 = vector.extract_strided_slice %240 {offsets = [0, 256], sizes = [8, 128], strides = [1, 1]} : vector<8x512xf32> to vector<8x128xf32>
    %254 = math.tanh %253 : vector<8x128xf32>
    %255 = vector.extract_strided_slice %240 {offsets = [0, 384], sizes = [8, 128], strides = [1, 1]} : vector<8x512xf32> to vector<8x128xf32>
    %256 = arith.negf %255 : vector<8x128xf32>
    %257 = math.exp %256 : vector<8x128xf32>
    %cst_71 = arith.constant 1.000000e+00 : f32
    %258 = vector.broadcast %cst_71 : f32 to vector<8x128xf32>
    %259 = arith.addf %258, %257 : vector<8x128xf32>
    %260 = arith.divf %258, %259 : vector<8x128xf32>
    %261 = arith.mulf %252, %225 : vector<8x128xf32>
    %262 = arith.mulf %246, %254 : vector<8x128xf32>
    %263 = arith.addf %261, %262 : vector<8x128xf32>
    %264 = math.tanh %263 : vector<8x128xf32>
    %265 = arith.mulf %260, %264 : vector<8x128xf32>
    %266 = arith.truncf %265 : vector<8x128xf32> to vector<8x128xbf16>
    %267 = arith.index_cast %c6_i32 : i32 to index
    %c0_72 = arith.constant 0 : index
    %c0_73 = arith.constant 0 : index
    %268 = vector.load %arg6[%267, %c0_72, %c0_73] : memref<8x8x128xbf16, #tpu.memory_space<vmem>>, vector<1x8x128xbf16>
    %269 = vector.shape_cast %268 : vector<1x8x128xbf16> to vector<8x128xbf16>
    %270 = vector.shape_cast %266 : vector<8x128xbf16> to vector<1x8x128xbf16>
    tpu.vector_store %arg6[%267, %c0_72, %c0_73], %270 {strides = array<i32>} : memref<8x8x128xbf16, #tpu.memory_space<vmem>>, vector<1x8x128xbf16>,
    %c7_i32 = arith.constant 7 : i32
    %271 = arith.index_cast %c7_i32 : i32 to index
    %c0_74 = arith.constant 0 : index
    %c0_75 = arith.constant 0 : index
    %272 = vector.load %arg2[%271, %c0_74, %c0_75] : memref<8x8x512xbf16, #tpu.memory_space<vmem>>, vector<1x8x512xbf16>
    %273 = vector.shape_cast %272 : vector<1x8x512xbf16> to vector<8x512xbf16>
    %274 = arith.extf %273 : vector<8x512xbf16> to vector<8x512xf32>
    %275 = arith.truncf %265 : vector<8x128xf32> to vector<8x128xbf16>
    %c0_76 = arith.constant 0 : index
    %c0_77 = arith.constant 0 : index
    %276 = vector.load %arg3[%c0_76, %c0_77] : memref<128x512xbf16, #tpu.memory_space<vmem>>, vector<128x512xbf16>
    %cst_78 = arith.constant dense<0.000000e+00> : vector<8x512xf32>
    %277 = tpu.matmul %275, %276, %cst_78 {dimension_numbers = #tpu.dot_dimension_numbers<[1], [0], [0], [1], [0, 0, 1, 1], [], []>} : vector<8x128xbf16>, vector<128x512xbf16>, vector<8x512xf32> -> vector<8x512xf32>
    %278 = arith.addf %274, %277 : vector<8x512xf32>
    %279 = vector.extract_strided_slice %278 {offsets = [0, 0], sizes = [8, 128], strides = [1, 1]} : vector<8x512xf32> to vector<8x128xf32>
    %280 = arith.negf %279 : vector<8x128xf32>
    %281 = math.exp %280 : vector<8x128xf32>
    %cst_79 = arith.constant 1.000000e+00 : f32
    %282 = vector.broadcast %cst_79 : f32 to vector<8x128xf32>
    %283 = arith.addf %282, %281 : vector<8x128xf32>
    %284 = arith.divf %282, %283 : vector<8x128xf32>
    %285 = vector.extract_strided_slice %278 {offsets = [0, 128], sizes = [8, 128], strides = [1, 1]} : vector<8x512xf32> to vector<8x128xf32>
    %286 = arith.negf %285 : vector<8x128xf32>
    %287 = math.exp %286 : vector<8x128xf32>
    %cst_80 = arith.constant 1.000000e+00 : f32
    %288 = vector.broadcast %cst_80 : f32 to vector<8x128xf32>
    %289 = arith.addf %288, %287 : vector<8x128xf32>
    %290 = arith.divf %288, %289 : vector<8x128xf32>
    %291 = vector.extract_strided_slice %278 {offsets = [0, 256], sizes = [8, 128], strides = [1, 1]} : vector<8x512xf32> to vector<8x128xf32>
    %292 = math.tanh %291 : vector<8x128xf32>
    %293 = vector.extract_strided_slice %278 {offsets = [0, 384], sizes = [8, 128], strides = [1, 1]} : vector<8x512xf32> to vector<8x128xf32>
    %294 = arith.negf %293 : vector<8x128xf32>
    %295 = math.exp %294 : vector<8x128xf32>
    %cst_81 = arith.constant 1.000000e+00 : f32
    %296 = vector.broadcast %cst_81 : f32 to vector<8x128xf32>
    %297 = arith.addf %296, %295 : vector<8x128xf32>
    %298 = arith.divf %296, %297 : vector<8x128xf32>
    %299 = arith.mulf %290, %263 : vector<8x128xf32>
    %300 = arith.mulf %284, %292 : vector<8x128xf32>
    %301 = arith.addf %299, %300 : vector<8x128xf32>
    %302 = math.tanh %301 : vector<8x128xf32>
    %303 = arith.mulf %298, %302 : vector<8x128xf32>
    %304 = arith.truncf %303 : vector<8x128xf32> to vector<8x128xbf16>
    %305 = arith.index_cast %c7_i32 : i32 to index
    %c0_82 = arith.constant 0 : index
    %c0_83 = arith.constant 0 : index
    %306 = vector.load %arg6[%305, %c0_82, %c0_83] : memref<8x8x128xbf16, #tpu.memory_space<vmem>>, vector<1x8x128xbf16>
    %307 = vector.shape_cast %306 : vector<1x8x128xbf16> to vector<8x128xbf16>
    %308 = vector.shape_cast %304 : vector<8x128xbf16> to vector<1x8x128xbf16>
    tpu.vector_store %arg6[%305, %c0_82, %c0_83], %308 {strides = array<i32>} : memref<8x8x128xbf16, #tpu.memory_space<vmem>>, vector<1x8x128xbf16>,
    %c8_i32 = arith.constant 8 : i32
    %c0_84 = arith.constant 0 : index
    %c0_85 = arith.constant 0 : index
    %309 = vector.load %arg8[%c0_84, %c0_85] : memref<8x128xf32, #tpu.memory_space<vmem>>, vector<8x128xf32>
    tpu.vector_store %arg8[%c0_84, %c0_85], %303 {strides = array<i32>} : memref<8x128xf32, #tpu.memory_space<vmem>>, vector<8x128xf32>,
    %c0_86 = arith.constant 0 : index
    %c0_87 = arith.constant 0 : index
    %310 = vector.load %arg9[%c0_86, %c0_87] : memref<8x128xf32, #tpu.memory_space<vmem>>, vector<8x128xf32>
    tpu.vector_store %arg9[%c0_86, %c0_87], %301 {strides = array<i32>} : memref<8x128xf32, #tpu.memory_space<vmem>>, vector<8x128xf32>,
    %c0_i32_88 = arith.constant 0 : i32
    %311 = arith.cmpi eq, %arg1, %c0_i32_88 : i32
    %312 = arith.extui %311 : i1 to i32
    %c0_i32_89 = arith.constant 0 : i32
    %313 = arith.cmpi ne, %312, %c0_i32_89 : i32
    scf.if %313 {
      %c0_90 = arith.constant 0 : index
      %c0_91 = arith.constant 0 : index
      %314 = vector.load %arg7[%c0_90, %c0_91] : memref<8x128xf32, #tpu.memory_space<vmem>>, vector<8x128xf32>
      tpu.vector_store %arg7[%c0_90, %c0_91], %303 {strides = array<i32>} : memref<8x128xf32, #tpu.memory_space<vmem>>, vector<8x128xf32>,
    } else {
    }
    return
  }
  func.func @transform_0(%arg0: i32, %arg1: i32) -> (i32, i32, i32) {
    %c0_i32 = arith.constant 0 : i32
    %c0_i32_0 = arith.constant 0 : i32
    return %arg1, %arg0, %c0_i32 : i32, i32, i32
  }
  func.func @transform_1(%arg0: i32, %arg1: i32) -> (i32, i32) {
    %c0_i32 = arith.constant 0 : i32
    %c0_i32_0 = arith.constant 0 : i32
    %c0_i32_1 = arith.constant 0 : i32
    return %c0_i32, %c0_i32_0 : i32, i32
  }
  func.func @transform_2(%arg0: i32, %arg1: i32) -> (i32, i32) {
    %c0_i32 = arith.constant 0 : i32
    %c0_i32_0 = arith.constant 0 : i32
    return %arg0, %c0_i32 : i32, i32
  }
  func.func @transform_3(%arg0: i32, %arg1: i32) -> (i32, i32) {
    %c0_i32 = arith.constant 0 : i32
    %c0_i32_0 = arith.constant 0 : i32
    return %arg0, %c0_i32 : i32, i32
  }
  func.func @transform_4(%arg0: i32, %arg1: i32) -> (i32, i32, i32) {
    %c0_i32 = arith.constant 0 : i32
    %c0_i32_0 = arith.constant 0 : i32
    return %arg1, %arg0, %c0_i32 : i32, i32, i32
  }
  func.func @transform_5(%arg0: i32, %arg1: i32) -> (i32, i32) {
    %c0_i32 = arith.constant 0 : i32
    %c0_i32_0 = arith.constant 0 : i32
    return %arg0, %c0_i32 : i32, i32
  }
}

module attributes {stable_mosaic.version = 11 : i64} {
  func.func @_matmul_kernel(%arg0: i32, %arg1: i32, %arg2: i32, %arg3: memref<48x128xbf16, #tpu.memory_space<vmem>>, %arg4: memref<128x512xbf16, #tpu.memory_space<vmem>>, %arg5: memref<1x512xf32, #tpu.memory_space<vmem>>, %arg6: memref<48x512xbf16, #tpu.memory_space<vmem>>, %arg7: memref<48x512xf32, #tpu.memory_space<vmem>>) attributes {dimension_semantics = [#tpu.dimension_semantics<parallel>, #tpu.dimension_semantics<parallel>, #tpu.dimension_semantics<arbitrary>], iteration_bounds = array<i64: 1, 1, 1>, scalar_prefetch = 0 : i64, scratch_operands = 1 : i64, tpu.core_type = #tpu.core_type<tc>, window_params = [{transform_indices = @transform_0, window_bounds = array<i64: 48, 128>}, {transform_indices = @transform_1, window_bounds = array<i64: 128, 512>}, {transform_indices = @transform_2, window_bounds = array<i64: 1, 512>}, {transform_indices = @transform_3, window_bounds = array<i64: 48, 512>}]} {
    %c0_i32 = arith.constant 0 : i32
    %0 = arith.cmpi eq, %arg2, %c0_i32 : i32
    %1 = arith.extui %0 : i1 to i32
    %c0_i32_0 = arith.constant 0 : i32
    %2 = arith.cmpi ne, %1, %c0_i32_0 : i32
    scf.if %2 {
      %cst_10 = arith.constant 0.000000e+00 : f32
      %12 = vector.broadcast %cst_10 : f32 to vector<48x512xf32>
      %c0_11 = arith.constant 0 : index
      %c0_12 = arith.constant 0 : index
      %13 = vector.load %arg7[%c0_11, %c0_12] : memref<48x512xf32, #tpu.memory_space<vmem>>, vector<48x512xf32>
      tpu.vector_store %arg7[%c0_11, %c0_12], %12 {strides = array<i32>} : memref<48x512xf32, #tpu.memory_space<vmem>>, vector<48x512xf32>,
    } else {
    }
    %c0 = arith.constant 0 : index
    %c0_1 = arith.constant 0 : index
    %3 = vector.load %arg7[%c0, %c0_1] : memref<48x512xf32, #tpu.memory_space<vmem>>, vector<48x512xf32>
    %c0_2 = arith.constant 0 : index
    %c0_3 = arith.constant 0 : index
    %4 = vector.load %arg3[%c0_2, %c0_3] : memref<48x128xbf16, #tpu.memory_space<vmem>>, vector<48x128xbf16>
    %c0_4 = arith.constant 0 : index
    %c0_5 = arith.constant 0 : index
    %5 = vector.load %arg4[%c0_4, %c0_5] : memref<128x512xbf16, #tpu.memory_space<vmem>>, vector<128x512xbf16>
    %cst = arith.constant dense<0.000000e+00> : vector<48x512xf32>
    %6 = tpu.matmul %4, %5, %cst {dimension_numbers = #tpu.dot_dimension_numbers<[1], [0], [0], [1], [0, 0, 1, 1], [], []>} : vector<48x128xbf16>, vector<128x512xbf16>, vector<48x512xf32> -> vector<48x512xf32>
    %7 = arith.addf %3, %6 : vector<48x512xf32>
    %c0_6 = arith.constant 0 : index
    %c0_7 = arith.constant 0 : index
    %8 = vector.load %arg7[%c0_6, %c0_7] : memref<48x512xf32, #tpu.memory_space<vmem>>, vector<48x512xf32>
    tpu.vector_store %arg7[%c0_6, %c0_7], %7 {strides = array<i32>} : memref<48x512xf32, #tpu.memory_space<vmem>>, vector<48x512xf32>,
    %c0_i32_8 = arith.constant 0 : i32
    %9 = arith.cmpi eq, %arg2, %c0_i32_8 : i32
    %10 = arith.extui %9 : i1 to i32
    %c0_i32_9 = arith.constant 0 : i32
    %11 = arith.cmpi ne, %10, %c0_i32_9 : i32
    scf.if %11 {
      %c0_10 = arith.constant 0 : index
      %c0_11 = arith.constant 0 : index
      %12 = vector.load %arg7[%c0_10, %c0_11] : memref<48x512xf32, #tpu.memory_space<vmem>>, vector<48x512xf32>
      %c0_12 = arith.constant 0 : index
      %c0_13 = arith.constant 0 : index
      %13 = vector.load %arg5[%c0_12, %c0_13] : memref<1x512xf32, #tpu.memory_space<vmem>>, vector<1x512xf32>
      %14 = vector.broadcast %13 : vector<1x512xf32> to vector<48x512xf32>
      %15 = arith.addf %12, %14 : vector<48x512xf32>
      %16 = arith.truncf %15 : vector<48x512xf32> to vector<48x512xbf16>
      %c0_14 = arith.constant 0 : index
      %c0_15 = arith.constant 0 : index
      %17 = vector.load %arg6[%c0_14, %c0_15] : memref<48x512xbf16, #tpu.memory_space<vmem>>, vector<48x512xbf16>
      tpu.vector_store %arg6[%c0_14, %c0_15], %16 {strides = array<i32>} : memref<48x512xbf16, #tpu.memory_space<vmem>>, vector<48x512xbf16>,
    } else {
    }
    return
  }
  func.func @transform_0(%arg0: i32, %arg1: i32, %arg2: i32) -> (i32, i32) {
    %c0_i32 = arith.constant 0 : i32
    return %arg0, %arg2 : i32, i32
  }
  func.func @transform_1(%arg0: i32, %arg1: i32, %arg2: i32) -> (i32, i32) {
    %c0_i32 = arith.constant 0 : i32
    return %arg2, %arg1 : i32, i32
  }
  func.func @transform_2(%arg0: i32, %arg1: i32, %arg2: i32) -> (i32, i32) {
    %c0_i32 = arith.constant 0 : i32
    %c0_i32_0 = arith.constant 0 : i32
    return %c0_i32, %arg1 : i32, i32
  }
  func.func @transform_3(%arg0: i32, %arg1: i32, %arg2: i32) -> (i32, i32) {
    %c0_i32 = arith.constant 0 : i32
    return %arg0, %arg1 : i32, i32
  }
}

module attributes {stable_mosaic.version = 11 : i64} {
  func.func @_lstm_scan_kernel(%arg0: i32, %arg1: i32, %arg2: memref<6x8x512xbf16, #tpu.memory_space<vmem>>, %arg3: memref<128x512xbf16, #tpu.memory_space<vmem>>, %arg4: memref<8x128xf32, #tpu.memory_space<vmem>>, %arg5: memref<8x128xf32, #tpu.memory_space<vmem>>, %arg6: memref<6x8x128xbf16, #tpu.memory_space<vmem>>, %arg7: memref<8x128xf32, #tpu.memory_space<vmem>>, %arg8: memref<8x128xf32, #tpu.memory_space<vmem>>, %arg9: memref<8x128xf32, #tpu.memory_space<vmem>>) attributes {dimension_semantics = [#tpu.dimension_semantics<parallel>, #tpu.dimension_semantics<arbitrary>], iteration_bounds = array<i64: 1, 1>, scalar_prefetch = 0 : i64, scratch_operands = 2 : i64, tpu.core_type = #tpu.core_type<tc>, window_params = [{transform_indices = @transform_0, window_bounds = array<i64: 6, 8, 512>}, {pipeline_mode = #tpu.pipeline_mode<synchronous>, transform_indices = @transform_1, window_bounds = array<i64: 128, 512>}, {transform_indices = @transform_2, window_bounds = array<i64: 8, 128>}, {transform_indices = @transform_3, window_bounds = array<i64: 8, 128>}, {transform_indices = @transform_4, window_bounds = array<i64: 6, 8, 128>}, {transform_indices = @transform_5, window_bounds = array<i64: 8, 128>}]} {
    %c0_i32 = arith.constant 0 : i32
    %0 = arith.cmpi eq, %arg1, %c0_i32 : i32
    %1 = arith.extui %0 : i1 to i32
    %c0_i32_0 = arith.constant 0 : i32
    %2 = arith.cmpi ne, %1, %c0_i32_0 : i32
    scf.if %2 {
      %c0_70 = arith.constant 0 : index
      %c0_71 = arith.constant 0 : index
      %238 = vector.load %arg4[%c0_70, %c0_71] : memref<8x128xf32, #tpu.memory_space<vmem>>, vector<8x128xf32>
      %c0_72 = arith.constant 0 : index
      %c0_73 = arith.constant 0 : index
      %239 = vector.load %arg8[%c0_72, %c0_73] : memref<8x128xf32, #tpu.memory_space<vmem>>, vector<8x128xf32>
      tpu.vector_store %arg8[%c0_72, %c0_73], %238 {strides = array<i32>} : memref<8x128xf32, #tpu.memory_space<vmem>>, vector<8x128xf32>,
      %c0_74 = arith.constant 0 : index
      %c0_75 = arith.constant 0 : index
      %240 = vector.load %arg5[%c0_74, %c0_75] : memref<8x128xf32, #tpu.memory_space<vmem>>, vector<8x128xf32>
      %c0_76 = arith.constant 0 : index
      %c0_77 = arith.constant 0 : index
      %241 = vector.load %arg9[%c0_76, %c0_77] : memref<8x128xf32, #tpu.memory_space<vmem>>, vector<8x128xf32>
      tpu.vector_store %arg9[%c0_76, %c0_77], %240 {strides = array<i32>} : memref<8x128xf32, #tpu.memory_space<vmem>>, vector<8x128xf32>,
    } else {
    }
    %c0 = arith.constant 0 : index
    %c0_1 = arith.constant 0 : index
    %3 = vector.load %arg8[%c0, %c0_1] : memref<8x128xf32, #tpu.memory_space<vmem>>, vector<8x128xf32>
    %c0_2 = arith.constant 0 : index
    %c0_3 = arith.constant 0 : index
    %4 = vector.load %arg9[%c0_2, %c0_3] : memref<8x128xf32, #tpu.memory_space<vmem>>, vector<8x128xf32>
    %c0_i32_4 = arith.constant 0 : i32
    %5 = arith.index_cast %c0_i32_4 : i32 to index
    %c0_5 = arith.constant 0 : index
    %c0_6 = arith.constant 0 : index
    %6 = vector.load %arg2[%5, %c0_5, %c0_6] : memref<6x8x512xbf16, #tpu.memory_space<vmem>>, vector<1x8x512xbf16>
    %7 = vector.shape_cast %6 : vector<1x8x512xbf16> to vector<8x512xbf16>
    %8 = arith.extf %7 : vector<8x512xbf16> to vector<8x512xf32>
    %9 = arith.truncf %3 : vector<8x128xf32> to vector<8x128xbf16>
    %c0_7 = arith.constant 0 : index
    %c0_8 = arith.constant 0 : index
    %10 = vector.load %arg3[%c0_7, %c0_8] : memref<128x512xbf16, #tpu.memory_space<vmem>>, vector<128x512xbf16>
    %cst = arith.constant dense<0.000000e+00> : vector<8x512xf32>
    %11 = tpu.matmul %9, %10, %cst {dimension_numbers = #tpu.dot_dimension_numbers<[1], [0], [0], [1], [0, 0, 1, 1], [], []>} : vector<8x128xbf16>, vector<128x512xbf16>, vector<8x512xf32> -> vector<8x512xf32>
    %12 = arith.addf %8, %11 : vector<8x512xf32>
    %13 = vector.extract_strided_slice %12 {offsets = [0, 0], sizes = [8, 128], strides = [1, 1]} : vector<8x512xf32> to vector<8x128xf32>
    %14 = arith.negf %13 : vector<8x128xf32>
    %15 = math.exp %14 : vector<8x128xf32>
    %cst_9 = arith.constant 1.000000e+00 : f32
    %16 = vector.broadcast %cst_9 : f32 to vector<8x128xf32>
    %17 = arith.addf %16, %15 : vector<8x128xf32>
    %18 = arith.divf %16, %17 : vector<8x128xf32>
    %19 = vector.extract_strided_slice %12 {offsets = [0, 128], sizes = [8, 128], strides = [1, 1]} : vector<8x512xf32> to vector<8x128xf32>
    %20 = arith.negf %19 : vector<8x128xf32>
    %21 = math.exp %20 : vector<8x128xf32>
    %cst_10 = arith.constant 1.000000e+00 : f32
    %22 = vector.broadcast %cst_10 : f32 to vector<8x128xf32>
    %23 = arith.addf %22, %21 : vector<8x128xf32>
    %24 = arith.divf %22, %23 : vector<8x128xf32>
    %25 = vector.extract_strided_slice %12 {offsets = [0, 256], sizes = [8, 128], strides = [1, 1]} : vector<8x512xf32> to vector<8x128xf32>
    %26 = math.tanh %25 : vector<8x128xf32>
    %27 = vector.extract_strided_slice %12 {offsets = [0, 384], sizes = [8, 128], strides = [1, 1]} : vector<8x512xf32> to vector<8x128xf32>
    %28 = arith.negf %27 : vector<8x128xf32>
    %29 = math.exp %28 : vector<8x128xf32>
    %cst_11 = arith.constant 1.000000e+00 : f32
    %30 = vector.broadcast %cst_11 : f32 to vector<8x128xf32>
    %31 = arith.addf %30, %29 : vector<8x128xf32>
    %32 = arith.divf %30, %31 : vector<8x128xf32>
    %33 = arith.mulf %24, %4 : vector<8x128xf32>
    %34 = arith.mulf %18, %26 : vector<8x128xf32>
    %35 = arith.addf %33, %34 : vector<8x128xf32>
    %36 = math.tanh %35 : vector<8x128xf32>
    %37 = arith.mulf %32, %36 : vector<8x128xf32>
    %38 = arith.truncf %37 : vector<8x128xf32> to vector<8x128xbf16>
    %39 = arith.index_cast %c0_i32_4 : i32 to index
    %c0_12 = arith.constant 0 : index
    %c0_13 = arith.constant 0 : index
    %40 = vector.load %arg6[%39, %c0_12, %c0_13] : memref<6x8x128xbf16, #tpu.memory_space<vmem>>, vector<1x8x128xbf16>
    %41 = vector.shape_cast %40 : vector<1x8x128xbf16> to vector<8x128xbf16>
    %42 = vector.shape_cast %38 : vector<8x128xbf16> to vector<1x8x128xbf16>
    tpu.vector_store %arg6[%39, %c0_12, %c0_13], %42 {strides = array<i32>} : memref<6x8x128xbf16, #tpu.memory_space<vmem>>, vector<1x8x128xbf16>,
    %c1_i32 = arith.constant 1 : i32
    %43 = arith.index_cast %c1_i32 : i32 to index
    %c0_14 = arith.constant 0 : index
    %c0_15 = arith.constant 0 : index
    %44 = vector.load %arg2[%43, %c0_14, %c0_15] : memref<6x8x512xbf16, #tpu.memory_space<vmem>>, vector<1x8x512xbf16>
    %45 = vector.shape_cast %44 : vector<1x8x512xbf16> to vector<8x512xbf16>
    %46 = arith.extf %45 : vector<8x512xbf16> to vector<8x512xf32>
    %47 = arith.truncf %37 : vector<8x128xf32> to vector<8x128xbf16>
    %c0_16 = arith.constant 0 : index
    %c0_17 = arith.constant 0 : index
    %48 = vector.load %arg3[%c0_16, %c0_17] : memref<128x512xbf16, #tpu.memory_space<vmem>>, vector<128x512xbf16>
    %cst_18 = arith.constant dense<0.000000e+00> : vector<8x512xf32>
    %49 = tpu.matmul %47, %48, %cst_18 {dimension_numbers = #tpu.dot_dimension_numbers<[1], [0], [0], [1], [0, 0, 1, 1], [], []>} : vector<8x128xbf16>, vector<128x512xbf16>, vector<8x512xf32> -> vector<8x512xf32>
    %50 = arith.addf %46, %49 : vector<8x512xf32>
    %51 = vector.extract_strided_slice %50 {offsets = [0, 0], sizes = [8, 128], strides = [1, 1]} : vector<8x512xf32> to vector<8x128xf32>
    %52 = arith.negf %51 : vector<8x128xf32>
    %53 = math.exp %52 : vector<8x128xf32>
    %cst_19 = arith.constant 1.000000e+00 : f32
    %54 = vector.broadcast %cst_19 : f32 to vector<8x128xf32>
    %55 = arith.addf %54, %53 : vector<8x128xf32>
    %56 = arith.divf %54, %55 : vector<8x128xf32>
    %57 = vector.extract_strided_slice %50 {offsets = [0, 128], sizes = [8, 128], strides = [1, 1]} : vector<8x512xf32> to vector<8x128xf32>
    %58 = arith.negf %57 : vector<8x128xf32>
    %59 = math.exp %58 : vector<8x128xf32>
    %cst_20 = arith.constant 1.000000e+00 : f32
    %60 = vector.broadcast %cst_20 : f32 to vector<8x128xf32>
    %61 = arith.addf %60, %59 : vector<8x128xf32>
    %62 = arith.divf %60, %61 : vector<8x128xf32>
    %63 = vector.extract_strided_slice %50 {offsets = [0, 256], sizes = [8, 128], strides = [1, 1]} : vector<8x512xf32> to vector<8x128xf32>
    %64 = math.tanh %63 : vector<8x128xf32>
    %65 = vector.extract_strided_slice %50 {offsets = [0, 384], sizes = [8, 128], strides = [1, 1]} : vector<8x512xf32> to vector<8x128xf32>
    %66 = arith.negf %65 : vector<8x128xf32>
    %67 = math.exp %66 : vector<8x128xf32>
    %cst_21 = arith.constant 1.000000e+00 : f32
    %68 = vector.broadcast %cst_21 : f32 to vector<8x128xf32>
    %69 = arith.addf %68, %67 : vector<8x128xf32>
    %70 = arith.divf %68, %69 : vector<8x128xf32>
    %71 = arith.mulf %62, %35 : vector<8x128xf32>
    %72 = arith.mulf %56, %64 : vector<8x128xf32>
    %73 = arith.addf %71, %72 : vector<8x128xf32>
    %74 = math.tanh %73 : vector<8x128xf32>
    %75 = arith.mulf %70, %74 : vector<8x128xf32>
    %76 = arith.truncf %75 : vector<8x128xf32> to vector<8x128xbf16>
    %77 = arith.index_cast %c1_i32 : i32 to index
    %c0_22 = arith.constant 0 : index
    %c0_23 = arith.constant 0 : index
    %78 = vector.load %arg6[%77, %c0_22, %c0_23] : memref<6x8x128xbf16, #tpu.memory_space<vmem>>, vector<1x8x128xbf16>
    %79 = vector.shape_cast %78 : vector<1x8x128xbf16> to vector<8x128xbf16>
    %80 = vector.shape_cast %76 : vector<8x128xbf16> to vector<1x8x128xbf16>
    tpu.vector_store %arg6[%77, %c0_22, %c0_23], %80 {strides = array<i32>} : memref<6x8x128xbf16, #tpu.memory_space<vmem>>, vector<1x8x128xbf16>,
    %c2_i32 = arith.constant 2 : i32
    %81 = arith.index_cast %c2_i32 : i32 to index
    %c0_24 = arith.constant 0 : index
    %c0_25 = arith.constant 0 : index
    %82 = vector.load %arg2[%81, %c0_24, %c0_25] : memref<6x8x512xbf16, #tpu.memory_space<vmem>>, vector<1x8x512xbf16>
    %83 = vector.shape_cast %82 : vector<1x8x512xbf16> to vector<8x512xbf16>
    %84 = arith.extf %83 : vector<8x512xbf16> to vector<8x512xf32>
    %85 = arith.truncf %75 : vector<8x128xf32> to vector<8x128xbf16>
    %c0_26 = arith.constant 0 : index
    %c0_27 = arith.constant 0 : index
    %86 = vector.load %arg3[%c0_26, %c0_27] : memref<128x512xbf16, #tpu.memory_space<vmem>>, vector<128x512xbf16>
    %cst_28 = arith.constant dense<0.000000e+00> : vector<8x512xf32>
    %87 = tpu.matmul %85, %86, %cst_28 {dimension_numbers = #tpu.dot_dimension_numbers<[1], [0], [0], [1], [0, 0, 1, 1], [], []>} : vector<8x128xbf16>, vector<128x512xbf16>, vector<8x512xf32> -> vector<8x512xf32>
    %88 = arith.addf %84, %87 : vector<8x512xf32>
    %89 = vector.extract_strided_slice %88 {offsets = [0, 0], sizes = [8, 128], strides = [1, 1]} : vector<8x512xf32> to vector<8x128xf32>
    %90 = arith.negf %89 : vector<8x128xf32>
    %91 = math.exp %90 : vector<8x128xf32>
    %cst_29 = arith.constant 1.000000e+00 : f32
    %92 = vector.broadcast %cst_29 : f32 to vector<8x128xf32>
    %93 = arith.addf %92, %91 : vector<8x128xf32>
    %94 = arith.divf %92, %93 : vector<8x128xf32>
    %95 = vector.extract_strided_slice %88 {offsets = [0, 128], sizes = [8, 128], strides = [1, 1]} : vector<8x512xf32> to vector<8x128xf32>
    %96 = arith.negf %95 : vector<8x128xf32>
    %97 = math.exp %96 : vector<8x128xf32>
    %cst_30 = arith.constant 1.000000e+00 : f32
    %98 = vector.broadcast %cst_30 : f32 to vector<8x128xf32>
    %99 = arith.addf %98, %97 : vector<8x128xf32>
    %100 = arith.divf %98, %99 : vector<8x128xf32>
    %101 = vector.extract_strided_slice %88 {offsets = [0, 256], sizes = [8, 128], strides = [1, 1]} : vector<8x512xf32> to vector<8x128xf32>
    %102 = math.tanh %101 : vector<8x128xf32>
    %103 = vector.extract_strided_slice %88 {offsets = [0, 384], sizes = [8, 128], strides = [1, 1]} : vector<8x512xf32> to vector<8x128xf32>
    %104 = arith.negf %103 : vector<8x128xf32>
    %105 = math.exp %104 : vector<8x128xf32>
    %cst_31 = arith.constant 1.000000e+00 : f32
    %106 = vector.broadcast %cst_31 : f32 to vector<8x128xf32>
    %107 = arith.addf %106, %105 : vector<8x128xf32>
    %108 = arith.divf %106, %107 : vector<8x128xf32>
    %109 = arith.mulf %100, %73 : vector<8x128xf32>
    %110 = arith.mulf %94, %102 : vector<8x128xf32>
    %111 = arith.addf %109, %110 : vector<8x128xf32>
    %112 = math.tanh %111 : vector<8x128xf32>
    %113 = arith.mulf %108, %112 : vector<8x128xf32>
    %114 = arith.truncf %113 : vector<8x128xf32> to vector<8x128xbf16>
    %115 = arith.index_cast %c2_i32 : i32 to index
    %c0_32 = arith.constant 0 : index
    %c0_33 = arith.constant 0 : index
    %116 = vector.load %arg6[%115, %c0_32, %c0_33] : memref<6x8x128xbf16, #tpu.memory_space<vmem>>, vector<1x8x128xbf16>
    %117 = vector.shape_cast %116 : vector<1x8x128xbf16> to vector<8x128xbf16>
    %118 = vector.shape_cast %114 : vector<8x128xbf16> to vector<1x8x128xbf16>
    tpu.vector_store %arg6[%115, %c0_32, %c0_33], %118 {strides = array<i32>} : memref<6x8x128xbf16, #tpu.memory_space<vmem>>, vector<1x8x128xbf16>,
    %c3_i32 = arith.constant 3 : i32
    %119 = arith.index_cast %c3_i32 : i32 to index
    %c0_34 = arith.constant 0 : index
    %c0_35 = arith.constant 0 : index
    %120 = vector.load %arg2[%119, %c0_34, %c0_35] : memref<6x8x512xbf16, #tpu.memory_space<vmem>>, vector<1x8x512xbf16>
    %121 = vector.shape_cast %120 : vector<1x8x512xbf16> to vector<8x512xbf16>
    %122 = arith.extf %121 : vector<8x512xbf16> to vector<8x512xf32>
    %123 = arith.truncf %113 : vector<8x128xf32> to vector<8x128xbf16>
    %c0_36 = arith.constant 0 : index
    %c0_37 = arith.constant 0 : index
    %124 = vector.load %arg3[%c0_36, %c0_37] : memref<128x512xbf16, #tpu.memory_space<vmem>>, vector<128x512xbf16>
    %cst_38 = arith.constant dense<0.000000e+00> : vector<8x512xf32>
    %125 = tpu.matmul %123, %124, %cst_38 {dimension_numbers = #tpu.dot_dimension_numbers<[1], [0], [0], [1], [0, 0, 1, 1], [], []>} : vector<8x128xbf16>, vector<128x512xbf16>, vector<8x512xf32> -> vector<8x512xf32>
    %126 = arith.addf %122, %125 : vector<8x512xf32>
    %127 = vector.extract_strided_slice %126 {offsets = [0, 0], sizes = [8, 128], strides = [1, 1]} : vector<8x512xf32> to vector<8x128xf32>
    %128 = arith.negf %127 : vector<8x128xf32>
    %129 = math.exp %128 : vector<8x128xf32>
    %cst_39 = arith.constant 1.000000e+00 : f32
    %130 = vector.broadcast %cst_39 : f32 to vector<8x128xf32>
    %131 = arith.addf %130, %129 : vector<8x128xf32>
    %132 = arith.divf %130, %131 : vector<8x128xf32>
    %133 = vector.extract_strided_slice %126 {offsets = [0, 128], sizes = [8, 128], strides = [1, 1]} : vector<8x512xf32> to vector<8x128xf32>
    %134 = arith.negf %133 : vector<8x128xf32>
    %135 = math.exp %134 : vector<8x128xf32>
    %cst_40 = arith.constant 1.000000e+00 : f32
    %136 = vector.broadcast %cst_40 : f32 to vector<8x128xf32>
    %137 = arith.addf %136, %135 : vector<8x128xf32>
    %138 = arith.divf %136, %137 : vector<8x128xf32>
    %139 = vector.extract_strided_slice %126 {offsets = [0, 256], sizes = [8, 128], strides = [1, 1]} : vector<8x512xf32> to vector<8x128xf32>
    %140 = math.tanh %139 : vector<8x128xf32>
    %141 = vector.extract_strided_slice %126 {offsets = [0, 384], sizes = [8, 128], strides = [1, 1]} : vector<8x512xf32> to vector<8x128xf32>
    %142 = arith.negf %141 : vector<8x128xf32>
    %143 = math.exp %142 : vector<8x128xf32>
    %cst_41 = arith.constant 1.000000e+00 : f32
    %144 = vector.broadcast %cst_41 : f32 to vector<8x128xf32>
    %145 = arith.addf %144, %143 : vector<8x128xf32>
    %146 = arith.divf %144, %145 : vector<8x128xf32>
    %147 = arith.mulf %138, %111 : vector<8x128xf32>
    %148 = arith.mulf %132, %140 : vector<8x128xf32>
    %149 = arith.addf %147, %148 : vector<8x128xf32>
    %150 = math.tanh %149 : vector<8x128xf32>
    %151 = arith.mulf %146, %150 : vector<8x128xf32>
    %152 = arith.truncf %151 : vector<8x128xf32> to vector<8x128xbf16>
    %153 = arith.index_cast %c3_i32 : i32 to index
    %c0_42 = arith.constant 0 : index
    %c0_43 = arith.constant 0 : index
    %154 = vector.load %arg6[%153, %c0_42, %c0_43] : memref<6x8x128xbf16, #tpu.memory_space<vmem>>, vector<1x8x128xbf16>
    %155 = vector.shape_cast %154 : vector<1x8x128xbf16> to vector<8x128xbf16>
    %156 = vector.shape_cast %152 : vector<8x128xbf16> to vector<1x8x128xbf16>
    tpu.vector_store %arg6[%153, %c0_42, %c0_43], %156 {strides = array<i32>} : memref<6x8x128xbf16, #tpu.memory_space<vmem>>, vector<1x8x128xbf16>,
    %c4_i32 = arith.constant 4 : i32
    %157 = arith.index_cast %c4_i32 : i32 to index
    %c0_44 = arith.constant 0 : index
    %c0_45 = arith.constant 0 : index
    %158 = vector.load %arg2[%157, %c0_44, %c0_45] : memref<6x8x512xbf16, #tpu.memory_space<vmem>>, vector<1x8x512xbf16>
    %159 = vector.shape_cast %158 : vector<1x8x512xbf16> to vector<8x512xbf16>
    %160 = arith.extf %159 : vector<8x512xbf16> to vector<8x512xf32>
    %161 = arith.truncf %151 : vector<8x128xf32> to vector<8x128xbf16>
    %c0_46 = arith.constant 0 : index
    %c0_47 = arith.constant 0 : index
    %162 = vector.load %arg3[%c0_46, %c0_47] : memref<128x512xbf16, #tpu.memory_space<vmem>>, vector<128x512xbf16>
    %cst_48 = arith.constant dense<0.000000e+00> : vector<8x512xf32>
    %163 = tpu.matmul %161, %162, %cst_48 {dimension_numbers = #tpu.dot_dimension_numbers<[1], [0], [0], [1], [0, 0, 1, 1], [], []>} : vector<8x128xbf16>, vector<128x512xbf16>, vector<8x512xf32> -> vector<8x512xf32>
    %164 = arith.addf %160, %163 : vector<8x512xf32>
    %165 = vector.extract_strided_slice %164 {offsets = [0, 0], sizes = [8, 128], strides = [1, 1]} : vector<8x512xf32> to vector<8x128xf32>
    %166 = arith.negf %165 : vector<8x128xf32>
    %167 = math.exp %166 : vector<8x128xf32>
    %cst_49 = arith.constant 1.000000e+00 : f32
    %168 = vector.broadcast %cst_49 : f32 to vector<8x128xf32>
    %169 = arith.addf %168, %167 : vector<8x128xf32>
    %170 = arith.divf %168, %169 : vector<8x128xf32>
    %171 = vector.extract_strided_slice %164 {offsets = [0, 128], sizes = [8, 128], strides = [1, 1]} : vector<8x512xf32> to vector<8x128xf32>
    %172 = arith.negf %171 : vector<8x128xf32>
    %173 = math.exp %172 : vector<8x128xf32>
    %cst_50 = arith.constant 1.000000e+00 : f32
    %174 = vector.broadcast %cst_50 : f32 to vector<8x128xf32>
    %175 = arith.addf %174, %173 : vector<8x128xf32>
    %176 = arith.divf %174, %175 : vector<8x128xf32>
    %177 = vector.extract_strided_slice %164 {offsets = [0, 256], sizes = [8, 128], strides = [1, 1]} : vector<8x512xf32> to vector<8x128xf32>
    %178 = math.tanh %177 : vector<8x128xf32>
    %179 = vector.extract_strided_slice %164 {offsets = [0, 384], sizes = [8, 128], strides = [1, 1]} : vector<8x512xf32> to vector<8x128xf32>
    %180 = arith.negf %179 : vector<8x128xf32>
    %181 = math.exp %180 : vector<8x128xf32>
    %cst_51 = arith.constant 1.000000e+00 : f32
    %182 = vector.broadcast %cst_51 : f32 to vector<8x128xf32>
    %183 = arith.addf %182, %181 : vector<8x128xf32>
    %184 = arith.divf %182, %183 : vector<8x128xf32>
    %185 = arith.mulf %176, %149 : vector<8x128xf32>
    %186 = arith.mulf %170, %178 : vector<8x128xf32>
    %187 = arith.addf %185, %186 : vector<8x128xf32>
    %188 = math.tanh %187 : vector<8x128xf32>
    %189 = arith.mulf %184, %188 : vector<8x128xf32>
    %190 = arith.truncf %189 : vector<8x128xf32> to vector<8x128xbf16>
    %191 = arith.index_cast %c4_i32 : i32 to index
    %c0_52 = arith.constant 0 : index
    %c0_53 = arith.constant 0 : index
    %192 = vector.load %arg6[%191, %c0_52, %c0_53] : memref<6x8x128xbf16, #tpu.memory_space<vmem>>, vector<1x8x128xbf16>
    %193 = vector.shape_cast %192 : vector<1x8x128xbf16> to vector<8x128xbf16>
    %194 = vector.shape_cast %190 : vector<8x128xbf16> to vector<1x8x128xbf16>
    tpu.vector_store %arg6[%191, %c0_52, %c0_53], %194 {strides = array<i32>} : memref<6x8x128xbf16, #tpu.memory_space<vmem>>, vector<1x8x128xbf16>,
    %c5_i32 = arith.constant 5 : i32
    %195 = arith.index_cast %c5_i32 : i32 to index
    %c0_54 = arith.constant 0 : index
    %c0_55 = arith.constant 0 : index
    %196 = vector.load %arg2[%195, %c0_54, %c0_55] : memref<6x8x512xbf16, #tpu.memory_space<vmem>>, vector<1x8x512xbf16>
    %197 = vector.shape_cast %196 : vector<1x8x512xbf16> to vector<8x512xbf16>
    %198 = arith.extf %197 : vector<8x512xbf16> to vector<8x512xf32>
    %199 = arith.truncf %189 : vector<8x128xf32> to vector<8x128xbf16>
    %c0_56 = arith.constant 0 : index
    %c0_57 = arith.constant 0 : index
    %200 = vector.load %arg3[%c0_56, %c0_57] : memref<128x512xbf16, #tpu.memory_space<vmem>>, vector<128x512xbf16>
    %cst_58 = arith.constant dense<0.000000e+00> : vector<8x512xf32>
    %201 = tpu.matmul %199, %200, %cst_58 {dimension_numbers = #tpu.dot_dimension_numbers<[1], [0], [0], [1], [0, 0, 1, 1], [], []>} : vector<8x128xbf16>, vector<128x512xbf16>, vector<8x512xf32> -> vector<8x512xf32>
    %202 = arith.addf %198, %201 : vector<8x512xf32>
    %203 = vector.extract_strided_slice %202 {offsets = [0, 0], sizes = [8, 128], strides = [1, 1]} : vector<8x512xf32> to vector<8x128xf32>
    %204 = arith.negf %203 : vector<8x128xf32>
    %205 = math.exp %204 : vector<8x128xf32>
    %cst_59 = arith.constant 1.000000e+00 : f32
    %206 = vector.broadcast %cst_59 : f32 to vector<8x128xf32>
    %207 = arith.addf %206, %205 : vector<8x128xf32>
    %208 = arith.divf %206, %207 : vector<8x128xf32>
    %209 = vector.extract_strided_slice %202 {offsets = [0, 128], sizes = [8, 128], strides = [1, 1]} : vector<8x512xf32> to vector<8x128xf32>
    %210 = arith.negf %209 : vector<8x128xf32>
    %211 = math.exp %210 : vector<8x128xf32>
    %cst_60 = arith.constant 1.000000e+00 : f32
    %212 = vector.broadcast %cst_60 : f32 to vector<8x128xf32>
    %213 = arith.addf %212, %211 : vector<8x128xf32>
    %214 = arith.divf %212, %213 : vector<8x128xf32>
    %215 = vector.extract_strided_slice %202 {offsets = [0, 256], sizes = [8, 128], strides = [1, 1]} : vector<8x512xf32> to vector<8x128xf32>
    %216 = math.tanh %215 : vector<8x128xf32>
    %217 = vector.extract_strided_slice %202 {offsets = [0, 384], sizes = [8, 128], strides = [1, 1]} : vector<8x512xf32> to vector<8x128xf32>
    %218 = arith.negf %217 : vector<8x128xf32>
    %219 = math.exp %218 : vector<8x128xf32>
    %cst_61 = arith.constant 1.000000e+00 : f32
    %220 = vector.broadcast %cst_61 : f32 to vector<8x128xf32>
    %221 = arith.addf %220, %219 : vector<8x128xf32>
    %222 = arith.divf %220, %221 : vector<8x128xf32>
    %223 = arith.mulf %214, %187 : vector<8x128xf32>
    %224 = arith.mulf %208, %216 : vector<8x128xf32>
    %225 = arith.addf %223, %224 : vector<8x128xf32>
    %226 = math.tanh %225 : vector<8x128xf32>
    %227 = arith.mulf %222, %226 : vector<8x128xf32>
    %228 = arith.truncf %227 : vector<8x128xf32> to vector<8x128xbf16>
    %229 = arith.index_cast %c5_i32 : i32 to index
    %c0_62 = arith.constant 0 : index
    %c0_63 = arith.constant 0 : index
    %230 = vector.load %arg6[%229, %c0_62, %c0_63] : memref<6x8x128xbf16, #tpu.memory_space<vmem>>, vector<1x8x128xbf16>
    %231 = vector.shape_cast %230 : vector<1x8x128xbf16> to vector<8x128xbf16>
    %232 = vector.shape_cast %228 : vector<8x128xbf16> to vector<1x8x128xbf16>
    tpu.vector_store %arg6[%229, %c0_62, %c0_63], %232 {strides = array<i32>} : memref<6x8x128xbf16, #tpu.memory_space<vmem>>, vector<1x8x128xbf16>,
    %c6_i32 = arith.constant 6 : i32
    %c0_64 = arith.constant 0 : index
    %c0_65 = arith.constant 0 : index
    %233 = vector.load %arg8[%c0_64, %c0_65] : memref<8x128xf32, #tpu.memory_space<vmem>>, vector<8x128xf32>
    tpu.vector_store %arg8[%c0_64, %c0_65], %227 {strides = array<i32>} : memref<8x128xf32, #tpu.memory_space<vmem>>, vector<8x128xf32>,
    %c0_66 = arith.constant 0 : index
    %c0_67 = arith.constant 0 : index
    %234 = vector.load %arg9[%c0_66, %c0_67] : memref<8x128xf32, #tpu.memory_space<vmem>>, vector<8x128xf32>
    tpu.vector_store %arg9[%c0_66, %c0_67], %225 {strides = array<i32>} : memref<8x128xf32, #tpu.memory_space<vmem>>, vector<8x128xf32>,
    %c0_i32_68 = arith.constant 0 : i32
    %235 = arith.cmpi eq, %arg1, %c0_i32_68 : i32
    %236 = arith.extui %235 : i1 to i32
    %c0_i32_69 = arith.constant 0 : i32
    %237 = arith.cmpi ne, %236, %c0_i32_69 : i32
    scf.if %237 {
      %c0_70 = arith.constant 0 : index
      %c0_71 = arith.constant 0 : index
      %238 = vector.load %arg7[%c0_70, %c0_71] : memref<8x128xf32, #tpu.memory_space<vmem>>, vector<8x128xf32>
      tpu.vector_store %arg7[%c0_70, %c0_71], %227 {strides = array<i32>} : memref<8x128xf32, #tpu.memory_space<vmem>>, vector<8x128xf32>,
    } else {
    }
    return
  }
  func.func @transform_0(%arg0: i32, %arg1: i32) -> (i32, i32, i32) {
    %c0_i32 = arith.constant 0 : i32
    %c0_i32_0 = arith.constant 0 : i32
    return %arg1, %arg0, %c0_i32 : i32, i32, i32
  }
  func.func @transform_1(%arg0: i32, %arg1: i32) -> (i32, i32) {
    %c0_i32 = arith.constant 0 : i32
    %c0_i32_0 = arith.constant 0 : i32
    %c0_i32_1 = arith.constant 0 : i32
    return %c0_i32, %c0_i32_0 : i32, i32
  }
  func.func @transform_2(%arg0: i32, %arg1: i32) -> (i32, i32) {
    %c0_i32 = arith.constant 0 : i32
    %c0_i32_0 = arith.constant 0 : i32
    return %arg0, %c0_i32 : i32, i32
  }
  func.func @transform_3(%arg0: i32, %arg1: i32) -> (i32, i32) {
    %c0_i32 = arith.constant 0 : i32
    %c0_i32_0 = arith.constant 0 : i32
    return %arg0, %c0_i32 : i32, i32
  }
  func.func @transform_4(%arg0: i32, %arg1: i32) -> (i32, i32, i32) {
    %c0_i32 = arith.constant 0 : i32
    %c0_i32_0 = arith.constant 0 : i32
    return %arg1, %arg0, %c0_i32 : i32, i32, i32
  }
  func.func @transform_5(%arg0: i32, %arg1: i32) -> (i32, i32) {
    %c0_i32 = arith.constant 0 : i32
    %c0_i32_0 = arith.constant 0 : i32
    return %arg0, %c0_i32 : i32, i32
  }
}

module attributes {stable_mosaic.version = 11 : i64} {
  func.func @_lstm_scan_kernel(%arg0: i32, %arg1: i32, %arg2: memref<8x8x512xbf16, #tpu.memory_space<vmem>>, %arg3: memref<128x512xbf16, #tpu.memory_space<vmem>>, %arg4: memref<8x128xf32, #tpu.memory_space<vmem>>, %arg5: memref<8x128xf32, #tpu.memory_space<vmem>>, %arg6: memref<8x8x128xbf16, #tpu.memory_space<vmem>>, %arg7: memref<8x128xf32, #tpu.memory_space<vmem>>, %arg8: memref<8x128xf32, #tpu.memory_space<vmem>>, %arg9: memref<8x128xf32, #tpu.memory_space<vmem>>) attributes {dimension_semantics = [#tpu.dimension_semantics<parallel>, #tpu.dimension_semantics<arbitrary>], iteration_bounds = array<i64: 1, 1>, scalar_prefetch = 0 : i64, scratch_operands = 2 : i64, tpu.core_type = #tpu.core_type<tc>, window_params = [{transform_indices = @transform_0, window_bounds = array<i64: 8, 8, 512>}, {pipeline_mode = #tpu.pipeline_mode<synchronous>, transform_indices = @transform_1, window_bounds = array<i64: 128, 512>}, {transform_indices = @transform_2, window_bounds = array<i64: 8, 128>}, {transform_indices = @transform_3, window_bounds = array<i64: 8, 128>}, {transform_indices = @transform_4, window_bounds = array<i64: 8, 8, 128>}, {transform_indices = @transform_5, window_bounds = array<i64: 8, 128>}]} {
    %c0_i32 = arith.constant 0 : i32
    %0 = arith.cmpi eq, %arg1, %c0_i32 : i32
    %1 = arith.extui %0 : i1 to i32
    %c0_i32_0 = arith.constant 0 : i32
    %2 = arith.cmpi ne, %1, %c0_i32_0 : i32
    scf.if %2 {
      %c0_90 = arith.constant 0 : index
      %c0_91 = arith.constant 0 : index
      %314 = vector.load %arg4[%c0_90, %c0_91] : memref<8x128xf32, #tpu.memory_space<vmem>>, vector<8x128xf32>
      %c0_92 = arith.constant 0 : index
      %c0_93 = arith.constant 0 : index
      %315 = vector.load %arg8[%c0_92, %c0_93] : memref<8x128xf32, #tpu.memory_space<vmem>>, vector<8x128xf32>
      tpu.vector_store %arg8[%c0_92, %c0_93], %314 {strides = array<i32>} : memref<8x128xf32, #tpu.memory_space<vmem>>, vector<8x128xf32>,
      %c0_94 = arith.constant 0 : index
      %c0_95 = arith.constant 0 : index
      %316 = vector.load %arg5[%c0_94, %c0_95] : memref<8x128xf32, #tpu.memory_space<vmem>>, vector<8x128xf32>
      %c0_96 = arith.constant 0 : index
      %c0_97 = arith.constant 0 : index
      %317 = vector.load %arg9[%c0_96, %c0_97] : memref<8x128xf32, #tpu.memory_space<vmem>>, vector<8x128xf32>
      tpu.vector_store %arg9[%c0_96, %c0_97], %316 {strides = array<i32>} : memref<8x128xf32, #tpu.memory_space<vmem>>, vector<8x128xf32>,
    } else {
    }
    %c0 = arith.constant 0 : index
    %c0_1 = arith.constant 0 : index
    %3 = vector.load %arg8[%c0, %c0_1] : memref<8x128xf32, #tpu.memory_space<vmem>>, vector<8x128xf32>
    %c0_2 = arith.constant 0 : index
    %c0_3 = arith.constant 0 : index
    %4 = vector.load %arg9[%c0_2, %c0_3] : memref<8x128xf32, #tpu.memory_space<vmem>>, vector<8x128xf32>
    %c0_i32_4 = arith.constant 0 : i32
    %5 = arith.index_cast %c0_i32_4 : i32 to index
    %c0_5 = arith.constant 0 : index
    %c0_6 = arith.constant 0 : index
    %6 = vector.load %arg2[%5, %c0_5, %c0_6] : memref<8x8x512xbf16, #tpu.memory_space<vmem>>, vector<1x8x512xbf16>
    %7 = vector.shape_cast %6 : vector<1x8x512xbf16> to vector<8x512xbf16>
    %8 = arith.extf %7 : vector<8x512xbf16> to vector<8x512xf32>
    %9 = arith.truncf %3 : vector<8x128xf32> to vector<8x128xbf16>
    %c0_7 = arith.constant 0 : index
    %c0_8 = arith.constant 0 : index
    %10 = vector.load %arg3[%c0_7, %c0_8] : memref<128x512xbf16, #tpu.memory_space<vmem>>, vector<128x512xbf16>
    %cst = arith.constant dense<0.000000e+00> : vector<8x512xf32>
    %11 = tpu.matmul %9, %10, %cst {dimension_numbers = #tpu.dot_dimension_numbers<[1], [0], [0], [1], [0, 0, 1, 1], [], []>} : vector<8x128xbf16>, vector<128x512xbf16>, vector<8x512xf32> -> vector<8x512xf32>
    %12 = arith.addf %8, %11 : vector<8x512xf32>
    %13 = vector.extract_strided_slice %12 {offsets = [0, 0], sizes = [8, 128], strides = [1, 1]} : vector<8x512xf32> to vector<8x128xf32>
    %14 = arith.negf %13 : vector<8x128xf32>
    %15 = math.exp %14 : vector<8x128xf32>
    %cst_9 = arith.constant 1.000000e+00 : f32
    %16 = vector.broadcast %cst_9 : f32 to vector<8x128xf32>
    %17 = arith.addf %16, %15 : vector<8x128xf32>
    %18 = arith.divf %16, %17 : vector<8x128xf32>
    %19 = vector.extract_strided_slice %12 {offsets = [0, 128], sizes = [8, 128], strides = [1, 1]} : vector<8x512xf32> to vector<8x128xf32>
    %20 = arith.negf %19 : vector<8x128xf32>
    %21 = math.exp %20 : vector<8x128xf32>
    %cst_10 = arith.constant 1.000000e+00 : f32
    %22 = vector.broadcast %cst_10 : f32 to vector<8x128xf32>
    %23 = arith.addf %22, %21 : vector<8x128xf32>
    %24 = arith.divf %22, %23 : vector<8x128xf32>
    %25 = vector.extract_strided_slice %12 {offsets = [0, 256], sizes = [8, 128], strides = [1, 1]} : vector<8x512xf32> to vector<8x128xf32>
    %26 = math.tanh %25 : vector<8x128xf32>
    %27 = vector.extract_strided_slice %12 {offsets = [0, 384], sizes = [8, 128], strides = [1, 1]} : vector<8x512xf32> to vector<8x128xf32>
    %28 = arith.negf %27 : vector<8x128xf32>
    %29 = math.exp %28 : vector<8x128xf32>
    %cst_11 = arith.constant 1.000000e+00 : f32
    %30 = vector.broadcast %cst_11 : f32 to vector<8x128xf32>
    %31 = arith.addf %30, %29 : vector<8x128xf32>
    %32 = arith.divf %30, %31 : vector<8x128xf32>
    %33 = arith.mulf %24, %4 : vector<8x128xf32>
    %34 = arith.mulf %18, %26 : vector<8x128xf32>
    %35 = arith.addf %33, %34 : vector<8x128xf32>
    %36 = math.tanh %35 : vector<8x128xf32>
    %37 = arith.mulf %32, %36 : vector<8x128xf32>
    %38 = arith.truncf %37 : vector<8x128xf32> to vector<8x128xbf16>
    %39 = arith.index_cast %c0_i32_4 : i32 to index
    %c0_12 = arith.constant 0 : index
    %c0_13 = arith.constant 0 : index
    %40 = vector.load %arg6[%39, %c0_12, %c0_13] : memref<8x8x128xbf16, #tpu.memory_space<vmem>>, vector<1x8x128xbf16>
    %41 = vector.shape_cast %40 : vector<1x8x128xbf16> to vector<8x128xbf16>
    %42 = vector.shape_cast %38 : vector<8x128xbf16> to vector<1x8x128xbf16>
    tpu.vector_store %arg6[%39, %c0_12, %c0_13], %42 {strides = array<i32>} : memref<8x8x128xbf16, #tpu.memory_space<vmem>>, vector<1x8x128xbf16>,
    %c1_i32 = arith.constant 1 : i32
    %43 = arith.index_cast %c1_i32 : i32 to index
    %c0_14 = arith.constant 0 : index
    %c0_15 = arith.constant 0 : index
    %44 = vector.load %arg2[%43, %c0_14, %c0_15] : memref<8x8x512xbf16, #tpu.memory_space<vmem>>, vector<1x8x512xbf16>
    %45 = vector.shape_cast %44 : vector<1x8x512xbf16> to vector<8x512xbf16>
    %46 = arith.extf %45 : vector<8x512xbf16> to vector<8x512xf32>
    %47 = arith.truncf %37 : vector<8x128xf32> to vector<8x128xbf16>
    %c0_16 = arith.constant 0 : index
    %c0_17 = arith.constant 0 : index
    %48 = vector.load %arg3[%c0_16, %c0_17] : memref<128x512xbf16, #tpu.memory_space<vmem>>, vector<128x512xbf16>
    %cst_18 = arith.constant dense<0.000000e+00> : vector<8x512xf32>
    %49 = tpu.matmul %47, %48, %cst_18 {dimension_numbers = #tpu.dot_dimension_numbers<[1], [0], [0], [1], [0, 0, 1, 1], [], []>} : vector<8x128xbf16>, vector<128x512xbf16>, vector<8x512xf32> -> vector<8x512xf32>
    %50 = arith.addf %46, %49 : vector<8x512xf32>
    %51 = vector.extract_strided_slice %50 {offsets = [0, 0], sizes = [8, 128], strides = [1, 1]} : vector<8x512xf32> to vector<8x128xf32>
    %52 = arith.negf %51 : vector<8x128xf32>
    %53 = math.exp %52 : vector<8x128xf32>
    %cst_19 = arith.constant 1.000000e+00 : f32
    %54 = vector.broadcast %cst_19 : f32 to vector<8x128xf32>
    %55 = arith.addf %54, %53 : vector<8x128xf32>
    %56 = arith.divf %54, %55 : vector<8x128xf32>
    %57 = vector.extract_strided_slice %50 {offsets = [0, 128], sizes = [8, 128], strides = [1, 1]} : vector<8x512xf32> to vector<8x128xf32>
    %58 = arith.negf %57 : vector<8x128xf32>
    %59 = math.exp %58 : vector<8x128xf32>
    %cst_20 = arith.constant 1.000000e+00 : f32
    %60 = vector.broadcast %cst_20 : f32 to vector<8x128xf32>
    %61 = arith.addf %60, %59 : vector<8x128xf32>
    %62 = arith.divf %60, %61 : vector<8x128xf32>
    %63 = vector.extract_strided_slice %50 {offsets = [0, 256], sizes = [8, 128], strides = [1, 1]} : vector<8x512xf32> to vector<8x128xf32>
    %64 = math.tanh %63 : vector<8x128xf32>
    %65 = vector.extract_strided_slice %50 {offsets = [0, 384], sizes = [8, 128], strides = [1, 1]} : vector<8x512xf32> to vector<8x128xf32>
    %66 = arith.negf %65 : vector<8x128xf32>
    %67 = math.exp %66 : vector<8x128xf32>
    %cst_21 = arith.constant 1.000000e+00 : f32
    %68 = vector.broadcast %cst_21 : f32 to vector<8x128xf32>
    %69 = arith.addf %68, %67 : vector<8x128xf32>
    %70 = arith.divf %68, %69 : vector<8x128xf32>
    %71 = arith.mulf %62, %35 : vector<8x128xf32>
    %72 = arith.mulf %56, %64 : vector<8x128xf32>
    %73 = arith.addf %71, %72 : vector<8x128xf32>
    %74 = math.tanh %73 : vector<8x128xf32>
    %75 = arith.mulf %70, %74 : vector<8x128xf32>
    %76 = arith.truncf %75 : vector<8x128xf32> to vector<8x128xbf16>
    %77 = arith.index_cast %c1_i32 : i32 to index
    %c0_22 = arith.constant 0 : index
    %c0_23 = arith.constant 0 : index
    %78 = vector.load %arg6[%77, %c0_22, %c0_23] : memref<8x8x128xbf16, #tpu.memory_space<vmem>>, vector<1x8x128xbf16>
    %79 = vector.shape_cast %78 : vector<1x8x128xbf16> to vector<8x128xbf16>
    %80 = vector.shape_cast %76 : vector<8x128xbf16> to vector<1x8x128xbf16>
    tpu.vector_store %arg6[%77, %c0_22, %c0_23], %80 {strides = array<i32>} : memref<8x8x128xbf16, #tpu.memory_space<vmem>>, vector<1x8x128xbf16>,
    %c2_i32 = arith.constant 2 : i32
    %81 = arith.index_cast %c2_i32 : i32 to index
    %c0_24 = arith.constant 0 : index
    %c0_25 = arith.constant 0 : index
    %82 = vector.load %arg2[%81, %c0_24, %c0_25] : memref<8x8x512xbf16, #tpu.memory_space<vmem>>, vector<1x8x512xbf16>
    %83 = vector.shape_cast %82 : vector<1x8x512xbf16> to vector<8x512xbf16>
    %84 = arith.extf %83 : vector<8x512xbf16> to vector<8x512xf32>
    %85 = arith.truncf %75 : vector<8x128xf32> to vector<8x128xbf16>
    %c0_26 = arith.constant 0 : index
    %c0_27 = arith.constant 0 : index
    %86 = vector.load %arg3[%c0_26, %c0_27] : memref<128x512xbf16, #tpu.memory_space<vmem>>, vector<128x512xbf16>
    %cst_28 = arith.constant dense<0.000000e+00> : vector<8x512xf32>
    %87 = tpu.matmul %85, %86, %cst_28 {dimension_numbers = #tpu.dot_dimension_numbers<[1], [0], [0], [1], [0, 0, 1, 1], [], []>} : vector<8x128xbf16>, vector<128x512xbf16>, vector<8x512xf32> -> vector<8x512xf32>
    %88 = arith.addf %84, %87 : vector<8x512xf32>
    %89 = vector.extract_strided_slice %88 {offsets = [0, 0], sizes = [8, 128], strides = [1, 1]} : vector<8x512xf32> to vector<8x128xf32>
    %90 = arith.negf %89 : vector<8x128xf32>
    %91 = math.exp %90 : vector<8x128xf32>
    %cst_29 = arith.constant 1.000000e+00 : f32
    %92 = vector.broadcast %cst_29 : f32 to vector<8x128xf32>
    %93 = arith.addf %92, %91 : vector<8x128xf32>
    %94 = arith.divf %92, %93 : vector<8x128xf32>
    %95 = vector.extract_strided_slice %88 {offsets = [0, 128], sizes = [8, 128], strides = [1, 1]} : vector<8x512xf32> to vector<8x128xf32>
    %96 = arith.negf %95 : vector<8x128xf32>
    %97 = math.exp %96 : vector<8x128xf32>
    %cst_30 = arith.constant 1.000000e+00 : f32
    %98 = vector.broadcast %cst_30 : f32 to vector<8x128xf32>
    %99 = arith.addf %98, %97 : vector<8x128xf32>
    %100 = arith.divf %98, %99 : vector<8x128xf32>
    %101 = vector.extract_strided_slice %88 {offsets = [0, 256], sizes = [8, 128], strides = [1, 1]} : vector<8x512xf32> to vector<8x128xf32>
    %102 = math.tanh %101 : vector<8x128xf32>
    %103 = vector.extract_strided_slice %88 {offsets = [0, 384], sizes = [8, 128], strides = [1, 1]} : vector<8x512xf32> to vector<8x128xf32>
    %104 = arith.negf %103 : vector<8x128xf32>
    %105 = math.exp %104 : vector<8x128xf32>
    %cst_31 = arith.constant 1.000000e+00 : f32
    %106 = vector.broadcast %cst_31 : f32 to vector<8x128xf32>
    %107 = arith.addf %106, %105 : vector<8x128xf32>
    %108 = arith.divf %106, %107 : vector<8x128xf32>
    %109 = arith.mulf %100, %73 : vector<8x128xf32>
    %110 = arith.mulf %94, %102 : vector<8x128xf32>
    %111 = arith.addf %109, %110 : vector<8x128xf32>
    %112 = math.tanh %111 : vector<8x128xf32>
    %113 = arith.mulf %108, %112 : vector<8x128xf32>
    %114 = arith.truncf %113 : vector<8x128xf32> to vector<8x128xbf16>
    %115 = arith.index_cast %c2_i32 : i32 to index
    %c0_32 = arith.constant 0 : index
    %c0_33 = arith.constant 0 : index
    %116 = vector.load %arg6[%115, %c0_32, %c0_33] : memref<8x8x128xbf16, #tpu.memory_space<vmem>>, vector<1x8x128xbf16>
    %117 = vector.shape_cast %116 : vector<1x8x128xbf16> to vector<8x128xbf16>
    %118 = vector.shape_cast %114 : vector<8x128xbf16> to vector<1x8x128xbf16>
    tpu.vector_store %arg6[%115, %c0_32, %c0_33], %118 {strides = array<i32>} : memref<8x8x128xbf16, #tpu.memory_space<vmem>>, vector<1x8x128xbf16>,
    %c3_i32 = arith.constant 3 : i32
    %119 = arith.index_cast %c3_i32 : i32 to index
    %c0_34 = arith.constant 0 : index
    %c0_35 = arith.constant 0 : index
    %120 = vector.load %arg2[%119, %c0_34, %c0_35] : memref<8x8x512xbf16, #tpu.memory_space<vmem>>, vector<1x8x512xbf16>
    %121 = vector.shape_cast %120 : vector<1x8x512xbf16> to vector<8x512xbf16>
    %122 = arith.extf %121 : vector<8x512xbf16> to vector<8x512xf32>
    %123 = arith.truncf %113 : vector<8x128xf32> to vector<8x128xbf16>
    %c0_36 = arith.constant 0 : index
    %c0_37 = arith.constant 0 : index
    %124 = vector.load %arg3[%c0_36, %c0_37] : memref<128x512xbf16, #tpu.memory_space<vmem>>, vector<128x512xbf16>
    %cst_38 = arith.constant dense<0.000000e+00> : vector<8x512xf32>
    %125 = tpu.matmul %123, %124, %cst_38 {dimension_numbers = #tpu.dot_dimension_numbers<[1], [0], [0], [1], [0, 0, 1, 1], [], []>} : vector<8x128xbf16>, vector<128x512xbf16>, vector<8x512xf32> -> vector<8x512xf32>
    %126 = arith.addf %122, %125 : vector<8x512xf32>
    %127 = vector.extract_strided_slice %126 {offsets = [0, 0], sizes = [8, 128], strides = [1, 1]} : vector<8x512xf32> to vector<8x128xf32>
    %128 = arith.negf %127 : vector<8x128xf32>
    %129 = math.exp %128 : vector<8x128xf32>
    %cst_39 = arith.constant 1.000000e+00 : f32
    %130 = vector.broadcast %cst_39 : f32 to vector<8x128xf32>
    %131 = arith.addf %130, %129 : vector<8x128xf32>
    %132 = arith.divf %130, %131 : vector<8x128xf32>
    %133 = vector.extract_strided_slice %126 {offsets = [0, 128], sizes = [8, 128], strides = [1, 1]} : vector<8x512xf32> to vector<8x128xf32>
    %134 = arith.negf %133 : vector<8x128xf32>
    %135 = math.exp %134 : vector<8x128xf32>
    %cst_40 = arith.constant 1.000000e+00 : f32
    %136 = vector.broadcast %cst_40 : f32 to vector<8x128xf32>
    %137 = arith.addf %136, %135 : vector<8x128xf32>
    %138 = arith.divf %136, %137 : vector<8x128xf32>
    %139 = vector.extract_strided_slice %126 {offsets = [0, 256], sizes = [8, 128], strides = [1, 1]} : vector<8x512xf32> to vector<8x128xf32>
    %140 = math.tanh %139 : vector<8x128xf32>
    %141 = vector.extract_strided_slice %126 {offsets = [0, 384], sizes = [8, 128], strides = [1, 1]} : vector<8x512xf32> to vector<8x128xf32>
    %142 = arith.negf %141 : vector<8x128xf32>
    %143 = math.exp %142 : vector<8x128xf32>
    %cst_41 = arith.constant 1.000000e+00 : f32
    %144 = vector.broadcast %cst_41 : f32 to vector<8x128xf32>
    %145 = arith.addf %144, %143 : vector<8x128xf32>
    %146 = arith.divf %144, %145 : vector<8x128xf32>
    %147 = arith.mulf %138, %111 : vector<8x128xf32>
    %148 = arith.mulf %132, %140 : vector<8x128xf32>
    %149 = arith.addf %147, %148 : vector<8x128xf32>
    %150 = math.tanh %149 : vector<8x128xf32>
    %151 = arith.mulf %146, %150 : vector<8x128xf32>
    %152 = arith.truncf %151 : vector<8x128xf32> to vector<8x128xbf16>
    %153 = arith.index_cast %c3_i32 : i32 to index
    %c0_42 = arith.constant 0 : index
    %c0_43 = arith.constant 0 : index
    %154 = vector.load %arg6[%153, %c0_42, %c0_43] : memref<8x8x128xbf16, #tpu.memory_space<vmem>>, vector<1x8x128xbf16>
    %155 = vector.shape_cast %154 : vector<1x8x128xbf16> to vector<8x128xbf16>
    %156 = vector.shape_cast %152 : vector<8x128xbf16> to vector<1x8x128xbf16>
    tpu.vector_store %arg6[%153, %c0_42, %c0_43], %156 {strides = array<i32>} : memref<8x8x128xbf16, #tpu.memory_space<vmem>>, vector<1x8x128xbf16>,
    %c4_i32 = arith.constant 4 : i32
    %157 = arith.index_cast %c4_i32 : i32 to index
    %c0_44 = arith.constant 0 : index
    %c0_45 = arith.constant 0 : index
    %158 = vector.load %arg2[%157, %c0_44, %c0_45] : memref<8x8x512xbf16, #tpu.memory_space<vmem>>, vector<1x8x512xbf16>
    %159 = vector.shape_cast %158 : vector<1x8x512xbf16> to vector<8x512xbf16>
    %160 = arith.extf %159 : vector<8x512xbf16> to vector<8x512xf32>
    %161 = arith.truncf %151 : vector<8x128xf32> to vector<8x128xbf16>
    %c0_46 = arith.constant 0 : index
    %c0_47 = arith.constant 0 : index
    %162 = vector.load %arg3[%c0_46, %c0_47] : memref<128x512xbf16, #tpu.memory_space<vmem>>, vector<128x512xbf16>
    %cst_48 = arith.constant dense<0.000000e+00> : vector<8x512xf32>
    %163 = tpu.matmul %161, %162, %cst_48 {dimension_numbers = #tpu.dot_dimension_numbers<[1], [0], [0], [1], [0, 0, 1, 1], [], []>} : vector<8x128xbf16>, vector<128x512xbf16>, vector<8x512xf32> -> vector<8x512xf32>
    %164 = arith.addf %160, %163 : vector<8x512xf32>
    %165 = vector.extract_strided_slice %164 {offsets = [0, 0], sizes = [8, 128], strides = [1, 1]} : vector<8x512xf32> to vector<8x128xf32>
    %166 = arith.negf %165 : vector<8x128xf32>
    %167 = math.exp %166 : vector<8x128xf32>
    %cst_49 = arith.constant 1.000000e+00 : f32
    %168 = vector.broadcast %cst_49 : f32 to vector<8x128xf32>
    %169 = arith.addf %168, %167 : vector<8x128xf32>
    %170 = arith.divf %168, %169 : vector<8x128xf32>
    %171 = vector.extract_strided_slice %164 {offsets = [0, 128], sizes = [8, 128], strides = [1, 1]} : vector<8x512xf32> to vector<8x128xf32>
    %172 = arith.negf %171 : vector<8x128xf32>
    %173 = math.exp %172 : vector<8x128xf32>
    %cst_50 = arith.constant 1.000000e+00 : f32
    %174 = vector.broadcast %cst_50 : f32 to vector<8x128xf32>
    %175 = arith.addf %174, %173 : vector<8x128xf32>
    %176 = arith.divf %174, %175 : vector<8x128xf32>
    %177 = vector.extract_strided_slice %164 {offsets = [0, 256], sizes = [8, 128], strides = [1, 1]} : vector<8x512xf32> to vector<8x128xf32>
    %178 = math.tanh %177 : vector<8x128xf32>
    %179 = vector.extract_strided_slice %164 {offsets = [0, 384], sizes = [8, 128], strides = [1, 1]} : vector<8x512xf32> to vector<8x128xf32>
    %180 = arith.negf %179 : vector<8x128xf32>
    %181 = math.exp %180 : vector<8x128xf32>
    %cst_51 = arith.constant 1.000000e+00 : f32
    %182 = vector.broadcast %cst_51 : f32 to vector<8x128xf32>
    %183 = arith.addf %182, %181 : vector<8x128xf32>
    %184 = arith.divf %182, %183 : vector<8x128xf32>
    %185 = arith.mulf %176, %149 : vector<8x128xf32>
    %186 = arith.mulf %170, %178 : vector<8x128xf32>
    %187 = arith.addf %185, %186 : vector<8x128xf32>
    %188 = math.tanh %187 : vector<8x128xf32>
    %189 = arith.mulf %184, %188 : vector<8x128xf32>
    %190 = arith.truncf %189 : vector<8x128xf32> to vector<8x128xbf16>
    %191 = arith.index_cast %c4_i32 : i32 to index
    %c0_52 = arith.constant 0 : index
    %c0_53 = arith.constant 0 : index
    %192 = vector.load %arg6[%191, %c0_52, %c0_53] : memref<8x8x128xbf16, #tpu.memory_space<vmem>>, vector<1x8x128xbf16>
    %193 = vector.shape_cast %192 : vector<1x8x128xbf16> to vector<8x128xbf16>
    %194 = vector.shape_cast %190 : vector<8x128xbf16> to vector<1x8x128xbf16>
    tpu.vector_store %arg6[%191, %c0_52, %c0_53], %194 {strides = array<i32>} : memref<8x8x128xbf16, #tpu.memory_space<vmem>>, vector<1x8x128xbf16>,
    %c5_i32 = arith.constant 5 : i32
    %195 = arith.index_cast %c5_i32 : i32 to index
    %c0_54 = arith.constant 0 : index
    %c0_55 = arith.constant 0 : index
    %196 = vector.load %arg2[%195, %c0_54, %c0_55] : memref<8x8x512xbf16, #tpu.memory_space<vmem>>, vector<1x8x512xbf16>
    %197 = vector.shape_cast %196 : vector<1x8x512xbf16> to vector<8x512xbf16>
    %198 = arith.extf %197 : vector<8x512xbf16> to vector<8x512xf32>
    %199 = arith.truncf %189 : vector<8x128xf32> to vector<8x128xbf16>
    %c0_56 = arith.constant 0 : index
    %c0_57 = arith.constant 0 : index
    %200 = vector.load %arg3[%c0_56, %c0_57] : memref<128x512xbf16, #tpu.memory_space<vmem>>, vector<128x512xbf16>
    %cst_58 = arith.constant dense<0.000000e+00> : vector<8x512xf32>
    %201 = tpu.matmul %199, %200, %cst_58 {dimension_numbers = #tpu.dot_dimension_numbers<[1], [0], [0], [1], [0, 0, 1, 1], [], []>} : vector<8x128xbf16>, vector<128x512xbf16>, vector<8x512xf32> -> vector<8x512xf32>
    %202 = arith.addf %198, %201 : vector<8x512xf32>
    %203 = vector.extract_strided_slice %202 {offsets = [0, 0], sizes = [8, 128], strides = [1, 1]} : vector<8x512xf32> to vector<8x128xf32>
    %204 = arith.negf %203 : vector<8x128xf32>
    %205 = math.exp %204 : vector<8x128xf32>
    %cst_59 = arith.constant 1.000000e+00 : f32
    %206 = vector.broadcast %cst_59 : f32 to vector<8x128xf32>
    %207 = arith.addf %206, %205 : vector<8x128xf32>
    %208 = arith.divf %206, %207 : vector<8x128xf32>
    %209 = vector.extract_strided_slice %202 {offsets = [0, 128], sizes = [8, 128], strides = [1, 1]} : vector<8x512xf32> to vector<8x128xf32>
    %210 = arith.negf %209 : vector<8x128xf32>
    %211 = math.exp %210 : vector<8x128xf32>
    %cst_60 = arith.constant 1.000000e+00 : f32
    %212 = vector.broadcast %cst_60 : f32 to vector<8x128xf32>
    %213 = arith.addf %212, %211 : vector<8x128xf32>
    %214 = arith.divf %212, %213 : vector<8x128xf32>
    %215 = vector.extract_strided_slice %202 {offsets = [0, 256], sizes = [8, 128], strides = [1, 1]} : vector<8x512xf32> to vector<8x128xf32>
    %216 = math.tanh %215 : vector<8x128xf32>
    %217 = vector.extract_strided_slice %202 {offsets = [0, 384], sizes = [8, 128], strides = [1, 1]} : vector<8x512xf32> to vector<8x128xf32>
    %218 = arith.negf %217 : vector<8x128xf32>
    %219 = math.exp %218 : vector<8x128xf32>
    %cst_61 = arith.constant 1.000000e+00 : f32
    %220 = vector.broadcast %cst_61 : f32 to vector<8x128xf32>
    %221 = arith.addf %220, %219 : vector<8x128xf32>
    %222 = arith.divf %220, %221 : vector<8x128xf32>
    %223 = arith.mulf %214, %187 : vector<8x128xf32>
    %224 = arith.mulf %208, %216 : vector<8x128xf32>
    %225 = arith.addf %223, %224 : vector<8x128xf32>
    %226 = math.tanh %225 : vector<8x128xf32>
    %227 = arith.mulf %222, %226 : vector<8x128xf32>
    %228 = arith.truncf %227 : vector<8x128xf32> to vector<8x128xbf16>
    %229 = arith.index_cast %c5_i32 : i32 to index
    %c0_62 = arith.constant 0 : index
    %c0_63 = arith.constant 0 : index
    %230 = vector.load %arg6[%229, %c0_62, %c0_63] : memref<8x8x128xbf16, #tpu.memory_space<vmem>>, vector<1x8x128xbf16>
    %231 = vector.shape_cast %230 : vector<1x8x128xbf16> to vector<8x128xbf16>
    %232 = vector.shape_cast %228 : vector<8x128xbf16> to vector<1x8x128xbf16>
    tpu.vector_store %arg6[%229, %c0_62, %c0_63], %232 {strides = array<i32>} : memref<8x8x128xbf16, #tpu.memory_space<vmem>>, vector<1x8x128xbf16>,
    %c6_i32 = arith.constant 6 : i32
    %233 = arith.index_cast %c6_i32 : i32 to index
    %c0_64 = arith.constant 0 : index
    %c0_65 = arith.constant 0 : index
    %234 = vector.load %arg2[%233, %c0_64, %c0_65] : memref<8x8x512xbf16, #tpu.memory_space<vmem>>, vector<1x8x512xbf16>
    %235 = vector.shape_cast %234 : vector<1x8x512xbf16> to vector<8x512xbf16>
    %236 = arith.extf %235 : vector<8x512xbf16> to vector<8x512xf32>
    %237 = arith.truncf %227 : vector<8x128xf32> to vector<8x128xbf16>
    %c0_66 = arith.constant 0 : index
    %c0_67 = arith.constant 0 : index
    %238 = vector.load %arg3[%c0_66, %c0_67] : memref<128x512xbf16, #tpu.memory_space<vmem>>, vector<128x512xbf16>
    %cst_68 = arith.constant dense<0.000000e+00> : vector<8x512xf32>
    %239 = tpu.matmul %237, %238, %cst_68 {dimension_numbers = #tpu.dot_dimension_numbers<[1], [0], [0], [1], [0, 0, 1, 1], [], []>} : vector<8x128xbf16>, vector<128x512xbf16>, vector<8x512xf32> -> vector<8x512xf32>
    %240 = arith.addf %236, %239 : vector<8x512xf32>
    %241 = vector.extract_strided_slice %240 {offsets = [0, 0], sizes = [8, 128], strides = [1, 1]} : vector<8x512xf32> to vector<8x128xf32>
    %242 = arith.negf %241 : vector<8x128xf32>
    %243 = math.exp %242 : vector<8x128xf32>
    %cst_69 = arith.constant 1.000000e+00 : f32
    %244 = vector.broadcast %cst_69 : f32 to vector<8x128xf32>
    %245 = arith.addf %244, %243 : vector<8x128xf32>
    %246 = arith.divf %244, %245 : vector<8x128xf32>
    %247 = vector.extract_strided_slice %240 {offsets = [0, 128], sizes = [8, 128], strides = [1, 1]} : vector<8x512xf32> to vector<8x128xf32>
    %248 = arith.negf %247 : vector<8x128xf32>
    %249 = math.exp %248 : vector<8x128xf32>
    %cst_70 = arith.constant 1.000000e+00 : f32
    %250 = vector.broadcast %cst_70 : f32 to vector<8x128xf32>
    %251 = arith.addf %250, %249 : vector<8x128xf32>
    %252 = arith.divf %250, %251 : vector<8x128xf32>
    %253 = vector.extract_strided_slice %240 {offsets = [0, 256], sizes = [8, 128], strides = [1, 1]} : vector<8x512xf32> to vector<8x128xf32>
    %254 = math.tanh %253 : vector<8x128xf32>
    %255 = vector.extract_strided_slice %240 {offsets = [0, 384], sizes = [8, 128], strides = [1, 1]} : vector<8x512xf32> to vector<8x128xf32>
    %256 = arith.negf %255 : vector<8x128xf32>
    %257 = math.exp %256 : vector<8x128xf32>
    %cst_71 = arith.constant 1.000000e+00 : f32
    %258 = vector.broadcast %cst_71 : f32 to vector<8x128xf32>
    %259 = arith.addf %258, %257 : vector<8x128xf32>
    %260 = arith.divf %258, %259 : vector<8x128xf32>
    %261 = arith.mulf %252, %225 : vector<8x128xf32>
    %262 = arith.mulf %246, %254 : vector<8x128xf32>
    %263 = arith.addf %261, %262 : vector<8x128xf32>
    %264 = math.tanh %263 : vector<8x128xf32>
    %265 = arith.mulf %260, %264 : vector<8x128xf32>
    %266 = arith.truncf %265 : vector<8x128xf32> to vector<8x128xbf16>
    %267 = arith.index_cast %c6_i32 : i32 to index
    %c0_72 = arith.constant 0 : index
    %c0_73 = arith.constant 0 : index
    %268 = vector.load %arg6[%267, %c0_72, %c0_73] : memref<8x8x128xbf16, #tpu.memory_space<vmem>>, vector<1x8x128xbf16>
    %269 = vector.shape_cast %268 : vector<1x8x128xbf16> to vector<8x128xbf16>
    %270 = vector.shape_cast %266 : vector<8x128xbf16> to vector<1x8x128xbf16>
    tpu.vector_store %arg6[%267, %c0_72, %c0_73], %270 {strides = array<i32>} : memref<8x8x128xbf16, #tpu.memory_space<vmem>>, vector<1x8x128xbf16>,
    %c7_i32 = arith.constant 7 : i32
    %271 = arith.index_cast %c7_i32 : i32 to index
    %c0_74 = arith.constant 0 : index
    %c0_75 = arith.constant 0 : index
    %272 = vector.load %arg2[%271, %c0_74, %c0_75] : memref<8x8x512xbf16, #tpu.memory_space<vmem>>, vector<1x8x512xbf16>
    %273 = vector.shape_cast %272 : vector<1x8x512xbf16> to vector<8x512xbf16>
    %274 = arith.extf %273 : vector<8x512xbf16> to vector<8x512xf32>
    %275 = arith.truncf %265 : vector<8x128xf32> to vector<8x128xbf16>
    %c0_76 = arith.constant 0 : index
    %c0_77 = arith.constant 0 : index
    %276 = vector.load %arg3[%c0_76, %c0_77] : memref<128x512xbf16, #tpu.memory_space<vmem>>, vector<128x512xbf16>
    %cst_78 = arith.constant dense<0.000000e+00> : vector<8x512xf32>
    %277 = tpu.matmul %275, %276, %cst_78 {dimension_numbers = #tpu.dot_dimension_numbers<[1], [0], [0], [1], [0, 0, 1, 1], [], []>} : vector<8x128xbf16>, vector<128x512xbf16>, vector<8x512xf32> -> vector<8x512xf32>
    %278 = arith.addf %274, %277 : vector<8x512xf32>
    %279 = vector.extract_strided_slice %278 {offsets = [0, 0], sizes = [8, 128], strides = [1, 1]} : vector<8x512xf32> to vector<8x128xf32>
    %280 = arith.negf %279 : vector<8x128xf32>
    %281 = math.exp %280 : vector<8x128xf32>
    %cst_79 = arith.constant 1.000000e+00 : f32
    %282 = vector.broadcast %cst_79 : f32 to vector<8x128xf32>
    %283 = arith.addf %282, %281 : vector<8x128xf32>
    %284 = arith.divf %282, %283 : vector<8x128xf32>
    %285 = vector.extract_strided_slice %278 {offsets = [0, 128], sizes = [8, 128], strides = [1, 1]} : vector<8x512xf32> to vector<8x128xf32>
    %286 = arith.negf %285 : vector<8x128xf32>
    %287 = math.exp %286 : vector<8x128xf32>
    %cst_80 = arith.constant 1.000000e+00 : f32
    %288 = vector.broadcast %cst_80 : f32 to vector<8x128xf32>
    %289 = arith.addf %288, %287 : vector<8x128xf32>
    %290 = arith.divf %288, %289 : vector<8x128xf32>
    %291 = vector.extract_strided_slice %278 {offsets = [0, 256], sizes = [8, 128], strides = [1, 1]} : vector<8x512xf32> to vector<8x128xf32>
    %292 = math.tanh %291 : vector<8x128xf32>
    %293 = vector.extract_strided_slice %278 {offsets = [0, 384], sizes = [8, 128], strides = [1, 1]} : vector<8x512xf32> to vector<8x128xf32>
    %294 = arith.negf %293 : vector<8x128xf32>
    %295 = math.exp %294 : vector<8x128xf32>
    %cst_81 = arith.constant 1.000000e+00 : f32
    %296 = vector.broadcast %cst_81 : f32 to vector<8x128xf32>
    %297 = arith.addf %296, %295 : vector<8x128xf32>
    %298 = arith.divf %296, %297 : vector<8x128xf32>
    %299 = arith.mulf %290, %263 : vector<8x128xf32>
    %300 = arith.mulf %284, %292 : vector<8x128xf32>
    %301 = arith.addf %299, %300 : vector<8x128xf32>
    %302 = math.tanh %301 : vector<8x128xf32>
    %303 = arith.mulf %298, %302 : vector<8x128xf32>
    %304 = arith.truncf %303 : vector<8x128xf32> to vector<8x128xbf16>
    %305 = arith.index_cast %c7_i32 : i32 to index
    %c0_82 = arith.constant 0 : index
    %c0_83 = arith.constant 0 : index
    %306 = vector.load %arg6[%305, %c0_82, %c0_83] : memref<8x8x128xbf16, #tpu.memory_space<vmem>>, vector<1x8x128xbf16>
    %307 = vector.shape_cast %306 : vector<1x8x128xbf16> to vector<8x128xbf16>
    %308 = vector.shape_cast %304 : vector<8x128xbf16> to vector<1x8x128xbf16>
    tpu.vector_store %arg6[%305, %c0_82, %c0_83], %308 {strides = array<i32>} : memref<8x8x128xbf16, #tpu.memory_space<vmem>>, vector<1x8x128xbf16>,
    %c8_i32 = arith.constant 8 : i32
    %c0_84 = arith.constant 0 : index
    %c0_85 = arith.constant 0 : index
    %309 = vector.load %arg8[%c0_84, %c0_85] : memref<8x128xf32, #tpu.memory_space<vmem>>, vector<8x128xf32>
    tpu.vector_store %arg8[%c0_84, %c0_85], %303 {strides = array<i32>} : memref<8x128xf32, #tpu.memory_space<vmem>>, vector<8x128xf32>,
    %c0_86 = arith.constant 0 : index
    %c0_87 = arith.constant 0 : index
    %310 = vector.load %arg9[%c0_86, %c0_87] : memref<8x128xf32, #tpu.memory_space<vmem>>, vector<8x128xf32>
    tpu.vector_store %arg9[%c0_86, %c0_87], %301 {strides = array<i32>} : memref<8x128xf32, #tpu.memory_space<vmem>>, vector<8x128xf32>,
    %c0_i32_88 = arith.constant 0 : i32
    %311 = arith.cmpi eq, %arg1, %c0_i32_88 : i32
    %312 = arith.extui %311 : i1 to i32
    %c0_i32_89 = arith.constant 0 : i32
    %313 = arith.cmpi ne, %312, %c0_i32_89 : i32
    scf.if %313 {
      %c0_90 = arith.constant 0 : index
      %c0_91 = arith.constant 0 : index
      %314 = vector.load %arg7[%c0_90, %c0_91] : memref<8x128xf32, #tpu.memory_space<vmem>>, vector<8x128xf32>
      tpu.vector_store %arg7[%c0_90, %c0_91], %303 {strides = array<i32>} : memref<8x128xf32, #tpu.memory_space<vmem>>, vector<8x128xf32>,
    } else {
    }
    return
  }
  func.func @transform_0(%arg0: i32, %arg1: i32) -> (i32, i32, i32) {
    %c0_i32 = arith.constant 0 : i32
    %c0_i32_0 = arith.constant 0 : i32
    return %arg1, %arg0, %c0_i32 : i32, i32, i32
  }
  func.func @transform_1(%arg0: i32, %arg1: i32) -> (i32, i32) {
    %c0_i32 = arith.constant 0 : i32
    %c0_i32_0 = arith.constant 0 : i32
    %c0_i32_1 = arith.constant 0 : i32
    return %c0_i32, %c0_i32_0 : i32, i32
  }
  func.func @transform_2(%arg0: i32, %arg1: i32) -> (i32, i32) {
    %c0_i32 = arith.constant 0 : i32
    %c0_i32_0 = arith.constant 0 : i32
    return %arg0, %c0_i32 : i32, i32
  }
  func.func @transform_3(%arg0: i32, %arg1: i32) -> (i32, i32) {
    %c0_i32 = arith.constant 0 : i32
    %c0_i32_0 = arith.constant 0 : i32
    return %arg0, %c0_i32 : i32, i32
  }
  func.func @transform_4(%arg0: i32, %arg1: i32) -> (i32, i32, i32) {
    %c0_i32 = arith.constant 0 : i32
    %c0_i32_0 = arith.constant 0 : i32
    return %arg1, %arg0, %c0_i32 : i32, i32, i32
  }
  func.func @transform_5(%arg0: i32, %arg1: i32) -> (i32, i32) {
    %c0_i32 = arith.constant 0 : i32
    %c0_i32_0 = arith.constant 0 : i32
    return %arg0, %c0_i32 : i32, i32
  }
}

module attributes {stable_mosaic.version = 11 : i64} {
  func.func @_matmul_kernel(%arg0: i32, %arg1: i32, %arg2: i32, %arg3: memref<48x128xbf16, #tpu.memory_space<vmem>>, %arg4: memref<128x128xbf16, #tpu.memory_space<vmem>>, %arg5: memref<1x128xf32, #tpu.memory_space<vmem>>, %arg6: memref<48x128xf32, #tpu.memory_space<vmem>>, %arg7: memref<48x128xf32, #tpu.memory_space<vmem>>) attributes {dimension_semantics = [#tpu.dimension_semantics<parallel>, #tpu.dimension_semantics<parallel>, #tpu.dimension_semantics<arbitrary>], iteration_bounds = array<i64: 1, 1, 1>, scalar_prefetch = 0 : i64, scratch_operands = 1 : i64, tpu.core_type = #tpu.core_type<tc>, window_params = [{transform_indices = @transform_0, window_bounds = array<i64: 48, 128>}, {transform_indices = @transform_1, window_bounds = array<i64: 128, 128>}, {transform_indices = @transform_2, window_bounds = array<i64: 1, 128>}, {transform_indices = @transform_3, window_bounds = array<i64: 48, 128>}]} {
    %c0_i32 = arith.constant 0 : i32
    %0 = arith.cmpi eq, %arg2, %c0_i32 : i32
    %1 = arith.extui %0 : i1 to i32
    %c0_i32_0 = arith.constant 0 : i32
    %2 = arith.cmpi ne, %1, %c0_i32_0 : i32
    scf.if %2 {
      %cst_10 = arith.constant 0.000000e+00 : f32
      %12 = vector.broadcast %cst_10 : f32 to vector<48x128xf32>
      %c0_11 = arith.constant 0 : index
      %c0_12 = arith.constant 0 : index
      %13 = vector.load %arg7[%c0_11, %c0_12] : memref<48x128xf32, #tpu.memory_space<vmem>>, vector<48x128xf32>
      tpu.vector_store %arg7[%c0_11, %c0_12], %12 {strides = array<i32>} : memref<48x128xf32, #tpu.memory_space<vmem>>, vector<48x128xf32>,
    } else {
    }
    %c0 = arith.constant 0 : index
    %c0_1 = arith.constant 0 : index
    %3 = vector.load %arg7[%c0, %c0_1] : memref<48x128xf32, #tpu.memory_space<vmem>>, vector<48x128xf32>
    %c0_2 = arith.constant 0 : index
    %c0_3 = arith.constant 0 : index
    %4 = vector.load %arg3[%c0_2, %c0_3] : memref<48x128xbf16, #tpu.memory_space<vmem>>, vector<48x128xbf16>
    %c0_4 = arith.constant 0 : index
    %c0_5 = arith.constant 0 : index
    %5 = vector.load %arg4[%c0_4, %c0_5] : memref<128x128xbf16, #tpu.memory_space<vmem>>, vector<128x128xbf16>
    %cst = arith.constant dense<0.000000e+00> : vector<48x128xf32>
    %6 = tpu.matmul %4, %5, %cst {dimension_numbers = #tpu.dot_dimension_numbers<[1], [0], [0], [1], [0, 0, 1, 1], [], []>} : vector<48x128xbf16>, vector<128x128xbf16>, vector<48x128xf32> -> vector<48x128xf32>
    %7 = arith.addf %3, %6 : vector<48x128xf32>
    %c0_6 = arith.constant 0 : index
    %c0_7 = arith.constant 0 : index
    %8 = vector.load %arg7[%c0_6, %c0_7] : memref<48x128xf32, #tpu.memory_space<vmem>>, vector<48x128xf32>
    tpu.vector_store %arg7[%c0_6, %c0_7], %7 {strides = array<i32>} : memref<48x128xf32, #tpu.memory_space<vmem>>, vector<48x128xf32>,
    %c0_i32_8 = arith.constant 0 : i32
    %9 = arith.cmpi eq, %arg2, %c0_i32_8 : i32
    %10 = arith.extui %9 : i1 to i32
    %c0_i32_9 = arith.constant 0 : i32
    %11 = arith.cmpi ne, %10, %c0_i32_9 : i32
    scf.if %11 {
      %c0_10 = arith.constant 0 : index
      %c0_11 = arith.constant 0 : index
      %12 = vector.load %arg7[%c0_10, %c0_11] : memref<48x128xf32, #tpu.memory_space<vmem>>, vector<48x128xf32>
      %c0_12 = arith.constant 0 : index
      %c0_13 = arith.constant 0 : index
      %13 = vector.load %arg5[%c0_12, %c0_13] : memref<1x128xf32, #tpu.memory_space<vmem>>, vector<1x128xf32>
      %14 = vector.broadcast %13 : vector<1x128xf32> to vector<48x128xf32>
      %15 = arith.addf %12, %14 : vector<48x128xf32>
      %c0_14 = arith.constant 0 : index
      %c0_15 = arith.constant 0 : index
      %16 = vector.load %arg6[%c0_14, %c0_15] : memref<48x128xf32, #tpu.memory_space<vmem>>, vector<48x128xf32>
      tpu.vector_store %arg6[%c0_14, %c0_15], %15 {strides = array<i32>} : memref<48x128xf32, #tpu.memory_space<vmem>>, vector<48x128xf32>,
    } else {
    }
    return
  }
  func.func @transform_0(%arg0: i32, %arg1: i32, %arg2: i32) -> (i32, i32) {
    %c0_i32 = arith.constant 0 : i32
    return %arg0, %arg2 : i32, i32
  }
  func.func @transform_1(%arg0: i32, %arg1: i32, %arg2: i32) -> (i32, i32) {
    %c0_i32 = arith.constant 0 : i32
    return %arg2, %arg1 : i32, i32
  }
  func.func @transform_2(%arg0: i32, %arg1: i32, %arg2: i32) -> (i32, i32) {
    %c0_i32 = arith.constant 0 : i32
    %c0_i32_0 = arith.constant 0 : i32
    return %c0_i32, %arg1 : i32, i32
  }
  func.func @transform_3(%arg0: i32, %arg1: i32, %arg2: i32) -> (i32, i32) {
    %c0_i32 = arith.constant 0 : i32
    return %arg0, %arg1 : i32, i32
  }
}

</mosaic_0001>

<bundles_post_ra>
// kernel: rnn_forward.12
= control target key start
LH: loop header
LB: loop body
LE: loop exit
PB: predicated region body
PF: predicated region fallthrough
CT: control target
= control target key end

     0   :  { %s343_s1 = inlined_call_operand.vmem [shape: bf16[128,128], index: 1, kind: input, shape index: {}]   ;;  %s344_s2 = inlined_call_operand.vmem [shape: f32[1,128], index: 2, kind: input, shape index: {}]   ;;  %s345_s0 = inlined_call_operand.vmem [shape: bf16[48,128], index: 0, kind: input, shape index: {}]   ;;  %s346_s3 = inlined_call_operand.vmem [shape: bf16[48,128], index: 3, kind: output, shape index: {}]  }
   0x1   :  { %v243_v0 = vld [vmem:[%s343_s1 + $0x38] sm:$0xff]  ;;  %v242_v1 = vld [vmem:[%s343_s1 + $0x30] sm:$0xff]  ;;  %v241_v2 = vld [vmem:[%s343_s1 + $0x28] sm:$0xff] }
   0x2   :  { %118 = vmatpush.bf16.msra.mxu0 %v243_v0  ;;  %261 = vmatpush.bf16.msra.mxu1 %v243_v0  ;;  %v240_v3 = vld [vmem:[%s343_s1 + $0x20] sm:$0xff]  ;;  %v239_v4 = vld [vmem:[%s343_s1 + $0x18] sm:$0xff]  ;;  %v238_v5 = vld [vmem:[%s343_s1 + $0x10] sm:$0xff] }
   0x3   :  { %262 = vmatpush.bf16.msra.mxu2 %v243_v0  ;;  %v237_v6 = vld [vmem:[%s343_s1 + $0x8] sm:$0xff]  ;;  %v236_v7 = vld [vmem:[%s343_s1] sm:$0xff]  ;;  %v235_v10 = vld [vmem:[%s345_s0 + $0x10] sm:$0xff] }
   0x4   :  { %v233_v8 = vld [vmem:[%s345_s0] sm:$0xff]  ;;  %v234_v9 = vld [vmem:[%s345_s0 + $0x8] sm:$0xff] }
   0x5   :  { %v277_v13 = vld [vmem:[%s344_s2] ss:$0 sm:$0xff] }
   0x6   :  { %119 = vmatpush.bf16.msra.mxu0 %v242_v1  ;;  %263 = vmatpush.bf16.msra.mxu1 %v242_v1 }
   0x7   :  { %264 = vmatpush.bf16.msra.mxu2 %v242_v1 }
   0xa   :  { %120 = vmatpush.bf16.msra.mxu0 %v241_v2  ;;  %265 = vmatpush.bf16.msra.mxu1 %v241_v2 }
   0xb   :  { %266 = vmatpush.bf16.msra.mxu2 %v241_v2 }
   0xe   :  { %121 = vmatpush.bf16.msra.mxu0 %v240_v3  ;;  %267 = vmatpush.bf16.msra.mxu1 %v240_v3 }
   0xf   :  { %268 = vmatpush.bf16.msra.mxu2 %v240_v3 }
  0x12   :  { %122 = vmatpush.bf16.msra.mxu0 %v239_v4  ;;  %269 = vmatpush.bf16.msra.mxu1 %v239_v4 }
  0x13   :  { %270 = vmatpush.bf16.msra.mxu2 %v239_v4 }
  0x16   :  { %123 = vmatpush.bf16.msra.mxu0 %v238_v5  ;;  %271 = vmatpush.bf16.msra.mxu1 %v238_v5 }
  0x17   :  { %272 = vmatpush.bf16.msra.mxu2 %v238_v5 }
  0x1a   :  { %124 = vmatpush.bf16.msra.mxu0 %v237_v6  ;;  %273 = vmatpush.bf16.msra.mxu1 %v237_v6 }
  0x1b   :  { %274 = vmatpush.bf16.msra.mxu2 %v237_v6 }
  0x1e   :  { %125 = vmatpush.bf16.msra.mxu0 %v236_v7  ;;  %275 = vmatpush.bf16.msra.mxu1 %v236_v7 }
  0x1f   :  { %276 = vmatpush.bf16.msra.mxu2 %v236_v7 }
  0x21   :  { %126 = vmatmul.bf16.vlgmr.msra.gmra.mxu0 %v233_v8  ;;  %131 = vmatmul.bf16.vlgmr.msra.gmra.mxu1 %v234_v9 }
  0x22   :  { %136 = vmatmul.bf16.vlgmr.msra.gmra.mxu2 %v235_v10 }
  0x9e   :  { %v127_v11 = vpop.f32.mrf.mxu0  ;;  %v132_v12 = vpop.f32.mrf.mxu1 }
  0x9f   :  { %v167_v17 = vadd.f32 %v277_v13, %v127_v11  ;;  %v169_v18 = vadd.f32 %v277_v13, %v132_v12 }
  0xa5   :  { %v137_v14 = vpop.f32.mrf.mxu2 }
  0xa6   :  { %v129_v15 = vpop.f32.mrf.mxu0  ;;  %v134_v16 = vpop.f32.mrf.mxu1  ;;  %v171_v24 = vadd.f32 %v277_v13, %v137_v14 }
  0xa7   :  { %v168_v19 = vadd.f32 %v277_v13, %v129_v15  ;;  %v170_v20 = vadd.f32 %v277_v13, %v134_v16 }
  0xa9   :  { %v247_v21 = vpack.c.bf16 %v168_v19, %v167_v17  ;;  %v252_v22 = vpack.c.bf16 %v170_v20, %v169_v18 }
  0xab   :  { %248 = vst [vmem:[%s346_s3] sm:$0xff] %v247_v21  }
  0xac   :  { %259 = vst [vmem:[%s346_s3 + $0x8] sm:$0xff] %v252_v22  }
  0xad   :  { %v139_v23 = vpop.f32.mrf.mxu2 }
  0xae   :  { %v172_v25 = vadd.f32 %v277_v13, %v139_v23 }
  0xb0   :  { %v257_v26 = vpack.c.bf16 %v172_v25, %v171_v24 }
  0xb2   :  { %260 = vst [vmem:[%s346_s3 + $0x10] sm:$0xff] %v257_v26  }

// kernel: rnn_forward.11
= control target key start
LH: loop header
LB: loop body
LE: loop exit
PB: predicated region body
PF: predicated region fallthrough
CT: control target
= control target key end

     0   :  { %s397_s1 = inlined_call_operand.vmem [shape: bf16[128,128], index: 1, kind: input, shape index: {}]   ;;  %s398_s2 = inlined_call_operand.vmem [shape: f32[1,128], index: 2, kind: input, shape index: {}]   ;;  %s399_s0 = inlined_call_operand.vmem [shape: bf16[64,128], index: 0, kind: input, shape index: {}]   ;;  %s400_s3 = inlined_call_operand.vmem [shape: bf16[64,128], index: 3, kind: output, shape index: {}]  }
   0x1   :  { %v277_v0 = vld [vmem:[%s397_s1 + $0x38] sm:$0xff]  ;;  %v276_v1 = vld [vmem:[%s397_s1 + $0x30] sm:$0xff]  ;;  %v275_v2 = vld [vmem:[%s397_s1 + $0x28] sm:$0xff] }
   0x2   :  { %130 = vmatpush.bf16.msra.mxu0 %v277_v0  ;;  %301 = vmatpush.bf16.msra.mxu1 %v277_v0  ;;  %v274_v3 = vld [vmem:[%s397_s1 + $0x20] sm:$0xff]  ;;  %v273_v4 = vld [vmem:[%s397_s1 + $0x18] sm:$0xff]  ;;  %v272_v5 = vld [vmem:[%s397_s1 + $0x10] sm:$0xff] }
   0x3   :  { %302 = vmatpush.bf16.msra.mxu2 %v277_v0  ;;  %303 = vmatpush.bf16.msra.mxu3 %v277_v0  ;;  %v271_v6 = vld [vmem:[%s397_s1 + $0x8] sm:$0xff]  ;;  %v270_v7 = vld [vmem:[%s397_s1] sm:$0xff]  ;;  %v268_v10 = vld [vmem:[%s399_s0 + $0x10] sm:$0xff] }
   0x4   :  { %v266_v8 = vld [vmem:[%s399_s0] sm:$0xff]  ;;  %v267_v9 = vld [vmem:[%s399_s0 + $0x8] sm:$0xff]  ;;  %v269_v11 = vld [vmem:[%s399_s0 + $0x18] sm:$0xff] }
   0x5   :  { %v325_v14 = vld [vmem:[%s398_s2] ss:$0 sm:$0xff] }
   0x6   :  { %131 = vmatpush.bf16.msra.mxu0 %v276_v1  ;;  %304 = vmatpush.bf16.msra.mxu1 %v276_v1 }
   0x7   :  { %305 = vmatpush.bf16.msra.mxu2 %v276_v1  ;;  %306 = vmatpush.bf16.msra.mxu3 %v276_v1 }
   0xa   :  { %132 = vmatpush.bf16.msra.mxu0 %v275_v2  ;;  %307 = vmatpush.bf16.msra.mxu1 %v275_v2 }
   0xb   :  { %308 = vmatpush.bf16.msra.mxu2 %v275_v2  ;;  %309 = vmatpush.bf16.msra.mxu3 %v275_v2 }
   0xe   :  { %133 = vmatpush.bf16.msra.mxu0 %v274_v3  ;;  %310 = vmatpush.bf16.msra.mxu1 %v274_v3 }
   0xf   :  { %311 = vmatpush.bf16.msra.mxu2 %v274_v3  ;;  %312 = vmatpush.bf16.msra.mxu3 %v274_v3 }
  0x12   :  { %134 = vmatpush.bf16.msra.mxu0 %v273_v4  ;;  %313 = vmatpush.bf16.msra.mxu1 %v273_v4 }
  0x13   :  { %314 = vmatpush.bf16.msra.mxu2 %v273_v4  ;;  %315 = vmatpush.bf16.msra.mxu3 %v273_v4 }
  0x16   :  { %135 = vmatpush.bf16.msra.mxu0 %v272_v5  ;;  %316 = vmatpush.bf16.msra.mxu1 %v272_v5 }
  0x17   :  { %317 = vmatpush.bf16.msra.mxu2 %v272_v5  ;;  %318 = vmatpush.bf16.msra.mxu3 %v272_v5 }
  0x1a   :  { %136 = vmatpush.bf16.msra.mxu0 %v271_v6  ;;  %319 = vmatpush.bf16.msra.mxu1 %v271_v6 }
  0x1b   :  { %320 = vmatpush.bf16.msra.mxu2 %v271_v6  ;;  %321 = vmatpush.bf16.msra.mxu3 %v271_v6 }
  0x1e   :  { %137 = vmatpush.bf16.msra.mxu0 %v270_v7  ;;  %322 = vmatpush.bf16.msra.mxu1 %v270_v7 }
  0x1f   :  { %323 = vmatpush.bf16.msra.mxu2 %v270_v7  ;;  %324 = vmatpush.bf16.msra.mxu3 %v270_v7 }
  0x21   :  { %138 = vmatmul.bf16.vlgmr.msra.gmra.mxu0 %v266_v8  ;;  %143 = vmatmul.bf16.vlgmr.msra.gmra.mxu1 %v267_v9 }
  0x22   :  { %148 = vmatmul.bf16.vlgmr.msra.gmra.mxu2 %v268_v10  ;;  %153 = vmatmul.bf16.vlgmr.msra.gmra.mxu3 %v269_v11 }
  0x9e   :  { %v139_v12 = vpop.f32.mrf.mxu0  ;;  %v144_v13 = vpop.f32.mrf.mxu1 }
  0x9f   :  { %v190_v19 = vadd.f32 %v325_v14, %v139_v12  ;;  %v192_v20 = vadd.f32 %v325_v14, %v144_v13 }
  0xa5   :  { %v149_v15 = vpop.f32.mrf.mxu2  ;;  %v154_v16 = vpop.f32.mrf.mxu3 }
  0xa6   :  { %v141_v17 = vpop.f32.mrf.mxu0  ;;  %v146_v18 = vpop.f32.mrf.mxu1  ;;  %v194_v27 = vadd.f32 %v325_v14, %v149_v15  ;;  %v196_v28 = vadd.f32 %v325_v14, %v154_v16 }
  0xa7   :  { %v191_v21 = vadd.f32 %v325_v14, %v141_v17  ;;  %v193_v22 = vadd.f32 %v325_v14, %v146_v18 }
  0xa9   :  { %v281_v23 = vpack.c.bf16 %v191_v21, %v190_v19  ;;  %v286_v24 = vpack.c.bf16 %v193_v22, %v192_v20 }
  0xab   :  { %282 = vst [vmem:[%s400_s3] sm:$0xff] %v281_v23  }
  0xac   :  { %298 = vst [vmem:[%s400_s3 + $0x8] sm:$0xff] %v286_v24  }
  0xad   :  { %v151_v25 = vpop.f32.mrf.mxu2  ;;  %v156_v26 = vpop.f32.mrf.mxu3 }
  0xae   :  { %v195_v29 = vadd.f32 %v325_v14, %v151_v25  ;;  %v197_v30 = vadd.f32 %v325_v14, %v156_v26 }
  0xb0   :  { %v291_v31 = vpack.c.bf16 %v195_v29, %v194_v27  ;;  %v296_v32 = vpack.c.bf16 %v197_v30, %v196_v28 }
  0xb2   :  { %299 = vst [vmem:[%s400_s3 + $0x10] sm:$0xff] %v291_v31  }
  0xb3   :  { %300 = vst [vmem:[%s400_s3 + $0x18] sm:$0xff] %v296_v32  }

// kernel: rnn_forward.13
= control target key start
LH: loop header
LB: loop body
LE: loop exit
PB: predicated region body
PF: predicated region fallthrough
CT: control target
= control target key end

     0   :  { %s1094_s1 = inlined_call_operand.vmem [shape: bf16[128,512], index: 1, kind: input, shape index: {}]   ;;  %s1095_s0 = inlined_call_operand.vmem [shape: bf16[64,128], index: 0, kind: input, shape index: {}]   ;;  %s1096_s2 = inlined_call_operand.vmem [shape: f32[1,512], index: 2, kind: input, shape index: {}]   ;;  %s1097_s3 = inlined_call_operand.vmem [shape: bf16[64,512], index: 3, kind: output, shape index: {}]  }
   0x1   :  { %v729_v0 = vld [vmem:[%s1094_s1 + $0xe0] sm:$0xf]  ;;  %v777_v1 = vld [vmem:[%s1094_s1 + $0xec] sm:$0xf0]  ;;  %v775_v2 = vld [vmem:[%s1094_s1 + $0xe4] sm:$0xf] }
   0x2   :  { %v730_v3 = vor.u32 %v777_v1, %v729_v0  ;;  %v731_v4 = vld [vmem:[%s1094_s1 + $0xf0] sm:$0xf0]  ;;  %v737_v5 = vld [vmem:[%s1094_s1 + $0xe8] sm:$0xf]  ;;  %v778_v6 = vld [vmem:[%s1094_s1 + $0xf4] sm:$0xf0] }
   0x3   :  { %v734_v7 = vor.u32 %v775_v2, %v731_v4  ;;  %v738_v8 = vor.u32 %v778_v6, %v737_v5  ;;  %v776_v9 = vld [vmem:[%s1094_s1 + $0xec] sm:$0xf]  ;;  %v739_v10 = vld [vmem:[%s1094_s1 + $0xf8] sm:$0xf0]  ;;  %v713_v11 = vld [vmem:[%s1094_s1 + $0xc0] sm:$0xf] }
   0x4   :  { %306 = vmatpush.bf16.msra.mxu0 %v730_v3  ;;  %v742_v12 = vor.u32 %v776_v9, %v739_v10  ;;  %v773_v13 = vld [vmem:[%s1094_s1 + $0xcc] sm:$0xf0]  ;;  %v771_v14 = vld [vmem:[%s1094_s1 + $0xc4] sm:$0xf]  ;;  %v715_v15 = vld [vmem:[%s1094_s1 + $0xd0] sm:$0xf0] }
   0x5   :  { %335 = vmatpush.bf16.msra.mxu1 %v734_v7  ;;  %364 = vmatpush.bf16.msra.mxu2 %v738_v8  ;;  %v714_v16 = vor.u32 %v773_v13, %v713_v11  ;;  %v718_v17 = vor.u32 %v771_v14, %v715_v15  ;;  %v721_v18 = vld [vmem:[%s1094_s1 + $0xc8] sm:$0xf]  ;;  %v774_v19 = vld [vmem:[%s1094_s1 + $0xd4] sm:$0xf0]  ;;  %v772_v20 = vld [vmem:[%s1094_s1 + $0xcc] sm:$0xf] }
   0x6   :  { %393 = vmatpush.bf16.msra.mxu3 %v742_v12  ;;  %v722_v21 = vor.u32 %v774_v19, %v721_v18  ;;  %v723_v22 = vld [vmem:[%s1094_s1 + $0xd8] sm:$0xf0]  ;;  %v697_v23 = vld [vmem:[%s1094_s1 + $0xa0] sm:$0xf]  ;;  %v769_v24 = vld [vmem:[%s1094_s1 + $0xac] sm:$0xf0] }
   0x7   :  { %v726_v25 = vor.u32 %v772_v20, %v723_v22  ;;  %v767_v26 = vld [vmem:[%s1094_s1 + $0xa4] sm:$0xf]  ;;  %v699_v27 = vld [vmem:[%s1094_s1 + $0xb0] sm:$0xf0]  ;;  %v705_v28 = vld [vmem:[%s1094_s1 + $0xa8] sm:$0xf]  ;;  %v698_v29 = vor.u32 %v769_v24, %v697_v23 }
   0x8   :  { %307 = vmatpush.bf16.msra.mxu0 %v714_v16  ;;  %v770_v30 = vld [vmem:[%s1094_s1 + $0xb4] sm:$0xf0]  ;;  %v768_v31 = vld [vmem:[%s1094_s1 + $0xac] sm:$0xf]  ;;  %v707_v32 = vld [vmem:[%s1094_s1 + $0xb8] sm:$0xf0]  ;;  %v702_v33 = vor.u32 %v767_v26, %v699_v27 }
   0x9   :  { %336 = vmatpush.bf16.msra.mxu1 %v718_v17  ;;  %365 = vmatpush.bf16.msra.mxu2 %v722_v21  ;;  %v706_v34 = vor.u32 %v770_v30, %v705_v28  ;;  %v681_v35 = vld [vmem:[%s1094_s1 + $0x80] sm:$0xf]  ;;  %v765_v36 = vld [vmem:[%s1094_s1 + $0x8c] sm:$0xf0]  ;;  %v763_v37 = vld [vmem:[%s1094_s1 + $0x84] sm:$0xf]  ;;  %v710_v38 = vor.u32 %v768_v31, %v707_v32 }
   0xa   :  { %394 = vmatpush.bf16.msra.mxu3 %v726_v25  ;;  %v683_v39 = vld [vmem:[%s1094_s1 + $0x90] sm:$0xf0]  ;;  %v689_v40 = vld [vmem:[%s1094_s1 + $0x88] sm:$0xf]  ;;  %v766_v41 = vld [vmem:[%s1094_s1 + $0x94] sm:$0xf0]  ;;  %v682_v44 = vor.u32 %v765_v36, %v681_v35 }
   0xb   :  { %v764_v42 = vld [vmem:[%s1094_s1 + $0x8c] sm:$0xf]  ;;  %v691_v43 = vld [vmem:[%s1094_s1 + $0x98] sm:$0xf0]  ;;  %v686_v45 = vor.u32 %v763_v37, %v683_v39  ;;  %v690_v46 = vor.u32 %v766_v41, %v689_v40  ;;  %v665_v47 = vld [vmem:[%s1094_s1 + $0x60] sm:$0xf] }
   0xc   :  { %308 = vmatpush.bf16.msra.mxu0 %v698_v29  ;;  %v761_v48 = vld [vmem:[%s1094_s1 + $0x6c] sm:$0xf0]  ;;  %v759_v49 = vld [vmem:[%s1094_s1 + $0x64] sm:$0xf]  ;;  %v694_v50 = vor.u32 %v764_v42, %v691_v43  ;;  %v667_v51 = vld [vmem:[%s1094_s1 + $0x70] sm:$0xf0] }
   0xd   :  { %337 = vmatpush.bf16.msra.mxu1 %v702_v33  ;;  %366 = vmatpush.bf16.msra.mxu2 %v706_v34  ;;  %v673_v52 = vld [vmem:[%s1094_s1 + $0x68] sm:$0xf]  ;;  %v762_v53 = vld [vmem:[%s1094_s1 + $0x74] sm:$0xf0]  ;;  %v760_v54 = vld [vmem:[%s1094_s1 + $0x6c] sm:$0xf]  ;;  %v666_v56 = vor.u32 %v761_v48, %v665_v47  ;;  %v670_v57 = vor.u32 %v759_v49, %v667_v51 }
   0xe   :  { %395 = vmatpush.bf16.msra.mxu3 %v710_v38  ;;  %v675_v55 = vld [vmem:[%s1094_s1 + $0x78] sm:$0xf0]  ;;  %v674_v58 = vor.u32 %v762_v53, %v673_v52  ;;  %v649_v59 = vld [vmem:[%s1094_s1 + $0x40] sm:$0xf]  ;;  %v757_v60 = vld [vmem:[%s1094_s1 + $0x4c] sm:$0xf0] }
   0xf   :  { %v755_v61 = vld [vmem:[%s1094_s1 + $0x44] sm:$0xf]  ;;  %v678_v62 = vor.u32 %v760_v54, %v675_v55  ;;  %v651_v63 = vld [vmem:[%s1094_s1 + $0x50] sm:$0xf0]  ;;  %v657_v0 = vld [vmem:[%s1094_s1 + $0x48] sm:$0xf]  ;;  %v650_v4 = vor.u32 %v757_v60, %v649_v59 }
  0x10   :  { %309 = vmatpush.bf16.msra.mxu0 %v682_v44  ;;  %v758_v1 = vld [vmem:[%s1094_s1 + $0x54] sm:$0xf0]  ;;  %v756_v2 = vld [vmem:[%s1094_s1 + $0x4c] sm:$0xf]  ;;  %v659_v3 = vld [vmem:[%s1094_s1 + $0x58] sm:$0xf0]  ;;  %v654_v5 = vor.u32 %v755_v61, %v651_v63 }
  0x11   :  { %338 = vmatpush.bf16.msra.mxu1 %v686_v45  ;;  %367 = vmatpush.bf16.msra.mxu2 %v690_v46  ;;  %v658_v6 = vor.u32 %v758_v1, %v657_v0  ;;  %v633_v7 = vld [vmem:[%s1094_s1 + $0x20] sm:$0xf]  ;;  %v753_v8 = vld [vmem:[%s1094_s1 + $0x2c] sm:$0xf0]  ;;  %v751_v9 = vld [vmem:[%s1094_s1 + $0x24] sm:$0xf]  ;;  %v662_v10 = vor.u32 %v756_v2, %v659_v3 }
  0x12   :  { %396 = vmatpush.bf16.msra.mxu3 %v694_v50  ;;  %v635_v11 = vld [vmem:[%s1094_s1 + $0x30] sm:$0xf0]  ;;  %v641_v12 = vld [vmem:[%s1094_s1 + $0x28] sm:$0xf]  ;;  %v754_v13 = vld [vmem:[%s1094_s1 + $0x34] sm:$0xf0]  ;;  %v634_v16 = vor.u32 %v753_v8, %v633_v7 }
  0x13   :  { %v752_v14 = vld [vmem:[%s1094_s1 + $0x2c] sm:$0xf]  ;;  %v643_v15 = vld [vmem:[%s1094_s1 + $0x38] sm:$0xf0]  ;;  %v638_v17 = vor.u32 %v751_v9, %v635_v11  ;;  %v642_v18 = vor.u32 %v754_v13, %v641_v12  ;;  %v617_v19 = vld [vmem:[%s1094_s1] sm:$0xf] }
  0x14   :  { %310 = vmatpush.bf16.msra.mxu0 %v666_v56  ;;  %v749_v20 = vld [vmem:[%s1094_s1 + $0xc] sm:$0xf0]  ;;  %v747_v21 = vld [vmem:[%s1094_s1 + $0x4] sm:$0xf]  ;;  %v646_v22 = vor.u32 %v752_v14, %v643_v15  ;;  %v619_v23 = vld [vmem:[%s1094_s1 + $0x10] sm:$0xf0] }
  0x15   :  { %339 = vmatpush.bf16.msra.mxu1 %v670_v57  ;;  %368 = vmatpush.bf16.msra.mxu2 %v674_v58  ;;  %v625_v24 = vld [vmem:[%s1094_s1 + $0x8] sm:$0xf]  ;;  %v750_v25 = vld [vmem:[%s1094_s1 + $0x14] sm:$0xf0]  ;;  %v748_v26 = vld [vmem:[%s1094_s1 + $0xc] sm:$0xf]  ;;  %v618_v28 = vor.u32 %v749_v20, %v617_v19  ;;  %v622_v29 = vor.u32 %v747_v21, %v619_v23 }
  0x16   :  { %397 = vmatpush.bf16.msra.mxu3 %v678_v62  ;;  %v627_v27 = vld [vmem:[%s1094_s1 + $0x18] sm:$0xf0]  ;;  %v626_v30 = vor.u32 %v750_v25, %v625_v24  ;;  %v743_v32 = vld [vmem:[%s1095_s0] sm:$0xff]  ;;  %v744_v33 = vld [vmem:[%s1095_s0 + $0x8] sm:$0xff] }
  0x17   :  { %v630_v31 = vor.u32 %v748_v26, %v627_v27  ;;  %v745_v34 = vld [vmem:[%s1095_s0 + $0x10] sm:$0xff]  ;;  %v746_v35 = vld [vmem:[%s1095_s0 + $0x18] sm:$0xff]  ;;  %v521_v36 = vld [vmem:[%s1096_s2] sm:$0xf] }
  0x18   :  { %311 = vmatpush.bf16.msra.mxu0 %v650_v4  ;;  %v1006_v37 = vperm.slane %v521_v36, 0  ;;  %v1008_v38 = vperm.slane %v521_v36, 1  ;;  %v1012_v44 = vperm.slane %v521_v36, 2  ;;  %v1014_v45 = vperm.slane %v521_v36, 3 }
  0x19   :  { %340 = vmatpush.bf16.msra.mxu1 %v654_v5  ;;  %369 = vmatpush.bf16.msra.mxu2 %v658_v6 }
  0x1a   :  { %398 = vmatpush.bf16.msra.mxu3 %v662_v10 }
  0x1c   :  { %312 = vmatpush.bf16.msra.mxu0 %v634_v16 }
  0x1d   :  { %341 = vmatpush.bf16.msra.mxu1 %v638_v17  ;;  %370 = vmatpush.bf16.msra.mxu2 %v642_v18 }
  0x1e   :  { %399 = vmatpush.bf16.msra.mxu3 %v646_v22 }
  0x20   :  { %313 = vmatpush.bf16.msra.mxu0 %v618_v28 }
  0x21   :  { %342 = vmatpush.bf16.msra.mxu1 %v622_v29  ;;  %371 = vmatpush.bf16.msra.mxu2 %v626_v30 }
  0x22   :  { %400 = vmatpush.bf16.msra.mxu3 %v630_v31 }
  0x23   :  { %314 = vmatmul.bf16.vlgmr.msra.gmra.mxu0 %v743_v32 }
  0x24   :  { %343 = vmatmul.bf16.vlgmr.msra.gmra.mxu1 %v743_v32  ;;  %372 = vmatmul.bf16.vlgmr.msra.gmra.mxu2 %v743_v32 }
  0x25   :  { %401 = vmatmul.bf16.vlgmr.msra.gmra.mxu3 %v743_v32 }
  0x33   :  { %319 = vmatmul.bf16.gmra.mxu0 %v744_v33 }
  0x34   :  { %348 = vmatmul.bf16.gmra.mxu1 %v744_v33  ;;  %377 = vmatmul.bf16.gmra.mxu2 %v744_v33 }
  0x35   :  { %406 = vmatmul.bf16.gmra.mxu3 %v744_v33 }
  0x43   :  { %324 = vmatmul.bf16.gmra.mxu0 %v745_v34 }
  0x44   :  { %353 = vmatmul.bf16.gmra.mxu1 %v745_v34  ;;  %382 = vmatmul.bf16.gmra.mxu2 %v745_v34 }
  0x45   :  { %411 = vmatmul.bf16.gmra.mxu3 %v745_v34 }
  0x53   :  { %329 = vmatmul.bf16.gmra.mxu0 %v746_v35 }
  0x54   :  { %358 = vmatmul.bf16.gmra.mxu1 %v746_v35  ;;  %387 = vmatmul.bf16.gmra.mxu2 %v746_v35 }
  0x55   :  { %416 = vmatmul.bf16.gmra.mxu3 %v746_v35 }
  0xa0   :  { %v315_v39 = vpop.f32.mrf.mxu0 }
  0xa1   :  { %v531_v40 = vadd.f32 %v1006_v37, %v315_v39  ;;  %v344_v41 = vpop.f32.mrf.mxu1 }
  0xa2   :  { %v532_v42 = vadd.f32 %v1008_v38, %v344_v41 }
  0xa4   :  { %v563_v43 = vpack.c.bf16 %v532_v42, %v531_v40 }
  0xa6   :  { %579 = vst [vmem:[%s1097_s3] sm:$0xff] %v563_v43 }
  0xa7   :  { %v373_v46 = vpop.f32.mrf.mxu2 }
  0xa8   :  { %v533_v47 = vadd.f32 %v1012_v44, %v373_v46  ;;  %v402_v48 = vpop.f32.mrf.mxu3  ;;  %v317_v49 = vpop.f32.mrf.mxu0 }
  0xa9   :  { %v534_v50 = vadd.f32 %v1014_v45, %v402_v48  ;;  %v535_v51 = vadd.f32 %v1006_v37, %v317_v49  ;;  %v346_v52 = vpop.f32.mrf.mxu1 }
  0xaa   :  { %v536_v53 = vadd.f32 %v1008_v38, %v346_v52 }
  0xab   :  { %v564_v54 = vpack.c.bf16 %v534_v50, %v533_v47 }
  0xac   :  { %v565_v55 = vpack.c.bf16 %v536_v53, %v535_v51 }
  0xad   :  { %580 = vst [vmem:[%s1097_s3 + $0x8] sm:$0xff] %v564_v54 }
  0xae   :  { %581 = vst [vmem:[%s1097_s3 + $0x10] sm:$0xff] %v565_v55 }
  0xaf   :  { %v375_v56 = vpop.f32.mrf.mxu2 }
  0xb0   :  { %v537_v57 = vadd.f32 %v1012_v44, %v375_v56  ;;  %v404_v58 = vpop.f32.mrf.mxu3  ;;  %v320_v59 = vpop.f32.mrf.mxu0 }
  0xb1   :  { %v538_v60 = vadd.f32 %v1014_v45, %v404_v58  ;;  %v539_v61 = vadd.f32 %v1006_v37, %v320_v59  ;;  %v349_v62 = vpop.f32.mrf.mxu1 }
  0xb2   :  { %v540_v63 = vadd.f32 %v1008_v38, %v349_v62 }
  0xb3   :  { %v566_v0 = vpack.c.bf16 %v538_v60, %v537_v57 }
  0xb4   :  { %v567_v1 = vpack.c.bf16 %v540_v63, %v539_v61 }
  0xb5   :  { %582 = vst [vmem:[%s1097_s3 + $0x18] sm:$0xff] %v566_v0 }
  0xb6   :  { %583 = vst [vmem:[%s1097_s3 + $0x20] sm:$0xff] %v567_v1 }
  0xb7   :  { %v378_v2 = vpop.f32.mrf.mxu2 }
  0xb8   :  { %v541_v3 = vadd.f32 %v1012_v44, %v378_v2  ;;  %v407_v4 = vpop.f32.mrf.mxu3  ;;  %v322_v5 = vpop.f32.mrf.mxu0 }
  0xb9   :  { %v542_v6 = vadd.f32 %v1014_v45, %v407_v4  ;;  %v543_v7 = vadd.f32 %v1006_v37, %v322_v5  ;;  %v351_v8 = vpop.f32.mrf.mxu1 }
  0xba   :  { %v544_v9 = vadd.f32 %v1008_v38, %v351_v8 }
  0xbb   :  { %v568_v10 = vpack.c.bf16 %v542_v6, %v541_v3 }
  0xbc   :  { %v569_v11 = vpack.c.bf16 %v544_v9, %v543_v7 }
  0xbd   :  { %584 = vst [vmem:[%s1097_s3 + $0x28] sm:$0xff] %v568_v10 }
  0xbe   :  { %585 = vst [vmem:[%s1097_s3 + $0x30] sm:$0xff] %v569_v11 }
  0xbf   :  { %v380_v12 = vpop.f32.mrf.mxu2 }
  0xc0   :  { %v545_v13 = vadd.f32 %v1012_v44, %v380_v12  ;;  %v409_v14 = vpop.f32.mrf.mxu3  ;;  %v325_v15 = vpop.f32.mrf.mxu0 }
  0xc1   :  { %v546_v16 = vadd.f32 %v1014_v45, %v409_v14  ;;  %v547_v17 = vadd.f32 %v1006_v37, %v325_v15  ;;  %v354_v18 = vpop.f32.mrf.mxu1 }
  0xc2   :  { %v548_v19 = vadd.f32 %v1008_v38, %v354_v18 }
  0xc3   :  { %v570_v20 = vpack.c.bf16 %v546_v16, %v545_v13 }
  0xc4   :  { %v571_v21 = vpack.c.bf16 %v548_v19, %v547_v17 }
  0xc5   :  { %586 = vst [vmem:[%s1097_s3 + $0x38] sm:$0xff] %v570_v20 }
  0xc6   :  { %587 = vst [vmem:[%s1097_s3 + $0x40] sm:$0xff] %v571_v21 }
  0xc7   :  { %v383_v22 = vpop.f32.mrf.mxu2 }
  0xc8   :  { %v549_v23 = vadd.f32 %v1012_v44, %v383_v22  ;;  %v412_v24 = vpop.f32.mrf.mxu3  ;;  %v327_v25 = vpop.f32.mrf.mxu0 }
  0xc9   :  { %v550_v26 = vadd.f32 %v1014_v45, %v412_v24  ;;  %v551_v27 = vadd.f32 %v1006_v37, %v327_v25  ;;  %v356_v28 = vpop.f32.mrf.mxu1 }
  0xca   :  { %v552_v29 = vadd.f32 %v1008_v38, %v356_v28 }
  0xcb   :  { %v572_v30 = vpack.c.bf16 %v550_v26, %v549_v23 }
  0xcc   :  { %v573_v31 = vpack.c.bf16 %v552_v29, %v551_v27 }
  0xcd   :  { %588 = vst [vmem:[%s1097_s3 + $0x48] sm:$0xff] %v572_v30 }
  0xce   :  { %589 = vst [vmem:[%s1097_s3 + $0x50] sm:$0xff] %v573_v31 }
  0xcf   :  { %v385_v32 = vpop.f32.mrf.mxu2 }
  0xd0   :  { %v553_v33 = vadd.f32 %v1012_v44, %v385_v32  ;;  %v414_v34 = vpop.f32.mrf.mxu3  ;;  %v330_v35 = vpop.f32.mrf.mxu0 }
  0xd1   :  { %v554_v36 = vadd.f32 %v1014_v45, %v414_v34  ;;  %v555_v39 = vadd.f32 %v1006_v37, %v330_v35  ;;  %v359_v40 = vpop.f32.mrf.mxu1 }
  0xd2   :  { %v556_v41 = vadd.f32 %v1008_v38, %v359_v40 }
  0xd3   :  { %v574_v42 = vpack.c.bf16 %v554_v36, %v553_v33 }
  0xd4   :  { %v575_v43 = vpack.c.bf16 %v556_v41, %v555_v39 }
  0xd5   :  { %590 = vst [vmem:[%s1097_s3 + $0x58] sm:$0xff] %v574_v42 }
  0xd6   :  { %591 = vst [vmem:[%s1097_s3 + $0x60] sm:$0xff] %v575_v43 }
  0xd7   :  { %v388_v46 = vpop.f32.mrf.mxu2 }
  0xd8   :  { %v557_v47 = vadd.f32 %v1012_v44, %v388_v46  ;;  %v417_v48 = vpop.f32.mrf.mxu3  ;;  %v332_v49 = vpop.f32.mrf.mxu0 }
  0xd9   :  { %v558_v50 = vadd.f32 %v1014_v45, %v417_v48  ;;  %v559_v51 = vadd.f32 %v1006_v37, %v332_v49  ;;  %v361_v52 = vpop.f32.mrf.mxu1 }
  0xda   :  { %v560_v53 = vadd.f32 %v1008_v38, %v361_v52 }
  0xdb   :  { %v576_v54 = vpack.c.bf16 %v558_v50, %v557_v47 }
  0xdc   :  { %v577_v55 = vpack.c.bf16 %v560_v53, %v559_v51 }
  0xdd   :  { %592 = vst [vmem:[%s1097_s3 + $0x68] sm:$0xff] %v576_v54 }
  0xde   :  { %593 = vst [vmem:[%s1097_s3 + $0x70] sm:$0xff] %v577_v55 }
  0xdf   :  { %v390_v56 = vpop.f32.mrf.mxu2 }
  0xe0   :  { %v561_v57 = vadd.f32 %v1012_v44, %v390_v56  ;;  %v419_v58 = vpop.f32.mrf.mxu3 }
  0xe1   :  { %v562_v59 = vadd.f32 %v1014_v45, %v419_v58 }
  0xe3   :  { %v578_v37 = vpack.c.bf16 %v562_v59, %v561_v57 }
  0xe5   :  { %594 = vst [vmem:[%s1097_s3 + $0x78] sm:$0xff] %v578_v37 }

// kernel: rnn_forward.17
= control target key start
LH: loop header
LB: loop body
LE: loop exit
PB: predicated region body
PF: predicated region fallthrough
CT: control target
= control target key end

     0   :  { %s982_s1 = inlined_call_operand.vmem [shape: bf16[128,512], index: 1, kind: input, shape index: {}]   ;;  %s983_s0 = inlined_call_operand.vmem [shape: bf16[48,128], index: 0, kind: input, shape index: {}]   ;;  %s984_s2 = inlined_call_operand.vmem [shape: f32[1,512], index: 2, kind: input, shape index: {}]   ;;  %s985_s3 = inlined_call_operand.vmem [shape: bf16[48,512], index: 3, kind: output, shape index: {}]  }
   0x1   :  { %v641_v0 = vld [vmem:[%s982_s1 + $0xe0] sm:$0xf]  ;;  %v688_v1 = vld [vmem:[%s982_s1 + $0xec] sm:$0xf0]  ;;  %v686_v2 = vld [vmem:[%s982_s1 + $0xe4] sm:$0xf] }
   0x2   :  { %v642_v3 = vor.u32 %v688_v1, %v641_v0  ;;  %v643_v4 = vld [vmem:[%s982_s1 + $0xf0] sm:$0xf0]  ;;  %v649_v5 = vld [vmem:[%s982_s1 + $0xe8] sm:$0xf]  ;;  %v689_v6 = vld [vmem:[%s982_s1 + $0xf4] sm:$0xf0] }
   0x3   :  { %v646_v7 = vor.u32 %v686_v2, %v643_v4  ;;  %v650_v8 = vor.u32 %v689_v6, %v649_v5  ;;  %v687_v9 = vld [vmem:[%s982_s1 + $0xec] sm:$0xf]  ;;  %v651_v10 = vld [vmem:[%s982_s1 + $0xf8] sm:$0xf0]  ;;  %v625_v11 = vld [vmem:[%s982_s1 + $0xc0] sm:$0xf] }
   0x4   :  { %282 = vmatpush.bf16.msra.mxu0 %v642_v3  ;;  %v654_v12 = vor.u32 %v687_v9, %v651_v10  ;;  %v684_v13 = vld [vmem:[%s982_s1 + $0xcc] sm:$0xf0]  ;;  %v682_v14 = vld [vmem:[%s982_s1 + $0xc4] sm:$0xf]  ;;  %v627_v15 = vld [vmem:[%s982_s1 + $0xd0] sm:$0xf0] }
   0x5   :  { %306 = vmatpush.bf16.msra.mxu1 %v646_v7  ;;  %330 = vmatpush.bf16.msra.mxu2 %v650_v8  ;;  %v626_v16 = vor.u32 %v684_v13, %v625_v11  ;;  %v630_v17 = vor.u32 %v682_v14, %v627_v15  ;;  %v633_v18 = vld [vmem:[%s982_s1 + $0xc8] sm:$0xf]  ;;  %v685_v19 = vld [vmem:[%s982_s1 + $0xd4] sm:$0xf0]  ;;  %v683_v20 = vld [vmem:[%s982_s1 + $0xcc] sm:$0xf] }
   0x6   :  { %354 = vmatpush.bf16.msra.mxu3 %v654_v12  ;;  %v634_v21 = vor.u32 %v685_v19, %v633_v18  ;;  %v635_v22 = vld [vmem:[%s982_s1 + $0xd8] sm:$0xf0]  ;;  %v609_v23 = vld [vmem:[%s982_s1 + $0xa0] sm:$0xf]  ;;  %v680_v24 = vld [vmem:[%s982_s1 + $0xac] sm:$0xf0] }
   0x7   :  { %v638_v25 = vor.u32 %v683_v20, %v635_v22  ;;  %v678_v26 = vld [vmem:[%s982_s1 + $0xa4] sm:$0xf]  ;;  %v611_v27 = vld [vmem:[%s982_s1 + $0xb0] sm:$0xf0]  ;;  %v617_v28 = vld [vmem:[%s982_s1 + $0xa8] sm:$0xf]  ;;  %v610_v29 = vor.u32 %v680_v24, %v609_v23 }
   0x8   :  { %283 = vmatpush.bf16.msra.mxu0 %v626_v16  ;;  %v681_v30 = vld [vmem:[%s982_s1 + $0xb4] sm:$0xf0]  ;;  %v679_v31 = vld [vmem:[%s982_s1 + $0xac] sm:$0xf]  ;;  %v619_v32 = vld [vmem:[%s982_s1 + $0xb8] sm:$0xf0]  ;;  %v614_v33 = vor.u32 %v678_v26, %v611_v27 }
   0x9   :  { %307 = vmatpush.bf16.msra.mxu1 %v630_v17  ;;  %331 = vmatpush.bf16.msra.mxu2 %v634_v21  ;;  %v618_v34 = vor.u32 %v681_v30, %v617_v28  ;;  %v593_v35 = vld [vmem:[%s982_s1 + $0x80] sm:$0xf]  ;;  %v676_v36 = vld [vmem:[%s982_s1 + $0x8c] sm:$0xf0]  ;;  %v674_v37 = vld [vmem:[%s982_s1 + $0x84] sm:$0xf]  ;;  %v622_v38 = vor.u32 %v679_v31, %v619_v32 }
   0xa   :  { %355 = vmatpush.bf16.msra.mxu3 %v638_v25  ;;  %v595_v39 = vld [vmem:[%s982_s1 + $0x90] sm:$0xf0]  ;;  %v601_v40 = vld [vmem:[%s982_s1 + $0x88] sm:$0xf]  ;;  %v677_v41 = vld [vmem:[%s982_s1 + $0x94] sm:$0xf0]  ;;  %v594_v44 = vor.u32 %v676_v36, %v593_v35 }
   0xb   :  { %v675_v42 = vld [vmem:[%s982_s1 + $0x8c] sm:$0xf]  ;;  %v603_v43 = vld [vmem:[%s982_s1 + $0x98] sm:$0xf0]  ;;  %v598_v45 = vor.u32 %v674_v37, %v595_v39  ;;  %v602_v46 = vor.u32 %v677_v41, %v601_v40  ;;  %v577_v47 = vld [vmem:[%s982_s1 + $0x60] sm:$0xf] }
   0xc   :  { %284 = vmatpush.bf16.msra.mxu0 %v610_v29  ;;  %v672_v48 = vld [vmem:[%s982_s1 + $0x6c] sm:$0xf0]  ;;  %v670_v49 = vld [vmem:[%s982_s1 + $0x64] sm:$0xf]  ;;  %v606_v50 = vor.u32 %v675_v42, %v603_v43  ;;  %v579_v51 = vld [vmem:[%s982_s1 + $0x70] sm:$0xf0] }
   0xd   :  { %308 = vmatpush.bf16.msra.mxu1 %v614_v33  ;;  %332 = vmatpush.bf16.msra.mxu2 %v618_v34  ;;  %v585_v52 = vld [vmem:[%s982_s1 + $0x68] sm:$0xf]  ;;  %v673_v53 = vld [vmem:[%s982_s1 + $0x74] sm:$0xf0]  ;;  %v671_v54 = vld [vmem:[%s982_s1 + $0x6c] sm:$0xf]  ;;  %v578_v56 = vor.u32 %v672_v48, %v577_v47  ;;  %v582_v57 = vor.u32 %v670_v49, %v579_v51 }
   0xe   :  { %356 = vmatpush.bf16.msra.mxu3 %v622_v38  ;;  %v587_v55 = vld [vmem:[%s982_s1 + $0x78] sm:$0xf0]  ;;  %v586_v58 = vor.u32 %v673_v53, %v585_v52  ;;  %v561_v59 = vld [vmem:[%s982_s1 + $0x40] sm:$0xf]  ;;  %v668_v60 = vld [vmem:[%s982_s1 + $0x4c] sm:$0xf0] }
   0xf   :  { %v666_v61 = vld [vmem:[%s982_s1 + $0x44] sm:$0xf]  ;;  %v590_v62 = vor.u32 %v671_v54, %v587_v55  ;;  %v563_v63 = vld [vmem:[%s982_s1 + $0x50] sm:$0xf0]  ;;  %v569_v0 = vld [vmem:[%s982_s1 + $0x48] sm:$0xf]  ;;  %v562_v4 = vor.u32 %v668_v60, %v561_v59 }
  0x10   :  { %285 = vmatpush.bf16.msra.mxu0 %v594_v44  ;;  %v669_v1 = vld [vmem:[%s982_s1 + $0x54] sm:$0xf0]  ;;  %v667_v2 = vld [vmem:[%s982_s1 + $0x4c] sm:$0xf]  ;;  %v571_v3 = vld [vmem:[%s982_s1 + $0x58] sm:$0xf0]  ;;  %v566_v5 = vor.u32 %v666_v61, %v563_v63 }
  0x11   :  { %309 = vmatpush.bf16.msra.mxu1 %v598_v45  ;;  %333 = vmatpush.bf16.msra.mxu2 %v602_v46  ;;  %v570_v6 = vor.u32 %v669_v1, %v569_v0  ;;  %v545_v7 = vld [vmem:[%s982_s1 + $0x20] sm:$0xf]  ;;  %v664_v8 = vld [vmem:[%s982_s1 + $0x2c] sm:$0xf0]  ;;  %v662_v9 = vld [vmem:[%s982_s1 + $0x24] sm:$0xf]  ;;  %v574_v10 = vor.u32 %v667_v2, %v571_v3 }
  0x12   :  { %357 = vmatpush.bf16.msra.mxu3 %v606_v50  ;;  %v547_v11 = vld [vmem:[%s982_s1 + $0x30] sm:$0xf0]  ;;  %v553_v12 = vld [vmem:[%s982_s1 + $0x28] sm:$0xf]  ;;  %v665_v13 = vld [vmem:[%s982_s1 + $0x34] sm:$0xf0]  ;;  %v546_v16 = vor.u32 %v664_v8, %v545_v7 }
  0x13   :  { %v663_v14 = vld [vmem:[%s982_s1 + $0x2c] sm:$0xf]  ;;  %v555_v15 = vld [vmem:[%s982_s1 + $0x38] sm:$0xf0]  ;;  %v550_v17 = vor.u32 %v662_v9, %v547_v11  ;;  %v554_v18 = vor.u32 %v665_v13, %v553_v12  ;;  %v529_v19 = vld [vmem:[%s982_s1] sm:$0xf] }
  0x14   :  { %286 = vmatpush.bf16.msra.mxu0 %v578_v56  ;;  %v660_v20 = vld [vmem:[%s982_s1 + $0xc] sm:$0xf0]  ;;  %v658_v21 = vld [vmem:[%s982_s1 + $0x4] sm:$0xf]  ;;  %v558_v22 = vor.u32 %v663_v14, %v555_v15  ;;  %v531_v23 = vld [vmem:[%s982_s1 + $0x10] sm:$0xf0] }
  0x15   :  { %310 = vmatpush.bf16.msra.mxu1 %v582_v57  ;;  %334 = vmatpush.bf16.msra.mxu2 %v586_v58  ;;  %v537_v24 = vld [vmem:[%s982_s1 + $0x8] sm:$0xf]  ;;  %v661_v25 = vld [vmem:[%s982_s1 + $0x14] sm:$0xf0]  ;;  %v659_v26 = vld [vmem:[%s982_s1 + $0xc] sm:$0xf]  ;;  %v530_v28 = vor.u32 %v660_v20, %v529_v19  ;;  %v534_v29 = vor.u32 %v658_v21, %v531_v23 }
  0x16   :  { %358 = vmatpush.bf16.msra.mxu3 %v590_v62  ;;  %v539_v27 = vld [vmem:[%s982_s1 + $0x18] sm:$0xf0]  ;;  %v538_v30 = vor.u32 %v661_v25, %v537_v24  ;;  %v655_v32 = vld [vmem:[%s983_s0] sm:$0xff]  ;;  %v656_v33 = vld [vmem:[%s983_s0 + $0x8] sm:$0xff] }
  0x17   :  { %v542_v31 = vor.u32 %v659_v26, %v539_v27  ;;  %v657_v34 = vld [vmem:[%s983_s0 + $0x10] sm:$0xff]  ;;  %v453_v35 = vld [vmem:[%s984_s2] sm:$0xf] }
  0x18   :  { %287 = vmatpush.bf16.msra.mxu0 %v562_v4  ;;  %v914_v36 = vperm.slane %v453_v35, 0  ;;  %v916_v37 = vperm.slane %v453_v35, 1  ;;  %v920_v43 = vperm.slane %v453_v35, 2  ;;  %v922_v44 = vperm.slane %v453_v35, 3 }
  0x19   :  { %311 = vmatpush.bf16.msra.mxu1 %v566_v5  ;;  %335 = vmatpush.bf16.msra.mxu2 %v570_v6 }
  0x1a   :  { %359 = vmatpush.bf16.msra.mxu3 %v574_v10 }
  0x1c   :  { %288 = vmatpush.bf16.msra.mxu0 %v546_v16 }
  0x1d   :  { %312 = vmatpush.bf16.msra.mxu1 %v550_v17  ;;  %336 = vmatpush.bf16.msra.mxu2 %v554_v18 }
  0x1e   :  { %360 = vmatpush.bf16.msra.mxu3 %v558_v22 }
  0x20   :  { %289 = vmatpush.bf16.msra.mxu0 %v530_v28 }
  0x21   :  { %313 = vmatpush.bf16.msra.mxu1 %v534_v29  ;;  %337 = vmatpush.bf16.msra.mxu2 %v538_v30 }
  0x22   :  { %361 = vmatpush.bf16.msra.mxu3 %v542_v31 }
  0x23   :  { %290 = vmatmul.bf16.vlgmr.msra.gmra.mxu0 %v655_v32 }
  0x24   :  { %314 = vmatmul.bf16.vlgmr.msra.gmra.mxu1 %v655_v32  ;;  %338 = vmatmul.bf16.vlgmr.msra.gmra.mxu2 %v655_v32 }
  0x25   :  { %362 = vmatmul.bf16.vlgmr.msra.gmra.mxu3 %v655_v32 }
  0x33   :  { %295 = vmatmul.bf16.gmra.mxu0 %v656_v33 }
  0x34   :  { %319 = vmatmul.bf16.gmra.mxu1 %v656_v33  ;;  %343 = vmatmul.bf16.gmra.mxu2 %v656_v33 }
  0x35   :  { %367 = vmatmul.bf16.gmra.mxu3 %v656_v33 }
  0x43   :  { %300 = vmatmul.bf16.gmra.mxu0 %v657_v34 }
  0x44   :  { %324 = vmatmul.bf16.gmra.mxu1 %v657_v34  ;;  %348 = vmatmul.bf16.gmra.mxu2 %v657_v34 }
  0x45   :  { %372 = vmatmul.bf16.gmra.mxu3 %v657_v34 }
  0xa0   :  { %v291_v38 = vpop.f32.mrf.mxu0 }
  0xa1   :  { %v463_v39 = vadd.f32 %v914_v36, %v291_v38  ;;  %v315_v40 = vpop.f32.mrf.mxu1 }
  0xa2   :  { %v464_v41 = vadd.f32 %v916_v37, %v315_v40 }
  0xa4   :  { %v487_v42 = vpack.c.bf16 %v464_v41, %v463_v39 }
  0xa6   :  { %499 = vst [vmem:[%s985_s3] sm:$0xff] %v487_v42 }
  0xa7   :  { %v339_v45 = vpop.f32.mrf.mxu2 }
  0xa8   :  { %v465_v46 = vadd.f32 %v920_v43, %v339_v45  ;;  %v363_v47 = vpop.f32.mrf.mxu3  ;;  %v293_v48 = vpop.f32.mrf.mxu0 }
  0xa9   :  { %v466_v49 = vadd.f32 %v922_v44, %v363_v47  ;;  %v467_v50 = vadd.f32 %v914_v36, %v293_v48  ;;  %v317_v51 = vpop.f32.mrf.mxu1 }
  0xaa   :  { %v468_v52 = vadd.f32 %v916_v37, %v317_v51 }
  0xab   :  { %v488_v53 = vpack.c.bf16 %v466_v49, %v465_v46 }
  0xac   :  { %v489_v54 = vpack.c.bf16 %v468_v52, %v467_v50 }
  0xad   :  { %500 = vst [vmem:[%s985_s3 + $0x8] sm:$0xff] %v488_v53 }
  0xae   :  { %501 = vst [vmem:[%s985_s3 + $0x10] sm:$0xff] %v489_v54 }
  0xaf   :  { %v341_v55 = vpop.f32.mrf.mxu2 }
  0xb0   :  { %v469_v56 = vadd.f32 %v920_v43, %v341_v55  ;;  %v365_v57 = vpop.f32.mrf.mxu3  ;;  %v296_v58 = vpop.f32.mrf.mxu0 }
  0xb1   :  { %v470_v59 = vadd.f32 %v922_v44, %v365_v57  ;;  %v471_v60 = vadd.f32 %v914_v36, %v296_v58  ;;  %v320_v61 = vpop.f32.mrf.mxu1 }
  0xb2   :  { %v472_v62 = vadd.f32 %v916_v37, %v320_v61 }
  0xb3   :  { %v490_v63 = vpack.c.bf16 %v470_v59, %v469_v56 }
  0xb4   :  { %v491_v0 = vpack.c.bf16 %v472_v62, %v471_v60 }
  0xb5   :  { %502 = vst [vmem:[%s985_s3 + $0x18] sm:$0xff] %v490_v63 }
  0xb6   :  { %503 = vst [vmem:[%s985_s3 + $0x20] sm:$0xff] %v491_v0 }
  0xb7   :  { %v344_v1 = vpop.f32.mrf.mxu2 }
  0xb8   :  { %v473_v2 = vadd.f32 %v920_v43, %v344_v1  ;;  %v368_v3 = vpop.f32.mrf.mxu3  ;;  %v298_v4 = vpop.f32.mrf.mxu0 }
  0xb9   :  { %v474_v5 = vadd.f32 %v922_v44, %v368_v3  ;;  %v475_v6 = vadd.f32 %v914_v36, %v298_v4  ;;  %v322_v7 = vpop.f32.mrf.mxu1 }
  0xba   :  { %v476_v8 = vadd.f32 %v916_v37, %v322_v7 }
  0xbb   :  { %v492_v9 = vpack.c.bf16 %v474_v5, %v473_v2 }
  0xbc   :  { %v493_v10 = vpack.c.bf16 %v476_v8, %v475_v6 }
  0xbd   :  { %504 = vst [vmem:[%s985_s3 + $0x28] sm:$0xff] %v492_v9 }
  0xbe   :  { %505 = vst [vmem:[%s985_s3 + $0x30] sm:$0xff] %v493_v10 }
  0xbf   :  { %v346_v11 = vpop.f32.mrf.mxu2 }
  0xc0   :  { %v477_v12 = vadd.f32 %v920_v43, %v346_v11  ;;  %v370_v13 = vpop.f32.mrf.mxu3  ;;  %v301_v14 = vpop.f32.mrf.mxu0 }
  0xc1   :  { %v478_v15 = vadd.f32 %v922_v44, %v370_v13  ;;  %v479_v16 = vadd.f32 %v914_v36, %v301_v14  ;;  %v325_v17 = vpop.f32.mrf.mxu1 }
  0xc2   :  { %v480_v18 = vadd.f32 %v916_v37, %v325_v17 }
  0xc3   :  { %v494_v19 = vpack.c.bf16 %v478_v15, %v477_v12 }
  0xc4   :  { %v495_v20 = vpack.c.bf16 %v480_v18, %v479_v16 }
  0xc5   :  { %506 = vst [vmem:[%s985_s3 + $0x38] sm:$0xff] %v494_v19 }
  0xc6   :  { %507 = vst [vmem:[%s985_s3 + $0x40] sm:$0xff] %v495_v20 }
  0xc7   :  { %v349_v21 = vpop.f32.mrf.mxu2 }
  0xc8   :  { %v481_v22 = vadd.f32 %v920_v43, %v349_v21  ;;  %v373_v23 = vpop.f32.mrf.mxu3  ;;  %v303_v24 = vpop.f32.mrf.mxu0 }
  0xc9   :  { %v482_v25 = vadd.f32 %v922_v44, %v373_v23  ;;  %v483_v26 = vadd.f32 %v914_v36, %v303_v24  ;;  %v327_v27 = vpop.f32.mrf.mxu1 }
  0xca   :  { %v484_v28 = vadd.f32 %v916_v37, %v327_v27 }
  0xcb   :  { %v496_v29 = vpack.c.bf16 %v482_v25, %v481_v22 }
  0xcc   :  { %v497_v30 = vpack.c.bf16 %v484_v28, %v483_v26 }
  0xcd   :  { %508 = vst [vmem:[%s985_s3 + $0x48] sm:$0xff] %v496_v29 }
  0xce   :  { %509 = vst [vmem:[%s985_s3 + $0x50] sm:$0xff] %v497_v30 }
  0xcf   :  { %v351_v31 = vpop.f32.mrf.mxu2 }
  0xd0   :  { %v485_v32 = vadd.f32 %v920_v43, %v351_v31  ;;  %v375_v33 = vpop.f32.mrf.mxu3 }
  0xd1   :  { %v486_v34 = vadd.f32 %v922_v44, %v375_v33 }
  0xd3   :  { %v498_v35 = vpack.c.bf16 %v486_v34, %v485_v32 }
  0xd5   :  { %510 = vst [vmem:[%s985_s3 + $0x58] sm:$0xff] %v498_v35 }

// kernel: rnn_forward.14
= control target key start
LH: loop header
LB: loop body
LE: loop exit
PB: predicated region body
PF: predicated region fallthrough
CT: control target
= control target key end

     0   :  { %s5766_s1 = inlined_call_operand.vmem [shape: bf16[128,512], index: 1, kind: input, shape index: {}]   ;;  %s5767_s2 = inlined_call_operand.vmem [shape: f32[8,128], index: 2, kind: input, shape index: {}, may-alias: {2,3}]   ;;  %s5768_s0 = inlined_call_operand.vmem [shape: bf16[8,8,512], index: 0, kind: input, shape index: {}]   ;;  %s5769_s3 = inlined_call_operand.vmem [shape: f32[8,128], index: 3, kind: input, shape index: {}, may-alias: {2,3}]   ;;  %s5770_s4 = inlined_call_operand.vmem [shape: bf16[8,8,128], index: 4, kind: output, shape index: {0}]   ;;  %s5771_s5 = inlined_call_operand.vmem [shape: f32[8,128], index: 5, kind: output, shape index: {1}]  }
   0x1   :  { %v2724_v0 = vld [vmem:[%s5766_s1 + $0xe0] sm:$0xf]  ;;  %v3709_v1 = vld [vmem:[%s5766_s1 + $0xec] sm:$0xf0]  ;;  %v3707_v2 = vld [vmem:[%s5766_s1 + $0xe4] sm:$0xf] }
   0x2   :  { %v2725_v3 = vor.u32 %v3709_v1, %v2724_v0  ;;  %v2726_v4 = vld [vmem:[%s5766_s1 + $0xf0] sm:$0xf0]  ;;  %v3708_v5 = vld [vmem:[%s5766_s1 + $0xec] sm:$0xf]  ;;  %v2734_v6 = vld [vmem:[%s5766_s1 + $0xf8] sm:$0xf0] }
   0x3   :  { %v2729_v7 = vor.u32 %v3707_v2, %v2726_v4  ;;  %v2737_v8 = vor.u32 %v3708_v5, %v2734_v6  ;;  %v2708_v9 = vld [vmem:[%s5766_s1 + $0xc0] sm:$0xf]  ;;  %v3705_v10 = vld [vmem:[%s5766_s1 + $0xcc] sm:$0xf0]  ;;  %v3703_v11 = vld [vmem:[%s5766_s1 + $0xc4] sm:$0xf] }
   0x4   :  { %228 = vmatpush.bf16.msra.mxu0 %v2725_v3  ;;  %v2709_v12 = vor.u32 %v3705_v10, %v2708_v9  ;;  %v2710_v13 = vld [vmem:[%s5766_s1 + $0xd0] sm:$0xf0]  ;;  %v3704_v14 = vld [vmem:[%s5766_s1 + $0xcc] sm:$0xf]  ;;  %v2718_v15 = vld [vmem:[%s5766_s1 + $0xd8] sm:$0xf0] }
   0x5   :  { %241 = vmatpush.bf16.msra.mxu1 %v2729_v7  ;;  %267 = vmatpush.bf16.msra.mxu3 %v2737_v8  ;;  %v2713_v16 = vor.u32 %v3703_v11, %v2710_v13  ;;  %v2721_v17 = vor.u32 %v3704_v14, %v2718_v15  ;;  %v2732_v18 = vld [vmem:[%s5766_s1 + $0xe8] sm:$0xf]  ;;  %v3710_v19 = vld [vmem:[%s5766_s1 + $0xf4] sm:$0xf0]  ;;  %v2692_v20 = vld [vmem:[%s5766_s1 + $0xa0] sm:$0xf] }
   0x6   :  { %v2733_v21 = vor.u32 %v3710_v19, %v2732_v18  ;;  %v3701_v22 = vld [vmem:[%s5766_s1 + $0xac] sm:$0xf0]  ;;  %v3699_v23 = vld [vmem:[%s5766_s1 + $0xa4] sm:$0xf]  ;;  %v2694_v24 = vld [vmem:[%s5766_s1 + $0xb0] sm:$0xf0] }
   0x7   :  { %v3700_v25 = vld [vmem:[%s5766_s1 + $0xac] sm:$0xf]  ;;  %v2702_v26 = vld [vmem:[%s5766_s1 + $0xb8] sm:$0xf0]  ;;  %v2716_v27 = vld [vmem:[%s5766_s1 + $0xc8] sm:$0xf]  ;;  %v2693_v28 = vor.u32 %v3701_v22, %v2692_v20  ;;  %v2697_v32 = vor.u32 %v3699_v23, %v2694_v24 }
   0x8   :  { %229 = vmatpush.bf16.msra.mxu0 %v2709_v12  ;;  %254 = vmatpush.bf16.msra.mxu2 %v2733_v21  ;;  %v3706_v29 = vld [vmem:[%s5766_s1 + $0xd4] sm:$0xf0]  ;;  %v2676_v30 = vld [vmem:[%s5766_s1 + $0x80] sm:$0xf]  ;;  %v3697_v31 = vld [vmem:[%s5766_s1 + $0x8c] sm:$0xf0]  ;;  %v2705_v33 = vor.u32 %v3700_v25, %v2702_v26 }
   0x9   :  { %242 = vmatpush.bf16.msra.mxu1 %v2713_v16  ;;  %268 = vmatpush.bf16.msra.mxu3 %v2721_v17  ;;  %v2717_v34 = vor.u32 %v3706_v29, %v2716_v27  ;;  %v3695_v35 = vld [vmem:[%s5766_s1 + $0x84] sm:$0xf]  ;;  %v2678_v36 = vld [vmem:[%s5766_s1 + $0x90] sm:$0xf0]  ;;  %v3696_v37 = vld [vmem:[%s5766_s1 + $0x8c] sm:$0xf]  ;;  %v2677_v41 = vor.u32 %v3697_v31, %v2676_v30 }
   0xa   :  { %v2686_v38 = vld [vmem:[%s5766_s1 + $0x98] sm:$0xf0]  ;;  %v2700_v39 = vld [vmem:[%s5766_s1 + $0xa8] sm:$0xf]  ;;  %v3702_v40 = vld [vmem:[%s5766_s1 + $0xb4] sm:$0xf0]  ;;  %v2681_v45 = vor.u32 %v3695_v35, %v2678_v36 }
   0xb   :  { %v2701_v42 = vor.u32 %v3702_v40, %v2700_v39  ;;  %v2660_v43 = vld [vmem:[%s5766_s1 + $0x60] sm:$0xf]  ;;  %v3693_v44 = vld [vmem:[%s5766_s1 + $0x6c] sm:$0xf0]  ;;  %v2689_v46 = vor.u32 %v3696_v37, %v2686_v38  ;;  %v3691_v47 = vld [vmem:[%s5766_s1 + $0x64] sm:$0xf] }
   0xc   :  { %230 = vmatpush.bf16.msra.mxu0 %v2693_v28  ;;  %255 = vmatpush.bf16.msra.mxu2 %v2717_v34  ;;  %v2684_v48 = vld [vmem:[%s5766_s1 + $0x88] sm:$0xf]  ;;  %v3698_v49 = vld [vmem:[%s5766_s1 + $0x94] sm:$0xf0]  ;;  %v2662_v50 = vld [vmem:[%s5766_s1 + $0x70] sm:$0xf0]  ;;  %v2661_v53 = vor.u32 %v3693_v44, %v2660_v43 }
   0xd   :  { %243 = vmatpush.bf16.msra.mxu1 %v2697_v32  ;;  %269 = vmatpush.bf16.msra.mxu3 %v2705_v33  ;;  %v3692_v51 = vld [vmem:[%s5766_s1 + $0x6c] sm:$0xf]  ;;  %v2670_v52 = vld [vmem:[%s5766_s1 + $0x78] sm:$0xf0]  ;;  %v2685_v54 = vor.u32 %v3698_v49, %v2684_v48  ;;  %v2644_v55 = vld [vmem:[%s5766_s1 + $0x40] sm:$0xf]  ;;  %v2665_v57 = vor.u32 %v3691_v47, %v2662_v50 }
   0xe   :  { %v3689_v56 = vld [vmem:[%s5766_s1 + $0x4c] sm:$0xf0]  ;;  %v2673_v58 = vor.u32 %v3692_v51, %v2670_v52  ;;  %v3687_v59 = vld [vmem:[%s5766_s1 + $0x44] sm:$0xf]  ;;  %v2668_v60 = vld [vmem:[%s5766_s1 + $0x68] sm:$0xf] }
   0xf   :  { %v3694_v61 = vld [vmem:[%s5766_s1 + $0x74] sm:$0xf0]  ;;  %v2646_v62 = vld [vmem:[%s5766_s1 + $0x50] sm:$0xf0]  ;;  %v3688_v63 = vld [vmem:[%s5766_s1 + $0x4c] sm:$0xf]  ;;  %v2645_v1 = vor.u32 %v3689_v56, %v2644_v55 }
  0x10   :  { %231 = vmatpush.bf16.msra.mxu0 %v2677_v41  ;;  %256 = vmatpush.bf16.msra.mxu2 %v2701_v42  ;;  %v2654_v0 = vld [vmem:[%s5766_s1 + $0x58] sm:$0xf0]  ;;  %v2669_v2 = vor.u32 %v3694_v61, %v2668_v60  ;;  %v2628_v3 = vld [vmem:[%s5766_s1 + $0x20] sm:$0xf]  ;;  %v3685_v4 = vld [vmem:[%s5766_s1 + $0x2c] sm:$0xf0]  ;;  %v2649_v5 = vor.u32 %v3687_v59, %v2646_v62 }
  0x11   :  { %244 = vmatpush.bf16.msra.mxu1 %v2681_v45  ;;  %270 = vmatpush.bf16.msra.mxu3 %v2689_v46  ;;  %v2657_v6 = vor.u32 %v3688_v63, %v2654_v0  ;;  %v3683_v7 = vld [vmem:[%s5766_s1 + $0x24] sm:$0xf]  ;;  %v2652_v8 = vld [vmem:[%s5766_s1 + $0x48] sm:$0xf]  ;;  %v3690_v9 = vld [vmem:[%s5766_s1 + $0x54] sm:$0xf0]  ;;  %v2629_v13 = vor.u32 %v3685_v4, %v2628_v3 }
  0x12   :  { %v2630_v10 = vld [vmem:[%s5766_s1 + $0x30] sm:$0xf0]  ;;  %v3684_v11 = vld [vmem:[%s5766_s1 + $0x2c] sm:$0xf]  ;;  %v2638_v12 = vld [vmem:[%s5766_s1 + $0x38] sm:$0xf0]  ;;  %v2653_v14 = vor.u32 %v3690_v9, %v2652_v8 }
  0x13   :  { %v2612_v15 = vld [vmem:[%s5766_s1] sm:$0xf]  ;;  %v3681_v16 = vld [vmem:[%s5766_s1 + $0xc] sm:$0xf0]  ;;  %v2633_v17 = vor.u32 %v3683_v7, %v2630_v10  ;;  %v2641_v18 = vor.u32 %v3684_v11, %v2638_v12  ;;  %v3679_v19 = vld [vmem:[%s5766_s1 + $0x4] sm:$0xf] }
  0x14   :  { %232 = vmatpush.bf16.msra.mxu0 %v2661_v53  ;;  %257 = vmatpush.bf16.msra.mxu2 %v2685_v54  ;;  %v2636_v20 = vld [vmem:[%s5766_s1 + $0x28] sm:$0xf]  ;;  %v3686_v21 = vld [vmem:[%s5766_s1 + $0x34] sm:$0xf0]  ;;  %v2614_v22 = vld [vmem:[%s5766_s1 + $0x10] sm:$0xf0]  ;;  %v2613_v25 = vor.u32 %v3681_v16, %v2612_v15 }
  0x15   :  { %245 = vmatpush.bf16.msra.mxu1 %v2665_v57  ;;  %271 = vmatpush.bf16.msra.mxu3 %v2673_v58  ;;  %v3680_v23 = vld [vmem:[%s5766_s1 + $0xc] sm:$0xf]  ;;  %v2622_v24 = vld [vmem:[%s5766_s1 + $0x18] sm:$0xf0]  ;;  %v23_v26 = vld [vmem:[%s5767_s2] sm:$0xff]  ;;  %v2637_v27 = vor.u32 %v3686_v21, %v2636_v20  ;;  %v2617_v28 = vor.u32 %v3679_v19, %v2614_v22 }
  0x16   :  { %v2625_v29 = vor.u32 %v3680_v23, %v2622_v24  ;;  %v2620_v30 = vld [vmem:[%s5766_s1 + $0x8] sm:$0xf]  ;;  %v3682_v31 = vld [vmem:[%s5766_s1 + $0x14] sm:$0xf0]  ;;  %v35_v32 = vpack.c.bf16 %v23_v26, %v23_v26  ;;  %v2857_v34 = vld [vmem:[%s5766_s1 + $0xe0] sm:$0xf] }
  0x17   :  { %v2621_v33 = vor.u32 %v3682_v31, %v2620_v30  ;;  %v3741_v35 = vld [vmem:[%s5766_s1 + $0xec] sm:$0xf0]  ;;  %v3739_v36 = vld [vmem:[%s5766_s1 + $0xe4] sm:$0xf]  ;;  %v2859_v38 = vld [vmem:[%s5766_s1 + $0xf0] sm:$0xf0] }
  0x18   :  { %233 = vmatpush.bf16.msra.mxu0 %v2645_v1  ;;  %258 = vmatpush.bf16.msra.mxu2 %v2669_v2  ;;  %v2858_v37 = vor.u32 %v3741_v35, %v2857_v34  ;;  %v2865_v39 = vld [vmem:[%s5766_s1 + $0xe8] sm:$0xf]  ;;  %v3742_v40 = vld [vmem:[%s5766_s1 + $0xf4] sm:$0xf0]  ;;  %v2862_v41 = vor.u32 %v3739_v36, %v2859_v38  ;;  %v3740_v43 = vld [vmem:[%s5766_s1 + $0xec] sm:$0xf] }
  0x19   :  { %246 = vmatpush.bf16.msra.mxu1 %v2649_v5  ;;  %272 = vmatpush.bf16.msra.mxu3 %v2657_v6  ;;  %v2866_v42 = vor.u32 %v3742_v40, %v2865_v39  ;;  %v2867_v44 = vld [vmem:[%s5766_s1 + $0xf8] sm:$0xf0]  ;;  %v2841_v46 = vld [vmem:[%s5766_s1 + $0xc0] sm:$0xf]  ;;  %v3737_v47 = vld [vmem:[%s5766_s1 + $0xcc] sm:$0xf0] }
  0x1a   :  { %v2870_v45 = vor.u32 %v3740_v43, %v2867_v44  ;;  %v3735_v48 = vld [vmem:[%s5766_s1 + $0xc4] sm:$0xf]  ;;  %v2842_v49 = vor.u32 %v3737_v47, %v2841_v46  ;;  %v2843_v50 = vld [vmem:[%s5766_s1 + $0xd0] sm:$0xf0]  ;;  %v2849_v51 = vld [vmem:[%s5766_s1 + $0xc8] sm:$0xf] }
  0x1b   :  { %v3738_v52 = vld [vmem:[%s5766_s1 + $0xd4] sm:$0xf0]  ;;  %v2846_v53 = vor.u32 %v3735_v48, %v2843_v50  ;;  %v3736_v55 = vld [vmem:[%s5766_s1 + $0xcc] sm:$0xf]  ;;  %v2851_v56 = vld [vmem:[%s5766_s1 + $0xd8] sm:$0xf0] }
  0x1c   :  { %234 = vmatpush.bf16.msra.mxu0 %v2629_v13  ;;  %259 = vmatpush.bf16.msra.mxu2 %v2653_v14  ;;  %v2850_v54 = vor.u32 %v3738_v52, %v2849_v51  ;;  %v2854_v57 = vor.u32 %v3736_v55, %v2851_v56  ;;  %v2825_v58 = vld [vmem:[%s5766_s1 + $0xa0] sm:$0xf]  ;;  %v3733_v59 = vld [vmem:[%s5766_s1 + $0xac] sm:$0xf0]  ;;  %v3731_v60 = vld [vmem:[%s5766_s1 + $0xa4] sm:$0xf] }
  0x1d   :  { %247 = vmatpush.bf16.msra.mxu1 %v2633_v17  ;;  %273 = vmatpush.bf16.msra.mxu3 %v2641_v18  ;;  %v2826_v61 = vor.u32 %v3733_v59, %v2825_v58  ;;  %v2827_v62 = vld [vmem:[%s5766_s1 + $0xb0] sm:$0xf0]  ;;  %v2833_v63 = vld [vmem:[%s5766_s1 + $0xa8] sm:$0xf]  ;;  %v3734_v0 = vld [vmem:[%s5766_s1 + $0xb4] sm:$0xf0] }
  0x1e   :  { %v2830_v1 = vor.u32 %v3731_v60, %v2827_v62  ;;  %v2834_v2 = vor.u32 %v3734_v0, %v2833_v63  ;;  %v3732_v3 = vld [vmem:[%s5766_s1 + $0xac] sm:$0xf]  ;;  %v2835_v4 = vld [vmem:[%s5766_s1 + $0xb8] sm:$0xf0]  ;;  %v29_v5 = vld [vmem:[%s5768_s0] sm:$0xff] }
  0x1f   :  { %v2838_v6 = vor.u32 %v3732_v3, %v2835_v4  ;;  %v2809_v7 = vld [vmem:[%s5766_s1 + $0x80] sm:$0xf]  ;;  %v3729_v8 = vld [vmem:[%s5766_s1 + $0x8c] sm:$0xf0]  ;;  %v3727_v9 = vld [vmem:[%s5766_s1 + $0x84] sm:$0xf]  ;;  %v31_v18 = vunpack.c.l.bf16 %v29_v5  ;;  %v32_v20 = vunpack.c.h.bf16 %v29_v5 }
  0x20   :  { %235 = vmatpush.bf16.msra.mxu0 %v2613_v25  ;;  %260 = vmatpush.bf16.msra.mxu2 %v2637_v27  ;;  %v2810_v10 = vor.u32 %v3729_v8, %v2809_v7  ;;  %v2811_v11 = vld [vmem:[%s5766_s1 + $0x90] sm:$0xf0]  ;;  %v2817_v12 = vld [vmem:[%s5766_s1 + $0x88] sm:$0xf]  ;;  %v3730_v13 = vld [vmem:[%s5766_s1 + $0x94] sm:$0xf0] }
  0x21   :  { %248 = vmatpush.bf16.msra.mxu1 %v2617_v28  ;;  %274 = vmatpush.bf16.msra.mxu3 %v2625_v29  ;;  %v2814_v14 = vor.u32 %v3727_v9, %v2811_v11  ;;  %v2818_v15 = vor.u32 %v3730_v13, %v2817_v12  ;;  %v3728_v16 = vld [vmem:[%s5766_s1 + $0x8c] sm:$0xf]  ;;  %v2819_v17 = vld [vmem:[%s5766_s1 + $0x98] sm:$0xf0]  ;;  %v2793_v21 = vld [vmem:[%s5766_s1 + $0x60] sm:$0xf] }
  0x22   :  { %v2822_v19 = vor.u32 %v3728_v16, %v2819_v17  ;;  %v3725_v22 = vld [vmem:[%s5766_s1 + $0x6c] sm:$0xf0]  ;;  %v3723_v23 = vld [vmem:[%s5766_s1 + $0x64] sm:$0xf]  ;;  %v2795_v25 = vld [vmem:[%s5766_s1 + $0x70] sm:$0xf0] }
  0x23   :  { %236 = vmatmul.bf16.vlgmr.msra.gmra.mxu0 %v35_v32  ;;  %v2794_v24 = vor.u32 %v3725_v22, %v2793_v21  ;;  %v2801_v26 = vld [vmem:[%s5766_s1 + $0x68] sm:$0xf]  ;;  %v2798_v28 = vor.u32 %v3723_v23, %v2795_v25  ;;  %v3726_v29 = vld [vmem:[%s5766_s1 + $0x74] sm:$0xf0]  ;;  %v3724_v30 = vld [vmem:[%s5766_s1 + $0x6c] sm:$0xf] }
  0x24   :  { %249 = vmatmul.bf16.vlgmr.msra.gmra.mxu1 %v35_v32  ;;  %275 = vmatmul.bf16.vlgmr.msra.gmra.mxu3 %v35_v32  ;;  %v2803_v31 = vld [vmem:[%s5766_s1 + $0x78] sm:$0xf0]  ;;  %v4414_v34 = vld [vmem:[%s5768_s0 + $0x8] sm:$0xff]  ;;  %v2802_v35 = vor.u32 %v3726_v29, %v2801_v26  ;;  %v2777_v38 = vld [vmem:[%s5766_s1 + $0x40] sm:$0xf] }
  0x25   :  { %261 = vmatpush.bf16.msra.mxu2 %v2621_v33  ;;  %548 = vmatpush.bf16.msrb.mxu0 %v2858_v37  ;;  %v2806_v36 = vor.u32 %v3724_v30, %v2803_v31  ;;  %v3721_v39 = vld [vmem:[%s5766_s1 + $0x4c] sm:$0xf0]  ;;  %v3719_v40 = vld [vmem:[%s5766_s1 + $0x44] sm:$0xf]  ;;  %v2779_v43 = vld [vmem:[%s5766_s1 + $0x50] sm:$0xf0]  ;;  %v34_v46 = vunpack.c.h.bf16 %v4414_v34  ;;  %v33_v23 = vunpack.c.l.bf16 %v4414_v34 }
  0x26   :  { %561 = vmatpush.bf16.msrb.mxu1 %v2862_v41  ;;  %587 = vmatpush.bf16.msrb.mxu3 %v2870_v45  ;;  %v2785_v44 = vld [vmem:[%s5766_s1 + $0x48] sm:$0xf]  ;;  %v2782_v47 = vor.u32 %v3719_v40, %v2779_v43  ;;  %v3722_v48 = vld [vmem:[%s5766_s1 + $0x54] sm:$0xf0]  ;;  %v2787_v51 = vld [vmem:[%s5766_s1 + $0x58] sm:$0xf0] }
  0x27   :  { %v2786_v50 = vor.u32 %v3722_v48, %v2785_v44  ;;  %v2761_v52 = vld [vmem:[%s5766_s1 + $0x20] sm:$0xf]  ;;  %v3715_v56 = vld [vmem:[%s5766_s1 + $0x24] sm:$0xf]  ;;  %v2769_v58 = vld [vmem:[%s5766_s1 + $0x28] sm:$0xf] }
  0x28   :  { %262 = vmatmul.bf16.vlgmr.msra.gmra.mxu2 %v35_v32  ;;  %v3716_v62 = vld [vmem:[%s5766_s1 + $0x2c] sm:$0xf]  ;;  %v2771_v63 = vld [vmem:[%s5766_s1 + $0x38] sm:$0xf0]  ;;  %v2745_v4 = vld [vmem:[%s5766_s1] sm:$0xf] }
  0x29   :  { %574 = vmatpush.bf16.msrb.mxu2 %v2866_v42  ;;  %549 = vmatpush.bf16.msrb.mxu0 %v2842_v49  ;;  %v2778_v42 = vor.u32 %v3721_v39, %v2777_v38  ;;  %v3720_v49 = vld [vmem:[%s5766_s1 + $0x4c] sm:$0xf]  ;;  %v2774_v3 = vor.u32 %v3716_v62, %v2771_v63  ;;  %v3713_v5 = vld [vmem:[%s5766_s1 + $0xc] sm:$0xf0]  ;;  %v2747_v9 = vld [vmem:[%s5766_s1 + $0x10] sm:$0xf0] }
  0x2a   :  { %562 = vmatpush.bf16.msrb.mxu1 %v2846_v53  ;;  %588 = vmatpush.bf16.msrb.mxu3 %v2854_v57  ;;  %v3717_v53 = vld [vmem:[%s5766_s1 + $0x2c] sm:$0xf0]  ;;  %v2763_v57 = vld [vmem:[%s5766_s1 + $0x30] sm:$0xf0]  ;;  %v2746_v8 = vor.u32 %v3713_v5, %v2745_v4  ;;  %v3714_v11 = vld [vmem:[%s5766_s1 + $0x14] sm:$0xf0] }
  0x2b   :  { %v2762_v55 = vor.u32 %v3717_v53, %v2761_v52  ;;  %v2766_v60 = vor.u32 %v3715_v56, %v2763_v57  ;;  %v25_v48 = vld [vmem:[%s5769_s3] sm:$0xff]  ;;  %v3773_v4 = vld [vmem:[%s5766_s1 + $0xec] sm:$0xf0] }
  0x2c   :  { %v3771_v5 = vld [vmem:[%s5766_s1 + $0xe4] sm:$0xf] }
  0x2d   :  { %575 = vmatpush.bf16.msrb.mxu2 %v2850_v54  ;;  %550 = vmatpush.bf16.msrb.mxu0 %v2826_v61  ;;  %v2790_v54 = vor.u32 %v3720_v49, %v2787_v51  ;;  %v3718_v61 = vld [vmem:[%s5766_s1 + $0x34] sm:$0xf0] }
  0x2e   :  { %563 = vmatpush.bf16.msrb.mxu1 %v2830_v1  ;;  %589 = vmatpush.bf16.msrb.mxu3 %v2838_v6  ;;  %v3711_v6 = vld [vmem:[%s5766_s1 + $0x4] sm:$0xf] }
  0x2f   :  { %v2750_v13 = vor.u32 %v3711_v6, %v2747_v9  ;;  %v3774_v9 = vld [vmem:[%s5766_s1 + $0xf4] sm:$0xf0] }
  0x31   :  { %576 = vmatpush.bf16.msrb.mxu2 %v2834_v2  ;;  %551 = vmatpush.bf16.msrb.mxu0 %v2810_v10  ;;  %v2770_v2 = vor.u32 %v3718_v61, %v2769_v58  ;;  %v2753_v10 = vld [vmem:[%s5766_s1 + $0x8] sm:$0xf] }
  0x32   :  { %564 = vmatpush.bf16.msrb.mxu1 %v2814_v14  ;;  %590 = vmatpush.bf16.msrb.mxu3 %v2822_v19  ;;  %v3712_v14 = vld [vmem:[%s5766_s1 + $0xc] sm:$0xf] }
  0x35   :  { %577 = vmatpush.bf16.msrb.mxu2 %v2818_v15  ;;  %552 = vmatpush.bf16.msrb.mxu0 %v2794_v24  ;;  %v2755_v15 = vld [vmem:[%s5766_s1 + $0x18] sm:$0xf0] }
  0x36   :  { %565 = vmatpush.bf16.msrb.mxu1 %v2798_v28  ;;  %591 = vmatpush.bf16.msrb.mxu3 %v2806_v36  ;;  %v2758_v21 = vor.u32 %v3712_v14, %v2755_v15  ;;  %v2975_v15 = vld [vmem:[%s5766_s1 + $0xc0] sm:$0xf] }
  0x39   :  { %578 = vmatpush.bf16.msrb.mxu2 %v2802_v35  ;;  %553 = vmatpush.bf16.msrb.mxu0 %v2778_v42 }
  0x3a   :  { %566 = vmatpush.bf16.msrb.mxu1 %v2782_v47  ;;  %592 = vmatpush.bf16.msrb.mxu3 %v2790_v54 }
  0x3d   :  { %579 = vmatpush.bf16.msrb.mxu2 %v2786_v50  ;;  %554 = vmatpush.bf16.msrb.mxu0 %v2762_v55 }
  0x3e   :  { %567 = vmatpush.bf16.msrb.mxu1 %v2766_v60  ;;  %593 = vmatpush.bf16.msrb.mxu3 %v2774_v3  ;;  %v2991_v3 = vld [vmem:[%s5766_s1 + $0xe0] sm:$0xf] }
  0x3f   :  { %v2992_v6 = vor.u32 %v3773_v4, %v2991_v3  ;;  %v2937_v3 = vld [vmem:[%s5766_s1 + $0x78] sm:$0xf0] }
  0x41   :  { %580 = vmatpush.bf16.msrb.mxu2 %v2770_v2  ;;  %555 = vmatpush.bf16.msrb.mxu0 %v2746_v8  ;;  %v2999_v8 = vld [vmem:[%s5766_s1 + $0xe8] sm:$0xf] }
  0x42   :  { %568 = vmatpush.bf16.msrb.mxu1 %v2750_v13  ;;  %594 = vmatpush.bf16.msrb.mxu3 %v2758_v21  ;;  %v3001_v13 = vld [vmem:[%s5766_s1 + $0xf8] sm:$0xf0]  ;;  %v3770_v21 = vld [vmem:[%s5766_s1 + $0xd4] sm:$0xf0] }
  0x45   :  { %869 = vmatpush.bf16.msra.mxu0 %v2992_v6  ;;  %v4625_v6 = vld [vmem:[%s5768_s0 + $0x18] sm:$0xff] }
  0xa0   :  { %v237_v27 = vpop.f32.mrf.mxu0 }
  0xa1   :  { %v280_v32 = vadd.f32 %v237_v27, %v31_v18  ;;  %v250_v33 = vpop.f32.mrf.mxu1  ;;  %v2754_v18 = vor.u32 %v3714_v11, %v2753_v10  ;;  %v3000_v11 = vor.u32 %v3774_v9, %v2999_v8  ;;  %v2911_v8 = vld [vmem:[%s5766_s1 + $0x40] sm:$0xf]  ;;  %v3753_v9 = vld [vmem:[%s5766_s1 + $0x4c] sm:$0xf0] }
  0xa2   :  { %v281_v37 = vadd.f32 %v250_v33, %v32_v20 }
  0xa3   :  { %v2738_v41 = vmul.f32 -1.442695, %v280_v32  ;;  %581 = vmatpush.bf16.msrb.mxu2 %v2754_v18 }
  0xa4   :  { %v2739_v45 = vmul.f32 -1.442695, %v281_v37 }
  0xa5   :  { %3935 = vpow2.f32 %v2738_v41 }
  0xa6   :  { %3937 = vpow2.f32 %v2739_v45 }
  0xa7   :  { %v276_v59 = vpop.f32.mrf.mxu3  ;;  %895 = vmatpush.bf16.msra.mxu2 %v3000_v11 }
  0xa8   :  { %v283_v0 = vadd.f32 %v276_v59, %v34_v46  ;;  %v239_v1 = vpop.f32.mrf.mxu0 }
  0xa9   :  { %v252_v7 = vpop.f32.mrf.mxu1 }
  0xaa   :  { %v2740_v12 = vmul.f32 -1.442695, %v283_v0  ;;  %v2993_v7 = vld [vmem:[%s5766_s1 + $0xf0] sm:$0xf0] }
  0xab   :  { %v3936_v16 = vpop.eup %3935  ;;  %v263_v17 = vpop.f32.mrf.mxu2  ;;  %v2996_v10 = vor.u32 %v3771_v5, %v2993_v7 }
  0xac   :  { %v3938_v19 = vpop.eup %3937  ;;  %v287_v20 = vadd.f32 1.0, %v3936_v16  ;;  %3939 = vpow2.f32 %v2740_v12  ;;  %v282_v26 = vadd.f32 %v263_v17, %v33_v23  ;;  %v3772_v12 = vld [vmem:[%s5766_s1 + $0xec] sm:$0xf]  ;;  %v3769_v16 = vld [vmem:[%s5766_s1 + $0xcc] sm:$0xf0] }
  0xad   :  { %v306_v22 = vadd.f32 1.0, %v3938_v19  ;;  %v3004_v14 = vor.u32 %v3772_v12, %v3001_v13  ;;  %882 = vmatpush.bf16.msra.mxu1 %v2996_v10  ;;  %v3767_v17 = vld [vmem:[%s5766_s1 + $0xc4] sm:$0xf]  ;;  %v2976_v18 = vor.u32 %v3769_v16, %v2975_v15  ;;  %v2977_v19 = vld [vmem:[%s5766_s1 + $0xd0] sm:$0xf0]  ;;  %v2912_v13 = vor.u32 %v3753_v9, %v2911_v8 }
  0xae   :  { %3941 = vrcp.f32 %v287_v20  ;;  %v299_v36 = vand.u32 2147483648, %v287_v20  ;;  %v297_v38 = vand.u32 2147483647, %v287_v20  ;;  %vm293_vm2 = vweird.f32 %v287_v20  ;;  %v3751_v10 = vld [vmem:[%s5766_s1 + $0x44] sm:$0xf] }
  0xaf   :  { %3943 = vrcp.f32 %v306_v22  ;;  %v278_v24 = vpop.f32.mrf.mxu3  ;;  %v318_v37 = vand.u32 2147483648, %v306_v22  ;;  %v316_v40 = vand.u32 2147483647, %v306_v22  ;;  %vm312_vm3 = vweird.f32 %v306_v22  ;;  %908 = vmatpush.bf16.msra.mxu3 %v3004_v14  ;;  %870 = vmatpush.bf16.msra.mxu0 %v2976_v18  ;;  %v2913_v14 = vld [vmem:[%s5766_s1 + $0x50] sm:$0xf0] }
  0xb0   :  { %v300_v45 = vor.u32 1.1754944e-38, %v299_v36  ;;  %vm298_vm6 = vcmp.eq.f32.partialorder %v297_v38, 8.507059e+37  ;;  %v3768_v24 = vld [vmem:[%s5766_s1 + $0xcc] sm:$0xf]  ;;  %v2741_v38 = vld [vmem:[%s5768_s0 + $0x10] sm:$0xff]  ;;  %v355_v15 = vunpack.c.h.bf16 %v4625_v6  ;;  %v2916_v16 = vor.u32 %v3751_v10, %v2913_v14 }
  0xb1   :  { %v319_v47 = vor.u32 1.1754944e-38, %v318_v37  ;;  %vm317_vm7 = vcmp.eq.f32.partialorder %v316_v40, 8.507059e+37  ;;  %v3764_v37 = vld [vmem:[%s5766_s1 + $0xac] sm:$0xf]  ;;  %v2943_v40 = vld [vmem:[%s5766_s1 + $0x80] sm:$0xf] }
  0xb2   :  { %v3940_v25 = vpop.eup %3939  ;;  %v3754_v18 = vld [vmem:[%s5766_s1 + $0x54] sm:$0xf0] }
  0xb3   :  { %v326_v27 = vadd.f32 1.0, %v3940_v25  ;;  %v265_v28 = vpop.f32.mrf.mxu2  ;;  %v2985_v25 = vld [vmem:[%s5766_s1 + $0xd8] sm:$0xf0] }
  0xb4   :  { %v3942_v29 = vpop.eup %3941  ;;  %v3765_v28 = vld [vmem:[%s5766_s1 + $0xac] sm:$0xf0] }
  0xb5   :  { %v3944_v30 = vpop.eup %3943  ;;  %v289_v31 = vmul.f32 %v3942_v29, %v287_v20  ;;  %3945 = vrcp.f32 %v326_v27  ;;  %vm294_vm0 = vweird.f32 %v3942_v29  ;;  %v338_v59 = vand.u32 2147483648, %v326_v27  ;;  %v2983_v20 = vld [vmem:[%s5766_s1 + $0xc8] sm:$0xf] }
  0xb6   :  { %v308_v32 = vmul.f32 %v3944_v30, %v306_v22  ;;  %3947 = vtanh.f32 %v282_v26  ;;  %vm313_vm1 = vweird.f32 %v3944_v30  ;;  %vm295_vm4 = vmor %vm293_vm2, %vm294_vm0  ;;  %vm332_vm9 = vweird.f32 %v326_v27 }
  0xb7   :  { %v290_v33 = vsub.f32 1.0, %v289_v31  ;;  %vm314_vm5 = vmor %vm312_vm3, %vm313_vm1  ;;  %v336_v60 = vand.u32 2147483647, %v326_v27  ;;  %v339_v62 = vor.u32 1.1754944e-38, %v338_v59  ;;  %v2980_v22 = vor.u32 %v3767_v17, %v2977_v19  ;;  %v2961_v31 = vld [vmem:[%s5766_s1 + $0xb0] sm:$0xf0] }
  0xb8   :  { %v309_v35 = vsub.f32 1.0, %v308_v32  ;;  %v2984_v23 = vor.u32 %v3770_v21, %v2983_v20  ;;  %v2988_v26 = vor.u32 %v3768_v24, %v2985_v25  ;;  %v2967_v32 = vld [vmem:[%s5766_s1 + $0xa8] sm:$0xf]  ;;  %v2929_v59 = vld [vmem:[%s5766_s1 + $0x70] sm:$0xf0] }
  0xb9   :  { %v291_v34 = vmul.f32 %v3942_v29, %v290_v33  ;;  %vm337_vm11 = vcmp.eq.f32.partialorder %v336_v60, 8.507059e+37  ;;  %883 = vmatpush.bf16.msra.mxu1 %v2980_v22  ;;  %v3766_v33 = vld [vmem:[%s5766_s1 + $0xb4] sm:$0xf0]  ;;  %v2935_v60 = vld [vmem:[%s5766_s1 + $0x68] sm:$0xf] }
  0xba   :  { %v310_v39 = vmul.f32 %v3944_v30, %v309_v35  ;;  %896 = vmatpush.bf16.msra.mxu2 %v2984_v23  ;;  %909 = vmatpush.bf16.msra.mxu3 %v2988_v26  ;;  %v2968_v36 = vor.u32 %v3766_v33, %v2967_v32  ;;  %v2919_v17 = vld [vmem:[%s5766_s1 + $0x48] sm:$0xf]  ;;  %v3752_v19 = vld [vmem:[%s5766_s1 + $0x4c] sm:$0xf]  ;;  %v2921_v21 = vld [vmem:[%s5766_s1 + $0x58] sm:$0xf0] }
  0xbb   :  { %v3946_v41 = vpop.eup %3945  ;;  %v292_v42 = vadd.f32 %v3942_v29, %v291_v34  ;;  %v2969_v34 = vld [vmem:[%s5766_s1 + $0xb8] sm:$0xf0]  ;;  %v2920_v20 = vor.u32 %v3754_v18, %v2919_v17  ;;  %v2895_v22 = vld [vmem:[%s5766_s1 + $0x20] sm:$0xf]  ;;  %v3749_v23 = vld [vmem:[%s5766_s1 + $0x2c] sm:$0xf0]  ;;  %v2924_v24 = vor.u32 %v3752_v19, %v2921_v21 }
  0xbc   :  { %v3948_v43 = vpop.eup %3947  ;;  %v328_v44 = vmul.f32 %v3946_v41, %v326_v27  ;;  %v311_v46 = vadd.f32 %v3944_v30, %v310_v39  ;;  %vm333_vm8 = vweird.f32 %v3946_v41  ;;  %v2959_v27 = vld [vmem:[%s5766_s1 + $0xa0] sm:$0xf]  ;;  %v2972_v39 = vor.u32 %v3764_v37, %v2969_v34  ;;  %v3747_v26 = vld [vmem:[%s5766_s1 + $0x24] sm:$0xf]  ;;  %v3750_v32 = vld [vmem:[%s5766_s1 + $0x34] sm:$0xf0] }
  0xbd   :  { %v296_v49 = vsel %vm295_vm4, %v3942_v29, %v292_v42  ;;  %vm334_vm10 = vmor %vm332_vm9, %vm333_vm8  ;;  %v3763_v29 = vld [vmem:[%s5766_s1 + $0xa4] sm:$0xf]  ;;  %v2896_v25 = vor.u32 %v3749_v23, %v2895_v22  ;;  %v3748_v33 = vld [vmem:[%s5766_s1 + $0x2c] sm:$0xf] }
  0xbe   :  { %v329_v50 = vsub.f32 1.0, %v328_v44  ;;  %v301_v51 = vsel %vm298_vm6, %v300_v45, %v296_v49  ;;  %v315_v52 = vsel %vm314_vm5, %v3944_v30, %v311_v46  ;;  %v2960_v30 = vor.u32 %v3765_v28, %v2959_v27  ;;  %897 = vmatpush.bf16.msra.mxu2 %v2968_v36  ;;  %v3759_v42 = vld [vmem:[%s5766_s1 + $0x84] sm:$0xf]  ;;  %910 = vmatpush.bf16.msra.mxu3 %v2972_v39  ;;  %v2945_v44 = vld [vmem:[%s5766_s1 + $0x90] sm:$0xf0] }
  0xbf   :  { %v320_v53 = vsel %vm317_vm7, %v319_v47, %v315_v52  ;;  %v343_v54 = vmul.f32 %v3948_v43, %v301_v51  ;;  %v2964_v35 = vor.u32 %v3763_v29, %v2961_v31  ;;  %v2951_v45 = vld [vmem:[%s5766_s1 + $0x88] sm:$0xf]  ;;  %v3762_v46 = vld [vmem:[%s5766_s1 + $0x94] sm:$0xf0]  ;;  %v2948_v47 = vor.u32 %v3759_v42, %v2945_v44  ;;  %v3760_v49 = vld [vmem:[%s5766_s1 + $0x8c] sm:$0xf] }
  0xc0   :  { %v330_v55 = vmul.f32 %v3946_v41, %v329_v50  ;;  %v342_v56 = vmul.f32 %v320_v53, %v25_v48  ;;  %871 = vmatpush.bf16.msra.mxu0 %v2960_v30  ;;  %v2952_v48 = vor.u32 %v3762_v46, %v2951_v45  ;;  %v2953_v50 = vld [vmem:[%s5766_s1 + $0x98] sm:$0xf0]  ;;  %v352_v51 = vunpack.c.l.bf16 %v2741_v38  ;;  %v2897_v27 = vld [vmem:[%s5766_s1 + $0x30] sm:$0xf0]  ;;  %v2903_v28 = vld [vmem:[%s5766_s1 + $0x28] sm:$0xf] }
  0xc1   :  { %884 = vmatpush.bf16.msra.mxu1 %v2964_v35  ;;  %v353_v52 = vunpack.c.h.bf16 %v2741_v38  ;;  %v2956_v53 = vor.u32 %v3760_v49, %v2953_v50  ;;  %v2900_v31 = vor.u32 %v3747_v26, %v2897_v27  ;;  %v2905_v35 = vld [vmem:[%s5766_s1 + $0x38] sm:$0xf0]  ;;  %v2904_v38 = vor.u32 %v3750_v32, %v2903_v28  ;;  %v3743_v42 = vld [vmem:[%s5766_s1 + $0x4] sm:$0xf]  ;;  %v2881_v44 = vld [vmem:[%s5766_s1 + $0x10] sm:$0xf0] }
  0xc2   :  { %v4493_v57 = vadd.f32 %v343_v54, %v342_v56  ;;  %v331_v58 = vadd.f32 %v3946_v41, %v330_v55  ;;  %898 = vmatpush.bf16.msra.mxu2 %v2952_v48  ;;  %v2927_v54 = vld [vmem:[%s5766_s1 + $0x60] sm:$0xf]  ;;  %v3757_v55 = vld [vmem:[%s5766_s1 + $0x6c] sm:$0xf0]  ;;  %v3755_v56 = vld [vmem:[%s5766_s1 + $0x64] sm:$0xf]  ;;  %v2908_v39 = vor.u32 %v3748_v33, %v2905_v35  ;;  %v2884_v48 = vor.u32 %v3743_v42, %v2881_v44 }
  0xc3   :  { %911 = vmatpush.bf16.msra.mxu3 %v2956_v53  ;;  %v2887_v45 = vld [vmem:[%s5766_s1 + $0x8] sm:$0xf]  ;;  %v3746_v46 = vld [vmem:[%s5766_s1 + $0x14] sm:$0xf0]  ;;  %v3744_v49 = vld [vmem:[%s5766_s1 + $0xc] sm:$0xf] }
  0xc4   :  { %3949 = vtanh.f32 %v4493_v57  ;;  %v335_v61 = vsel %vm334_vm10, %v3946_v41, %v331_v58  ;;  %v3761_v41 = vld [vmem:[%s5766_s1 + $0x8c] sm:$0xf0]  ;;  %v2928_v58 = vor.u32 %v3757_v55, %v2927_v54  ;;  %v2889_v50 = vld [vmem:[%s5766_s1 + $0x18] sm:$0xf0]  ;;  %v3806_v42 = vld [vmem:[%s5766_s1 + $0xf4] sm:$0xf0] }
  0xc5   :  { %v340_v0 = vsel %vm337_vm11, %v339_v62, %v335_v61  ;;  %v2944_v43 = vor.u32 %v3761_v41, %v2943_v40  ;;  %885 = vmatpush.bf16.msra.mxu1 %v2948_v47  ;;  %v3758_v61 = vld [vmem:[%s5766_s1 + $0x74] sm:$0xf0]  ;;  %v2879_v40 = vld [vmem:[%s5766_s1] sm:$0xf]  ;;  %v3745_v41 = vld [vmem:[%s5766_s1 + $0xc] sm:$0xf0]  ;;  %v2892_v55 = vor.u32 %v3744_v49, %v2889_v50 }
  0xc6   :  { %v3801_v49 = vld [vmem:[%s5766_s1 + $0xcc] sm:$0xf0]  ;;  %v3799_v50 = vld [vmem:[%s5766_s1 + $0xc4] sm:$0xf] }
  0xc7   :  { %872 = vmatpush.bf16.msra.mxu0 %v2944_v43  ;;  %v2880_v43 = vor.u32 %v3745_v41, %v2879_v40  ;;  %v3127_v40 = vld [vmem:[%s5766_s1 + $0xf0] sm:$0xf0]  ;;  %v3133_v41 = vld [vmem:[%s5766_s1 + $0xe8] sm:$0xf] }
  0xc8   :  { %v3134_v44 = vor.u32 %v3806_v42, %v3133_v41  ;;  %v3045_v41 = vld [vmem:[%s5766_s1 + $0x40] sm:$0xf]  ;;  %v3785_v42 = vld [vmem:[%s5766_s1 + $0x4c] sm:$0xf0] }
  0xca   :  { %v3950_v63 = vpop.eup %3949 }
  0xcb   :  { %v346_v1 = vmul.f32 %v3950_v63, %v340_v0  ;;  %v2932_v0 = vor.u32 %v3755_v56, %v2929_v59  ;;  %873 = vmatpush.bf16.msra.mxu0 %v2928_v58 }
  0xcd   :  { %v347_v2 = vpack.c.bf16 %v346_v1, %v346_v1  ;;  %v2936_v1 = vor.u32 %v3758_v61, %v2935_v60  ;;  %886 = vmatpush.bf16.msra.mxu1 %v2932_v0  ;;  %v354_v60 = vunpack.c.l.bf16 %v4625_v6 }
  0xcf   :  { %348 = vst [vmem:[%s5770_s4] sm:$0xf] %v347_v2  ;;  %556 = vmatmul.bf16.vlgmr.msrb.gmra.mxu0 %v347_v2  ;;  %569 = vmatmul.bf16.vlgmr.msrb.gmra.mxu1 %v347_v2 }
  0xd0   :  { %582 = vmatmul.bf16.vlgmr.msrb.gmra.mxu2 %v347_v2  ;;  %595 = vmatmul.bf16.vlgmr.msrb.gmra.mxu3 %v347_v2  ;;  %v3756_v2 = vld [vmem:[%s5766_s1 + $0x6c] sm:$0xf] }
  0xd1   :  { %v2940_v7 = vor.u32 %v3756_v2, %v2937_v3  ;;  %899 = vmatpush.bf16.msra.mxu2 %v2936_v1  ;;  %874 = vmatpush.bf16.msra.mxu0 %v2912_v13 }
  0xd2   :  { %887 = vmatpush.bf16.msra.mxu1 %v2916_v16 }
  0xd3   :  { %912 = vmatpush.bf16.msra.mxu3 %v2940_v7 }
  0xd5   :  { %900 = vmatpush.bf16.msra.mxu2 %v2920_v20  ;;  %875 = vmatpush.bf16.msra.mxu0 %v2896_v25 }
  0xd6   :  { %888 = vmatpush.bf16.msra.mxu1 %v2900_v31 }
  0xd7   :  { %913 = vmatpush.bf16.msra.mxu3 %v2924_v24 }
  0xd9   :  { %901 = vmatpush.bf16.msra.mxu2 %v2904_v38  ;;  %876 = vmatpush.bf16.msra.mxu0 %v2880_v43  ;;  %v3803_v38 = vld [vmem:[%s5766_s1 + $0xe4] sm:$0xf] }
  0xda   :  { %889 = vmatpush.bf16.msra.mxu1 %v2884_v48  ;;  %v3130_v43 = vor.u32 %v3803_v38, %v3127_v40  ;;  %v3109_v48 = vld [vmem:[%s5766_s1 + $0xc0] sm:$0xf] }
  0xdb   :  { %914 = vmatpush.bf16.msra.mxu3 %v2908_v39 }
  0xde   :  { %1203 = vmatpush.bf16.msrb.mxu1 %v3130_v43  ;;  %v3783_v43 = vld [vmem:[%s5766_s1 + $0x44] sm:$0xf] }
  0xdf   :  { %915 = vmatpush.bf16.msra.mxu3 %v2892_v55 }
 0x14c   :  { %v557_v62 = vpop.f32.mrf.mxu0  ;;  %v570_v63 = vpop.f32.mrf.mxu1 }
 0x14d   :  { %v600_v4 = vadd.f32 %v557_v62, %v352_v51  ;;  %v601_v5 = vadd.f32 %v570_v63, %v353_v52  ;;  %v2888_v52 = vor.u32 %v3746_v46, %v2887_v45  ;;  %v3804_v45 = vld [vmem:[%s5766_s1 + $0xec] sm:$0xf]  ;;  %v3135_v46 = vld [vmem:[%s5766_s1 + $0xf8] sm:$0xf0] }
 0x14f   :  { %v2871_v11 = vmul.f32 -1.442695, %v600_v4  ;;  %v2872_v12 = vmul.f32 -1.442695, %v601_v5  ;;  %902 = vmatpush.bf16.msra.mxu2 %v2888_v52  ;;  %v3111_v52 = vld [vmem:[%s5766_s1 + $0xd0] sm:$0xf0] }
 0x150   :  { %v3114_v55 = vor.u32 %v3799_v50, %v3111_v52  ;;  %v3053_v50 = vld [vmem:[%s5766_s1 + $0x48] sm:$0xf]  ;;  %v3784_v52 = vld [vmem:[%s5766_s1 + $0x4c] sm:$0xf] }
 0x151   :  { %3951 = vpow2.f32 %v2871_v11 }
 0x152   :  { %3953 = vpow2.f32 %v2872_v12  ;;  %1204 = vmatpush.bf16.msrb.mxu1 %v3114_v55  ;;  %v3029_v55 = vld [vmem:[%s5766_s1 + $0x20] sm:$0xf] }
 0x153   :  { %v583_v29 = vpop.f32.mrf.mxu2  ;;  %v596_v30 = vpop.f32.mrf.mxu3  ;;  %1216 = vmatpush.bf16.msrb.mxu2 %v3134_v44 }
 0x154   :  { %v603_v36 = vadd.f32 %v596_v30, %v355_v15  ;;  %v559_v37 = vpop.f32.mrf.mxu0  ;;  %v572_v34 = vpop.f32.mrf.mxu1  ;;  %v602_v0 = vadd.f32 %v583_v29, %v354_v60 }
 0x155   :  { %v3805_v34 = vld [vmem:[%s5766_s1 + $0xec] sm:$0xf0] }
 0x156   :  { %v2873_v47 = vmul.f32 -1.442695, %v603_v36 }
 0x157   :  { %v3952_v51 = vpop.eup %3951 }
 0x158   :  { %v3954_v53 = vpop.eup %3953  ;;  %v607_v54 = vadd.f32 1.0, %v3952_v51  ;;  %3955 = vpow2.f32 %v2873_v47  ;;  %v3138_v47 = vor.u32 %v3804_v45, %v3135_v46  ;;  %v3110_v51 = vor.u32 %v3801_v49, %v3109_v48 }
 0x159   :  { %v626_v56 = vadd.f32 1.0, %v3954_v53  ;;  %v3117_v53 = vld [vmem:[%s5766_s1 + $0xc8] sm:$0xf]  ;;  %v3046_v46 = vor.u32 %v3785_v42, %v3045_v41 }
 0x15a   :  { %3957 = vrcp.f32 %v607_v54  ;;  %v619_v7 = vand.u32 2147483648, %v607_v54  ;;  %v617_v10 = vand.u32 2147483647, %v607_v54  ;;  %vm613_vm14 = vweird.f32 %v607_v54  ;;  %1229 = vmatpush.bf16.msrb.mxu3 %v3138_v47  ;;  %v3047_v47 = vld [vmem:[%s5766_s1 + $0x50] sm:$0xf0] }
 0x15b   :  { %3959 = vrcp.f32 %v626_v56  ;;  %v585_v58 = vpop.f32.mrf.mxu2  ;;  %v598_v59 = vpop.f32.mrf.mxu3  ;;  %v638_v8 = vand.u32 2147483648, %v626_v56  ;;  %v636_v6 = vand.u32 2147483647, %v626_v56  ;;  %vm632_vm15 = vweird.f32 %v626_v56 }
 0x15c   :  { %v620_v14 = vor.u32 1.1754944e-38, %v619_v7  ;;  %vm618_vm2 = vcmp.eq.f32.partialorder %v617_v10, 8.507059e+37  ;;  %v3800_v58 = vld [vmem:[%s5766_s1 + $0xcc] sm:$0xf]  ;;  %v3119_v59 = vld [vmem:[%s5766_s1 + $0xd8] sm:$0xf0]  ;;  %v3050_v49 = vor.u32 %v3783_v43, %v3047_v47 }
 0x15d   :  { %v639_v17 = vor.u32 1.1754944e-38, %v638_v8  ;;  %vm637_vm3 = vcmp.eq.f32.partialorder %v636_v6, 8.507059e+37  ;;  %v3122_v60 = vor.u32 %v3800_v58, %v3119_v59  ;;  %v3796_v7 = vld [vmem:[%s5766_s1 + $0xac] sm:$0xf]  ;;  %v3103_v8 = vld [vmem:[%s5766_s1 + $0xb8] sm:$0xf0] }
 0x15e   :  { %v3956_v61 = vpop.eup %3955  ;;  %v3106_v10 = vor.u32 %v3796_v7, %v3103_v8  ;;  %v3793_v6 = vld [vmem:[%s5766_s1 + $0x8c] sm:$0xf0] }
 0x15f   :  { %v646_v62 = vadd.f32 1.0, %v3956_v61  ;;  %v3093_v61 = vld [vmem:[%s5766_s1 + $0xa0] sm:$0xf]  ;;  %1230 = vmatpush.bf16.msrb.mxu3 %v3122_v60  ;;  %v3779_v60 = vld [vmem:[%s5766_s1 + $0x24] sm:$0xf] }
 0x160   :  { %v3958_v63 = vpop.eup %3957 }
 0x161   :  { %v3960_v1 = vpop.eup %3959  ;;  %v609_v2 = vmul.f32 %v3958_v63, %v607_v54  ;;  %3961 = vrcp.f32 %v646_v62  ;;  %vm614_vm12 = vweird.f32 %v3958_v63  ;;  %v658_v29 = vand.u32 2147483648, %v646_v62  ;;  %v3802_v54 = vld [vmem:[%s5766_s1 + $0xd4] sm:$0xf0] }
 0x162   :  { %v628_v3 = vmul.f32 %v3960_v1, %v626_v56  ;;  %3963 = vtanh.f32 %v602_v0  ;;  %vm633_vm13 = vweird.f32 %v3960_v1  ;;  %vm615_vm0 = vmor %vm613_vm14, %vm614_vm12  ;;  %vm652_vm5 = vweird.f32 %v646_v62 }
 0x163   :  { %v610_v4 = vsub.f32 1.0, %v609_v2  ;;  %vm634_vm1 = vmor %vm632_vm15, %vm633_vm13  ;;  %v656_v30 = vand.u32 2147483647, %v646_v62  ;;  %v659_v32 = vor.u32 1.1754944e-38, %v658_v29  ;;  %v3118_v56 = vor.u32 %v3802_v54, %v3117_v53  ;;  %v3101_v2 = vld [vmem:[%s5766_s1 + $0xa8] sm:$0xf]  ;;  %1231 = vmatpush.bf16.msrb.mxu3 %v3106_v10 }
 0x164   :  { %v629_v5 = vsub.f32 1.0, %v628_v3  ;;  %v3798_v3 = vld [vmem:[%s5766_s1 + $0xb4] sm:$0xf0]  ;;  %v3063_v29 = vld [vmem:[%s5766_s1 + $0x70] sm:$0xf0] }
 0x165   :  { %v611_v9 = vmul.f32 %v3958_v63, %v610_v4  ;;  %vm657_vm7 = vcmp.eq.f32.partialorder %v656_v30, 8.507059e+37  ;;  %1217 = vmatpush.bf16.msrb.mxu2 %v3118_v56  ;;  %v3069_v30 = vld [vmem:[%s5766_s1 + $0x68] sm:$0xf]  ;;  %v3055_v54 = vld [vmem:[%s5766_s1 + $0x58] sm:$0xf0] }
 0x166   :  { %v630_v11 = vmul.f32 %v3960_v1, %v629_v5  ;;  %v3102_v5 = vor.u32 %v3798_v3, %v3101_v2  ;;  %v3781_v56 = vld [vmem:[%s5766_s1 + $0x2c] sm:$0xf0]  ;;  %v3058_v58 = vor.u32 %v3784_v52, %v3055_v54  ;;  %v3782_v2 = vld [vmem:[%s5766_s1 + $0x34] sm:$0xf0]  ;;  %v3780_v3 = vld [vmem:[%s5766_s1 + $0x2c] sm:$0xf] }
 0x167   :  { %v3962_v12 = vpop.eup %3961  ;;  %v612_v13 = vadd.f32 %v3958_v63, %v611_v9  ;;  %v2875_v9 = vld [vmem:[%s5768_s0 + $0x20] sm:$0xff]  ;;  %v3030_v59 = vor.u32 %v3781_v56, %v3029_v55 }
 0x168   :  { %v631_v15 = vadd.f32 %v3960_v1, %v630_v11  ;;  %v648_v16 = vmul.f32 %v3962_v12, %v646_v62  ;;  %v3964_v19 = vpop.eup %3963  ;;  %vm653_vm4 = vweird.f32 %v3962_v12  ;;  %v3797_v62 = vld [vmem:[%s5766_s1 + $0xac] sm:$0xf0]  ;;  %v3077_v11 = vld [vmem:[%s5766_s1 + $0x80] sm:$0xf] }
 0x169   :  { %v616_v18 = vsel %vm615_vm0, %v3958_v63, %v612_v13  ;;  %vm654_vm6 = vmor %vm652_vm5, %vm653_vm4  ;;  %v3795_v63 = vld [vmem:[%s5766_s1 + $0xa4] sm:$0xf]  ;;  %v3094_v0 = vor.u32 %v3797_v62, %v3093_v61  ;;  %1218 = vmatpush.bf16.msrb.mxu2 %v3102_v5  ;;  %v3078_v13 = vor.u32 %v3793_v6, %v3077_v11  ;;  %v3031_v61 = vld [vmem:[%s5766_s1 + $0x30] sm:$0xf0] }
 0x16a   :  { %v621_v20 = vsel %vm618_vm2, %v620_v14, %v616_v18  ;;  %v635_v21 = vsel %vm634_vm1, %v3960_v1, %v631_v15  ;;  %v649_v22 = vsub.f32 1.0, %v648_v16  ;;  %v3095_v1 = vld [vmem:[%s5766_s1 + $0xb0] sm:$0xf0]  ;;  %v3085_v15 = vld [vmem:[%s5766_s1 + $0x88] sm:$0xf] }
 0x16b   :  { %v640_v23 = vsel %vm637_vm3, %v639_v17, %v635_v21  ;;  %v663_v24 = vmul.f32 %v3964_v19, %v621_v20  ;;  %v3098_v4 = vor.u32 %v3795_v63, %v3095_v1  ;;  %v3079_v14 = vld [vmem:[%s5766_s1 + $0x90] sm:$0xf0]  ;;  %v3794_v16 = vld [vmem:[%s5766_s1 + $0x94] sm:$0xf0]  ;;  %v3792_v19 = vld [vmem:[%s5766_s1 + $0x8c] sm:$0xf]  ;;  %v673_v21 = vunpack.c.l.bf16 %v2875_v9 }
 0x16c   :  { %v662_v25 = vmul.f32 %v640_v23, %v4493_v57  ;;  %v650_v26 = vmul.f32 %v3962_v12, %v649_v22  ;;  %v3125_v57 = vld [vmem:[%s5766_s1 + $0xe0] sm:$0xf]  ;;  %v3086_v18 = vor.u32 %v3794_v16, %v3085_v15  ;;  %v3087_v20 = vld [vmem:[%s5766_s1 + $0x98] sm:$0xf0]  ;;  %v674_v22 = vunpack.c.h.bf16 %v2875_v9  ;;  %v3037_v62 = vld [vmem:[%s5766_s1 + $0x28] sm:$0xf] }
 0x16d   :  { %v3126_v39 = vor.u32 %v3805_v34, %v3125_v57  ;;  %1205 = vmatpush.bf16.msrb.mxu1 %v3098_v4  ;;  %v3090_v23 = vor.u32 %v3792_v19, %v3087_v20  ;;  %v3071_v57 = vld [vmem:[%s5766_s1 + $0x78] sm:$0xf0]  ;;  %v3034_v1 = vor.u32 %v3779_v60, %v3031_v61  ;;  %v3038_v9 = vor.u32 %v3782_v2, %v3037_v62  ;;  %v3013_v11 = vld [vmem:[%s5766_s1] sm:$0xf]  ;;  %v3777_v6 = vld [vmem:[%s5766_s1 + $0xc] sm:$0xf0] }
 0x16e   :  { %v4702_v27 = vadd.f32 %v663_v24, %v662_v25  ;;  %v651_v28 = vadd.f32 %v3962_v12, %v650_v26  ;;  %1219 = vmatpush.bf16.msrb.mxu2 %v3086_v18  ;;  %v3061_v24 = vld [vmem:[%s5766_s1 + $0x60] sm:$0xf]  ;;  %v3789_v25 = vld [vmem:[%s5766_s1 + $0x6c] sm:$0xf0]  ;;  %v3787_v26 = vld [vmem:[%s5766_s1 + $0x64] sm:$0xf] }
 0x16f   :  { %1190 = vmatpush.bf16.msrb.mxu0 %v3126_v39  ;;  %1232 = vmatpush.bf16.msrb.mxu3 %v3090_v23  ;;  %v4834_v39 = vld [vmem:[%s5768_s0 + $0x28] sm:$0xff]  ;;  %v3039_v4 = vld [vmem:[%s5766_s1 + $0x38] sm:$0xf0]  ;;  %v3778_v16 = vld [vmem:[%s5766_s1 + $0x14] sm:$0xf0] }
 0x170   :  { %3965 = vtanh.f32 %v4702_v27  ;;  %v655_v31 = vsel %vm654_vm6, %v3962_v12, %v651_v28  ;;  %v3791_v12 = vld [vmem:[%s5766_s1 + $0x84] sm:$0xf]  ;;  %v3062_v28 = vor.u32 %v3789_v25, %v3061_v24  ;;  %v676_v48 = vunpack.c.h.bf16 %v4834_v39  ;;  %v3021_v15 = vld [vmem:[%s5766_s1 + $0x8] sm:$0xf]  ;;  %v3776_v19 = vld [vmem:[%s5766_s1 + $0xc] sm:$0xf] }
 0x171   :  { %v660_v35 = vsel %vm657_vm7, %v659_v32, %v655_v31  ;;  %v3082_v17 = vor.u32 %v3791_v12, %v3079_v14  ;;  %v3790_v31 = vld [vmem:[%s5766_s1 + $0x74] sm:$0xf0]  ;;  %v3042_v10 = vor.u32 %v3780_v3, %v3039_v4  ;;  %v3775_v12 = vld [vmem:[%s5766_s1 + $0x4] sm:$0xf]  ;;  %v3015_v14 = vld [vmem:[%s5766_s1 + $0x10] sm:$0xf0] }
 0x172   :  { %v3018_v18 = vor.u32 %v3775_v12, %v3015_v14  ;;  %v3023_v20 = vld [vmem:[%s5766_s1 + $0x18] sm:$0xf0]  ;;  %v3838_v12 = vld [vmem:[%s5766_s1 + $0xf4] sm:$0xf0] }
 0x173   :  { %1191 = vmatpush.bf16.msrb.mxu0 %v3110_v51  ;;  %1206 = vmatpush.bf16.msrb.mxu1 %v3082_v17  ;;  %v3786_v51 = vld [vmem:[%s5766_s1 + $0x54] sm:$0xf0]  ;;  %v3026_v25 = vor.u32 %v3776_v19, %v3023_v20  ;;  %v3833_v19 = vld [vmem:[%s5766_s1 + $0xcc] sm:$0xf0]  ;;  %v3831_v20 = vld [vmem:[%s5766_s1 + $0xc4] sm:$0xf] }
 0x174   :  { %v3054_v53 = vor.u32 %v3786_v51, %v3053_v50 }
 0x176   :  { %v3966_v33 = vpop.eup %3965 }
 0x177   :  { %v666_v36 = vmul.f32 %v3966_v33, %v660_v35  ;;  %1192 = vmatpush.bf16.msrb.mxu0 %v3094_v0  ;;  %v3066_v35 = vor.u32 %v3787_v26, %v3063_v29 }
 0x179   :  { %v667_v37 = vpack.c.bf16 %v666_v36, %v666_v36  ;;  %v3070_v36 = vor.u32 %v3790_v31, %v3069_v30  ;;  %1207 = vmatpush.bf16.msrb.mxu1 %v3066_v35  ;;  %v675_v30 = vunpack.c.l.bf16 %v4834_v39 }
 0x17b   :  { %2874 = vst [vmem:[%s5770_s4 + $0x4] sm:$0xf] %v667_v37  ;;  %877 = vmatmul.bf16.vlgmr.msra.gmra.mxu0 %v667_v37  ;;  %890 = vmatmul.bf16.vlgmr.msra.gmra.mxu1 %v667_v37 }
 0x17c   :  { %903 = vmatmul.bf16.vlgmr.msra.gmra.mxu2 %v667_v37  ;;  %916 = vmatmul.bf16.vlgmr.msra.gmra.mxu3 %v667_v37  ;;  %v3788_v37 = vld [vmem:[%s5766_s1 + $0x6c] sm:$0xf] }
 0x17d   :  { %1193 = vmatpush.bf16.msrb.mxu0 %v3078_v13  ;;  %v3074_v40 = vor.u32 %v3788_v37, %v3071_v57  ;;  %1220 = vmatpush.bf16.msrb.mxu2 %v3070_v36  ;;  %v3014_v13 = vor.u32 %v3777_v6, %v3013_v11  ;;  %v3261_v11 = vld [vmem:[%s5766_s1 + $0xf0] sm:$0xf0]  ;;  %v3267_v6 = vld [vmem:[%s5766_s1 + $0xe8] sm:$0xf] }
 0x17e   :  { %1208 = vmatpush.bf16.msrb.mxu1 %v3050_v49  ;;  %v3268_v14 = vor.u32 %v3838_v12, %v3267_v6  ;;  %v3179_v6 = vld [vmem:[%s5766_s1 + $0x40] sm:$0xf]  ;;  %v3817_v12 = vld [vmem:[%s5766_s1 + $0x4c] sm:$0xf0] }
 0x17f   :  { %1233 = vmatpush.bf16.msrb.mxu3 %v3074_v40 }
 0x181   :  { %1194 = vmatpush.bf16.msrb.mxu0 %v3062_v28  ;;  %1221 = vmatpush.bf16.msrb.mxu2 %v3054_v53 }
 0x182   :  { %1209 = vmatpush.bf16.msrb.mxu1 %v3034_v1 }
 0x183   :  { %1234 = vmatpush.bf16.msrb.mxu3 %v3058_v58 }
 0x185   :  { %1195 = vmatpush.bf16.msrb.mxu0 %v3046_v46  ;;  %1222 = vmatpush.bf16.msrb.mxu2 %v3038_v9  ;;  %v3835_v9 = vld [vmem:[%s5766_s1 + $0xe4] sm:$0xf] }
 0x186   :  { %1210 = vmatpush.bf16.msrb.mxu1 %v3018_v18  ;;  %v3243_v18 = vld [vmem:[%s5766_s1 + $0xc0] sm:$0xf] }
 0x187   :  { %1235 = vmatpush.bf16.msrb.mxu3 %v3042_v10 }
 0x189   :  { %1196 = vmatpush.bf16.msrb.mxu0 %v3030_v59 }
 0x18b   :  { %1236 = vmatpush.bf16.msrb.mxu3 %v3026_v25 }
 0x18d   :  { %1197 = vmatpush.bf16.msrb.mxu0 %v3014_v13  ;;  %v3264_v13 = vor.u32 %v3835_v9, %v3261_v11 }
 0x18f   :  { %1524 = vmatpush.bf16.msra.mxu1 %v3264_v13  ;;  %v3815_v13 = vld [vmem:[%s5766_s1 + $0x44] sm:$0xf] }
 0x1f8   :  { %v878_v32 = vpop.f32.mrf.mxu0  ;;  %v891_v33 = vpop.f32.mrf.mxu1 }
 0x1f9   :  { %v921_v34 = vadd.f32 %v878_v32, %v673_v21  ;;  %v922_v38 = vadd.f32 %v891_v33, %v674_v22  ;;  %v3022_v22 = vor.u32 %v3778_v16, %v3021_v15  ;;  %v3836_v15 = vld [vmem:[%s5766_s1 + $0xec] sm:$0xf]  ;;  %v3269_v16 = vld [vmem:[%s5766_s1 + $0xf8] sm:$0xf0] }
 0x1fb   :  { %v3005_v44 = vmul.f32 -1.442695, %v921_v34  ;;  %v3006_v45 = vmul.f32 -1.442695, %v922_v38  ;;  %1223 = vmatpush.bf16.msrb.mxu2 %v3022_v22  ;;  %v3245_v22 = vld [vmem:[%s5766_s1 + $0xd0] sm:$0xf0] }
 0x1fc   :  { %v3248_v25 = vor.u32 %v3831_v20, %v3245_v22  ;;  %v3187_v20 = vld [vmem:[%s5766_s1 + $0x48] sm:$0xf]  ;;  %v3816_v22 = vld [vmem:[%s5766_s1 + $0x4c] sm:$0xf] }
 0x1fd   :  { %3967 = vpow2.f32 %v3005_v44 }
 0x1fe   :  { %3969 = vpow2.f32 %v3006_v45  ;;  %1525 = vmatpush.bf16.msra.mxu1 %v3248_v25  ;;  %v3163_v25 = vld [vmem:[%s5766_s1 + $0x20] sm:$0xf] }
 0x1ff   :  { %v904_v63 = vpop.f32.mrf.mxu2  ;;  %v917_v0 = vpop.f32.mrf.mxu3  ;;  %1537 = vmatpush.bf16.msra.mxu2 %v3268_v14 }
 0x200   :  { %v924_v5 = vadd.f32 %v917_v0, %v676_v48  ;;  %v880_v7 = vpop.f32.mrf.mxu0  ;;  %v893_v8 = vpop.f32.mrf.mxu1  ;;  %v923_v35 = vadd.f32 %v904_v63, %v675_v30 }
 0x201   :  { %v3837_v8 = vld [vmem:[%s5766_s1 + $0xec] sm:$0xf0] }
 0x202   :  { %v3007_v17 = vmul.f32 -1.442695, %v924_v5 }
 0x203   :  { %v3968_v21 = vpop.eup %3967 }
 0x204   :  { %v3970_v23 = vpop.eup %3969  ;;  %v928_v24 = vadd.f32 1.0, %v3968_v21  ;;  %3971 = vpow2.f32 %v3007_v17  ;;  %v3272_v17 = vor.u32 %v3836_v15, %v3269_v16  ;;  %v3244_v21 = vor.u32 %v3833_v19, %v3243_v18 }
 0x205   :  { %v947_v26 = vadd.f32 1.0, %v3970_v23  ;;  %v3251_v23 = vld [vmem:[%s5766_s1 + $0xc8] sm:$0xf]  ;;  %v3180_v16 = vor.u32 %v3817_v12, %v3179_v6 }
 0x206   :  { %3973 = vrcp.f32 %v928_v24  ;;  %v940_v40 = vand.u32 2147483648, %v928_v24  ;;  %v938_v43 = vand.u32 2147483647, %v928_v24  ;;  %vm934_vm10 = vweird.f32 %v928_v24  ;;  %1550 = vmatpush.bf16.msra.mxu3 %v3272_v17  ;;  %v3181_v17 = vld [vmem:[%s5766_s1 + $0x50] sm:$0xf0] }
 0x207   :  { %3975 = vrcp.f32 %v947_v26  ;;  %v906_v28 = vpop.f32.mrf.mxu2  ;;  %v919_v29 = vpop.f32.mrf.mxu3  ;;  %v959_v41 = vand.u32 2147483648, %v947_v26  ;;  %v957_v39 = vand.u32 2147483647, %v947_v26  ;;  %vm953_vm11 = vweird.f32 %v947_v26 }
 0x208   :  { %v941_v47 = vor.u32 1.1754944e-38, %v940_v40  ;;  %vm939_vm14 = vcmp.eq.f32.partialorder %v938_v43, 8.507059e+37  ;;  %v3832_v28 = vld [vmem:[%s5766_s1 + $0xcc] sm:$0xf]  ;;  %v3253_v29 = vld [vmem:[%s5766_s1 + $0xd8] sm:$0xf0]  ;;  %v3184_v19 = vor.u32 %v3815_v13, %v3181_v17 }
 0x209   :  { %v960_v50 = vor.u32 1.1754944e-38, %v959_v41  ;;  %vm958_vm15 = vcmp.eq.f32.partialorder %v957_v39, 8.507059e+37  ;;  %v3256_v30 = vor.u32 %v3832_v28, %v3253_v29  ;;  %v3828_v40 = vld [vmem:[%s5766_s1 + $0xac] sm:$0xf]  ;;  %v3237_v41 = vld [vmem:[%s5766_s1 + $0xb8] sm:$0xf0] }
 0x20a   :  { %v3972_v31 = vpop.eup %3971  ;;  %v3240_v43 = vor.u32 %v3828_v40, %v3237_v41  ;;  %v3825_v39 = vld [vmem:[%s5766_s1 + $0x8c] sm:$0xf0] }
 0x20b   :  { %v967_v32 = vadd.f32 1.0, %v3972_v31  ;;  %v3227_v31 = vld [vmem:[%s5766_s1 + $0xa0] sm:$0xf]  ;;  %1551 = vmatpush.bf16.msra.mxu3 %v3256_v30  ;;  %v3811_v30 = vld [vmem:[%s5766_s1 + $0x24] sm:$0xf] }
 0x20c   :  { %v3974_v33 = vpop.eup %3973 }
 0x20d   :  { %v3976_v36 = vpop.eup %3975  ;;  %v930_v37 = vmul.f32 %v3974_v33, %v928_v24  ;;  %3977 = vrcp.f32 %v967_v32  ;;  %vm935_vm8 = vweird.f32 %v3974_v33  ;;  %v979_v63 = vand.u32 2147483648, %v967_v32  ;;  %v3834_v24 = vld [vmem:[%s5766_s1 + $0xd4] sm:$0xf0] }
 0x20e   :  { %v949_v57 = vmul.f32 %v3976_v36, %v947_v26  ;;  %3979 = vtanh.f32 %v923_v35  ;;  %vm954_vm9 = vweird.f32 %v3976_v36  ;;  %vm936_vm12 = vmor %vm934_vm10, %vm935_vm8  ;;  %vm973_vm1 = vweird.f32 %v967_v32 }
 0x20f   :  { %v931_v34 = vsub.f32 1.0, %v930_v37  ;;  %vm955_vm13 = vmor %vm953_vm11, %vm954_vm9  ;;  %v977_v0 = vand.u32 2147483647, %v967_v32  ;;  %v980_v2 = vor.u32 1.1754944e-38, %v979_v63  ;;  %v3252_v26 = vor.u32 %v3834_v24, %v3251_v23  ;;  %v3235_v37 = vld [vmem:[%s5766_s1 + $0xa8] sm:$0xf]  ;;  %1552 = vmatpush.bf16.msra.mxu3 %v3240_v43 }
 0x210   :  { %v950_v38 = vsub.f32 1.0, %v949_v57  ;;  %v3830_v57 = vld [vmem:[%s5766_s1 + $0xb4] sm:$0xf0]  ;;  %v3197_v63 = vld [vmem:[%s5766_s1 + $0x70] sm:$0xf0] }
 0x211   :  { %v932_v42 = vmul.f32 %v3974_v33, %v931_v34  ;;  %vm978_vm3 = vcmp.eq.f32.partialorder %v977_v0, 8.507059e+37  ;;  %1538 = vmatpush.bf16.msra.mxu2 %v3252_v26  ;;  %v3203_v0 = vld [vmem:[%s5766_s1 + $0x68] sm:$0xf]  ;;  %v3189_v24 = vld [vmem:[%s5766_s1 + $0x58] sm:$0xf0] }
 0x212   :  { %v951_v44 = vmul.f32 %v3976_v36, %v950_v38  ;;  %v3236_v38 = vor.u32 %v3830_v57, %v3235_v37  ;;  %v3813_v26 = vld [vmem:[%s5766_s1 + $0x2c] sm:$0xf0]  ;;  %v3192_v28 = vor.u32 %v3816_v22, %v3189_v24  ;;  %v3814_v37 = vld [vmem:[%s5766_s1 + $0x34] sm:$0xf0]  ;;  %v3812_v57 = vld [vmem:[%s5766_s1 + $0x2c] sm:$0xf] }
 0x213   :  { %v3978_v45 = vpop.eup %3977  ;;  %v933_v46 = vadd.f32 %v3974_v33, %v932_v42  ;;  %v3009_v42 = vld [vmem:[%s5768_s0 + $0x30] sm:$0xff]  ;;  %v3164_v29 = vor.u32 %v3813_v26, %v3163_v25 }
 0x214   :  { %v952_v48 = vadd.f32 %v3976_v36, %v951_v44  ;;  %v969_v49 = vmul.f32 %v3978_v45, %v967_v32  ;;  %v3980_v52 = vpop.eup %3979  ;;  %vm974_vm0 = vweird.f32 %v3978_v45  ;;  %v3829_v32 = vld [vmem:[%s5766_s1 + $0xac] sm:$0xf0]  ;;  %v3211_v44 = vld [vmem:[%s5766_s1 + $0x80] sm:$0xf] }
 0x215   :  { %v937_v51 = vsel %vm936_vm12, %v3974_v33, %v933_v46  ;;  %vm975_vm2 = vmor %vm973_vm1, %vm974_vm0  ;;  %v3827_v33 = vld [vmem:[%s5766_s1 + $0xa4] sm:$0xf]  ;;  %v3228_v35 = vor.u32 %v3829_v32, %v3227_v31  ;;  %1539 = vmatpush.bf16.msra.mxu2 %v3236_v38  ;;  %v3212_v46 = vor.u32 %v3825_v39, %v3211_v44  ;;  %v3165_v31 = vld [vmem:[%s5766_s1 + $0x30] sm:$0xf0] }
 0x216   :  { %v942_v53 = vsel %vm939_vm14, %v941_v47, %v937_v51  ;;  %v956_v54 = vsel %vm955_vm13, %v3976_v36, %v952_v48  ;;  %v970_v55 = vsub.f32 1.0, %v969_v49  ;;  %v3229_v36 = vld [vmem:[%s5766_s1 + $0xb0] sm:$0xf0]  ;;  %v3219_v48 = vld [vmem:[%s5766_s1 + $0x88] sm:$0xf] }
 0x217   :  { %v961_v56 = vsel %vm958_vm15, %v960_v50, %v956_v54  ;;  %v984_v58 = vmul.f32 %v3980_v52, %v942_v53  ;;  %v3232_v34 = vor.u32 %v3827_v33, %v3229_v36  ;;  %v3213_v47 = vld [vmem:[%s5766_s1 + $0x90] sm:$0xf0]  ;;  %v3826_v49 = vld [vmem:[%s5766_s1 + $0x94] sm:$0xf0]  ;;  %v3824_v52 = vld [vmem:[%s5766_s1 + $0x8c] sm:$0xf]  ;;  %v994_v54 = vunpack.c.l.bf16 %v3009_v42 }
 0x218   :  { %v983_v59 = vmul.f32 %v961_v56, %v4702_v27  ;;  %v971_v60 = vmul.f32 %v3978_v45, %v970_v55  ;;  %v3259_v27 = vld [vmem:[%s5766_s1 + $0xe0] sm:$0xf]  ;;  %v3220_v51 = vor.u32 %v3826_v49, %v3219_v48  ;;  %v3221_v53 = vld [vmem:[%s5766_s1 + $0x98] sm:$0xf0]  ;;  %v995_v55 = vunpack.c.h.bf16 %v3009_v42  ;;  %v3171_v32 = vld [vmem:[%s5766_s1 + $0x28] sm:$0xf] }
 0x219   :  { %v3260_v10 = vor.u32 %v3837_v8, %v3259_v27  ;;  %1526 = vmatpush.bf16.msra.mxu1 %v3232_v34  ;;  %v3224_v56 = vor.u32 %v3824_v52, %v3221_v53  ;;  %v3205_v27 = vld [vmem:[%s5766_s1 + $0x78] sm:$0xf0]  ;;  %v3168_v36 = vor.u32 %v3811_v30, %v3165_v31  ;;  %v3172_v42 = vor.u32 %v3814_v37, %v3171_v32  ;;  %v3147_v44 = vld [vmem:[%s5766_s1] sm:$0xf]  ;;  %v3809_v39 = vld [vmem:[%s5766_s1 + $0xc] sm:$0xf0] }
 0x21a   :  { %v4911_v61 = vadd.f32 %v984_v58, %v983_v59  ;;  %v972_v62 = vadd.f32 %v3978_v45, %v971_v60  ;;  %1540 = vmatpush.bf16.msra.mxu2 %v3220_v51  ;;  %v3195_v58 = vld [vmem:[%s5766_s1 + $0x60] sm:$0xf]  ;;  %v3821_v59 = vld [vmem:[%s5766_s1 + $0x6c] sm:$0xf0]  ;;  %v3819_v60 = vld [vmem:[%s5766_s1 + $0x64] sm:$0xf] }
 0x21b   :  { %1511 = vmatpush.bf16.msra.mxu0 %v3260_v10  ;;  %1553 = vmatpush.bf16.msra.mxu3 %v3224_v56  ;;  %v5043_v10 = vld [vmem:[%s5768_s0 + $0x38] sm:$0xff]  ;;  %v3155_v48 = vld [vmem:[%s5766_s1 + $0x8] sm:$0xf]  ;;  %v3808_v52 = vld [vmem:[%s5766_s1 + $0xc] sm:$0xf] }
 0x21c   :  { %3981 = vtanh.f32 %v4911_v61  ;;  %v976_v1 = vsel %vm975_vm2, %v3978_v45, %v972_v62  ;;  %v3823_v45 = vld [vmem:[%s5766_s1 + $0x84] sm:$0xf]  ;;  %v3196_v62 = vor.u32 %v3821_v59, %v3195_v58  ;;  %v997_v18 = vunpack.c.h.bf16 %v5043_v10  ;;  %v3173_v34 = vld [vmem:[%s5766_s1 + $0x38] sm:$0xf0]  ;;  %v3810_v49 = vld [vmem:[%s5766_s1 + $0x14] sm:$0xf0] }
 0x21d   :  { %v981_v4 = vsel %vm978_vm3, %v980_v2, %v976_v1  ;;  %v3216_v50 = vor.u32 %v3823_v45, %v3213_v47  ;;  %v3822_v1 = vld [vmem:[%s5766_s1 + $0x74] sm:$0xf0]  ;;  %v3176_v43 = vor.u32 %v3812_v57, %v3173_v34  ;;  %v3807_v45 = vld [vmem:[%s5766_s1 + $0x4] sm:$0xf]  ;;  %v3149_v47 = vld [vmem:[%s5766_s1 + $0x10] sm:$0xf0] }
 0x21e   :  { %v3152_v51 = vor.u32 %v3807_v45, %v3149_v47  ;;  %v3157_v53 = vld [vmem:[%s5766_s1 + $0x18] sm:$0xf0]  ;;  %v3870_v45 = vld [vmem:[%s5766_s1 + $0xf4] sm:$0xf0] }
 0x21f   :  { %1512 = vmatpush.bf16.msra.mxu0 %v3244_v21  ;;  %1527 = vmatpush.bf16.msra.mxu1 %v3216_v50  ;;  %v3818_v21 = vld [vmem:[%s5766_s1 + $0x54] sm:$0xf0]  ;;  %v3160_v59 = vor.u32 %v3808_v52, %v3157_v53  ;;  %v3865_v52 = vld [vmem:[%s5766_s1 + $0xcc] sm:$0xf0]  ;;  %v3863_v53 = vld [vmem:[%s5766_s1 + $0xc4] sm:$0xf] }
 0x220   :  { %v3188_v23 = vor.u32 %v3818_v21, %v3187_v20 }
 0x222   :  { %v3982_v3 = vpop.eup %3981 }
 0x223   :  { %v987_v5 = vmul.f32 %v3982_v3, %v981_v4  ;;  %1513 = vmatpush.bf16.msra.mxu0 %v3228_v35  ;;  %v3200_v4 = vor.u32 %v3819_v60, %v3197_v63 }
 0x225   :  { %v988_v7 = vpack.c.bf16 %v987_v5, %v987_v5  ;;  %v3204_v5 = vor.u32 %v3822_v1, %v3203_v0  ;;  %1528 = vmatpush.bf16.msra.mxu1 %v3200_v4  ;;  %v996_v0 = vunpack.c.l.bf16 %v5043_v10 }
 0x227   :  { %3008 = vst [vmem:[%s5770_s4 + $0x8] sm:$0xf] %v988_v7  ;;  %1198 = vmatmul.bf16.vlgmr.msrb.gmra.mxu0 %v988_v7  ;;  %1211 = vmatmul.bf16.vlgmr.msrb.gmra.mxu1 %v988_v7 }
 0x228   :  { %1224 = vmatmul.bf16.vlgmr.msrb.gmra.mxu2 %v988_v7  ;;  %1237 = vmatmul.bf16.vlgmr.msrb.gmra.mxu3 %v988_v7  ;;  %v3820_v7 = vld [vmem:[%s5766_s1 + $0x6c] sm:$0xf] }
 0x229   :  { %1514 = vmatpush.bf16.msra.mxu0 %v3212_v46  ;;  %v3208_v11 = vor.u32 %v3820_v7, %v3205_v27  ;;  %1541 = vmatpush.bf16.msra.mxu2 %v3204_v5  ;;  %v3148_v46 = vor.u32 %v3809_v39, %v3147_v44  ;;  %v3395_v44 = vld [vmem:[%s5766_s1 + $0xf0] sm:$0xf0]  ;;  %v3401_v39 = vld [vmem:[%s5766_s1 + $0xe8] sm:$0xf] }
 0x22a   :  { %1529 = vmatpush.bf16.msra.mxu1 %v3184_v19  ;;  %v3402_v47 = vor.u32 %v3870_v45, %v3401_v39  ;;  %v3313_v39 = vld [vmem:[%s5766_s1 + $0x40] sm:$0xf]  ;;  %v3849_v45 = vld [vmem:[%s5766_s1 + $0x4c] sm:$0xf0] }
 0x22b   :  { %1554 = vmatpush.bf16.msra.mxu3 %v3208_v11 }
 0x22d   :  { %1515 = vmatpush.bf16.msra.mxu0 %v3196_v62  ;;  %1542 = vmatpush.bf16.msra.mxu2 %v3188_v23 }
 0x22e   :  { %1530 = vmatpush.bf16.msra.mxu1 %v3168_v36 }
 0x22f   :  { %1555 = vmatpush.bf16.msra.mxu3 %v3192_v28 }
 0x231   :  { %1516 = vmatpush.bf16.msra.mxu0 %v3180_v16  ;;  %1543 = vmatpush.bf16.msra.mxu2 %v3172_v42  ;;  %v3867_v42 = vld [vmem:[%s5766_s1 + $0xe4] sm:$0xf] }
 0x232   :  { %1531 = vmatpush.bf16.msra.mxu1 %v3152_v51  ;;  %v3377_v51 = vld [vmem:[%s5766_s1 + $0xc0] sm:$0xf] }
 0x233   :  { %1556 = vmatpush.bf16.msra.mxu3 %v3176_v43 }
 0x235   :  { %1517 = vmatpush.bf16.msra.mxu0 %v3164_v29 }
 0x237   :  { %1557 = vmatpush.bf16.msra.mxu3 %v3160_v59 }
 0x239   :  { %1518 = vmatpush.bf16.msra.mxu0 %v3148_v46  ;;  %v3398_v46 = vor.u32 %v3867_v42, %v3395_v44 }
 0x23b   :  { %1845 = vmatpush.bf16.msrb.mxu1 %v3398_v46  ;;  %v3847_v46 = vld [vmem:[%s5766_s1 + $0x44] sm:$0xf] }
 0x2a4   :  { %v1199_v2 = vpop.f32.mrf.mxu0  ;;  %v1212_v3 = vpop.f32.mrf.mxu1 }
 0x2a5   :  { %v1242_v8 = vadd.f32 %v1199_v2, %v994_v54  ;;  %v1243_v9 = vadd.f32 %v1212_v3, %v995_v55  ;;  %v3156_v55 = vor.u32 %v3810_v49, %v3155_v48  ;;  %v3868_v48 = vld [vmem:[%s5766_s1 + $0xec] sm:$0xf]  ;;  %v3403_v49 = vld [vmem:[%s5766_s1 + $0xf8] sm:$0xf0] }
 0x2a7   :  { %v3139_v14 = vmul.f32 -1.442695, %v1242_v8  ;;  %v3140_v15 = vmul.f32 -1.442695, %v1243_v9  ;;  %1544 = vmatpush.bf16.msra.mxu2 %v3156_v55  ;;  %v3379_v55 = vld [vmem:[%s5766_s1 + $0xd0] sm:$0xf0] }
 0x2a8   :  { %v3382_v59 = vor.u32 %v3863_v53, %v3379_v55  ;;  %v3321_v53 = vld [vmem:[%s5766_s1 + $0x48] sm:$0xf]  ;;  %v3848_v55 = vld [vmem:[%s5766_s1 + $0x4c] sm:$0xf] }
 0x2a9   :  { %3983 = vpow2.f32 %v3139_v14 }
 0x2aa   :  { %3985 = vpow2.f32 %v3140_v15  ;;  %1846 = vmatpush.bf16.msrb.mxu1 %v3382_v59  ;;  %v3297_v59 = vld [vmem:[%s5766_s1 + $0x20] sm:$0xf] }
 0x2ab   :  { %v1225_v33 = vpop.f32.mrf.mxu2  ;;  %v1238_v35 = vpop.f32.mrf.mxu3  ;;  %1858 = vmatpush.bf16.msrb.mxu2 %v3402_v47 }
 0x2ac   :  { %v1245_v38 = vadd.f32 %v1238_v35, %v997_v18  ;;  %v1201_v40 = vpop.f32.mrf.mxu0  ;;  %v1214_v41 = vpop.f32.mrf.mxu1  ;;  %v1244_v4 = vadd.f32 %v1225_v33, %v996_v0 }
 0x2ad   :  { %v3869_v41 = vld [vmem:[%s5766_s1 + $0xec] sm:$0xf0] }
 0x2ae   :  { %v3141_v50 = vmul.f32 -1.442695, %v1245_v38 }
 0x2af   :  { %v3984_v54 = vpop.eup %3983 }
 0x2b0   :  { %v3986_v56 = vpop.eup %3985  ;;  %v1249_v58 = vadd.f32 1.0, %v3984_v54  ;;  %3987 = vpow2.f32 %v3141_v50  ;;  %v3406_v50 = vor.u32 %v3868_v48, %v3403_v49  ;;  %v3378_v54 = vor.u32 %v3865_v52, %v3377_v51 }
 0x2b1   :  { %v1268_v60 = vadd.f32 1.0, %v3986_v56  ;;  %v3385_v56 = vld [vmem:[%s5766_s1 + $0xc8] sm:$0xf]  ;;  %v3314_v49 = vor.u32 %v3849_v45, %v3313_v39 }
 0x2b2   :  { %3989 = vrcp.f32 %v1249_v58  ;;  %v1261_v11 = vand.u32 2147483648, %v1249_v58  ;;  %v1259_v13 = vand.u32 2147483647, %v1249_v58  ;;  %vm1255_vm6 = vweird.f32 %v1249_v58  ;;  %1871 = vmatpush.bf16.msrb.mxu3 %v3406_v50  ;;  %v3315_v50 = vld [vmem:[%s5766_s1 + $0x50] sm:$0xf0] }
 0x2b3   :  { %3991 = vrcp.f32 %v1268_v60  ;;  %v1227_v62 = vpop.f32.mrf.mxu2  ;;  %v1240_v63 = vpop.f32.mrf.mxu3  ;;  %v1280_v6 = vand.u32 2147483648, %v1268_v60  ;;  %v1278_v10 = vand.u32 2147483647, %v1268_v60  ;;  %vm1274_vm7 = vweird.f32 %v1268_v60 }
 0x2b4   :  { %v1262_v17 = vor.u32 1.1754944e-38, %v1261_v11  ;;  %vm1260_vm10 = vcmp.eq.f32.partialorder %v1259_v13, 8.507059e+37  ;;  %v3864_v62 = vld [vmem:[%s5766_s1 + $0xcc] sm:$0xf]  ;;  %v3387_v63 = vld [vmem:[%s5766_s1 + $0xd8] sm:$0xf0]  ;;  %v3318_v52 = vor.u32 %v3847_v46, %v3315_v50 }
 0x2b5   :  { %v1281_v20 = vor.u32 1.1754944e-38, %v1280_v6  ;;  %vm1279_vm11 = vcmp.eq.f32.partialorder %v1278_v10, 8.507059e+37  ;;  %v3390_v0 = vor.u32 %v3864_v62, %v3387_v63  ;;  %v3860_v11 = vld [vmem:[%s5766_s1 + $0xac] sm:$0xf]  ;;  %v3371_v6 = vld [vmem:[%s5766_s1 + $0xb8] sm:$0xf0] }
 0x2b6   :  { %v3988_v1 = vpop.eup %3987  ;;  %v3374_v13 = vor.u32 %v3860_v11, %v3371_v6  ;;  %v3857_v10 = vld [vmem:[%s5766_s1 + $0x8c] sm:$0xf0] }
 0x2b7   :  { %v1288_v2 = vadd.f32 1.0, %v3988_v1  ;;  %v3361_v1 = vld [vmem:[%s5766_s1 + $0xa0] sm:$0xf]  ;;  %1872 = vmatpush.bf16.msrb.mxu3 %v3390_v0  ;;  %v3843_v0 = vld [vmem:[%s5766_s1 + $0x24] sm:$0xf] }
 0x2b8   :  { %v3990_v3 = vpop.eup %3989 }
 0x2b9   :  { %v3992_v5 = vpop.eup %3991  ;;  %v1251_v7 = vmul.f32 %v3990_v3, %v1249_v58  ;;  %3993 = vrcp.f32 %v1288_v2  ;;  %vm1256_vm4 = vweird.f32 %v3990_v3  ;;  %v1300_v33 = vand.u32 2147483648, %v1288_v2  ;;  %v3866_v58 = vld [vmem:[%s5766_s1 + $0xd4] sm:$0xf0] }
 0x2ba   :  { %v1270_v27 = vmul.f32 %v3992_v5, %v1268_v60  ;;  %3995 = vtanh.f32 %v1244_v4  ;;  %vm1275_vm5 = vweird.f32 %v3992_v5  ;;  %vm1257_vm8 = vmor %vm1255_vm6, %vm1256_vm4  ;;  %vm1294_vm13 = vweird.f32 %v1288_v2 }
 0x2bb   :  { %v1252_v8 = vsub.f32 1.0, %v1251_v7  ;;  %vm1276_vm9 = vmor %vm1274_vm7, %vm1275_vm5  ;;  %v1298_v35 = vand.u32 2147483647, %v1288_v2  ;;  %v1301_v37 = vor.u32 1.1754944e-38, %v1300_v33  ;;  %v3386_v60 = vor.u32 %v3866_v58, %v3385_v56  ;;  %v3369_v7 = vld [vmem:[%s5766_s1 + $0xa8] sm:$0xf]  ;;  %1873 = vmatpush.bf16.msrb.mxu3 %v3374_v13 }
 0x2bc   :  { %v1271_v9 = vsub.f32 1.0, %v1270_v27  ;;  %v3862_v27 = vld [vmem:[%s5766_s1 + $0xb4] sm:$0xf0]  ;;  %v3331_v33 = vld [vmem:[%s5766_s1 + $0x70] sm:$0xf0] }
 0x2bd   :  { %v1253_v12 = vmul.f32 %v3990_v3, %v1252_v8  ;;  %vm1299_vm15 = vcmp.eq.f32.partialorder %v1298_v35, 8.507059e+37  ;;  %1859 = vmatpush.bf16.msrb.mxu2 %v3386_v60  ;;  %v3337_v35 = vld [vmem:[%s5766_s1 + $0x68] sm:$0xf]  ;;  %v3323_v58 = vld [vmem:[%s5766_s1 + $0x58] sm:$0xf0] }
 0x2be   :  { %v1272_v14 = vmul.f32 %v3992_v5, %v1271_v9  ;;  %v3370_v9 = vor.u32 %v3862_v27, %v3369_v7  ;;  %v3845_v60 = vld [vmem:[%s5766_s1 + $0x2c] sm:$0xf0]  ;;  %v3326_v62 = vor.u32 %v3848_v55, %v3323_v58  ;;  %v3846_v7 = vld [vmem:[%s5766_s1 + $0x34] sm:$0xf0]  ;;  %v3844_v27 = vld [vmem:[%s5766_s1 + $0x2c] sm:$0xf] }
 0x2bf   :  { %v3994_v15 = vpop.eup %3993  ;;  %v1254_v16 = vadd.f32 %v3990_v3, %v1253_v12  ;;  %v3143_v12 = vld [vmem:[%s5768_s0 + $0x40] sm:$0xff]  ;;  %v3298_v63 = vor.u32 %v3845_v60, %v3297_v59 }
 0x2c0   :  { %v1273_v18 = vadd.f32 %v3992_v5, %v1272_v14  ;;  %v1290_v19 = vmul.f32 %v3994_v15, %v1288_v2  ;;  %v3996_v22 = vpop.eup %3995  ;;  %vm1295_vm12 = vweird.f32 %v3994_v15  ;;  %v3861_v2 = vld [vmem:[%s5766_s1 + $0xac] sm:$0xf0]  ;;  %v3345_v14 = vld [vmem:[%s5766_s1 + $0x80] sm:$0xf] }
 0x2c1   :  { %v1258_v21 = vsel %vm1257_vm8, %v3990_v3, %v1254_v16  ;;  %vm1296_vm14 = vmor %vm1294_vm13, %vm1295_vm12  ;;  %v3859_v3 = vld [vmem:[%s5766_s1 + $0xa4] sm:$0xf]  ;;  %v3362_v4 = vor.u32 %v3861_v2, %v3361_v1  ;;  %1860 = vmatpush.bf16.msrb.mxu2 %v3370_v9  ;;  %v3346_v16 = vor.u32 %v3857_v10, %v3345_v14  ;;  %v3299_v1 = vld [vmem:[%s5766_s1 + $0x30] sm:$0xf0] }
 0x2c2   :  { %v1263_v23 = vsel %vm1260_vm10, %v1262_v17, %v1258_v21  ;;  %v1277_v24 = vsel %vm1276_vm9, %v3992_v5, %v1273_v18  ;;  %v1291_v25 = vsub.f32 1.0, %v1290_v19  ;;  %v3363_v5 = vld [vmem:[%s5766_s1 + $0xb0] sm:$0xf0]  ;;  %v3353_v18 = vld [vmem:[%s5766_s1 + $0x88] sm:$0xf] }
 0x2c3   :  { %v1282_v26 = vsel %vm1279_vm11, %v1281_v20, %v1277_v24  ;;  %v1305_v28 = vmul.f32 %v3996_v22, %v1263_v23  ;;  %v3366_v8 = vor.u32 %v3859_v3, %v3363_v5  ;;  %v3347_v17 = vld [vmem:[%s5766_s1 + $0x90] sm:$0xf0]  ;;  %v3858_v19 = vld [vmem:[%s5766_s1 + $0x94] sm:$0xf0]  ;;  %v3856_v22 = vld [vmem:[%s5766_s1 + $0x8c] sm:$0xf]  ;;  %v1315_v24 = vunpack.c.l.bf16 %v3143_v12 }
 0x2c4   :  { %v1304_v29 = vmul.f32 %v1282_v26, %v4911_v61  ;;  %v1292_v30 = vmul.f32 %v3994_v15, %v1291_v25  ;;  %v3393_v61 = vld [vmem:[%s5766_s1 + $0xe0] sm:$0xf]  ;;  %v3354_v21 = vor.u32 %v3858_v19, %v3353_v18  ;;  %v3355_v23 = vld [vmem:[%s5766_s1 + $0x98] sm:$0xf0]  ;;  %v1316_v25 = vunpack.c.h.bf16 %v3143_v12  ;;  %v3305_v2 = vld [vmem:[%s5766_s1 + $0x28] sm:$0xf] }
 0x2c5   :  { %v3394_v43 = vor.u32 %v3869_v41, %v3393_v61  ;;  %1847 = vmatpush.bf16.msrb.mxu1 %v3366_v8  ;;  %v3358_v26 = vor.u32 %v3856_v22, %v3355_v23  ;;  %v3339_v61 = vld [vmem:[%s5766_s1 + $0x78] sm:$0xf0]  ;;  %v3302_v5 = vor.u32 %v3843_v0, %v3299_v1  ;;  %v3306_v12 = vor.u32 %v3846_v7, %v3305_v2  ;;  %v3281_v14 = vld [vmem:[%s5766_s1] sm:$0xf]  ;;  %v3841_v10 = vld [vmem:[%s5766_s1 + $0xc] sm:$0xf0] }
 0x2c6   :  { %v5120_v31 = vadd.f32 %v1305_v28, %v1304_v29  ;;  %v1293_v32 = vadd.f32 %v3994_v15, %v1292_v30  ;;  %1861 = vmatpush.bf16.msrb.mxu2 %v3354_v21  ;;  %v3329_v28 = vld [vmem:[%s5766_s1 + $0x60] sm:$0xf]  ;;  %v3853_v29 = vld [vmem:[%s5766_s1 + $0x6c] sm:$0xf0]  ;;  %v3851_v30 = vld [vmem:[%s5766_s1 + $0x64] sm:$0xf] }
 0x2c7   :  { %1832 = vmatpush.bf16.msrb.mxu0 %v3394_v43  ;;  %1874 = vmatpush.bf16.msrb.mxu3 %v3358_v26  ;;  %v5252_v43 = vld [vmem:[%s5768_s0 + $0x48] sm:$0xff]  ;;  %v3307_v8 = vld [vmem:[%s5766_s1 + $0x38] sm:$0xf0]  ;;  %v3842_v19 = vld [vmem:[%s5766_s1 + $0x14] sm:$0xf0] }
 0x2c8   :  { %3997 = vtanh.f32 %v5120_v31  ;;  %v1297_v36 = vsel %vm1296_vm14, %v3994_v15, %v1293_v32  ;;  %v3855_v15 = vld [vmem:[%s5766_s1 + $0x84] sm:$0xf]  ;;  %v3330_v32 = vor.u32 %v3853_v29, %v3329_v28  ;;  %v1318_v51 = vunpack.c.h.bf16 %v5252_v43  ;;  %v3289_v18 = vld [vmem:[%s5766_s1 + $0x8] sm:$0xf]  ;;  %v3840_v22 = vld [vmem:[%s5766_s1 + $0xc] sm:$0xf] }
 0x2c9   :  { %v1302_v34 = vsel %vm1299_vm15, %v1301_v37, %v1297_v36  ;;  %v3350_v20 = vor.u32 %v3855_v15, %v3347_v17  ;;  %v3854_v36 = vld [vmem:[%s5766_s1 + $0x74] sm:$0xf0]  ;;  %v3310_v13 = vor.u32 %v3844_v27, %v3307_v8  ;;  %v3839_v15 = vld [vmem:[%s5766_s1 + $0x4] sm:$0xf]  ;;  %v3283_v17 = vld [vmem:[%s5766_s1 + $0x10] sm:$0xf0] }
 0x2ca   :  { %v3286_v21 = vor.u32 %v3839_v15, %v3283_v17  ;;  %v3291_v23 = vld [vmem:[%s5766_s1 + $0x18] sm:$0xf0]  ;;  %v3902_v15 = vld [vmem:[%s5766_s1 + $0xf4] sm:$0xf0] }
 0x2cb   :  { %1833 = vmatpush.bf16.msrb.mxu0 %v3378_v54  ;;  %1848 = vmatpush.bf16.msrb.mxu1 %v3350_v20  ;;  %v3850_v54 = vld [vmem:[%s5766_s1 + $0x54] sm:$0xf0]  ;;  %v3294_v29 = vor.u32 %v3840_v22, %v3291_v23  ;;  %v3897_v22 = vld [vmem:[%s5766_s1 + $0xcc] sm:$0xf0]  ;;  %v3895_v23 = vld [vmem:[%s5766_s1 + $0xc4] sm:$0xf] }
 0x2cc   :  { %v3322_v56 = vor.u32 %v3850_v54, %v3321_v53 }
 0x2ce   :  { %v3998_v57 = vpop.eup %3997 }
 0x2cf   :  { %v1308_v38 = vmul.f32 %v3998_v57, %v1302_v34  ;;  %1834 = vmatpush.bf16.msrb.mxu0 %v3362_v4  ;;  %v3334_v34 = vor.u32 %v3851_v30, %v3331_v33 }
 0x2d1   :  { %v1309_v40 = vpack.c.bf16 %v1308_v38, %v1308_v38  ;;  %v3338_v38 = vor.u32 %v3854_v36, %v3337_v35  ;;  %1849 = vmatpush.bf16.msrb.mxu1 %v3334_v34  ;;  %v1317_v35 = vunpack.c.l.bf16 %v5252_v43 }
 0x2d3   :  { %3142 = vst [vmem:[%s5770_s4 + $0xc] sm:$0xf] %v1309_v40  ;;  %1519 = vmatmul.bf16.vlgmr.msra.gmra.mxu0 %v1309_v40  ;;  %1532 = vmatmul.bf16.vlgmr.msra.gmra.mxu1 %v1309_v40 }
 0x2d4   :  { %1545 = vmatmul.bf16.vlgmr.msra.gmra.mxu2 %v1309_v40  ;;  %1558 = vmatmul.bf16.vlgmr.msra.gmra.mxu3 %v1309_v40  ;;  %v3852_v40 = vld [vmem:[%s5766_s1 + $0x6c] sm:$0xf] }
 0x2d5   :  { %1835 = vmatpush.bf16.msrb.mxu0 %v3346_v16  ;;  %v3342_v44 = vor.u32 %v3852_v40, %v3339_v61  ;;  %1862 = vmatpush.bf16.msrb.mxu2 %v3338_v38  ;;  %v3282_v16 = vor.u32 %v3841_v10, %v3281_v14  ;;  %v3529_v14 = vld [vmem:[%s5766_s1 + $0xf0] sm:$0xf0]  ;;  %v3535_v10 = vld [vmem:[%s5766_s1 + $0xe8] sm:$0xf] }
 0x2d6   :  { %1850 = vmatpush.bf16.msrb.mxu1 %v3318_v52  ;;  %v3536_v17 = vor.u32 %v3902_v15, %v3535_v10  ;;  %v3447_v10 = vld [vmem:[%s5766_s1 + $0x40] sm:$0xf]  ;;  %v3881_v15 = vld [vmem:[%s5766_s1 + $0x4c] sm:$0xf0] }
 0x2d7   :  { %1875 = vmatpush.bf16.msrb.mxu3 %v3342_v44 }
 0x2d9   :  { %1836 = vmatpush.bf16.msrb.mxu0 %v3330_v32  ;;  %1863 = vmatpush.bf16.msrb.mxu2 %v3322_v56 }
 0x2da   :  { %1851 = vmatpush.bf16.msrb.mxu1 %v3302_v5 }
 0x2db   :  { %1876 = vmatpush.bf16.msrb.mxu3 %v3326_v62 }
 0x2dd   :  { %1837 = vmatpush.bf16.msrb.mxu0 %v3314_v49  ;;  %1864 = vmatpush.bf16.msrb.mxu2 %v3306_v12  ;;  %v3899_v12 = vld [vmem:[%s5766_s1 + $0xe4] sm:$0xf] }
 0x2de   :  { %1852 = vmatpush.bf16.msrb.mxu1 %v3286_v21  ;;  %v3511_v21 = vld [vmem:[%s5766_s1 + $0xc0] sm:$0xf] }
 0x2df   :  { %1877 = vmatpush.bf16.msrb.mxu3 %v3310_v13 }
 0x2e1   :  { %1838 = vmatpush.bf16.msrb.mxu0 %v3298_v63 }
 0x2e3   :  { %1878 = vmatpush.bf16.msrb.mxu3 %v3294_v29 }
 0x2e5   :  { %1839 = vmatpush.bf16.msrb.mxu0 %v3282_v16  ;;  %v3532_v16 = vor.u32 %v3899_v12, %v3529_v14 }
 0x2e7   :  { %2166 = vmatpush.bf16.msra.mxu1 %v3532_v16  ;;  %v3879_v16 = vld [vmem:[%s5766_s1 + $0x44] sm:$0xf] }
 0x350   :  { %v1520_v37 = vpop.f32.mrf.mxu0  ;;  %v1533_v57 = vpop.f32.mrf.mxu1 }
 0x351   :  { %v1563_v41 = vadd.f32 %v1520_v37, %v1315_v24  ;;  %v1564_v42 = vadd.f32 %v1533_v57, %v1316_v25  ;;  %v3290_v25 = vor.u32 %v3842_v19, %v3289_v18  ;;  %v3900_v18 = vld [vmem:[%s5766_s1 + $0xec] sm:$0xf]  ;;  %v3537_v19 = vld [vmem:[%s5766_s1 + $0xf8] sm:$0xf0] }
 0x353   :  { %v3273_v47 = vmul.f32 -1.442695, %v1563_v41  ;;  %v3274_v48 = vmul.f32 -1.442695, %v1564_v42  ;;  %1865 = vmatpush.bf16.msrb.mxu2 %v3290_v25  ;;  %v3513_v25 = vld [vmem:[%s5766_s1 + $0xd0] sm:$0xf0] }
 0x354   :  { %v3516_v29 = vor.u32 %v3895_v23, %v3513_v25  ;;  %v3455_v23 = vld [vmem:[%s5766_s1 + $0x48] sm:$0xf]  ;;  %v3880_v25 = vld [vmem:[%s5766_s1 + $0x4c] sm:$0xf] }
 0x355   :  { %3999 = vpow2.f32 %v3273_v47 }
 0x356   :  { %4001 = vpow2.f32 %v3274_v48  ;;  %2167 = vmatpush.bf16.msra.mxu1 %v3516_v29  ;;  %v3431_v29 = vld [vmem:[%s5766_s1 + $0x20] sm:$0xf] }
 0x357   :  { %v1546_v3 = vpop.f32.mrf.mxu2  ;;  %v1559_v4 = vpop.f32.mrf.mxu3  ;;  %2179 = vmatpush.bf16.msra.mxu2 %v3536_v17 }
 0x358   :  { %v1566_v9 = vadd.f32 %v1559_v4, %v1318_v51  ;;  %v1522_v11 = vpop.f32.mrf.mxu0  ;;  %v1535_v6 = vpop.f32.mrf.mxu1  ;;  %v1565_v34 = vadd.f32 %v1546_v3, %v1317_v35 }
 0x359   :  { %v3901_v6 = vld [vmem:[%s5766_s1 + $0xec] sm:$0xf0] }
 0x35a   :  { %v3275_v20 = vmul.f32 -1.442695, %v1566_v9 }
 0x35b   :  { %v4000_v24 = vpop.eup %3999 }
 0x35c   :  { %v4002_v26 = vpop.eup %4001  ;;  %v1570_v28 = vadd.f32 1.0, %v4000_v24  ;;  %4003 = vpow2.f32 %v3275_v20  ;;  %v3540_v20 = vor.u32 %v3900_v18, %v3537_v19  ;;  %v3512_v24 = vor.u32 %v3897_v22, %v3511_v21 }
 0x35d   :  { %v1589_v30 = vadd.f32 1.0, %v4002_v26  ;;  %v3519_v26 = vld [vmem:[%s5766_s1 + $0xc8] sm:$0xf]  ;;  %v3448_v19 = vor.u32 %v3881_v15, %v3447_v10 }
 0x35e   :  { %4005 = vrcp.f32 %v1570_v28  ;;  %v1582_v44 = vand.u32 2147483648, %v1570_v28  ;;  %v1580_v46 = vand.u32 2147483647, %v1570_v28  ;;  %vm1576_vm2 = vweird.f32 %v1570_v28  ;;  %2192 = vmatpush.bf16.msra.mxu3 %v3540_v20  ;;  %v3449_v20 = vld [vmem:[%s5766_s1 + $0x50] sm:$0xf0] }
 0x35f   :  { %4007 = vrcp.f32 %v1589_v30  ;;  %v1548_v32 = vpop.f32.mrf.mxu2  ;;  %v1561_v33 = vpop.f32.mrf.mxu3  ;;  %v1601_v39 = vand.u32 2147483648, %v1589_v30  ;;  %v1599_v43 = vand.u32 2147483647, %v1589_v30  ;;  %vm1595_vm3 = vweird.f32 %v1589_v30 }
 0x360   :  { %v1583_v50 = vor.u32 1.1754944e-38, %v1582_v44  ;;  %vm1581_vm6 = vcmp.eq.f32.partialorder %v1580_v46, 8.507059e+37  ;;  %v3896_v32 = vld [vmem:[%s5766_s1 + $0xcc] sm:$0xf]  ;;  %v3521_v33 = vld [vmem:[%s5766_s1 + $0xd8] sm:$0xf0]  ;;  %v3452_v22 = vor.u32 %v3879_v16, %v3449_v20 }
 0x361   :  { %v1602_v53 = vor.u32 1.1754944e-38, %v1601_v39  ;;  %vm1600_vm7 = vcmp.eq.f32.partialorder %v1599_v43, 8.507059e+37  ;;  %v3524_v35 = vor.u32 %v3896_v32, %v3521_v33  ;;  %v3892_v44 = vld [vmem:[%s5766_s1 + $0xac] sm:$0xf]  ;;  %v3505_v39 = vld [vmem:[%s5766_s1 + $0xb8] sm:$0xf0] }
 0x362   :  { %v4004_v36 = vpop.eup %4003  ;;  %v3508_v46 = vor.u32 %v3892_v44, %v3505_v39  ;;  %v3889_v43 = vld [vmem:[%s5766_s1 + $0x8c] sm:$0xf0] }
 0x363   :  { %v1609_v37 = vadd.f32 1.0, %v4004_v36  ;;  %v3495_v36 = vld [vmem:[%s5766_s1 + $0xa0] sm:$0xf]  ;;  %2193 = vmatpush.bf16.msra.mxu3 %v3524_v35  ;;  %v3875_v35 = vld [vmem:[%s5766_s1 + $0x24] sm:$0xf] }
 0x364   :  { %v4006_v57 = vpop.eup %4005 }
 0x365   :  { %v4008_v38 = vpop.eup %4007  ;;  %v1572_v40 = vmul.f32 %v4006_v57, %v1570_v28  ;;  %4009 = vrcp.f32 %v1609_v37  ;;  %vm1577_vm0 = vweird.f32 %v4006_v57  ;;  %v1621_v3 = vand.u32 2147483648, %v1609_v37  ;;  %v3898_v28 = vld [vmem:[%s5766_s1 + $0xd4] sm:$0xf0] }
 0x366   :  { %v1591_v61 = vmul.f32 %v4008_v38, %v1589_v30  ;;  %4011 = vtanh.f32 %v1565_v34  ;;  %vm1596_vm1 = vweird.f32 %v4008_v38  ;;  %vm1578_vm4 = vmor %vm1576_vm2, %vm1577_vm0  ;;  %vm1615_vm9 = vweird.f32 %v1609_v37 }
 0x367   :  { %v1573_v41 = vsub.f32 1.0, %v1572_v40  ;;  %vm1597_vm5 = vmor %vm1595_vm3, %vm1596_vm1  ;;  %v1619_v4 = vand.u32 2147483647, %v1609_v37  ;;  %v1622_v7 = vor.u32 1.1754944e-38, %v1621_v3  ;;  %v3520_v30 = vor.u32 %v3898_v28, %v3519_v26  ;;  %v3503_v40 = vld [vmem:[%s5766_s1 + $0xa8] sm:$0xf]  ;;  %2194 = vmatpush.bf16.msra.mxu3 %v3508_v46 }
 0x368   :  { %v1592_v42 = vsub.f32 1.0, %v1591_v61  ;;  %v3894_v61 = vld [vmem:[%s5766_s1 + $0xb4] sm:$0xf0]  ;;  %v3465_v3 = vld [vmem:[%s5766_s1 + $0x70] sm:$0xf0] }
 0x369   :  { %v1574_v45 = vmul.f32 %v4006_v57, %v1573_v41  ;;  %vm1620_vm11 = vcmp.eq.f32.partialorder %v1619_v4, 8.507059e+37  ;;  %2180 = vmatpush.bf16.msra.mxu2 %v3520_v30  ;;  %v3471_v4 = vld [vmem:[%s5766_s1 + $0x68] sm:$0xf]  ;;  %v3457_v28 = vld [vmem:[%s5766_s1 + $0x58] sm:$0xf0] }
 0x36a   :  { %v1593_v47 = vmul.f32 %v4008_v38, %v1592_v42  ;;  %v3504_v42 = vor.u32 %v3894_v61, %v3503_v40  ;;  %v3877_v30 = vld [vmem:[%s5766_s1 + $0x2c] sm:$0xf0]  ;;  %v3460_v32 = vor.u32 %v3880_v25, %v3457_v28  ;;  %v3878_v40 = vld [vmem:[%s5766_s1 + $0x34] sm:$0xf0]  ;;  %v3876_v61 = vld [vmem:[%s5766_s1 + $0x2c] sm:$0xf] }
 0x36b   :  { %v4010_v48 = vpop.eup %4009  ;;  %v1575_v49 = vadd.f32 %v4006_v57, %v1574_v45  ;;  %v3277_v45 = vld [vmem:[%s5768_s0 + $0x50] sm:$0xff]  ;;  %v3432_v33 = vor.u32 %v3877_v30, %v3431_v29 }
 0x36c   :  { %v1594_v51 = vadd.f32 %v4008_v38, %v1593_v47  ;;  %v1611_v52 = vmul.f32 %v4010_v48, %v1609_v37  ;;  %v4012_v55 = vpop.eup %4011  ;;  %vm1616_vm8 = vweird.f32 %v4010_v48  ;;  %v3893_v37 = vld [vmem:[%s5766_s1 + $0xac] sm:$0xf0]  ;;  %v3479_v47 = vld [vmem:[%s5766_s1 + $0x80] sm:$0xf] }
 0x36d   :  { %v1579_v54 = vsel %vm1578_vm4, %v4006_v57, %v1575_v49  ;;  %vm1617_vm10 = vmor %vm1615_vm9, %vm1616_vm8  ;;  %v3891_v57 = vld [vmem:[%s5766_s1 + $0xa4] sm:$0xf]  ;;  %v3496_v34 = vor.u32 %v3893_v37, %v3495_v36  ;;  %2181 = vmatpush.bf16.msra.mxu2 %v3504_v42  ;;  %v3480_v49 = vor.u32 %v3889_v43, %v3479_v47  ;;  %v3433_v36 = vld [vmem:[%s5766_s1 + $0x30] sm:$0xf0] }
 0x36e   :  { %v1584_v56 = vsel %vm1581_vm6, %v1583_v50, %v1579_v54  ;;  %v1598_v58 = vsel %vm1597_vm5, %v4008_v38, %v1594_v51  ;;  %v1612_v59 = vsub.f32 1.0, %v1611_v52  ;;  %v3497_v38 = vld [vmem:[%s5766_s1 + $0xb0] sm:$0xf0]  ;;  %v3487_v51 = vld [vmem:[%s5766_s1 + $0x88] sm:$0xf] }
 0x36f   :  { %v1603_v60 = vsel %vm1600_vm7, %v1602_v53, %v1598_v58  ;;  %v1626_v62 = vmul.f32 %v4012_v55, %v1584_v56  ;;  %v3500_v41 = vor.u32 %v3891_v57, %v3497_v38  ;;  %v3481_v50 = vld [vmem:[%s5766_s1 + $0x90] sm:$0xf0]  ;;  %v3890_v52 = vld [vmem:[%s5766_s1 + $0x94] sm:$0xf0]  ;;  %v3888_v55 = vld [vmem:[%s5766_s1 + $0x8c] sm:$0xf]  ;;  %v1636_v58 = vunpack.c.l.bf16 %v3277_v45 }
 0x370   :  { %v1625_v63 = vmul.f32 %v1603_v60, %v5120_v31  ;;  %v1613_v0 = vmul.f32 %v4010_v48, %v1612_v59  ;;  %v3527_v31 = vld [vmem:[%s5766_s1 + $0xe0] sm:$0xf]  ;;  %v3488_v54 = vor.u32 %v3890_v52, %v3487_v51  ;;  %v3489_v56 = vld [vmem:[%s5766_s1 + $0x98] sm:$0xf0]  ;;  %v1637_v59 = vunpack.c.h.bf16 %v3277_v45  ;;  %v3439_v37 = vld [vmem:[%s5766_s1 + $0x28] sm:$0xf] }
 0x371   :  { %v3528_v13 = vor.u32 %v3901_v6, %v3527_v31  ;;  %2168 = vmatpush.bf16.msra.mxu1 %v3500_v41  ;;  %v3492_v60 = vor.u32 %v3888_v55, %v3489_v56  ;;  %v3473_v31 = vld [vmem:[%s5766_s1 + $0x78] sm:$0xf0]  ;;  %v3436_v38 = vor.u32 %v3875_v35, %v3433_v36  ;;  %v3440_v45 = vor.u32 %v3878_v40, %v3439_v37  ;;  %v3415_v47 = vld [vmem:[%s5766_s1] sm:$0xf]  ;;  %v3873_v43 = vld [vmem:[%s5766_s1 + $0xc] sm:$0xf0] }
 0x372   :  { %v5329_v1 = vadd.f32 %v1626_v62, %v1625_v63  ;;  %v1614_v2 = vadd.f32 %v4010_v48, %v1613_v0  ;;  %2182 = vmatpush.bf16.msra.mxu2 %v3488_v54  ;;  %v3463_v62 = vld [vmem:[%s5766_s1 + $0x60] sm:$0xf]  ;;  %v3885_v63 = vld [vmem:[%s5766_s1 + $0x6c] sm:$0xf0]  ;;  %v3883_v0 = vld [vmem:[%s5766_s1 + $0x64] sm:$0xf] }
 0x373   :  { %2153 = vmatpush.bf16.msra.mxu0 %v3528_v13  ;;  %2195 = vmatpush.bf16.msra.mxu3 %v3492_v60  ;;  %v5461_v13 = vld [vmem:[%s5768_s0 + $0x58] sm:$0xff]  ;;  %v3423_v51 = vld [vmem:[%s5766_s1 + $0x8] sm:$0xf]  ;;  %v3872_v55 = vld [vmem:[%s5766_s1 + $0xc] sm:$0xf] }
 0x374   :  { %4013 = vtanh.f32 %v5329_v1  ;;  %v1618_v5 = vsel %vm1617_vm10, %v4010_v48, %v1614_v2  ;;  %v3887_v48 = vld [vmem:[%s5766_s1 + $0x84] sm:$0xf]  ;;  %v3464_v2 = vor.u32 %v3885_v63, %v3463_v62  ;;  %v1639_v21 = vunpack.c.h.bf16 %v5461_v13  ;;  %v3441_v41 = vld [vmem:[%s5766_s1 + $0x38] sm:$0xf0]  ;;  %v3874_v52 = vld [vmem:[%s5766_s1 + $0x14] sm:$0xf0] }
 0x375   :  { %v1623_v8 = vsel %vm1620_vm11, %v1622_v7, %v1618_v5  ;;  %v3484_v53 = vor.u32 %v3887_v48, %v3481_v50  ;;  %v3886_v5 = vld [vmem:[%s5766_s1 + $0x74] sm:$0xf0]  ;;  %v3444_v46 = vor.u32 %v3876_v61, %v3441_v41  ;;  %v3871_v48 = vld [vmem:[%s5766_s1 + $0x4] sm:$0xf]  ;;  %v3417_v50 = vld [vmem:[%s5766_s1 + $0x10] sm:$0xf0] }
 0x376   :  { %v3420_v54 = vor.u32 %v3871_v48, %v3417_v50  ;;  %v3425_v56 = vld [vmem:[%s5766_s1 + $0x18] sm:$0xf0]  ;;  %v3934_v48 = vld [vmem:[%s5766_s1 + $0xf4] sm:$0xf0] }
 0x377   :  { %2154 = vmatpush.bf16.msra.mxu0 %v3512_v24  ;;  %2169 = vmatpush.bf16.msra.mxu1 %v3484_v53  ;;  %v3882_v24 = vld [vmem:[%s5766_s1 + $0x54] sm:$0xf0]  ;;  %v3428_v63 = vor.u32 %v3872_v55, %v3425_v56  ;;  %v3929_v55 = vld [vmem:[%s5766_s1 + $0xcc] sm:$0xf0]  ;;  %v3927_v56 = vld [vmem:[%s5766_s1 + $0xc4] sm:$0xf] }
 0x378   :  { %v3456_v26 = vor.u32 %v3882_v24, %v3455_v23 }
 0x37a   :  { %v4014_v27 = vpop.eup %4013 }
 0x37b   :  { %v1629_v9 = vmul.f32 %v4014_v27, %v1623_v8  ;;  %2155 = vmatpush.bf16.msra.mxu0 %v3496_v34  ;;  %v3468_v8 = vor.u32 %v3883_v0, %v3465_v3 }
 0x37d   :  { %v1630_v11 = vpack.c.bf16 %v1629_v9, %v1629_v9  ;;  %v3472_v9 = vor.u32 %v3886_v5, %v3471_v4  ;;  %2170 = vmatpush.bf16.msra.mxu1 %v3468_v8  ;;  %v1638_v4 = vunpack.c.l.bf16 %v5461_v13 }
 0x37f   :  { %3276 = vst [vmem:[%s5770_s4 + $0x10] sm:$0xf] %v1630_v11  ;;  %1840 = vmatmul.bf16.vlgmr.msrb.gmra.mxu0 %v1630_v11  ;;  %1853 = vmatmul.bf16.vlgmr.msrb.gmra.mxu1 %v1630_v11 }
 0x380   :  { %1866 = vmatmul.bf16.vlgmr.msrb.gmra.mxu2 %v1630_v11  ;;  %1879 = vmatmul.bf16.vlgmr.msrb.gmra.mxu3 %v1630_v11  ;;  %v3884_v11 = vld [vmem:[%s5766_s1 + $0x6c] sm:$0xf] }
 0x381   :  { %2156 = vmatpush.bf16.msra.mxu0 %v3480_v49  ;;  %v3476_v14 = vor.u32 %v3884_v11, %v3473_v31  ;;  %2183 = vmatpush.bf16.msra.mxu2 %v3472_v9  ;;  %v3416_v49 = vor.u32 %v3873_v43, %v3415_v47  ;;  %v3663_v47 = vld [vmem:[%s5766_s1 + $0xf0] sm:$0xf0]  ;;  %v3669_v43 = vld [vmem:[%s5766_s1 + $0xe8] sm:$0xf] }
 0x382   :  { %2171 = vmatpush.bf16.msra.mxu1 %v3452_v22  ;;  %v3670_v50 = vor.u32 %v3934_v48, %v3669_v43  ;;  %v3581_v43 = vld [vmem:[%s5766_s1 + $0x40] sm:$0xf]  ;;  %v3913_v48 = vld [vmem:[%s5766_s1 + $0x4c] sm:$0xf0] }
 0x383   :  { %2196 = vmatpush.bf16.msra.mxu3 %v3476_v14 }
 0x385   :  { %2157 = vmatpush.bf16.msra.mxu0 %v3464_v2  ;;  %2184 = vmatpush.bf16.msra.mxu2 %v3456_v26 }
 0x386   :  { %2172 = vmatpush.bf16.msra.mxu1 %v3436_v38 }
 0x387   :  { %2197 = vmatpush.bf16.msra.mxu3 %v3460_v32 }
 0x389   :  { %2158 = vmatpush.bf16.msra.mxu0 %v3448_v19  ;;  %2185 = vmatpush.bf16.msra.mxu2 %v3440_v45  ;;  %v3931_v45 = vld [vmem:[%s5766_s1 + $0xe4] sm:$0xf] }
 0x38a   :  { %2173 = vmatpush.bf16.msra.mxu1 %v3420_v54  ;;  %v3645_v54 = vld [vmem:[%s5766_s1 + $0xc0] sm:$0xf] }
 0x38b   :  { %2198 = vmatpush.bf16.msra.mxu3 %v3444_v46 }
 0x38d   :  { %2159 = vmatpush.bf16.msra.mxu0 %v3432_v33 }
 0x38f   :  { %2199 = vmatpush.bf16.msra.mxu3 %v3428_v63 }
 0x391   :  { %2160 = vmatpush.bf16.msra.mxu0 %v3416_v49  ;;  %v3666_v49 = vor.u32 %v3931_v45, %v3663_v47 }
 0x393   :  { %2487 = vmatpush.bf16.msrb.mxu1 %v3666_v49  ;;  %v3911_v49 = vld [vmem:[%s5766_s1 + $0x44] sm:$0xf] }
 0x3fc   :  { %v1841_v7 = vpop.f32.mrf.mxu0  ;;  %v1854_v27 = vpop.f32.mrf.mxu1 }
 0x3fd   :  { %v1884_v6 = vadd.f32 %v1841_v7, %v1636_v58  ;;  %v1885_v12 = vadd.f32 %v1854_v27, %v1637_v59  ;;  %v3424_v59 = vor.u32 %v3874_v52, %v3423_v51  ;;  %v3932_v51 = vld [vmem:[%s5766_s1 + $0xec] sm:$0xf]  ;;  %v3671_v52 = vld [vmem:[%s5766_s1 + $0xf8] sm:$0xf0] }
 0x3ff   :  { %v3407_v17 = vmul.f32 -1.442695, %v1884_v6  ;;  %v3408_v18 = vmul.f32 -1.442695, %v1885_v12  ;;  %2186 = vmatpush.bf16.msra.mxu2 %v3424_v59  ;;  %v3647_v59 = vld [vmem:[%s5766_s1 + $0xd0] sm:$0xf0] }
 0x400   :  { %v3650_v63 = vor.u32 %v3927_v56, %v3647_v59  ;;  %v3589_v56 = vld [vmem:[%s5766_s1 + $0x48] sm:$0xf]  ;;  %v3912_v59 = vld [vmem:[%s5766_s1 + $0x4c] sm:$0xf] }
 0x401   :  { %4015 = vpow2.f32 %v3407_v17 }
 0x402   :  { %4017 = vpow2.f32 %v3408_v18  ;;  %2488 = vmatpush.bf16.msrb.mxu1 %v3650_v63  ;;  %v3565_v63 = vld [vmem:[%s5766_s1 + $0x20] sm:$0xf] }
 0x403   :  { %v1867_v57 = vpop.f32.mrf.mxu2  ;;  %v1880_v34 = vpop.f32.mrf.mxu3  ;;  %2500 = vmatpush.bf16.msrb.mxu2 %v3670_v50 }
 0x404   :  { %v1887_v42 = vadd.f32 %v1880_v34, %v1639_v21  ;;  %v1843_v44 = vpop.f32.mrf.mxu0  ;;  %v1856_v39 = vpop.f32.mrf.mxu1  ;;  %v1886_v8 = vadd.f32 %v1867_v57, %v1638_v4 }
 0x405   :  { %v3933_v39 = vld [vmem:[%s5766_s1 + $0xec] sm:$0xf0] }
 0x406   :  { %v3409_v53 = vmul.f32 -1.442695, %v1887_v42 }
 0x407   :  { %v4016_v58 = vpop.eup %4015 }
 0x408   :  { %v4018_v60 = vpop.eup %4017  ;;  %v1891_v62 = vadd.f32 1.0, %v4016_v58  ;;  %4019 = vpow2.f32 %v3409_v53  ;;  %v3674_v53 = vor.u32 %v3932_v51, %v3671_v52  ;;  %v3646_v58 = vor.u32 %v3929_v55, %v3645_v54 }
 0x409   :  { %v1910_v0 = vadd.f32 1.0, %v4018_v60  ;;  %v3653_v60 = vld [vmem:[%s5766_s1 + $0xc8] sm:$0xf]  ;;  %v3582_v52 = vor.u32 %v3913_v48, %v3581_v43 }
 0x40a   :  { %4021 = vrcp.f32 %v1891_v62  ;;  %v1903_v14 = vand.u32 2147483648, %v1891_v62  ;;  %v1901_v16 = vand.u32 2147483647, %v1891_v62  ;;  %vm1897_vm14 = vweird.f32 %v1891_v62  ;;  %2513 = vmatpush.bf16.msrb.mxu3 %v3674_v53  ;;  %v3583_v53 = vld [vmem:[%s5766_s1 + $0x50] sm:$0xf0] }
 0x40b   :  { %4023 = vrcp.f32 %v1910_v0  ;;  %v1869_v2 = vpop.f32.mrf.mxu2  ;;  %v1882_v3 = vpop.f32.mrf.mxu3  ;;  %v1922_v10 = vand.u32 2147483648, %v1910_v0  ;;  %v1920_v13 = vand.u32 2147483647, %v1910_v0  ;;  %vm1916_vm15 = vweird.f32 %v1910_v0 }
 0x40c   :  { %v1904_v20 = vor.u32 1.1754944e-38, %v1903_v14  ;;  %vm1902_vm2 = vcmp.eq.f32.partialorder %v1901_v16, 8.507059e+37  ;;  %v3928_v2 = vld [vmem:[%s5766_s1 + $0xcc] sm:$0xf]  ;;  %v3655_v3 = vld [vmem:[%s5766_s1 + $0xd8] sm:$0xf0]  ;;  %v3586_v55 = vor.u32 %v3911_v49, %v3583_v53 }
 0x40d   :  { %v1923_v23 = vor.u32 1.1754944e-38, %v1922_v10  ;;  %vm1921_vm3 = vcmp.eq.f32.partialorder %v1920_v13, 8.507059e+37  ;;  %v3658_v4 = vor.u32 %v3928_v2, %v3655_v3  ;;  %v3924_v14 = vld [vmem:[%s5766_s1 + $0xac] sm:$0xf]  ;;  %v3639_v10 = vld [vmem:[%s5766_s1 + $0xb8] sm:$0xf0] }
 0x40e   :  { %v4020_v5 = vpop.eup %4019  ;;  %v3642_v16 = vor.u32 %v3924_v14, %v3639_v10  ;;  %v3921_v13 = vld [vmem:[%s5766_s1 + $0x8c] sm:$0xf0] }
 0x40f   :  { %v1930_v7 = vadd.f32 1.0, %v4020_v5  ;;  %v3629_v5 = vld [vmem:[%s5766_s1 + $0xa0] sm:$0xf]  ;;  %2514 = vmatpush.bf16.msrb.mxu3 %v3658_v4  ;;  %v3907_v4 = vld [vmem:[%s5766_s1 + $0x24] sm:$0xf] }
 0x410   :  { %v4022_v27 = vpop.eup %4021 }
 0x411   :  { %v4024_v9 = vpop.eup %4023  ;;  %v1893_v11 = vmul.f32 %v4022_v27, %v1891_v62  ;;  %4025 = vrcp.f32 %v1930_v7  ;;  %vm1898_vm12 = vweird.f32 %v4022_v27  ;;  %v1942_v57 = vand.u32 2147483648, %v1930_v7  ;;  %v3930_v62 = vld [vmem:[%s5766_s1 + $0xd4] sm:$0xf0] }
 0x412   :  { %v1912_v31 = vmul.f32 %v4024_v9, %v1910_v0  ;;  %4027 = vtanh.f32 %v1886_v8  ;;  %vm1917_vm13 = vweird.f32 %v4024_v9  ;;  %vm1899_vm0 = vmor %vm1897_vm14, %vm1898_vm12  ;;  %vm1936_vm5 = vweird.f32 %v1930_v7 }
 0x413   :  { %v1894_v6 = vsub.f32 1.0, %v1893_v11  ;;  %vm1918_vm1 = vmor %vm1916_vm15, %vm1917_vm13  ;;  %v1940_v34 = vand.u32 2147483647, %v1930_v7  ;;  %v1943_v40 = vor.u32 1.1754944e-38, %v1942_v57  ;;  %v3654_v0 = vor.u32 %v3930_v62, %v3653_v60  ;;  %v3637_v11 = vld [vmem:[%s5766_s1 + $0xa8] sm:$0xf]  ;;  %2515 = vmatpush.bf16.msrb.mxu3 %v3642_v16 }
 0x414   :  { %v1913_v12 = vsub.f32 1.0, %v1912_v31  ;;  %v3926_v31 = vld [vmem:[%s5766_s1 + $0xb4] sm:$0xf0]  ;;  %v3599_v57 = vld [vmem:[%s5766_s1 + $0x70] sm:$0xf0] }
 0x415   :  { %v1895_v15 = vmul.f32 %v4022_v27, %v1894_v6  ;;  %vm1941_vm7 = vcmp.eq.f32.partialorder %v1940_v34, 8.507059e+37  ;;  %2501 = vmatpush.bf16.msrb.mxu2 %v3654_v0  ;;  %v3605_v34 = vld [vmem:[%s5766_s1 + $0x68] sm:$0xf]  ;;  %v3591_v62 = vld [vmem:[%s5766_s1 + $0x58] sm:$0xf0] }
 0x416   :  { %v1914_v17 = vmul.f32 %v4024_v9, %v1913_v12  ;;  %v3638_v12 = vor.u32 %v3926_v31, %v3637_v11  ;;  %v3909_v0 = vld [vmem:[%s5766_s1 + $0x2c] sm:$0xf0]  ;;  %v3594_v2 = vor.u32 %v3912_v59, %v3591_v62  ;;  %v3910_v11 = vld [vmem:[%s5766_s1 + $0x34] sm:$0xf0]  ;;  %v3908_v31 = vld [vmem:[%s5766_s1 + $0x2c] sm:$0xf] }
 0x417   :  { %v4026_v18 = vpop.eup %4025  ;;  %v1896_v19 = vadd.f32 %v4022_v27, %v1895_v15  ;;  %v3411_v15 = vld [vmem:[%s5768_s0 + $0x60] sm:$0xff]  ;;  %v3566_v3 = vor.u32 %v3909_v0, %v3565_v63 }
 0x418   :  { %v1915_v21 = vadd.f32 %v4024_v9, %v1914_v17  ;;  %v1932_v22 = vmul.f32 %v4026_v18, %v1930_v7  ;;  %v4028_v25 = vpop.eup %4027  ;;  %vm1937_vm4 = vweird.f32 %v4026_v18  ;;  %v3925_v7 = vld [vmem:[%s5766_s1 + $0xac] sm:$0xf0]  ;;  %v3613_v17 = vld [vmem:[%s5766_s1 + $0x80] sm:$0xf] }
 0x419   :  { %v1900_v24 = vsel %vm1899_vm0, %v4022_v27, %v1896_v19  ;;  %vm1938_vm6 = vmor %vm1936_vm5, %vm1937_vm4  ;;  %v3923_v27 = vld [vmem:[%s5766_s1 + $0xa4] sm:$0xf]  ;;  %v3630_v8 = vor.u32 %v3925_v7, %v3629_v5  ;;  %2502 = vmatpush.bf16.msrb.mxu2 %v3638_v12  ;;  %v3614_v19 = vor.u32 %v3921_v13, %v3613_v17  ;;  %v3567_v5 = vld [vmem:[%s5766_s1 + $0x30] sm:$0xf0] }
 0x41a   :  { %v1905_v26 = vsel %vm1902_vm2, %v1904_v20, %v1900_v24  ;;  %v1919_v28 = vsel %vm1918_vm1, %v4024_v9, %v1915_v21  ;;  %v1933_v29 = vsub.f32 1.0, %v1932_v22  ;;  %v3631_v9 = vld [vmem:[%s5766_s1 + $0xb0] sm:$0xf0]  ;;  %v3621_v21 = vld [vmem:[%s5766_s1 + $0x88] sm:$0xf] }
 0x41b   :  { %v1924_v30 = vsel %vm1921_vm3, %v1923_v23, %v1919_v28  ;;  %v1947_v32 = vmul.f32 %v4028_v25, %v1905_v26  ;;  %v3634_v6 = vor.u32 %v3923_v27, %v3631_v9  ;;  %v3615_v20 = vld [vmem:[%s5766_s1 + $0x90] sm:$0xf0]  ;;  %v3922_v22 = vld [vmem:[%s5766_s1 + $0x94] sm:$0xf0]  ;;  %v3920_v25 = vld [vmem:[%s5766_s1 + $0x8c] sm:$0xf]  ;;  %v1957_v28 = vunpack.c.l.bf16 %v3411_v15 }
 0x41c   :  { %v1946_v33 = vmul.f32 %v1924_v30, %v5329_v1  ;;  %v1934_v35 = vmul.f32 %v4026_v18, %v1933_v29  ;;  %v3661_v1 = vld [vmem:[%s5766_s1 + $0xe0] sm:$0xf]  ;;  %v3622_v24 = vor.u32 %v3922_v22, %v3621_v21  ;;  %v3623_v26 = vld [vmem:[%s5766_s1 + $0x98] sm:$0xf0]  ;;  %v1958_v29 = vunpack.c.h.bf16 %v3411_v15  ;;  %v3573_v7 = vld [vmem:[%s5766_s1 + $0x28] sm:$0xf] }
 0x41d   :  { %v3662_v46 = vor.u32 %v3933_v39, %v3661_v1  ;;  %2489 = vmatpush.bf16.msrb.mxu1 %v3634_v6  ;;  %v3626_v30 = vor.u32 %v3920_v25, %v3623_v26  ;;  %v3607_v1 = vld [vmem:[%s5766_s1 + $0x78] sm:$0xf0]  ;;  %v3570_v9 = vor.u32 %v3907_v4, %v3567_v5  ;;  %v3574_v15 = vor.u32 %v3910_v11, %v3573_v7  ;;  %v3549_v17 = vld [vmem:[%s5766_s1] sm:$0xf]  ;;  %v3905_v13 = vld [vmem:[%s5766_s1 + $0xc] sm:$0xf0] }
 0x41e   :  { %v5538_v36 = vadd.f32 %v1947_v32, %v1946_v33  ;;  %v1935_v37 = vadd.f32 %v4026_v18, %v1934_v35  ;;  %2503 = vmatpush.bf16.msrb.mxu2 %v3622_v24  ;;  %v3597_v32 = vld [vmem:[%s5766_s1 + $0x60] sm:$0xf]  ;;  %v3917_v33 = vld [vmem:[%s5766_s1 + $0x6c] sm:$0xf0]  ;;  %v3915_v35 = vld [vmem:[%s5766_s1 + $0x64] sm:$0xf] }
 0x41f   :  { %2474 = vmatpush.bf16.msrb.mxu0 %v3662_v46  ;;  %2516 = vmatpush.bf16.msrb.mxu3 %v3626_v30  ;;  %v5670_v46 = vld [vmem:[%s5768_s0 + $0x68] sm:$0xff]  ;;  %v3575_v6 = vld [vmem:[%s5766_s1 + $0x38] sm:$0xf0]  ;;  %v3906_v22 = vld [vmem:[%s5766_s1 + $0x14] sm:$0xf0] }
 0x420   :  { %4029 = vtanh.f32 %v5538_v36  ;;  %v1939_v38 = vsel %vm1938_vm6, %v4026_v18, %v1935_v37  ;;  %v3919_v18 = vld [vmem:[%s5766_s1 + $0x84] sm:$0xf]  ;;  %v3598_v37 = vor.u32 %v3917_v33, %v3597_v32  ;;  %v1960_v54 = vunpack.c.h.bf16 %v5670_v46  ;;  %v3557_v21 = vld [vmem:[%s5766_s1 + $0x8] sm:$0xf]  ;;  %v3904_v25 = vld [vmem:[%s5766_s1 + $0xc] sm:$0xf] }
 0x421   :  { %v1944_v41 = vsel %vm1941_vm7, %v1943_v40, %v1939_v38  ;;  %v3618_v23 = vor.u32 %v3919_v18, %v3615_v20  ;;  %v3918_v38 = vld [vmem:[%s5766_s1 + $0x74] sm:$0xf0]  ;;  %v3578_v16 = vor.u32 %v3908_v31, %v3575_v6  ;;  %v3903_v18 = vld [vmem:[%s5766_s1 + $0x4] sm:$0xf]  ;;  %v3551_v20 = vld [vmem:[%s5766_s1 + $0x10] sm:$0xf0] }
 0x422   :  { %v3554_v24 = vor.u32 %v3903_v18, %v3551_v20  ;;  %v3559_v26 = vld [vmem:[%s5766_s1 + $0x18] sm:$0xf0] }
 0x423   :  { %2475 = vmatpush.bf16.msrb.mxu0 %v3646_v58  ;;  %2490 = vmatpush.bf16.msrb.mxu1 %v3618_v23  ;;  %v3914_v58 = vld [vmem:[%s5766_s1 + $0x54] sm:$0xf0]  ;;  %v3562_v33 = vor.u32 %v3904_v25, %v3559_v26 }
 0x424   :  { %v3590_v60 = vor.u32 %v3914_v58, %v3589_v56 }
 0x426   :  { %v4030_v61 = vpop.eup %4029 }
 0x427   :  { %v1950_v42 = vmul.f32 %v4030_v61, %v1944_v41  ;;  %2476 = vmatpush.bf16.msrb.mxu0 %v3630_v8  ;;  %v3602_v41 = vor.u32 %v3915_v35, %v3599_v57 }
 0x429   :  { %v1951_v44 = vpack.c.bf16 %v1950_v42, %v1950_v42  ;;  %v3606_v42 = vor.u32 %v3918_v38, %v3605_v34  ;;  %2491 = vmatpush.bf16.msrb.mxu1 %v3602_v41  ;;  %v1959_v34 = vunpack.c.l.bf16 %v5670_v46 }
 0x42b   :  { %3410 = vst [vmem:[%s5770_s4 + $0x14] sm:$0xf] %v1951_v44  ;;  %2161 = vmatmul.bf16.vlgmr.msra.gmra.mxu0 %v1951_v44  ;;  %2174 = vmatmul.bf16.vlgmr.msra.gmra.mxu1 %v1951_v44 }
 0x42c   :  { %2187 = vmatmul.bf16.vlgmr.msra.gmra.mxu2 %v1951_v44  ;;  %2200 = vmatmul.bf16.vlgmr.msra.gmra.mxu3 %v1951_v44  ;;  %v3916_v44 = vld [vmem:[%s5766_s1 + $0x6c] sm:$0xf] }
 0x42d   :  { %2477 = vmatpush.bf16.msrb.mxu0 %v3614_v19  ;;  %v3610_v47 = vor.u32 %v3916_v44, %v3607_v1  ;;  %2504 = vmatpush.bf16.msrb.mxu2 %v3606_v42  ;;  %v3550_v19 = vor.u32 %v3905_v13, %v3549_v17 }
 0x42e   :  { %2492 = vmatpush.bf16.msrb.mxu1 %v3586_v55 }
 0x42f   :  { %2517 = vmatpush.bf16.msrb.mxu3 %v3610_v47 }
 0x431   :  { %2478 = vmatpush.bf16.msrb.mxu0 %v3598_v37  ;;  %2505 = vmatpush.bf16.msrb.mxu2 %v3590_v60 }
 0x432   :  { %2493 = vmatpush.bf16.msrb.mxu1 %v3570_v9 }
 0x433   :  { %2518 = vmatpush.bf16.msrb.mxu3 %v3594_v2 }
 0x435   :  { %2479 = vmatpush.bf16.msrb.mxu0 %v3582_v52  ;;  %2506 = vmatpush.bf16.msrb.mxu2 %v3574_v15 }
 0x436   :  { %2494 = vmatpush.bf16.msrb.mxu1 %v3554_v24 }
 0x437   :  { %2519 = vmatpush.bf16.msrb.mxu3 %v3578_v16 }
 0x439   :  { %2480 = vmatpush.bf16.msrb.mxu0 %v3566_v3 }
 0x43b   :  { %2520 = vmatpush.bf16.msrb.mxu3 %v3562_v33 }
 0x43d   :  { %2481 = vmatpush.bf16.msrb.mxu0 %v3550_v19  ;;  %v3546_v19 = vld [vmem:[%s5768_s0 + $0x78] sm:$0xff] }
 0x4a8   :  { %v2162_v40 = vpop.f32.mrf.mxu0  ;;  %v2175_v61 = vpop.f32.mrf.mxu1 }
 0x4a9   :  { %v2205_v39 = vadd.f32 %v2162_v40, %v1957_v28  ;;  %v2206_v45 = vadd.f32 %v2175_v61, %v1958_v29  ;;  %v3558_v29 = vor.u32 %v3906_v22, %v3557_v21  ;;  %v2281_v22 = vunpack.c.h.bf16 %v3546_v19 }
 0x4ab   :  { %v3541_v50 = vmul.f32 -1.442695, %v2205_v39  ;;  %v3542_v51 = vmul.f32 -1.442695, %v2206_v45  ;;  %2507 = vmatpush.bf16.msrb.mxu2 %v3558_v29 }
 0x4ad   :  { %4031 = vpow2.f32 %v3541_v50 }
 0x4ae   :  { %4033 = vpow2.f32 %v3542_v51 }
 0x4af   :  { %v2188_v27 = vpop.f32.mrf.mxu2  ;;  %v2201_v8 = vpop.f32.mrf.mxu3 }
 0x4b0   :  { %v2208_v12 = vadd.f32 %v2201_v8, %v1960_v54  ;;  %v2164_v14 = vpop.f32.mrf.mxu0  ;;  %v2177_v10 = vpop.f32.mrf.mxu1  ;;  %v2207_v41 = vadd.f32 %v2188_v27, %v1959_v34  ;;  %v2280_v34 = vunpack.c.l.bf16 %v3546_v19 }
 0x4b2   :  { %v3543_v23 = vmul.f32 -1.442695, %v2208_v12 }
 0x4b3   :  { %v4032_v28 = vpop.eup %4031 }
 0x4b4   :  { %v4034_v30 = vpop.eup %4033  ;;  %v2212_v32 = vadd.f32 1.0, %v4032_v28  ;;  %4035 = vpow2.f32 %v3543_v23 }
 0x4b5   :  { %v2231_v35 = vadd.f32 1.0, %v4034_v30 }
 0x4b6   :  { %4037 = vrcp.f32 %v2212_v32  ;;  %v2224_v47 = vand.u32 2147483648, %v2212_v32  ;;  %v2222_v49 = vand.u32 2147483647, %v2212_v32  ;;  %vm2218_vm10 = vweird.f32 %v2212_v32 }
 0x4b7   :  { %4039 = vrcp.f32 %v2231_v35  ;;  %v2190_v37 = vpop.f32.mrf.mxu2  ;;  %v2203_v57 = vpop.f32.mrf.mxu3  ;;  %v2243_v43 = vand.u32 2147483648, %v2231_v35  ;;  %v2241_v46 = vand.u32 2147483647, %v2231_v35  ;;  %vm2237_vm11 = vweird.f32 %v2231_v35 }
 0x4b8   :  { %v2225_v53 = vor.u32 1.1754944e-38, %v2224_v47  ;;  %vm2223_vm14 = vcmp.eq.f32.partialorder %v2222_v49, 8.507059e+37 }
 0x4b9   :  { %v2244_v56 = vor.u32 1.1754944e-38, %v2243_v43  ;;  %vm2242_vm15 = vcmp.eq.f32.partialorder %v2241_v46, 8.507059e+37 }
 0x4ba   :  { %v4036_v38 = vpop.eup %4035 }
 0x4bb   :  { %v2251_v40 = vadd.f32 1.0, %v4036_v38 }
 0x4bc   :  { %v4038_v61 = vpop.eup %4037 }
 0x4bd   :  { %v4040_v42 = vpop.eup %4039  ;;  %v2214_v44 = vmul.f32 %v4038_v61, %v2212_v32  ;;  %4041 = vrcp.f32 %v2251_v40  ;;  %vm2219_vm8 = vweird.f32 %v4038_v61  ;;  %v2263_v27 = vand.u32 2147483648, %v2251_v40 }
 0x4be   :  { %v2233_v1 = vmul.f32 %v4040_v42, %v2231_v35  ;;  %4043 = vtanh.f32 %v2207_v41  ;;  %vm2238_vm9 = vweird.f32 %v4040_v42  ;;  %vm2220_vm12 = vmor %vm2218_vm10, %vm2219_vm8  ;;  %vm2257_vm1 = vweird.f32 %v2251_v40 }
 0x4bf   :  { %v2215_v39 = vsub.f32 1.0, %v2214_v44  ;;  %vm2239_vm13 = vmor %vm2237_vm11, %vm2238_vm9  ;;  %v2261_v8 = vand.u32 2147483647, %v2251_v40  ;;  %v2264_v11 = vor.u32 1.1754944e-38, %v2263_v27 }
 0x4c0   :  { %v2234_v45 = vsub.f32 1.0, %v2233_v1 }
 0x4c1   :  { %v2216_v48 = vmul.f32 %v4038_v61, %v2215_v39  ;;  %vm2262_vm3 = vcmp.eq.f32.partialorder %v2261_v8, 8.507059e+37 }
 0x4c2   :  { %v2235_v50 = vmul.f32 %v4040_v42, %v2234_v45 }
 0x4c3   :  { %v4042_v51 = vpop.eup %4041  ;;  %v2217_v52 = vadd.f32 %v4038_v61, %v2216_v48 }
 0x4c4   :  { %v2236_v54 = vadd.f32 %v4040_v42, %v2235_v50  ;;  %v2253_v55 = vmul.f32 %v4042_v51, %v2251_v40  ;;  %v4044_v59 = vpop.eup %4043  ;;  %vm2258_vm0 = vweird.f32 %v4042_v51 }
 0x4c5   :  { %v2221_v58 = vsel %vm2220_vm12, %v4038_v61, %v2217_v52  ;;  %vm2259_vm2 = vmor %vm2257_vm1, %vm2258_vm0 }
 0x4c6   :  { %v2226_v60 = vsel %vm2223_vm14, %v2225_v53, %v2221_v58  ;;  %v2240_v62 = vsel %vm2239_vm13, %v4040_v42, %v2236_v54  ;;  %v2254_v63 = vsub.f32 1.0, %v2253_v55 }
 0x4c7   :  { %v2245_v0 = vsel %vm2242_vm15, %v2244_v56, %v2240_v62  ;;  %v2268_v2 = vmul.f32 %v4044_v59, %v2226_v60 }
 0x4c8   :  { %v2267_v3 = vmul.f32 %v2245_v0, %v5538_v36  ;;  %v2255_v4 = vmul.f32 %v4042_v51, %v2254_v63  ;;  %v3545_v36 = vld [vmem:[%s5768_s0 + $0x70] sm:$0xff] }
 0x4c9   :  { %v2278_v10 = vunpack.c.l.bf16 %v3545_v36  ;;  %v2279_v15 = vunpack.c.h.bf16 %v3545_v36 }
 0x4ca   :  { %v5747_v5 = vadd.f32 %v2268_v2, %v2267_v3  ;;  %v2256_v7 = vadd.f32 %v4042_v51, %v2255_v4 }
 0x4cc   :  { %4045 = vtanh.f32 %v5747_v5  ;;  %v2260_v9 = vsel %vm2259_vm2, %v4042_v51, %v2256_v7 }
 0x4cd   :  { %v2265_v6 = vsel %vm2262_vm3, %v2264_v11, %v2260_v9 }
 0x4d2   :  { %v4046_v31 = vpop.eup %4045 }
 0x4d3   :  { %v2271_v12 = vmul.f32 %v4046_v31, %v2265_v6 }
 0x4d5   :  { %v2272_v14 = vpack.c.bf16 %v2271_v12, %v2271_v12 }
 0x4d7   :  { %3544 = vst [vmem:[%s5770_s4 + $0x18] sm:$0xf] %v2272_v14  ;;  %2482 = vmatmul.bf16.vlgmr.msrb.gmra.mxu0 %v2272_v14  ;;  %2495 = vmatmul.bf16.vlgmr.msrb.gmra.mxu1 %v2272_v14 }
 0x4d8   :  { %2508 = vmatmul.bf16.vlgmr.msrb.gmra.mxu2 %v2272_v14  ;;  %2521 = vmatmul.bf16.vlgmr.msrb.gmra.mxu3 %v2272_v14 }
 0x554   :  { %v2483_v16 = vpop.f32.mrf.mxu0  ;;  %v2496_v17 = vpop.f32.mrf.mxu1 }
 0x555   :  { %v2526_v13 = vadd.f32 %v2483_v16, %v2278_v10  ;;  %v2527_v18 = vadd.f32 %v2496_v17, %v2279_v15 }
 0x557   :  { %v3675_v20 = vmul.f32 -1.442695, %v2526_v13  ;;  %v3676_v21 = vmul.f32 -1.442695, %v2527_v18 }
 0x559   :  { %4047 = vpow2.f32 %v3675_v20 }
 0x55a   :  { %4049 = vpow2.f32 %v3676_v21 }
 0x55b   :  { %v2509_v23 = vpop.f32.mrf.mxu2  ;;  %v2522_v24 = vpop.f32.mrf.mxu3 }
 0x55c   :  { %v2529_v25 = vadd.f32 %v2522_v24, %v2281_v22  ;;  %v2485_v26 = vpop.f32.mrf.mxu0  ;;  %v2498_v28 = vpop.f32.mrf.mxu1  ;;  %v2528_v41 = vadd.f32 %v2509_v23, %v2280_v34 }
 0x55e   :  { %v3677_v29 = vmul.f32 -1.442695, %v2529_v25 }
 0x55f   :  { %v4048_v30 = vpop.eup %4047 }
 0x560   :  { %v4050_v32 = vpop.eup %4049  ;;  %v2533_v33 = vadd.f32 1.0, %v4048_v30  ;;  %4051 = vpow2.f32 %v3677_v29 }
 0x561   :  { %v2552_v35 = vadd.f32 1.0, %v4050_v32 }
 0x562   :  { %4053 = vrcp.f32 %v2533_v33  ;;  %v2545_v47 = vand.u32 2147483648, %v2533_v33  ;;  %v2543_v49 = vand.u32 2147483647, %v2533_v33  ;;  %vm2539_vm6 = vweird.f32 %v2533_v33 }
 0x563   :  { %4055 = vrcp.f32 %v2552_v35  ;;  %v2511_v37 = vpop.f32.mrf.mxu2  ;;  %v2524_v57 = vpop.f32.mrf.mxu3  ;;  %v2564_v43 = vand.u32 2147483648, %v2552_v35  ;;  %v2562_v46 = vand.u32 2147483647, %v2552_v35  ;;  %vm2558_vm7 = vweird.f32 %v2552_v35 }
 0x564   :  { %v2546_v53 = vor.u32 1.1754944e-38, %v2545_v47  ;;  %vm2544_vm10 = vcmp.eq.f32.partialorder %v2543_v49, 8.507059e+37 }
 0x565   :  { %v2565_v56 = vor.u32 1.1754944e-38, %v2564_v43  ;;  %vm2563_vm11 = vcmp.eq.f32.partialorder %v2562_v46, 8.507059e+37 }
 0x566   :  { %v4052_v38 = vpop.eup %4051 }
 0x567   :  { %v2572_v40 = vadd.f32 1.0, %v4052_v38 }
 0x568   :  { %v4054_v61 = vpop.eup %4053 }
 0x569   :  { %v4056_v42 = vpop.eup %4055  ;;  %v2535_v44 = vmul.f32 %v4054_v61, %v2533_v33  ;;  %4057 = vrcp.f32 %v2572_v40  ;;  %vm2540_vm4 = vweird.f32 %v4054_v61  ;;  %v2584_v8 = vand.u32 2147483648, %v2572_v40 }
 0x56a   :  { %v2554_v1 = vmul.f32 %v4056_v42, %v2552_v35  ;;  %4059 = vtanh.f32 %v2528_v41  ;;  %vm2559_vm5 = vweird.f32 %v4056_v42  ;;  %vm2541_vm8 = vmor %vm2539_vm6, %vm2540_vm4  ;;  %vm2578_vm13 = vweird.f32 %v2572_v40 }
 0x56b   :  { %v2536_v39 = vsub.f32 1.0, %v2535_v44  ;;  %vm2560_vm9 = vmor %vm2558_vm7, %vm2559_vm5  ;;  %v2582_v9 = vand.u32 2147483647, %v2572_v40  ;;  %v2585_v31 = vor.u32 1.1754944e-38, %v2584_v8 }
 0x56c   :  { %v2555_v45 = vsub.f32 1.0, %v2554_v1 }
 0x56d   :  { %v2537_v48 = vmul.f32 %v4054_v61, %v2536_v39  ;;  %vm2583_vm15 = vcmp.eq.f32.partialorder %v2582_v9, 8.507059e+37 }
 0x56e   :  { %v2556_v50 = vmul.f32 %v4056_v42, %v2555_v45 }
 0x56f   :  { %v4058_v51 = vpop.eup %4057  ;;  %v2538_v52 = vadd.f32 %v4054_v61, %v2537_v48 }
 0x570   :  { %v2557_v54 = vadd.f32 %v4056_v42, %v2556_v50  ;;  %v2574_v55 = vmul.f32 %v4058_v51, %v2572_v40  ;;  %v4060_v59 = vpop.eup %4059  ;;  %vm2579_vm12 = vweird.f32 %v4058_v51 }
 0x571   :  { %v2542_v58 = vsel %vm2541_vm8, %v4054_v61, %v2538_v52  ;;  %vm2580_vm14 = vmor %vm2578_vm13, %vm2579_vm12 }
 0x572   :  { %v2547_v60 = vsel %vm2544_vm10, %v2546_v53, %v2542_v58  ;;  %v2561_v62 = vsel %vm2560_vm9, %v4056_v42, %v2557_v54  ;;  %v2575_v63 = vsub.f32 1.0, %v2574_v55 }
 0x573   :  { %v2566_v0 = vsel %vm2563_vm11, %v2565_v56, %v2561_v62  ;;  %v2589_v2 = vmul.f32 %v4060_v59, %v2547_v60 }
 0x574   :  { %v2588_v3 = vmul.f32 %v2566_v0, %v5747_v5  ;;  %v2576_v4 = vmul.f32 %v4058_v51, %v2575_v63 }
 0x576   :  { %v2590_v7 = vadd.f32 %v2589_v2, %v2588_v3  ;;  %v2577_v27 = vadd.f32 %v4058_v51, %v2576_v4 }
 0x578   :  { %4061 = vtanh.f32 %v2590_v7  ;;  %v2581_v11 = vsel %vm2580_vm14, %v4058_v51, %v2577_v27 }
 0x579   :  { %v2586_v12 = vsel %vm2583_vm15, %v2585_v31, %v2581_v11 }
 0x57e   :  { %v4062_v6 = vpop.eup %4061 }
 0x57f   :  { %v2592_v14 = vmul.f32 %v4062_v6, %v2586_v12 }
 0x581   :  { %v2593_v36 = vpack.c.bf16 %v2592_v14, %v2592_v14  ;;  %2601 = vst [vmem:[%s5771_s5] sm:$0xff] %v2592_v14 }
 0x583   :  { %3678 = vst [vmem:[%s5770_s4 + $0x1c] sm:$0xf] %v2593_v36 }

// kernel: rnn_forward.18
= control target key start
LH: loop header
LB: loop body
LE: loop exit
PB: predicated region body
PF: predicated region fallthrough
CT: control target
= control target key end

     0   :  { %s4383_s0 = inlined_call_operand.vmem [shape: bf16[6,8,512], index: 0, kind: input, shape index: {}]   ;;  %s4384_s1 = inlined_call_operand.vmem [shape: bf16[128,512], index: 1, kind: input, shape index: {}]   ;;  %s4385_s2 = inlined_call_operand.vmem [shape: f32[8,128], index: 2, kind: input, shape index: {}, may-alias: {2,3}]   ;;  %s4386_s3 = inlined_call_operand.vmem [shape: f32[8,128], index: 3, kind: input, shape index: {}, may-alias: {2,3}]   ;;  %s4387_s4 = inlined_call_operand.vmem [shape: bf16[6,8,128], index: 4, kind: output, shape index: {0}]   ;;  %s4388_s5 = inlined_call_operand.hbm [shape: f32[8,128], index: 5, kind: output, shape index: {1}]  }
   0x1   :  { %v2095_v0 = vld [vmem:[%s4384_s1 + $0xe0] sm:$0xf]  ;;  %v2812_v1 = vld [vmem:[%s4384_s1 + $0xec] sm:$0xf0]  ;;  %v2810_v2 = vld [vmem:[%s4384_s1 + $0xe4] sm:$0xf] }
   0x2   :  { %v2096_v3 = vor.u32 %v2812_v1, %v2095_v0  ;;  %v2097_v4 = vld [vmem:[%s4384_s1 + $0xf0] sm:$0xf0]  ;;  %v2811_v5 = vld [vmem:[%s4384_s1 + $0xec] sm:$0xf]  ;;  %v2105_v6 = vld [vmem:[%s4384_s1 + $0xf8] sm:$0xf0] }
   0x3   :  { %v2100_v7 = vor.u32 %v2810_v2, %v2097_v4  ;;  %v2108_v8 = vor.u32 %v2811_v5, %v2105_v6  ;;  %v2079_v9 = vld [vmem:[%s4384_s1 + $0xc0] sm:$0xf]  ;;  %v2808_v10 = vld [vmem:[%s4384_s1 + $0xcc] sm:$0xf0]  ;;  %v2806_v11 = vld [vmem:[%s4384_s1 + $0xc4] sm:$0xf] }
   0x4   :  { %229 = vmatpush.bf16.msra.mxu0 %v2096_v3  ;;  %v2080_v12 = vor.u32 %v2808_v10, %v2079_v9  ;;  %v2081_v13 = vld [vmem:[%s4384_s1 + $0xd0] sm:$0xf0]  ;;  %v2807_v14 = vld [vmem:[%s4384_s1 + $0xcc] sm:$0xf]  ;;  %v2089_v15 = vld [vmem:[%s4384_s1 + $0xd8] sm:$0xf0] }
   0x5   :  { %242 = vmatpush.bf16.msra.mxu1 %v2100_v7  ;;  %268 = vmatpush.bf16.msra.mxu3 %v2108_v8  ;;  %v2084_v16 = vor.u32 %v2806_v11, %v2081_v13  ;;  %v2092_v17 = vor.u32 %v2807_v14, %v2089_v15  ;;  %v2103_v18 = vld [vmem:[%s4384_s1 + $0xe8] sm:$0xf]  ;;  %v2813_v19 = vld [vmem:[%s4384_s1 + $0xf4] sm:$0xf0]  ;;  %v2063_v20 = vld [vmem:[%s4384_s1 + $0xa0] sm:$0xf] }
   0x6   :  { %v2104_v21 = vor.u32 %v2813_v19, %v2103_v18  ;;  %v2804_v22 = vld [vmem:[%s4384_s1 + $0xac] sm:$0xf0]  ;;  %v2802_v23 = vld [vmem:[%s4384_s1 + $0xa4] sm:$0xf]  ;;  %v2065_v24 = vld [vmem:[%s4384_s1 + $0xb0] sm:$0xf0] }
   0x7   :  { %v2803_v25 = vld [vmem:[%s4384_s1 + $0xac] sm:$0xf]  ;;  %v2073_v26 = vld [vmem:[%s4384_s1 + $0xb8] sm:$0xf0]  ;;  %v2087_v27 = vld [vmem:[%s4384_s1 + $0xc8] sm:$0xf]  ;;  %v2064_v28 = vor.u32 %v2804_v22, %v2063_v20  ;;  %v2068_v32 = vor.u32 %v2802_v23, %v2065_v24 }
   0x8   :  { %230 = vmatpush.bf16.msra.mxu0 %v2080_v12  ;;  %255 = vmatpush.bf16.msra.mxu2 %v2104_v21  ;;  %v2809_v29 = vld [vmem:[%s4384_s1 + $0xd4] sm:$0xf0]  ;;  %v2047_v30 = vld [vmem:[%s4384_s1 + $0x80] sm:$0xf]  ;;  %v2800_v31 = vld [vmem:[%s4384_s1 + $0x8c] sm:$0xf0]  ;;  %v2076_v33 = vor.u32 %v2803_v25, %v2073_v26 }
   0x9   :  { %243 = vmatpush.bf16.msra.mxu1 %v2084_v16  ;;  %269 = vmatpush.bf16.msra.mxu3 %v2092_v17  ;;  %v2088_v34 = vor.u32 %v2809_v29, %v2087_v27  ;;  %v2798_v35 = vld [vmem:[%s4384_s1 + $0x84] sm:$0xf]  ;;  %v2049_v36 = vld [vmem:[%s4384_s1 + $0x90] sm:$0xf0]  ;;  %v2799_v37 = vld [vmem:[%s4384_s1 + $0x8c] sm:$0xf]  ;;  %v2048_v41 = vor.u32 %v2800_v31, %v2047_v30 }
   0xa   :  { %v2057_v38 = vld [vmem:[%s4384_s1 + $0x98] sm:$0xf0]  ;;  %v2071_v39 = vld [vmem:[%s4384_s1 + $0xa8] sm:$0xf]  ;;  %v2805_v40 = vld [vmem:[%s4384_s1 + $0xb4] sm:$0xf0]  ;;  %v2052_v45 = vor.u32 %v2798_v35, %v2049_v36 }
   0xb   :  { %v2072_v42 = vor.u32 %v2805_v40, %v2071_v39  ;;  %v2031_v43 = vld [vmem:[%s4384_s1 + $0x60] sm:$0xf]  ;;  %v2796_v44 = vld [vmem:[%s4384_s1 + $0x6c] sm:$0xf0]  ;;  %v2060_v46 = vor.u32 %v2799_v37, %v2057_v38  ;;  %v2794_v47 = vld [vmem:[%s4384_s1 + $0x64] sm:$0xf] }
   0xc   :  { %231 = vmatpush.bf16.msra.mxu0 %v2064_v28  ;;  %256 = vmatpush.bf16.msra.mxu2 %v2088_v34  ;;  %v2055_v48 = vld [vmem:[%s4384_s1 + $0x88] sm:$0xf]  ;;  %v2801_v49 = vld [vmem:[%s4384_s1 + $0x94] sm:$0xf0]  ;;  %v2033_v50 = vld [vmem:[%s4384_s1 + $0x70] sm:$0xf0]  ;;  %v2032_v53 = vor.u32 %v2796_v44, %v2031_v43 }
   0xd   :  { %244 = vmatpush.bf16.msra.mxu1 %v2068_v32  ;;  %270 = vmatpush.bf16.msra.mxu3 %v2076_v33  ;;  %v2795_v51 = vld [vmem:[%s4384_s1 + $0x6c] sm:$0xf]  ;;  %v2041_v52 = vld [vmem:[%s4384_s1 + $0x78] sm:$0xf0]  ;;  %v2056_v54 = vor.u32 %v2801_v49, %v2055_v48  ;;  %v2015_v55 = vld [vmem:[%s4384_s1 + $0x40] sm:$0xf]  ;;  %v2036_v57 = vor.u32 %v2794_v47, %v2033_v50 }
   0xe   :  { %v2792_v56 = vld [vmem:[%s4384_s1 + $0x4c] sm:$0xf0]  ;;  %v2044_v58 = vor.u32 %v2795_v51, %v2041_v52  ;;  %v2790_v59 = vld [vmem:[%s4384_s1 + $0x44] sm:$0xf]  ;;  %v2039_v60 = vld [vmem:[%s4384_s1 + $0x68] sm:$0xf] }
   0xf   :  { %v2797_v61 = vld [vmem:[%s4384_s1 + $0x74] sm:$0xf0]  ;;  %v2017_v62 = vld [vmem:[%s4384_s1 + $0x50] sm:$0xf0]  ;;  %v2791_v63 = vld [vmem:[%s4384_s1 + $0x4c] sm:$0xf]  ;;  %v2016_v1 = vor.u32 %v2792_v56, %v2015_v55 }
  0x10   :  { %232 = vmatpush.bf16.msra.mxu0 %v2048_v41  ;;  %257 = vmatpush.bf16.msra.mxu2 %v2072_v42  ;;  %v2025_v0 = vld [vmem:[%s4384_s1 + $0x58] sm:$0xf0]  ;;  %v2040_v2 = vor.u32 %v2797_v61, %v2039_v60  ;;  %v1999_v3 = vld [vmem:[%s4384_s1 + $0x20] sm:$0xf]  ;;  %v2788_v4 = vld [vmem:[%s4384_s1 + $0x2c] sm:$0xf0]  ;;  %v2020_v5 = vor.u32 %v2790_v59, %v2017_v62 }
  0x11   :  { %245 = vmatpush.bf16.msra.mxu1 %v2052_v45  ;;  %271 = vmatpush.bf16.msra.mxu3 %v2060_v46  ;;  %v2028_v6 = vor.u32 %v2791_v63, %v2025_v0  ;;  %v2786_v7 = vld [vmem:[%s4384_s1 + $0x24] sm:$0xf]  ;;  %v2023_v8 = vld [vmem:[%s4384_s1 + $0x48] sm:$0xf]  ;;  %v2793_v9 = vld [vmem:[%s4384_s1 + $0x54] sm:$0xf0] }
  0x12   :  { %v2001_v10 = vld [vmem:[%s4384_s1 + $0x30] sm:$0xf0]  ;;  %v2787_v11 = vld [vmem:[%s4384_s1 + $0x2c] sm:$0xf]  ;;  %v2009_v12 = vld [vmem:[%s4384_s1 + $0x38] sm:$0xf0] }
  0x14   :  { %233 = vmatpush.bf16.msra.mxu0 %v2032_v53  ;;  %258 = vmatpush.bf16.msra.mxu2 %v2056_v54 }
  0x15   :  { %246 = vmatpush.bf16.msra.mxu1 %v2036_v57  ;;  %272 = vmatpush.bf16.msra.mxu3 %v2044_v58 }
  0x16   :  { %11 = vsyncpa [#allocation5], 0  ;;  %v2000_v13 = vor.u32 %v2788_v4, %v1999_v3  ;;  %v2024_v14 = vor.u32 %v2793_v9, %v2023_v8  ;;  %v1983_v15 = vld [vmem:[%s4384_s1] sm:$0xf]  ;;  %v2784_v16 = vld [vmem:[%s4384_s1 + $0xc] sm:$0xf0]  ;;  %v2004_v17 = vor.u32 %v2786_v7, %v2001_v10  ;;  %v2012_v18 = vor.u32 %v2787_v11, %v2009_v12 }
  0x17   :  { %v2782_v19 = vld [vmem:[%s4384_s1 + $0x4] sm:$0xf]  ;;  %v2007_v20 = vld [vmem:[%s4384_s1 + $0x28] sm:$0xf]  ;;  %v2789_v21 = vld [vmem:[%s4384_s1 + $0x34] sm:$0xf0]  ;;  %v1984_v25 = vor.u32 %v2784_v16, %v1983_v15 }
  0x18   :  { %234 = vmatpush.bf16.msra.mxu0 %v2016_v1  ;;  %259 = vmatpush.bf16.msra.mxu2 %v2040_v2  ;;  %v1985_v22 = vld [vmem:[%s4384_s1 + $0x10] sm:$0xf0]  ;;  %v2783_v23 = vld [vmem:[%s4384_s1 + $0xc] sm:$0xf]  ;;  %v1993_v24 = vld [vmem:[%s4384_s1 + $0x18] sm:$0xf0]  ;;  %v2008_v27 = vor.u32 %v2789_v21, %v2007_v20 }
  0x19   :  { %247 = vmatpush.bf16.msra.mxu1 %v2020_v5  ;;  %273 = vmatpush.bf16.msra.mxu3 %v2028_v6  ;;  %v24_v26 = vld [vmem:[%s4385_s2] sm:$0xff]  ;;  %v1988_v28 = vor.u32 %v2782_v19, %v1985_v22  ;;  %v1996_v29 = vor.u32 %v2783_v23, %v1993_v24  ;;  %v1991_v30 = vld [vmem:[%s4384_s1 + $0x8] sm:$0xf]  ;;  %v2785_v31 = vld [vmem:[%s4384_s1 + $0x14] sm:$0xf0]  ;;  %s1970_s29 = sshll.u32 %s4388_s5, 4  ;;  %s1971_s29 = int_to_ptr.hbm [resolvable:$true] %s1970_s29 }
  0x1a   :  { %v36_v32 = vpack.c.bf16 %v24_v26, %v24_v26  ;;  %v1992_v33 = vor.u32 %v2785_v31, %v1991_v30  ;;  %v2228_v34 = vld [vmem:[%s4384_s1 + $0xe0] sm:$0xf]  ;;  %v2844_v35 = vld [vmem:[%s4384_s1 + $0xec] sm:$0xf0]  ;;  %v2842_v36 = vld [vmem:[%s4384_s1 + $0xe4] sm:$0xf] }
  0x1b   :  { %v2229_v37 = vor.u32 %v2844_v35, %v2228_v34  ;;  %v2230_v38 = vld [vmem:[%s4384_s1 + $0xf0] sm:$0xf0]  ;;  %v2236_v39 = vld [vmem:[%s4384_s1 + $0xe8] sm:$0xf]  ;;  %v2845_v40 = vld [vmem:[%s4384_s1 + $0xf4] sm:$0xf0] }
  0x1c   :  { %235 = vmatpush.bf16.msra.mxu0 %v2000_v13  ;;  %260 = vmatpush.bf16.msra.mxu2 %v2024_v14  ;;  %v2233_v41 = vor.u32 %v2842_v36, %v2230_v38  ;;  %v2237_v42 = vor.u32 %v2845_v40, %v2236_v39  ;;  %v2843_v43 = vld [vmem:[%s4384_s1 + $0xec] sm:$0xf]  ;;  %v2238_v44 = vld [vmem:[%s4384_s1 + $0xf8] sm:$0xf0]  ;;  %v2212_v46 = vld [vmem:[%s4384_s1 + $0xc0] sm:$0xf] }
  0x1d   :  { %248 = vmatpush.bf16.msra.mxu1 %v2004_v17  ;;  %274 = vmatpush.bf16.msra.mxu3 %v2012_v18  ;;  %v2241_v45 = vor.u32 %v2843_v43, %v2238_v44  ;;  %v2840_v47 = vld [vmem:[%s4384_s1 + $0xcc] sm:$0xf0]  ;;  %v2838_v48 = vld [vmem:[%s4384_s1 + $0xc4] sm:$0xf]  ;;  %v2214_v50 = vld [vmem:[%s4384_s1 + $0xd0] sm:$0xf0] }
  0x1e   :  { %v2213_v49 = vor.u32 %v2840_v47, %v2212_v46  ;;  %v2220_v51 = vld [vmem:[%s4384_s1 + $0xc8] sm:$0xf]  ;;  %v2841_v52 = vld [vmem:[%s4384_s1 + $0xd4] sm:$0xf0]  ;;  %v2217_v53 = vor.u32 %v2838_v48, %v2214_v50  ;;  %v2839_v55 = vld [vmem:[%s4384_s1 + $0xcc] sm:$0xf] }
  0x1f   :  { %v2221_v54 = vor.u32 %v2841_v52, %v2220_v51  ;;  %v2222_v56 = vld [vmem:[%s4384_s1 + $0xd8] sm:$0xf0]  ;;  %v2196_v58 = vld [vmem:[%s4384_s1 + $0xa0] sm:$0xf]  ;;  %v2836_v59 = vld [vmem:[%s4384_s1 + $0xac] sm:$0xf0] }
  0x20   :  { %236 = vmatpush.bf16.msra.mxu0 %v1984_v25  ;;  %261 = vmatpush.bf16.msra.mxu2 %v2008_v27  ;;  %v2225_v57 = vor.u32 %v2839_v55, %v2222_v56  ;;  %v2834_v60 = vld [vmem:[%s4384_s1 + $0xa4] sm:$0xf]  ;;  %v2197_v61 = vor.u32 %v2836_v59, %v2196_v58  ;;  %v2198_v62 = vld [vmem:[%s4384_s1 + $0xb0] sm:$0xf0]  ;;  %v2204_v63 = vld [vmem:[%s4384_s1 + $0xa8] sm:$0xf] }
  0x21   :  { %249 = vmatpush.bf16.msra.mxu1 %v1988_v28  ;;  %275 = vmatpush.bf16.msra.mxu3 %v1996_v29  ;;  %v2837_v0 = vld [vmem:[%s4384_s1 + $0xb4] sm:$0xf0]  ;;  %v2201_v1 = vor.u32 %v2834_v60, %v2198_v62  ;;  %v2835_v3 = vld [vmem:[%s4384_s1 + $0xac] sm:$0xf]  ;;  %v2206_v4 = vld [vmem:[%s4384_s1 + $0xb8] sm:$0xf0] }
  0x22   :  { %v2205_v2 = vor.u32 %v2837_v0, %v2204_v63  ;;  %v30_v5 = vld [vmem:[%s4383_s0] sm:$0xff]  ;;  %v2209_v6 = vor.u32 %v2835_v3, %v2206_v4  ;;  %v2832_v8 = vld [vmem:[%s4384_s1 + $0x8c] sm:$0xf0]  ;;  %v2182_v11 = vld [vmem:[%s4384_s1 + $0x90] sm:$0xf0] }
  0x23   :  { %237 = vmatmul.bf16.vlgmr.msra.gmra.mxu0 %v36_v32  ;;  %v2180_v7 = vld [vmem:[%s4384_s1 + $0x80] sm:$0xf]  ;;  %v2830_v9 = vld [vmem:[%s4384_s1 + $0x84] sm:$0xf]  ;;  %v2188_v12 = vld [vmem:[%s4384_s1 + $0x88] sm:$0xf]  ;;  %v32_v18 = vunpack.c.l.bf16 %v30_v5  ;;  %v33_v20 = vunpack.c.h.bf16 %v30_v5 }
  0x24   :  { %250 = vmatmul.bf16.vlgmr.msra.gmra.mxu1 %v36_v32  ;;  %276 = vmatmul.bf16.vlgmr.msra.gmra.mxu3 %v36_v32  ;;  %v2181_v10 = vor.u32 %v2832_v8, %v2180_v7  ;;  %v2833_v13 = vld [vmem:[%s4384_s1 + $0x94] sm:$0xf0]  ;;  %v2185_v14 = vor.u32 %v2830_v9, %v2182_v11  ;;  %v2831_v16 = vld [vmem:[%s4384_s1 + $0x8c] sm:$0xf]  ;;  %v2190_v17 = vld [vmem:[%s4384_s1 + $0x98] sm:$0xf0] }
  0x25   :  { %262 = vmatpush.bf16.msra.mxu2 %v1992_v33  ;;  %549 = vmatpush.bf16.msrb.mxu0 %v2229_v37  ;;  %v2189_v15 = vor.u32 %v2833_v13, %v2188_v12  ;;  %v2193_v19 = vor.u32 %v2831_v16, %v2190_v17  ;;  %v2164_v21 = vld [vmem:[%s4384_s1 + $0x60] sm:$0xf]  ;;  %v2828_v22 = vld [vmem:[%s4384_s1 + $0x6c] sm:$0xf0]  ;;  %v2826_v23 = vld [vmem:[%s4384_s1 + $0x64] sm:$0xf] }
  0x26   :  { %562 = vmatpush.bf16.msrb.mxu1 %v2233_v41  ;;  %588 = vmatpush.bf16.msrb.mxu3 %v2241_v45  ;;  %v2165_v24 = vor.u32 %v2828_v22, %v2164_v21  ;;  %v2166_v25 = vld [vmem:[%s4384_s1 + $0x70] sm:$0xf0]  ;;  %v2172_v26 = vld [vmem:[%s4384_s1 + $0x68] sm:$0xf]  ;;  %v2829_v29 = vld [vmem:[%s4384_s1 + $0x74] sm:$0xf0] }
  0x27   :  { %v2169_v28 = vor.u32 %v2826_v23, %v2166_v25  ;;  %v2827_v30 = vld [vmem:[%s4384_s1 + $0x6c] sm:$0xf]  ;;  %v2174_v31 = vld [vmem:[%s4384_s1 + $0x78] sm:$0xf0]  ;;  %v2173_v35 = vor.u32 %v2829_v29, %v2172_v26  ;;  %v2148_v38 = vld [vmem:[%s4384_s1 + $0x40] sm:$0xf] }
  0x28   :  { %263 = vmatmul.bf16.vlgmr.msra.gmra.mxu2 %v36_v32  ;;  %v3449_v34 = vld [vmem:[%s4383_s0 + $0x8] sm:$0xff]  ;;  %v2177_v36 = vor.u32 %v2827_v30, %v2174_v31  ;;  %v2824_v39 = vld [vmem:[%s4384_s1 + $0x4c] sm:$0xf0]  ;;  %v2822_v40 = vld [vmem:[%s4384_s1 + $0x44] sm:$0xf] }
  0x29   :  { %575 = vmatpush.bf16.msrb.mxu2 %v2237_v42  ;;  %550 = vmatpush.bf16.msrb.mxu0 %v2213_v49  ;;  %v2149_v42 = vor.u32 %v2824_v39, %v2148_v38  ;;  %v2150_v43 = vld [vmem:[%s4384_s1 + $0x50] sm:$0xf0]  ;;  %v2156_v44 = vld [vmem:[%s4384_s1 + $0x48] sm:$0xf]  ;;  %v35_v46 = vunpack.c.h.bf16 %v3449_v34  ;;  %v2825_v48 = vld [vmem:[%s4384_s1 + $0x54] sm:$0xf0]  ;;  %v34_v23 = vunpack.c.l.bf16 %v3449_v34 }
  0x2a   :  { %563 = vmatpush.bf16.msrb.mxu1 %v2217_v53  ;;  %589 = vmatpush.bf16.msrb.mxu3 %v2225_v57  ;;  %v2153_v47 = vor.u32 %v2822_v40, %v2150_v43  ;;  %v2823_v49 = vld [vmem:[%s4384_s1 + $0x4c] sm:$0xf]  ;;  %v2157_v50 = vor.u32 %v2825_v48, %v2156_v44  ;;  %v2158_v51 = vld [vmem:[%s4384_s1 + $0x58] sm:$0xf0]  ;;  %v2132_v52 = vld [vmem:[%s4384_s1 + $0x20] sm:$0xf] }
  0x2b   :  { %v2820_v53 = vld [vmem:[%s4384_s1 + $0x2c] sm:$0xf0]  ;;  %v2818_v56 = vld [vmem:[%s4384_s1 + $0x24] sm:$0xf]  ;;  %v2134_v57 = vld [vmem:[%s4384_s1 + $0x30] sm:$0xf0] }
  0x2c   :  { %v2133_v55 = vor.u32 %v2820_v53, %v2132_v52  ;;  %v2140_v58 = vld [vmem:[%s4384_s1 + $0x28] sm:$0xf]  ;;  %v2137_v60 = vor.u32 %v2818_v56, %v2134_v57  ;;  %v2819_v62 = vld [vmem:[%s4384_s1 + $0x2c] sm:$0xf]  ;;  %v2142_v63 = vld [vmem:[%s4384_s1 + $0x38] sm:$0xf0] }
  0x2d   :  { %576 = vmatpush.bf16.msrb.mxu2 %v2221_v54  ;;  %551 = vmatpush.bf16.msrb.mxu0 %v2197_v61  ;;  %v2161_v54 = vor.u32 %v2823_v49, %v2158_v51  ;;  %v2821_v61 = vld [vmem:[%s4384_s1 + $0x34] sm:$0xf0]  ;;  %v2145_v3 = vor.u32 %v2819_v62, %v2142_v63  ;;  %v2116_v4 = vld [vmem:[%s4384_s1] sm:$0xf]  ;;  %v2816_v5 = vld [vmem:[%s4384_s1 + $0xc] sm:$0xf0] }
  0x2e   :  { %564 = vmatpush.bf16.msrb.mxu1 %v2201_v1  ;;  %590 = vmatpush.bf16.msrb.mxu3 %v2209_v6  ;;  %v2814_v6 = vld [vmem:[%s4384_s1 + $0x4] sm:$0xf]  ;;  %v2117_v8 = vor.u32 %v2816_v5, %v2116_v4  ;;  %v2118_v9 = vld [vmem:[%s4384_s1 + $0x10] sm:$0xf0]  ;;  %v2817_v11 = vld [vmem:[%s4384_s1 + $0x14] sm:$0xf0] }
  0x2f   :  { %v2121_v13 = vor.u32 %v2814_v6, %v2118_v9  ;;  %v26_v48 = vld [vmem:[%s4386_s3] sm:$0xff]  ;;  %v2876_v4 = vld [vmem:[%s4384_s1 + $0xec] sm:$0xf0]  ;;  %v2877_v9 = vld [vmem:[%s4384_s1 + $0xf4] sm:$0xf0] }
  0x30   :  { %v2874_v5 = vld [vmem:[%s4384_s1 + $0xe4] sm:$0xf] }
  0x31   :  { %577 = vmatpush.bf16.msrb.mxu2 %v2205_v2  ;;  %552 = vmatpush.bf16.msrb.mxu0 %v2181_v10  ;;  %v2141_v2 = vor.u32 %v2821_v61, %v2140_v58  ;;  %v2124_v10 = vld [vmem:[%s4384_s1 + $0x8] sm:$0xf] }
  0x32   :  { %565 = vmatpush.bf16.msrb.mxu1 %v2185_v14  ;;  %591 = vmatpush.bf16.msrb.mxu3 %v2193_v19  ;;  %v2815_v14 = vld [vmem:[%s4384_s1 + $0xc] sm:$0xf] }
  0x35   :  { %578 = vmatpush.bf16.msrb.mxu2 %v2189_v15  ;;  %553 = vmatpush.bf16.msrb.mxu0 %v2165_v24  ;;  %v2126_v15 = vld [vmem:[%s4384_s1 + $0x18] sm:$0xf0] }
  0x36   :  { %566 = vmatpush.bf16.msrb.mxu1 %v2169_v28  ;;  %592 = vmatpush.bf16.msrb.mxu3 %v2177_v36  ;;  %v2129_v21 = vor.u32 %v2815_v14, %v2126_v15  ;;  %v2346_v15 = vld [vmem:[%s4384_s1 + $0xc0] sm:$0xf] }
  0x39   :  { %579 = vmatpush.bf16.msrb.mxu2 %v2173_v35  ;;  %554 = vmatpush.bf16.msrb.mxu0 %v2149_v42 }
  0x3a   :  { %567 = vmatpush.bf16.msrb.mxu1 %v2153_v47  ;;  %593 = vmatpush.bf16.msrb.mxu3 %v2161_v54 }
  0x3d   :  { %580 = vmatpush.bf16.msrb.mxu2 %v2157_v50  ;;  %555 = vmatpush.bf16.msrb.mxu0 %v2133_v55 }
  0x3e   :  { %568 = vmatpush.bf16.msrb.mxu1 %v2137_v60  ;;  %594 = vmatpush.bf16.msrb.mxu3 %v2145_v3  ;;  %v2362_v3 = vld [vmem:[%s4384_s1 + $0xe0] sm:$0xf] }
  0x3f   :  { %v2363_v6 = vor.u32 %v2876_v4, %v2362_v3  ;;  %v2308_v3 = vld [vmem:[%s4384_s1 + $0x78] sm:$0xf0] }
  0x41   :  { %581 = vmatpush.bf16.msrb.mxu2 %v2141_v2  ;;  %556 = vmatpush.bf16.msrb.mxu0 %v2117_v8  ;;  %v2370_v8 = vld [vmem:[%s4384_s1 + $0xe8] sm:$0xf] }
  0x42   :  { %569 = vmatpush.bf16.msrb.mxu1 %v2121_v13  ;;  %595 = vmatpush.bf16.msrb.mxu3 %v2129_v21  ;;  %v2372_v13 = vld [vmem:[%s4384_s1 + $0xf8] sm:$0xf0]  ;;  %v2873_v21 = vld [vmem:[%s4384_s1 + $0xd4] sm:$0xf0] }
  0x45   :  { %870 = vmatpush.bf16.msra.mxu0 %v2363_v6  ;;  %v3660_v6 = vld [vmem:[%s4383_s0 + $0x18] sm:$0xff] }
  0xa0   :  { %v238_v27 = vpop.f32.mrf.mxu0 }
  0xa1   :  { %v281_v32 = vadd.f32 %v238_v27, %v32_v18  ;;  %v251_v33 = vpop.f32.mrf.mxu1  ;;  %v2125_v18 = vor.u32 %v2817_v11, %v2124_v10  ;;  %v2371_v11 = vor.u32 %v2877_v9, %v2370_v8  ;;  %v2282_v8 = vld [vmem:[%s4384_s1 + $0x40] sm:$0xf]  ;;  %v2856_v9 = vld [vmem:[%s4384_s1 + $0x4c] sm:$0xf0] }
  0xa2   :  { %v282_v37 = vadd.f32 %v251_v33, %v33_v20 }
  0xa3   :  { %v2109_v41 = vmul.f32 -1.442695, %v281_v32  ;;  %582 = vmatpush.bf16.msrb.mxu2 %v2125_v18 }
  0xa4   :  { %v2110_v45 = vmul.f32 -1.442695, %v282_v37 }
  0xa5   :  { %2975 = vpow2.f32 %v2109_v41 }
  0xa6   :  { %2977 = vpow2.f32 %v2110_v45 }
  0xa7   :  { %v277_v59 = vpop.f32.mrf.mxu3  ;;  %896 = vmatpush.bf16.msra.mxu2 %v2371_v11 }
  0xa8   :  { %v284_v0 = vadd.f32 %v277_v59, %v35_v46  ;;  %v240_v1 = vpop.f32.mrf.mxu0 }
  0xa9   :  { %v253_v7 = vpop.f32.mrf.mxu1 }
  0xaa   :  { %v2111_v12 = vmul.f32 -1.442695, %v284_v0  ;;  %v2364_v7 = vld [vmem:[%s4384_s1 + $0xf0] sm:$0xf0] }
  0xab   :  { %v2976_v16 = vpop.eup %2975  ;;  %v264_v17 = vpop.f32.mrf.mxu2  ;;  %v2367_v10 = vor.u32 %v2874_v5, %v2364_v7 }
  0xac   :  { %v2978_v19 = vpop.eup %2977  ;;  %v288_v20 = vadd.f32 1.0, %v2976_v16  ;;  %2979 = vpow2.f32 %v2111_v12  ;;  %v283_v26 = vadd.f32 %v264_v17, %v34_v23  ;;  %v2875_v12 = vld [vmem:[%s4384_s1 + $0xec] sm:$0xf]  ;;  %v2872_v16 = vld [vmem:[%s4384_s1 + $0xcc] sm:$0xf0] }
  0xad   :  { %v307_v22 = vadd.f32 1.0, %v2978_v19  ;;  %v2375_v14 = vor.u32 %v2875_v12, %v2372_v13  ;;  %883 = vmatpush.bf16.msra.mxu1 %v2367_v10  ;;  %v2870_v17 = vld [vmem:[%s4384_s1 + $0xc4] sm:$0xf]  ;;  %v2347_v18 = vor.u32 %v2872_v16, %v2346_v15  ;;  %v2348_v19 = vld [vmem:[%s4384_s1 + $0xd0] sm:$0xf0]  ;;  %v2283_v13 = vor.u32 %v2856_v9, %v2282_v8 }
  0xae   :  { %2981 = vrcp.f32 %v288_v20  ;;  %v300_v36 = vand.u32 2147483648, %v288_v20  ;;  %v298_v38 = vand.u32 2147483647, %v288_v20  ;;  %vm294_vm2 = vweird.f32 %v288_v20  ;;  %v2854_v10 = vld [vmem:[%s4384_s1 + $0x44] sm:$0xf] }
  0xaf   :  { %2983 = vrcp.f32 %v307_v22  ;;  %v279_v24 = vpop.f32.mrf.mxu3  ;;  %v319_v37 = vand.u32 2147483648, %v307_v22  ;;  %v317_v40 = vand.u32 2147483647, %v307_v22  ;;  %vm313_vm3 = vweird.f32 %v307_v22  ;;  %909 = vmatpush.bf16.msra.mxu3 %v2375_v14  ;;  %871 = vmatpush.bf16.msra.mxu0 %v2347_v18  ;;  %v2284_v14 = vld [vmem:[%s4384_s1 + $0x50] sm:$0xf0] }
  0xb0   :  { %v301_v45 = vor.u32 1.1754944e-38, %v300_v36  ;;  %vm299_vm6 = vcmp.eq.f32.partialorder %v298_v38, 8.507059e+37  ;;  %v2871_v24 = vld [vmem:[%s4384_s1 + $0xcc] sm:$0xf]  ;;  %v2112_v38 = vld [vmem:[%s4383_s0 + $0x10] sm:$0xff]  ;;  %v356_v15 = vunpack.c.h.bf16 %v3660_v6  ;;  %v2287_v16 = vor.u32 %v2854_v10, %v2284_v14 }
  0xb1   :  { %v320_v47 = vor.u32 1.1754944e-38, %v319_v37  ;;  %vm318_vm7 = vcmp.eq.f32.partialorder %v317_v40, 8.507059e+37  ;;  %v2867_v37 = vld [vmem:[%s4384_s1 + $0xac] sm:$0xf]  ;;  %v2314_v40 = vld [vmem:[%s4384_s1 + $0x80] sm:$0xf] }
  0xb2   :  { %v2980_v25 = vpop.eup %2979  ;;  %v2857_v18 = vld [vmem:[%s4384_s1 + $0x54] sm:$0xf0] }
  0xb3   :  { %v327_v27 = vadd.f32 1.0, %v2980_v25  ;;  %v266_v28 = vpop.f32.mrf.mxu2  ;;  %v2356_v25 = vld [vmem:[%s4384_s1 + $0xd8] sm:$0xf0] }
  0xb4   :  { %v2982_v29 = vpop.eup %2981  ;;  %v2868_v28 = vld [vmem:[%s4384_s1 + $0xac] sm:$0xf0] }
  0xb5   :  { %v2984_v30 = vpop.eup %2983  ;;  %v290_v31 = vmul.f32 %v2982_v29, %v288_v20  ;;  %2985 = vrcp.f32 %v327_v27  ;;  %vm295_vm0 = vweird.f32 %v2982_v29  ;;  %v339_v59 = vand.u32 2147483648, %v327_v27  ;;  %v2354_v20 = vld [vmem:[%s4384_s1 + $0xc8] sm:$0xf] }
  0xb6   :  { %v309_v32 = vmul.f32 %v2984_v30, %v307_v22  ;;  %2987 = vtanh.f32 %v283_v26  ;;  %vm314_vm1 = vweird.f32 %v2984_v30  ;;  %vm296_vm4 = vmor %vm294_vm2, %vm295_vm0  ;;  %vm333_vm9 = vweird.f32 %v327_v27 }
  0xb7   :  { %v291_v33 = vsub.f32 1.0, %v290_v31  ;;  %vm315_vm5 = vmor %vm313_vm3, %vm314_vm1  ;;  %v337_v60 = vand.u32 2147483647, %v327_v27  ;;  %v340_v62 = vor.u32 1.1754944e-38, %v339_v59  ;;  %v2351_v22 = vor.u32 %v2870_v17, %v2348_v19  ;;  %v2332_v31 = vld [vmem:[%s4384_s1 + $0xb0] sm:$0xf0] }
  0xb8   :  { %v310_v35 = vsub.f32 1.0, %v309_v32  ;;  %v2355_v23 = vor.u32 %v2873_v21, %v2354_v20  ;;  %v2359_v26 = vor.u32 %v2871_v24, %v2356_v25  ;;  %v2338_v32 = vld [vmem:[%s4384_s1 + $0xa8] sm:$0xf]  ;;  %v2300_v59 = vld [vmem:[%s4384_s1 + $0x70] sm:$0xf0] }
  0xb9   :  { %v292_v34 = vmul.f32 %v2982_v29, %v291_v33  ;;  %vm338_vm11 = vcmp.eq.f32.partialorder %v337_v60, 8.507059e+37  ;;  %884 = vmatpush.bf16.msra.mxu1 %v2351_v22  ;;  %v2869_v33 = vld [vmem:[%s4384_s1 + $0xb4] sm:$0xf0]  ;;  %v2306_v60 = vld [vmem:[%s4384_s1 + $0x68] sm:$0xf] }
  0xba   :  { %v311_v39 = vmul.f32 %v2984_v30, %v310_v35  ;;  %897 = vmatpush.bf16.msra.mxu2 %v2355_v23  ;;  %910 = vmatpush.bf16.msra.mxu3 %v2359_v26  ;;  %v2339_v36 = vor.u32 %v2869_v33, %v2338_v32  ;;  %v2290_v17 = vld [vmem:[%s4384_s1 + $0x48] sm:$0xf]  ;;  %v2855_v19 = vld [vmem:[%s4384_s1 + $0x4c] sm:$0xf]  ;;  %v2292_v21 = vld [vmem:[%s4384_s1 + $0x58] sm:$0xf0] }
  0xbb   :  { %v2986_v41 = vpop.eup %2985  ;;  %v293_v42 = vadd.f32 %v2982_v29, %v292_v34  ;;  %v2340_v34 = vld [vmem:[%s4384_s1 + $0xb8] sm:$0xf0]  ;;  %v2291_v20 = vor.u32 %v2857_v18, %v2290_v17  ;;  %v2266_v22 = vld [vmem:[%s4384_s1 + $0x20] sm:$0xf]  ;;  %v2852_v23 = vld [vmem:[%s4384_s1 + $0x2c] sm:$0xf0]  ;;  %v2295_v24 = vor.u32 %v2855_v19, %v2292_v21 }
  0xbc   :  { %v2988_v43 = vpop.eup %2987  ;;  %v329_v44 = vmul.f32 %v2986_v41, %v327_v27  ;;  %v312_v46 = vadd.f32 %v2984_v30, %v311_v39  ;;  %vm334_vm8 = vweird.f32 %v2986_v41  ;;  %v2330_v27 = vld [vmem:[%s4384_s1 + $0xa0] sm:$0xf]  ;;  %v2343_v39 = vor.u32 %v2867_v37, %v2340_v34  ;;  %v2850_v26 = vld [vmem:[%s4384_s1 + $0x24] sm:$0xf]  ;;  %v2853_v32 = vld [vmem:[%s4384_s1 + $0x34] sm:$0xf0] }
  0xbd   :  { %v297_v49 = vsel %vm296_vm4, %v2982_v29, %v293_v42  ;;  %vm335_vm10 = vmor %vm333_vm9, %vm334_vm8  ;;  %v2866_v29 = vld [vmem:[%s4384_s1 + $0xa4] sm:$0xf]  ;;  %v2267_v25 = vor.u32 %v2852_v23, %v2266_v22  ;;  %v2851_v33 = vld [vmem:[%s4384_s1 + $0x2c] sm:$0xf] }
  0xbe   :  { %v330_v50 = vsub.f32 1.0, %v329_v44  ;;  %v302_v51 = vsel %vm299_vm6, %v301_v45, %v297_v49  ;;  %v316_v52 = vsel %vm315_vm5, %v2984_v30, %v312_v46  ;;  %v2331_v30 = vor.u32 %v2868_v28, %v2330_v27  ;;  %898 = vmatpush.bf16.msra.mxu2 %v2339_v36  ;;  %v2862_v42 = vld [vmem:[%s4384_s1 + $0x84] sm:$0xf]  ;;  %911 = vmatpush.bf16.msra.mxu3 %v2343_v39  ;;  %v2316_v44 = vld [vmem:[%s4384_s1 + $0x90] sm:$0xf0] }
  0xbf   :  { %v321_v53 = vsel %vm318_vm7, %v320_v47, %v316_v52  ;;  %v344_v54 = vmul.f32 %v2988_v43, %v302_v51  ;;  %v2335_v35 = vor.u32 %v2866_v29, %v2332_v31  ;;  %v2322_v45 = vld [vmem:[%s4384_s1 + $0x88] sm:$0xf]  ;;  %v2865_v46 = vld [vmem:[%s4384_s1 + $0x94] sm:$0xf0]  ;;  %v2319_v47 = vor.u32 %v2862_v42, %v2316_v44  ;;  %v2863_v49 = vld [vmem:[%s4384_s1 + $0x8c] sm:$0xf] }
  0xc0   :  { %v331_v55 = vmul.f32 %v2986_v41, %v330_v50  ;;  %v343_v56 = vmul.f32 %v321_v53, %v26_v48  ;;  %872 = vmatpush.bf16.msra.mxu0 %v2331_v30  ;;  %v2323_v48 = vor.u32 %v2865_v46, %v2322_v45  ;;  %v2324_v50 = vld [vmem:[%s4384_s1 + $0x98] sm:$0xf0]  ;;  %v353_v51 = vunpack.c.l.bf16 %v2112_v38  ;;  %v2268_v27 = vld [vmem:[%s4384_s1 + $0x30] sm:$0xf0]  ;;  %v2274_v28 = vld [vmem:[%s4384_s1 + $0x28] sm:$0xf] }
  0xc1   :  { %885 = vmatpush.bf16.msra.mxu1 %v2335_v35  ;;  %v354_v52 = vunpack.c.h.bf16 %v2112_v38  ;;  %v2327_v53 = vor.u32 %v2863_v49, %v2324_v50  ;;  %v2271_v31 = vor.u32 %v2850_v26, %v2268_v27  ;;  %v2276_v35 = vld [vmem:[%s4384_s1 + $0x38] sm:$0xf0]  ;;  %v2275_v38 = vor.u32 %v2853_v32, %v2274_v28  ;;  %v2846_v42 = vld [vmem:[%s4384_s1 + $0x4] sm:$0xf]  ;;  %v2252_v44 = vld [vmem:[%s4384_s1 + $0x10] sm:$0xf0] }
  0xc2   :  { %v3528_v57 = vadd.f32 %v344_v54, %v343_v56  ;;  %v332_v58 = vadd.f32 %v2986_v41, %v331_v55  ;;  %899 = vmatpush.bf16.msra.mxu2 %v2323_v48  ;;  %v2298_v54 = vld [vmem:[%s4384_s1 + $0x60] sm:$0xf]  ;;  %v2860_v55 = vld [vmem:[%s4384_s1 + $0x6c] sm:$0xf0]  ;;  %v2858_v56 = vld [vmem:[%s4384_s1 + $0x64] sm:$0xf]  ;;  %v2279_v39 = vor.u32 %v2851_v33, %v2276_v35  ;;  %v2255_v48 = vor.u32 %v2846_v42, %v2252_v44 }
  0xc3   :  { %912 = vmatpush.bf16.msra.mxu3 %v2327_v53  ;;  %v2258_v45 = vld [vmem:[%s4384_s1 + $0x8] sm:$0xf]  ;;  %v2849_v46 = vld [vmem:[%s4384_s1 + $0x14] sm:$0xf0]  ;;  %v2847_v49 = vld [vmem:[%s4384_s1 + $0xc] sm:$0xf] }
  0xc4   :  { %2989 = vtanh.f32 %v3528_v57  ;;  %v336_v61 = vsel %vm335_vm10, %v2986_v41, %v332_v58  ;;  %v2864_v41 = vld [vmem:[%s4384_s1 + $0x8c] sm:$0xf0]  ;;  %v2299_v58 = vor.u32 %v2860_v55, %v2298_v54  ;;  %v2260_v50 = vld [vmem:[%s4384_s1 + $0x18] sm:$0xf0]  ;;  %v2909_v42 = vld [vmem:[%s4384_s1 + $0xf4] sm:$0xf0] }
  0xc5   :  { %v341_v0 = vsel %vm338_vm11, %v340_v62, %v336_v61  ;;  %v2315_v43 = vor.u32 %v2864_v41, %v2314_v40  ;;  %886 = vmatpush.bf16.msra.mxu1 %v2319_v47  ;;  %v2861_v61 = vld [vmem:[%s4384_s1 + $0x74] sm:$0xf0]  ;;  %v2250_v40 = vld [vmem:[%s4384_s1] sm:$0xf]  ;;  %v2848_v41 = vld [vmem:[%s4384_s1 + $0xc] sm:$0xf0]  ;;  %v2263_v55 = vor.u32 %v2847_v49, %v2260_v50 }
  0xc6   :  { %v2904_v49 = vld [vmem:[%s4384_s1 + $0xcc] sm:$0xf0]  ;;  %v2902_v50 = vld [vmem:[%s4384_s1 + $0xc4] sm:$0xf] }
  0xc7   :  { %873 = vmatpush.bf16.msra.mxu0 %v2315_v43  ;;  %v2251_v43 = vor.u32 %v2848_v41, %v2250_v40  ;;  %v2498_v40 = vld [vmem:[%s4384_s1 + $0xf0] sm:$0xf0]  ;;  %v2504_v41 = vld [vmem:[%s4384_s1 + $0xe8] sm:$0xf] }
  0xc8   :  { %v2505_v44 = vor.u32 %v2909_v42, %v2504_v41  ;;  %v2416_v41 = vld [vmem:[%s4384_s1 + $0x40] sm:$0xf]  ;;  %v2888_v42 = vld [vmem:[%s4384_s1 + $0x4c] sm:$0xf0] }
  0xca   :  { %v2990_v63 = vpop.eup %2989 }
  0xcb   :  { %v347_v1 = vmul.f32 %v2990_v63, %v341_v0  ;;  %v2303_v0 = vor.u32 %v2858_v56, %v2300_v59  ;;  %874 = vmatpush.bf16.msra.mxu0 %v2299_v58 }
  0xcd   :  { %v348_v2 = vpack.c.bf16 %v347_v1, %v347_v1  ;;  %v2307_v1 = vor.u32 %v2861_v61, %v2306_v60  ;;  %887 = vmatpush.bf16.msra.mxu1 %v2303_v0  ;;  %v355_v60 = vunpack.c.l.bf16 %v3660_v6 }
  0xcf   :  { %349 = vst [vmem:[%s4387_s4] sm:$0xf] %v348_v2  ;;  %557 = vmatmul.bf16.vlgmr.msrb.gmra.mxu0 %v348_v2  ;;  %570 = vmatmul.bf16.vlgmr.msrb.gmra.mxu1 %v348_v2 }
  0xd0   :  { %583 = vmatmul.bf16.vlgmr.msrb.gmra.mxu2 %v348_v2  ;;  %596 = vmatmul.bf16.vlgmr.msrb.gmra.mxu3 %v348_v2  ;;  %v2859_v2 = vld [vmem:[%s4384_s1 + $0x6c] sm:$0xf] }
  0xd1   :  { %v2311_v7 = vor.u32 %v2859_v2, %v2308_v3  ;;  %900 = vmatpush.bf16.msra.mxu2 %v2307_v1  ;;  %875 = vmatpush.bf16.msra.mxu0 %v2283_v13 }
  0xd2   :  { %888 = vmatpush.bf16.msra.mxu1 %v2287_v16 }
  0xd3   :  { %913 = vmatpush.bf16.msra.mxu3 %v2311_v7 }
  0xd5   :  { %901 = vmatpush.bf16.msra.mxu2 %v2291_v20  ;;  %876 = vmatpush.bf16.msra.mxu0 %v2267_v25 }
  0xd6   :  { %889 = vmatpush.bf16.msra.mxu1 %v2271_v31 }
  0xd7   :  { %914 = vmatpush.bf16.msra.mxu3 %v2295_v24 }
  0xd9   :  { %902 = vmatpush.bf16.msra.mxu2 %v2275_v38  ;;  %877 = vmatpush.bf16.msra.mxu0 %v2251_v43  ;;  %v2906_v38 = vld [vmem:[%s4384_s1 + $0xe4] sm:$0xf] }
  0xda   :  { %890 = vmatpush.bf16.msra.mxu1 %v2255_v48  ;;  %v2501_v43 = vor.u32 %v2906_v38, %v2498_v40  ;;  %v2480_v48 = vld [vmem:[%s4384_s1 + $0xc0] sm:$0xf] }
  0xdb   :  { %915 = vmatpush.bf16.msra.mxu3 %v2279_v39 }
  0xde   :  { %1204 = vmatpush.bf16.msrb.mxu1 %v2501_v43  ;;  %v2886_v43 = vld [vmem:[%s4384_s1 + $0x44] sm:$0xf] }
  0xdf   :  { %916 = vmatpush.bf16.msra.mxu3 %v2263_v55 }
 0x14c   :  { %v558_v62 = vpop.f32.mrf.mxu0  ;;  %v571_v63 = vpop.f32.mrf.mxu1 }
 0x14d   :  { %v601_v4 = vadd.f32 %v558_v62, %v353_v51  ;;  %v602_v5 = vadd.f32 %v571_v63, %v354_v52  ;;  %v2259_v52 = vor.u32 %v2849_v46, %v2258_v45  ;;  %v2907_v45 = vld [vmem:[%s4384_s1 + $0xec] sm:$0xf]  ;;  %v2506_v46 = vld [vmem:[%s4384_s1 + $0xf8] sm:$0xf0] }
 0x14f   :  { %v2242_v11 = vmul.f32 -1.442695, %v601_v4  ;;  %v2243_v12 = vmul.f32 -1.442695, %v602_v5  ;;  %903 = vmatpush.bf16.msra.mxu2 %v2259_v52  ;;  %v2482_v52 = vld [vmem:[%s4384_s1 + $0xd0] sm:$0xf0] }
 0x150   :  { %v2485_v55 = vor.u32 %v2902_v50, %v2482_v52  ;;  %v2424_v50 = vld [vmem:[%s4384_s1 + $0x48] sm:$0xf]  ;;  %v2887_v52 = vld [vmem:[%s4384_s1 + $0x4c] sm:$0xf] }
 0x151   :  { %2991 = vpow2.f32 %v2242_v11 }
 0x152   :  { %2993 = vpow2.f32 %v2243_v12  ;;  %1205 = vmatpush.bf16.msrb.mxu1 %v2485_v55  ;;  %v2400_v55 = vld [vmem:[%s4384_s1 + $0x20] sm:$0xf] }
 0x153   :  { %v584_v29 = vpop.f32.mrf.mxu2  ;;  %v597_v30 = vpop.f32.mrf.mxu3  ;;  %1217 = vmatpush.bf16.msrb.mxu2 %v2505_v44 }
 0x154   :  { %v604_v36 = vadd.f32 %v597_v30, %v356_v15  ;;  %v560_v37 = vpop.f32.mrf.mxu0  ;;  %v573_v34 = vpop.f32.mrf.mxu1  ;;  %v603_v0 = vadd.f32 %v584_v29, %v355_v60 }
 0x155   :  { %v2908_v34 = vld [vmem:[%s4384_s1 + $0xec] sm:$0xf0] }
 0x156   :  { %v2244_v47 = vmul.f32 -1.442695, %v604_v36 }
 0x157   :  { %v2992_v51 = vpop.eup %2991 }
 0x158   :  { %v2994_v53 = vpop.eup %2993  ;;  %v608_v54 = vadd.f32 1.0, %v2992_v51  ;;  %2995 = vpow2.f32 %v2244_v47  ;;  %v2509_v47 = vor.u32 %v2907_v45, %v2506_v46  ;;  %v2481_v51 = vor.u32 %v2904_v49, %v2480_v48 }
 0x159   :  { %v627_v56 = vadd.f32 1.0, %v2994_v53  ;;  %v2488_v53 = vld [vmem:[%s4384_s1 + $0xc8] sm:$0xf]  ;;  %v2417_v46 = vor.u32 %v2888_v42, %v2416_v41 }
 0x15a   :  { %2997 = vrcp.f32 %v608_v54  ;;  %v620_v7 = vand.u32 2147483648, %v608_v54  ;;  %v618_v10 = vand.u32 2147483647, %v608_v54  ;;  %vm614_vm14 = vweird.f32 %v608_v54  ;;  %1230 = vmatpush.bf16.msrb.mxu3 %v2509_v47  ;;  %v2418_v47 = vld [vmem:[%s4384_s1 + $0x50] sm:$0xf0] }
 0x15b   :  { %2999 = vrcp.f32 %v627_v56  ;;  %v586_v58 = vpop.f32.mrf.mxu2  ;;  %v599_v59 = vpop.f32.mrf.mxu3  ;;  %v639_v8 = vand.u32 2147483648, %v627_v56  ;;  %v637_v6 = vand.u32 2147483647, %v627_v56  ;;  %vm633_vm15 = vweird.f32 %v627_v56 }
 0x15c   :  { %v621_v14 = vor.u32 1.1754944e-38, %v620_v7  ;;  %vm619_vm2 = vcmp.eq.f32.partialorder %v618_v10, 8.507059e+37  ;;  %v2903_v58 = vld [vmem:[%s4384_s1 + $0xcc] sm:$0xf]  ;;  %v2490_v59 = vld [vmem:[%s4384_s1 + $0xd8] sm:$0xf0]  ;;  %v2421_v49 = vor.u32 %v2886_v43, %v2418_v47 }
 0x15d   :  { %v640_v17 = vor.u32 1.1754944e-38, %v639_v8  ;;  %vm638_vm3 = vcmp.eq.f32.partialorder %v637_v6, 8.507059e+37  ;;  %v2493_v60 = vor.u32 %v2903_v58, %v2490_v59  ;;  %v2899_v7 = vld [vmem:[%s4384_s1 + $0xac] sm:$0xf]  ;;  %v2474_v8 = vld [vmem:[%s4384_s1 + $0xb8] sm:$0xf0] }
 0x15e   :  { %v2996_v61 = vpop.eup %2995  ;;  %v2477_v10 = vor.u32 %v2899_v7, %v2474_v8  ;;  %v2896_v6 = vld [vmem:[%s4384_s1 + $0x8c] sm:$0xf0] }
 0x15f   :  { %v647_v62 = vadd.f32 1.0, %v2996_v61  ;;  %v2464_v61 = vld [vmem:[%s4384_s1 + $0xa0] sm:$0xf]  ;;  %1231 = vmatpush.bf16.msrb.mxu3 %v2493_v60  ;;  %v2882_v60 = vld [vmem:[%s4384_s1 + $0x24] sm:$0xf] }
 0x160   :  { %v2998_v63 = vpop.eup %2997 }
 0x161   :  { %v3000_v1 = vpop.eup %2999  ;;  %v610_v2 = vmul.f32 %v2998_v63, %v608_v54  ;;  %3001 = vrcp.f32 %v647_v62  ;;  %vm615_vm12 = vweird.f32 %v2998_v63  ;;  %v659_v29 = vand.u32 2147483648, %v647_v62  ;;  %v2905_v54 = vld [vmem:[%s4384_s1 + $0xd4] sm:$0xf0] }
 0x162   :  { %v629_v3 = vmul.f32 %v3000_v1, %v627_v56  ;;  %3003 = vtanh.f32 %v603_v0  ;;  %vm634_vm13 = vweird.f32 %v3000_v1  ;;  %vm616_vm0 = vmor %vm614_vm14, %vm615_vm12  ;;  %vm653_vm5 = vweird.f32 %v647_v62 }
 0x163   :  { %v611_v4 = vsub.f32 1.0, %v610_v2  ;;  %vm635_vm1 = vmor %vm633_vm15, %vm634_vm13  ;;  %v657_v30 = vand.u32 2147483647, %v647_v62  ;;  %v660_v32 = vor.u32 1.1754944e-38, %v659_v29  ;;  %v2489_v56 = vor.u32 %v2905_v54, %v2488_v53  ;;  %v2472_v2 = vld [vmem:[%s4384_s1 + $0xa8] sm:$0xf]  ;;  %1232 = vmatpush.bf16.msrb.mxu3 %v2477_v10 }
 0x164   :  { %v630_v5 = vsub.f32 1.0, %v629_v3  ;;  %v2901_v3 = vld [vmem:[%s4384_s1 + $0xb4] sm:$0xf0]  ;;  %v2434_v29 = vld [vmem:[%s4384_s1 + $0x70] sm:$0xf0] }
 0x165   :  { %v612_v9 = vmul.f32 %v2998_v63, %v611_v4  ;;  %vm658_vm7 = vcmp.eq.f32.partialorder %v657_v30, 8.507059e+37  ;;  %1218 = vmatpush.bf16.msrb.mxu2 %v2489_v56  ;;  %v2440_v30 = vld [vmem:[%s4384_s1 + $0x68] sm:$0xf]  ;;  %v2426_v54 = vld [vmem:[%s4384_s1 + $0x58] sm:$0xf0] }
 0x166   :  { %v631_v11 = vmul.f32 %v3000_v1, %v630_v5  ;;  %v2473_v5 = vor.u32 %v2901_v3, %v2472_v2  ;;  %v2884_v56 = vld [vmem:[%s4384_s1 + $0x2c] sm:$0xf0]  ;;  %v2429_v58 = vor.u32 %v2887_v52, %v2426_v54  ;;  %v2885_v2 = vld [vmem:[%s4384_s1 + $0x34] sm:$0xf0]  ;;  %v2883_v3 = vld [vmem:[%s4384_s1 + $0x2c] sm:$0xf] }
 0x167   :  { %v3002_v12 = vpop.eup %3001  ;;  %v613_v13 = vadd.f32 %v2998_v63, %v612_v9  ;;  %v2246_v9 = vld [vmem:[%s4383_s0 + $0x20] sm:$0xff]  ;;  %v2401_v59 = vor.u32 %v2884_v56, %v2400_v55 }
 0x168   :  { %v632_v15 = vadd.f32 %v3000_v1, %v631_v11  ;;  %v649_v16 = vmul.f32 %v3002_v12, %v647_v62  ;;  %v3004_v19 = vpop.eup %3003  ;;  %vm654_vm4 = vweird.f32 %v3002_v12  ;;  %v2900_v62 = vld [vmem:[%s4384_s1 + $0xac] sm:$0xf0]  ;;  %v2448_v11 = vld [vmem:[%s4384_s1 + $0x80] sm:$0xf] }
 0x169   :  { %v617_v18 = vsel %vm616_vm0, %v2998_v63, %v613_v13  ;;  %vm655_vm6 = vmor %vm653_vm5, %vm654_vm4  ;;  %v2898_v63 = vld [vmem:[%s4384_s1 + $0xa4] sm:$0xf]  ;;  %v2465_v0 = vor.u32 %v2900_v62, %v2464_v61  ;;  %1219 = vmatpush.bf16.msrb.mxu2 %v2473_v5  ;;  %v2449_v13 = vor.u32 %v2896_v6, %v2448_v11  ;;  %v2402_v61 = vld [vmem:[%s4384_s1 + $0x30] sm:$0xf0] }
 0x16a   :  { %v622_v20 = vsel %vm619_vm2, %v621_v14, %v617_v18  ;;  %v636_v21 = vsel %vm635_vm1, %v3000_v1, %v632_v15  ;;  %v650_v22 = vsub.f32 1.0, %v649_v16  ;;  %v2466_v1 = vld [vmem:[%s4384_s1 + $0xb0] sm:$0xf0]  ;;  %v2456_v15 = vld [vmem:[%s4384_s1 + $0x88] sm:$0xf] }
 0x16b   :  { %v641_v23 = vsel %vm638_vm3, %v640_v17, %v636_v21  ;;  %v664_v24 = vmul.f32 %v3004_v19, %v622_v20  ;;  %v2469_v4 = vor.u32 %v2898_v63, %v2466_v1  ;;  %v2450_v14 = vld [vmem:[%s4384_s1 + $0x90] sm:$0xf0]  ;;  %v2897_v16 = vld [vmem:[%s4384_s1 + $0x94] sm:$0xf0]  ;;  %v2895_v19 = vld [vmem:[%s4384_s1 + $0x8c] sm:$0xf]  ;;  %v674_v21 = vunpack.c.l.bf16 %v2246_v9 }
 0x16c   :  { %v663_v25 = vmul.f32 %v641_v23, %v3528_v57  ;;  %v651_v26 = vmul.f32 %v3002_v12, %v650_v22  ;;  %v2496_v57 = vld [vmem:[%s4384_s1 + $0xe0] sm:$0xf]  ;;  %v2457_v18 = vor.u32 %v2897_v16, %v2456_v15  ;;  %v2458_v20 = vld [vmem:[%s4384_s1 + $0x98] sm:$0xf0]  ;;  %v675_v22 = vunpack.c.h.bf16 %v2246_v9  ;;  %v2408_v62 = vld [vmem:[%s4384_s1 + $0x28] sm:$0xf] }
 0x16d   :  { %v2497_v39 = vor.u32 %v2908_v34, %v2496_v57  ;;  %1206 = vmatpush.bf16.msrb.mxu1 %v2469_v4  ;;  %v2461_v23 = vor.u32 %v2895_v19, %v2458_v20  ;;  %v2442_v57 = vld [vmem:[%s4384_s1 + $0x78] sm:$0xf0]  ;;  %v2405_v1 = vor.u32 %v2882_v60, %v2402_v61  ;;  %v2409_v9 = vor.u32 %v2885_v2, %v2408_v62  ;;  %v2384_v11 = vld [vmem:[%s4384_s1] sm:$0xf]  ;;  %v2880_v6 = vld [vmem:[%s4384_s1 + $0xc] sm:$0xf0] }
 0x16e   :  { %v3737_v27 = vadd.f32 %v664_v24, %v663_v25  ;;  %v652_v28 = vadd.f32 %v3002_v12, %v651_v26  ;;  %1220 = vmatpush.bf16.msrb.mxu2 %v2457_v18  ;;  %v2432_v24 = vld [vmem:[%s4384_s1 + $0x60] sm:$0xf]  ;;  %v2892_v25 = vld [vmem:[%s4384_s1 + $0x6c] sm:$0xf0]  ;;  %v2890_v26 = vld [vmem:[%s4384_s1 + $0x64] sm:$0xf] }
 0x16f   :  { %1191 = vmatpush.bf16.msrb.mxu0 %v2497_v39  ;;  %1233 = vmatpush.bf16.msrb.mxu3 %v2461_v23  ;;  %v3869_v39 = vld [vmem:[%s4383_s0 + $0x28] sm:$0xff]  ;;  %v2410_v4 = vld [vmem:[%s4384_s1 + $0x38] sm:$0xf0]  ;;  %v2881_v16 = vld [vmem:[%s4384_s1 + $0x14] sm:$0xf0] }
 0x170   :  { %3005 = vtanh.f32 %v3737_v27  ;;  %v656_v31 = vsel %vm655_vm6, %v3002_v12, %v652_v28  ;;  %v2894_v12 = vld [vmem:[%s4384_s1 + $0x84] sm:$0xf]  ;;  %v2433_v28 = vor.u32 %v2892_v25, %v2432_v24  ;;  %v677_v48 = vunpack.c.h.bf16 %v3869_v39  ;;  %v2392_v15 = vld [vmem:[%s4384_s1 + $0x8] sm:$0xf]  ;;  %v2879_v19 = vld [vmem:[%s4384_s1 + $0xc] sm:$0xf] }
 0x171   :  { %v661_v35 = vsel %vm658_vm7, %v660_v32, %v656_v31  ;;  %v2453_v17 = vor.u32 %v2894_v12, %v2450_v14  ;;  %v2893_v31 = vld [vmem:[%s4384_s1 + $0x74] sm:$0xf0]  ;;  %v2413_v10 = vor.u32 %v2883_v3, %v2410_v4  ;;  %v2878_v12 = vld [vmem:[%s4384_s1 + $0x4] sm:$0xf]  ;;  %v2386_v14 = vld [vmem:[%s4384_s1 + $0x10] sm:$0xf0] }
 0x172   :  { %v2389_v18 = vor.u32 %v2878_v12, %v2386_v14  ;;  %v2394_v20 = vld [vmem:[%s4384_s1 + $0x18] sm:$0xf0]  ;;  %v2941_v12 = vld [vmem:[%s4384_s1 + $0xf4] sm:$0xf0] }
 0x173   :  { %1192 = vmatpush.bf16.msrb.mxu0 %v2481_v51  ;;  %1207 = vmatpush.bf16.msrb.mxu1 %v2453_v17  ;;  %v2889_v51 = vld [vmem:[%s4384_s1 + $0x54] sm:$0xf0]  ;;  %v2397_v25 = vor.u32 %v2879_v19, %v2394_v20  ;;  %v2936_v19 = vld [vmem:[%s4384_s1 + $0xcc] sm:$0xf0]  ;;  %v2934_v20 = vld [vmem:[%s4384_s1 + $0xc4] sm:$0xf] }
 0x174   :  { %v2425_v53 = vor.u32 %v2889_v51, %v2424_v50 }
 0x176   :  { %v3006_v33 = vpop.eup %3005 }
 0x177   :  { %v667_v36 = vmul.f32 %v3006_v33, %v661_v35  ;;  %1193 = vmatpush.bf16.msrb.mxu0 %v2465_v0  ;;  %v2437_v35 = vor.u32 %v2890_v26, %v2434_v29 }
 0x179   :  { %v668_v37 = vpack.c.bf16 %v667_v36, %v667_v36  ;;  %v2441_v36 = vor.u32 %v2893_v31, %v2440_v30  ;;  %1208 = vmatpush.bf16.msrb.mxu1 %v2437_v35  ;;  %v676_v30 = vunpack.c.l.bf16 %v3869_v39 }
 0x17b   :  { %2245 = vst [vmem:[%s4387_s4 + $0x4] sm:$0xf] %v668_v37  ;;  %878 = vmatmul.bf16.vlgmr.msra.gmra.mxu0 %v668_v37  ;;  %891 = vmatmul.bf16.vlgmr.msra.gmra.mxu1 %v668_v37 }
 0x17c   :  { %904 = vmatmul.bf16.vlgmr.msra.gmra.mxu2 %v668_v37  ;;  %917 = vmatmul.bf16.vlgmr.msra.gmra.mxu3 %v668_v37  ;;  %v2891_v37 = vld [vmem:[%s4384_s1 + $0x6c] sm:$0xf] }
 0x17d   :  { %1194 = vmatpush.bf16.msrb.mxu0 %v2449_v13  ;;  %v2445_v40 = vor.u32 %v2891_v37, %v2442_v57  ;;  %1221 = vmatpush.bf16.msrb.mxu2 %v2441_v36  ;;  %v2385_v13 = vor.u32 %v2880_v6, %v2384_v11  ;;  %v2632_v11 = vld [vmem:[%s4384_s1 + $0xf0] sm:$0xf0]  ;;  %v2638_v6 = vld [vmem:[%s4384_s1 + $0xe8] sm:$0xf] }
 0x17e   :  { %1209 = vmatpush.bf16.msrb.mxu1 %v2421_v49  ;;  %v2639_v14 = vor.u32 %v2941_v12, %v2638_v6  ;;  %v2550_v6 = vld [vmem:[%s4384_s1 + $0x40] sm:$0xf]  ;;  %v2920_v12 = vld [vmem:[%s4384_s1 + $0x4c] sm:$0xf0] }
 0x17f   :  { %1234 = vmatpush.bf16.msrb.mxu3 %v2445_v40 }
 0x181   :  { %1195 = vmatpush.bf16.msrb.mxu0 %v2433_v28  ;;  %1222 = vmatpush.bf16.msrb.mxu2 %v2425_v53 }
 0x182   :  { %1210 = vmatpush.bf16.msrb.mxu1 %v2405_v1 }
 0x183   :  { %1235 = vmatpush.bf16.msrb.mxu3 %v2429_v58 }
 0x185   :  { %1196 = vmatpush.bf16.msrb.mxu0 %v2417_v46  ;;  %1223 = vmatpush.bf16.msrb.mxu2 %v2409_v9  ;;  %v2938_v9 = vld [vmem:[%s4384_s1 + $0xe4] sm:$0xf] }
 0x186   :  { %1211 = vmatpush.bf16.msrb.mxu1 %v2389_v18  ;;  %v2614_v18 = vld [vmem:[%s4384_s1 + $0xc0] sm:$0xf] }
 0x187   :  { %1236 = vmatpush.bf16.msrb.mxu3 %v2413_v10 }
 0x189   :  { %1197 = vmatpush.bf16.msrb.mxu0 %v2401_v59 }
 0x18b   :  { %1237 = vmatpush.bf16.msrb.mxu3 %v2397_v25 }
 0x18d   :  { %1198 = vmatpush.bf16.msrb.mxu0 %v2385_v13  ;;  %v2635_v13 = vor.u32 %v2938_v9, %v2632_v11 }
 0x18f   :  { %1525 = vmatpush.bf16.msra.mxu1 %v2635_v13  ;;  %v2918_v13 = vld [vmem:[%s4384_s1 + $0x44] sm:$0xf] }
 0x1f8   :  { %v879_v32 = vpop.f32.mrf.mxu0  ;;  %v892_v33 = vpop.f32.mrf.mxu1 }
 0x1f9   :  { %v922_v34 = vadd.f32 %v879_v32, %v674_v21  ;;  %v923_v38 = vadd.f32 %v892_v33, %v675_v22  ;;  %v2393_v22 = vor.u32 %v2881_v16, %v2392_v15  ;;  %v2939_v15 = vld [vmem:[%s4384_s1 + $0xec] sm:$0xf]  ;;  %v2640_v16 = vld [vmem:[%s4384_s1 + $0xf8] sm:$0xf0] }
 0x1fb   :  { %v2376_v44 = vmul.f32 -1.442695, %v922_v34  ;;  %v2377_v45 = vmul.f32 -1.442695, %v923_v38  ;;  %1224 = vmatpush.bf16.msrb.mxu2 %v2393_v22  ;;  %v2616_v22 = vld [vmem:[%s4384_s1 + $0xd0] sm:$0xf0] }
 0x1fc   :  { %v2619_v25 = vor.u32 %v2934_v20, %v2616_v22  ;;  %v2558_v20 = vld [vmem:[%s4384_s1 + $0x48] sm:$0xf]  ;;  %v2919_v22 = vld [vmem:[%s4384_s1 + $0x4c] sm:$0xf] }
 0x1fd   :  { %3007 = vpow2.f32 %v2376_v44 }
 0x1fe   :  { %3009 = vpow2.f32 %v2377_v45  ;;  %1526 = vmatpush.bf16.msra.mxu1 %v2619_v25  ;;  %v2534_v25 = vld [vmem:[%s4384_s1 + $0x20] sm:$0xf] }
 0x1ff   :  { %v905_v63 = vpop.f32.mrf.mxu2  ;;  %v918_v0 = vpop.f32.mrf.mxu3  ;;  %1538 = vmatpush.bf16.msra.mxu2 %v2639_v14 }
 0x200   :  { %v925_v5 = vadd.f32 %v918_v0, %v677_v48  ;;  %v881_v7 = vpop.f32.mrf.mxu0  ;;  %v894_v8 = vpop.f32.mrf.mxu1  ;;  %v924_v35 = vadd.f32 %v905_v63, %v676_v30 }
 0x201   :  { %v2940_v8 = vld [vmem:[%s4384_s1 + $0xec] sm:$0xf0] }
 0x202   :  { %v2378_v17 = vmul.f32 -1.442695, %v925_v5 }
 0x203   :  { %v3008_v21 = vpop.eup %3007 }
 0x204   :  { %v3010_v23 = vpop.eup %3009  ;;  %v929_v24 = vadd.f32 1.0, %v3008_v21  ;;  %3011 = vpow2.f32 %v2378_v17  ;;  %v2643_v17 = vor.u32 %v2939_v15, %v2640_v16  ;;  %v2615_v21 = vor.u32 %v2936_v19, %v2614_v18 }
 0x205   :  { %v948_v26 = vadd.f32 1.0, %v3010_v23  ;;  %v2622_v23 = vld [vmem:[%s4384_s1 + $0xc8] sm:$0xf]  ;;  %v2551_v16 = vor.u32 %v2920_v12, %v2550_v6 }
 0x206   :  { %3013 = vrcp.f32 %v929_v24  ;;  %v941_v40 = vand.u32 2147483648, %v929_v24  ;;  %v939_v43 = vand.u32 2147483647, %v929_v24  ;;  %vm935_vm10 = vweird.f32 %v929_v24  ;;  %1551 = vmatpush.bf16.msra.mxu3 %v2643_v17  ;;  %v2552_v17 = vld [vmem:[%s4384_s1 + $0x50] sm:$0xf0] }
 0x207   :  { %3015 = vrcp.f32 %v948_v26  ;;  %v907_v28 = vpop.f32.mrf.mxu2  ;;  %v920_v29 = vpop.f32.mrf.mxu3  ;;  %v960_v41 = vand.u32 2147483648, %v948_v26  ;;  %v958_v39 = vand.u32 2147483647, %v948_v26  ;;  %vm954_vm11 = vweird.f32 %v948_v26 }
 0x208   :  { %v942_v47 = vor.u32 1.1754944e-38, %v941_v40  ;;  %vm940_vm14 = vcmp.eq.f32.partialorder %v939_v43, 8.507059e+37  ;;  %v2935_v28 = vld [vmem:[%s4384_s1 + $0xcc] sm:$0xf]  ;;  %v2624_v29 = vld [vmem:[%s4384_s1 + $0xd8] sm:$0xf0]  ;;  %v2555_v19 = vor.u32 %v2918_v13, %v2552_v17 }
 0x209   :  { %v961_v50 = vor.u32 1.1754944e-38, %v960_v41  ;;  %vm959_vm15 = vcmp.eq.f32.partialorder %v958_v39, 8.507059e+37  ;;  %v2627_v30 = vor.u32 %v2935_v28, %v2624_v29  ;;  %v2931_v40 = vld [vmem:[%s4384_s1 + $0xac] sm:$0xf]  ;;  %v2608_v41 = vld [vmem:[%s4384_s1 + $0xb8] sm:$0xf0] }
 0x20a   :  { %v3012_v31 = vpop.eup %3011  ;;  %v2611_v43 = vor.u32 %v2931_v40, %v2608_v41  ;;  %v2928_v39 = vld [vmem:[%s4384_s1 + $0x8c] sm:$0xf0] }
 0x20b   :  { %v968_v32 = vadd.f32 1.0, %v3012_v31  ;;  %v2598_v31 = vld [vmem:[%s4384_s1 + $0xa0] sm:$0xf]  ;;  %1552 = vmatpush.bf16.msra.mxu3 %v2627_v30  ;;  %v2914_v30 = vld [vmem:[%s4384_s1 + $0x24] sm:$0xf] }
 0x20c   :  { %v3014_v33 = vpop.eup %3013 }
 0x20d   :  { %v3016_v36 = vpop.eup %3015  ;;  %v931_v37 = vmul.f32 %v3014_v33, %v929_v24  ;;  %3017 = vrcp.f32 %v968_v32  ;;  %vm936_vm8 = vweird.f32 %v3014_v33  ;;  %v980_v63 = vand.u32 2147483648, %v968_v32  ;;  %v2937_v24 = vld [vmem:[%s4384_s1 + $0xd4] sm:$0xf0] }
 0x20e   :  { %v950_v57 = vmul.f32 %v3016_v36, %v948_v26  ;;  %3019 = vtanh.f32 %v924_v35  ;;  %vm955_vm9 = vweird.f32 %v3016_v36  ;;  %vm937_vm12 = vmor %vm935_vm10, %vm936_vm8  ;;  %vm974_vm1 = vweird.f32 %v968_v32 }
 0x20f   :  { %v932_v34 = vsub.f32 1.0, %v931_v37  ;;  %vm956_vm13 = vmor %vm954_vm11, %vm955_vm9  ;;  %v978_v0 = vand.u32 2147483647, %v968_v32  ;;  %v981_v2 = vor.u32 1.1754944e-38, %v980_v63  ;;  %v2623_v26 = vor.u32 %v2937_v24, %v2622_v23  ;;  %v2606_v37 = vld [vmem:[%s4384_s1 + $0xa8] sm:$0xf]  ;;  %1553 = vmatpush.bf16.msra.mxu3 %v2611_v43 }
 0x210   :  { %v951_v38 = vsub.f32 1.0, %v950_v57  ;;  %v2933_v57 = vld [vmem:[%s4384_s1 + $0xb4] sm:$0xf0]  ;;  %v2568_v63 = vld [vmem:[%s4384_s1 + $0x70] sm:$0xf0] }
 0x211   :  { %v933_v42 = vmul.f32 %v3014_v33, %v932_v34  ;;  %vm979_vm3 = vcmp.eq.f32.partialorder %v978_v0, 8.507059e+37  ;;  %1539 = vmatpush.bf16.msra.mxu2 %v2623_v26  ;;  %v2574_v0 = vld [vmem:[%s4384_s1 + $0x68] sm:$0xf]  ;;  %v2560_v24 = vld [vmem:[%s4384_s1 + $0x58] sm:$0xf0] }
 0x212   :  { %v952_v44 = vmul.f32 %v3016_v36, %v951_v38  ;;  %v2607_v38 = vor.u32 %v2933_v57, %v2606_v37  ;;  %v2916_v26 = vld [vmem:[%s4384_s1 + $0x2c] sm:$0xf0]  ;;  %v2563_v28 = vor.u32 %v2919_v22, %v2560_v24  ;;  %v2917_v37 = vld [vmem:[%s4384_s1 + $0x34] sm:$0xf0]  ;;  %v2915_v57 = vld [vmem:[%s4384_s1 + $0x2c] sm:$0xf] }
 0x213   :  { %v3018_v45 = vpop.eup %3017  ;;  %v934_v46 = vadd.f32 %v3014_v33, %v933_v42  ;;  %v2380_v42 = vld [vmem:[%s4383_s0 + $0x30] sm:$0xff]  ;;  %v2535_v29 = vor.u32 %v2916_v26, %v2534_v25 }
 0x214   :  { %v953_v48 = vadd.f32 %v3016_v36, %v952_v44  ;;  %v970_v49 = vmul.f32 %v3018_v45, %v968_v32  ;;  %v3020_v52 = vpop.eup %3019  ;;  %vm975_vm0 = vweird.f32 %v3018_v45  ;;  %v2932_v32 = vld [vmem:[%s4384_s1 + $0xac] sm:$0xf0]  ;;  %v2582_v44 = vld [vmem:[%s4384_s1 + $0x80] sm:$0xf] }
 0x215   :  { %v938_v51 = vsel %vm937_vm12, %v3014_v33, %v934_v46  ;;  %vm976_vm2 = vmor %vm974_vm1, %vm975_vm0  ;;  %v2930_v33 = vld [vmem:[%s4384_s1 + $0xa4] sm:$0xf]  ;;  %v2599_v35 = vor.u32 %v2932_v32, %v2598_v31  ;;  %1540 = vmatpush.bf16.msra.mxu2 %v2607_v38  ;;  %v2583_v46 = vor.u32 %v2928_v39, %v2582_v44  ;;  %v2536_v31 = vld [vmem:[%s4384_s1 + $0x30] sm:$0xf0] }
 0x216   :  { %v943_v53 = vsel %vm940_vm14, %v942_v47, %v938_v51  ;;  %v957_v54 = vsel %vm956_vm13, %v3016_v36, %v953_v48  ;;  %v971_v55 = vsub.f32 1.0, %v970_v49  ;;  %v2600_v36 = vld [vmem:[%s4384_s1 + $0xb0] sm:$0xf0]  ;;  %v2590_v48 = vld [vmem:[%s4384_s1 + $0x88] sm:$0xf] }
 0x217   :  { %v962_v56 = vsel %vm959_vm15, %v961_v50, %v957_v54  ;;  %v985_v58 = vmul.f32 %v3020_v52, %v943_v53  ;;  %v2603_v34 = vor.u32 %v2930_v33, %v2600_v36  ;;  %v2584_v47 = vld [vmem:[%s4384_s1 + $0x90] sm:$0xf0]  ;;  %v2929_v49 = vld [vmem:[%s4384_s1 + $0x94] sm:$0xf0]  ;;  %v2927_v52 = vld [vmem:[%s4384_s1 + $0x8c] sm:$0xf]  ;;  %v995_v54 = vunpack.c.l.bf16 %v2380_v42 }
 0x218   :  { %v984_v59 = vmul.f32 %v962_v56, %v3737_v27  ;;  %v972_v60 = vmul.f32 %v3018_v45, %v971_v55  ;;  %v2630_v27 = vld [vmem:[%s4384_s1 + $0xe0] sm:$0xf]  ;;  %v2591_v51 = vor.u32 %v2929_v49, %v2590_v48  ;;  %v2592_v53 = vld [vmem:[%s4384_s1 + $0x98] sm:$0xf0]  ;;  %v996_v55 = vunpack.c.h.bf16 %v2380_v42  ;;  %v2542_v32 = vld [vmem:[%s4384_s1 + $0x28] sm:$0xf] }
 0x219   :  { %v2631_v10 = vor.u32 %v2940_v8, %v2630_v27  ;;  %1527 = vmatpush.bf16.msra.mxu1 %v2603_v34  ;;  %v2595_v56 = vor.u32 %v2927_v52, %v2592_v53  ;;  %v2576_v27 = vld [vmem:[%s4384_s1 + $0x78] sm:$0xf0]  ;;  %v2539_v36 = vor.u32 %v2914_v30, %v2536_v31  ;;  %v2543_v42 = vor.u32 %v2917_v37, %v2542_v32  ;;  %v2518_v44 = vld [vmem:[%s4384_s1] sm:$0xf]  ;;  %v2912_v39 = vld [vmem:[%s4384_s1 + $0xc] sm:$0xf0] }
 0x21a   :  { %v3946_v61 = vadd.f32 %v985_v58, %v984_v59  ;;  %v973_v62 = vadd.f32 %v3018_v45, %v972_v60  ;;  %1541 = vmatpush.bf16.msra.mxu2 %v2591_v51  ;;  %v2566_v58 = vld [vmem:[%s4384_s1 + $0x60] sm:$0xf]  ;;  %v2924_v59 = vld [vmem:[%s4384_s1 + $0x6c] sm:$0xf0]  ;;  %v2922_v60 = vld [vmem:[%s4384_s1 + $0x64] sm:$0xf] }
 0x21b   :  { %1512 = vmatpush.bf16.msra.mxu0 %v2631_v10  ;;  %1554 = vmatpush.bf16.msra.mxu3 %v2595_v56  ;;  %v4078_v10 = vld [vmem:[%s4383_s0 + $0x38] sm:$0xff]  ;;  %v2526_v48 = vld [vmem:[%s4384_s1 + $0x8] sm:$0xf]  ;;  %v2911_v52 = vld [vmem:[%s4384_s1 + $0xc] sm:$0xf] }
 0x21c   :  { %3021 = vtanh.f32 %v3946_v61  ;;  %v977_v1 = vsel %vm976_vm2, %v3018_v45, %v973_v62  ;;  %v2926_v45 = vld [vmem:[%s4384_s1 + $0x84] sm:$0xf]  ;;  %v2567_v62 = vor.u32 %v2924_v59, %v2566_v58  ;;  %v998_v18 = vunpack.c.h.bf16 %v4078_v10  ;;  %v2544_v34 = vld [vmem:[%s4384_s1 + $0x38] sm:$0xf0]  ;;  %v2913_v49 = vld [vmem:[%s4384_s1 + $0x14] sm:$0xf0] }
 0x21d   :  { %v982_v4 = vsel %vm979_vm3, %v981_v2, %v977_v1  ;;  %v2587_v50 = vor.u32 %v2926_v45, %v2584_v47  ;;  %v2925_v1 = vld [vmem:[%s4384_s1 + $0x74] sm:$0xf0]  ;;  %v2547_v43 = vor.u32 %v2915_v57, %v2544_v34  ;;  %v2910_v45 = vld [vmem:[%s4384_s1 + $0x4] sm:$0xf]  ;;  %v2520_v47 = vld [vmem:[%s4384_s1 + $0x10] sm:$0xf0] }
 0x21e   :  { %v2523_v51 = vor.u32 %v2910_v45, %v2520_v47  ;;  %v2528_v53 = vld [vmem:[%s4384_s1 + $0x18] sm:$0xf0]  ;;  %v2973_v45 = vld [vmem:[%s4384_s1 + $0xf4] sm:$0xf0] }
 0x21f   :  { %1513 = vmatpush.bf16.msra.mxu0 %v2615_v21  ;;  %1528 = vmatpush.bf16.msra.mxu1 %v2587_v50  ;;  %v2921_v21 = vld [vmem:[%s4384_s1 + $0x54] sm:$0xf0]  ;;  %v2531_v59 = vor.u32 %v2911_v52, %v2528_v53  ;;  %v2968_v52 = vld [vmem:[%s4384_s1 + $0xcc] sm:$0xf0]  ;;  %v2966_v53 = vld [vmem:[%s4384_s1 + $0xc4] sm:$0xf] }
 0x220   :  { %v2559_v23 = vor.u32 %v2921_v21, %v2558_v20 }
 0x222   :  { %v3022_v3 = vpop.eup %3021 }
 0x223   :  { %v988_v5 = vmul.f32 %v3022_v3, %v982_v4  ;;  %1514 = vmatpush.bf16.msra.mxu0 %v2599_v35  ;;  %v2571_v4 = vor.u32 %v2922_v60, %v2568_v63 }
 0x225   :  { %v989_v7 = vpack.c.bf16 %v988_v5, %v988_v5  ;;  %v2575_v5 = vor.u32 %v2925_v1, %v2574_v0  ;;  %1529 = vmatpush.bf16.msra.mxu1 %v2571_v4  ;;  %v997_v0 = vunpack.c.l.bf16 %v4078_v10 }
 0x227   :  { %2379 = vst [vmem:[%s4387_s4 + $0x8] sm:$0xf] %v989_v7  ;;  %1199 = vmatmul.bf16.vlgmr.msrb.gmra.mxu0 %v989_v7  ;;  %1212 = vmatmul.bf16.vlgmr.msrb.gmra.mxu1 %v989_v7 }
 0x228   :  { %1225 = vmatmul.bf16.vlgmr.msrb.gmra.mxu2 %v989_v7  ;;  %1238 = vmatmul.bf16.vlgmr.msrb.gmra.mxu3 %v989_v7  ;;  %v2923_v7 = vld [vmem:[%s4384_s1 + $0x6c] sm:$0xf] }
 0x229   :  { %1515 = vmatpush.bf16.msra.mxu0 %v2583_v46  ;;  %v2579_v11 = vor.u32 %v2923_v7, %v2576_v27  ;;  %1542 = vmatpush.bf16.msra.mxu2 %v2575_v5  ;;  %v2519_v46 = vor.u32 %v2912_v39, %v2518_v44  ;;  %v2766_v44 = vld [vmem:[%s4384_s1 + $0xf0] sm:$0xf0]  ;;  %v2772_v39 = vld [vmem:[%s4384_s1 + $0xe8] sm:$0xf] }
 0x22a   :  { %1530 = vmatpush.bf16.msra.mxu1 %v2555_v19  ;;  %v2773_v47 = vor.u32 %v2973_v45, %v2772_v39  ;;  %v2684_v39 = vld [vmem:[%s4384_s1 + $0x40] sm:$0xf]  ;;  %v2952_v45 = vld [vmem:[%s4384_s1 + $0x4c] sm:$0xf0] }
 0x22b   :  { %1555 = vmatpush.bf16.msra.mxu3 %v2579_v11 }
 0x22d   :  { %1516 = vmatpush.bf16.msra.mxu0 %v2567_v62  ;;  %1543 = vmatpush.bf16.msra.mxu2 %v2559_v23 }
 0x22e   :  { %1531 = vmatpush.bf16.msra.mxu1 %v2539_v36 }
 0x22f   :  { %1556 = vmatpush.bf16.msra.mxu3 %v2563_v28 }
 0x231   :  { %1517 = vmatpush.bf16.msra.mxu0 %v2551_v16  ;;  %1544 = vmatpush.bf16.msra.mxu2 %v2543_v42  ;;  %v2970_v42 = vld [vmem:[%s4384_s1 + $0xe4] sm:$0xf] }
 0x232   :  { %1532 = vmatpush.bf16.msra.mxu1 %v2523_v51  ;;  %v2748_v51 = vld [vmem:[%s4384_s1 + $0xc0] sm:$0xf] }
 0x233   :  { %1557 = vmatpush.bf16.msra.mxu3 %v2547_v43 }
 0x235   :  { %1518 = vmatpush.bf16.msra.mxu0 %v2535_v29 }
 0x237   :  { %1558 = vmatpush.bf16.msra.mxu3 %v2531_v59 }
 0x239   :  { %1519 = vmatpush.bf16.msra.mxu0 %v2519_v46  ;;  %v2769_v46 = vor.u32 %v2970_v42, %v2766_v44 }
 0x23b   :  { %1846 = vmatpush.bf16.msrb.mxu1 %v2769_v46  ;;  %v2950_v46 = vld [vmem:[%s4384_s1 + $0x44] sm:$0xf] }
 0x2a4   :  { %v1200_v2 = vpop.f32.mrf.mxu0  ;;  %v1213_v3 = vpop.f32.mrf.mxu1 }
 0x2a5   :  { %v1243_v8 = vadd.f32 %v1200_v2, %v995_v54  ;;  %v1244_v9 = vadd.f32 %v1213_v3, %v996_v55  ;;  %v2527_v55 = vor.u32 %v2913_v49, %v2526_v48  ;;  %v2971_v48 = vld [vmem:[%s4384_s1 + $0xec] sm:$0xf]  ;;  %v2774_v49 = vld [vmem:[%s4384_s1 + $0xf8] sm:$0xf0] }
 0x2a7   :  { %v2510_v14 = vmul.f32 -1.442695, %v1243_v8  ;;  %v2511_v15 = vmul.f32 -1.442695, %v1244_v9  ;;  %1545 = vmatpush.bf16.msra.mxu2 %v2527_v55  ;;  %v2750_v55 = vld [vmem:[%s4384_s1 + $0xd0] sm:$0xf0] }
 0x2a8   :  { %v2753_v59 = vor.u32 %v2966_v53, %v2750_v55  ;;  %v2692_v53 = vld [vmem:[%s4384_s1 + $0x48] sm:$0xf]  ;;  %v2951_v55 = vld [vmem:[%s4384_s1 + $0x4c] sm:$0xf] }
 0x2a9   :  { %3023 = vpow2.f32 %v2510_v14 }
 0x2aa   :  { %3025 = vpow2.f32 %v2511_v15  ;;  %1847 = vmatpush.bf16.msrb.mxu1 %v2753_v59  ;;  %v2668_v59 = vld [vmem:[%s4384_s1 + $0x20] sm:$0xf] }
 0x2ab   :  { %v1226_v33 = vpop.f32.mrf.mxu2  ;;  %v1239_v35 = vpop.f32.mrf.mxu3  ;;  %1859 = vmatpush.bf16.msrb.mxu2 %v2773_v47 }
 0x2ac   :  { %v1246_v38 = vadd.f32 %v1239_v35, %v998_v18  ;;  %v1202_v40 = vpop.f32.mrf.mxu0  ;;  %v1215_v41 = vpop.f32.mrf.mxu1  ;;  %v1245_v4 = vadd.f32 %v1226_v33, %v997_v0 }
 0x2ad   :  { %v2972_v41 = vld [vmem:[%s4384_s1 + $0xec] sm:$0xf0] }
 0x2ae   :  { %v2512_v50 = vmul.f32 -1.442695, %v1246_v38 }
 0x2af   :  { %v3024_v54 = vpop.eup %3023 }
 0x2b0   :  { %v3026_v56 = vpop.eup %3025  ;;  %v1250_v58 = vadd.f32 1.0, %v3024_v54  ;;  %3027 = vpow2.f32 %v2512_v50  ;;  %v2777_v50 = vor.u32 %v2971_v48, %v2774_v49  ;;  %v2749_v54 = vor.u32 %v2968_v52, %v2748_v51 }
 0x2b1   :  { %v1269_v60 = vadd.f32 1.0, %v3026_v56  ;;  %v2756_v56 = vld [vmem:[%s4384_s1 + $0xc8] sm:$0xf]  ;;  %v2685_v49 = vor.u32 %v2952_v45, %v2684_v39 }
 0x2b2   :  { %3029 = vrcp.f32 %v1250_v58  ;;  %v1262_v11 = vand.u32 2147483648, %v1250_v58  ;;  %v1260_v13 = vand.u32 2147483647, %v1250_v58  ;;  %vm1256_vm6 = vweird.f32 %v1250_v58  ;;  %1872 = vmatpush.bf16.msrb.mxu3 %v2777_v50  ;;  %v2686_v50 = vld [vmem:[%s4384_s1 + $0x50] sm:$0xf0] }
 0x2b3   :  { %3031 = vrcp.f32 %v1269_v60  ;;  %v1228_v62 = vpop.f32.mrf.mxu2  ;;  %v1241_v63 = vpop.f32.mrf.mxu3  ;;  %v1281_v6 = vand.u32 2147483648, %v1269_v60  ;;  %v1279_v10 = vand.u32 2147483647, %v1269_v60  ;;  %vm1275_vm7 = vweird.f32 %v1269_v60 }
 0x2b4   :  { %v1263_v17 = vor.u32 1.1754944e-38, %v1262_v11  ;;  %vm1261_vm10 = vcmp.eq.f32.partialorder %v1260_v13, 8.507059e+37  ;;  %v2967_v62 = vld [vmem:[%s4384_s1 + $0xcc] sm:$0xf]  ;;  %v2758_v63 = vld [vmem:[%s4384_s1 + $0xd8] sm:$0xf0]  ;;  %v2689_v52 = vor.u32 %v2950_v46, %v2686_v50 }
 0x2b5   :  { %v1282_v20 = vor.u32 1.1754944e-38, %v1281_v6  ;;  %vm1280_vm11 = vcmp.eq.f32.partialorder %v1279_v10, 8.507059e+37  ;;  %v2761_v0 = vor.u32 %v2967_v62, %v2758_v63  ;;  %v2963_v11 = vld [vmem:[%s4384_s1 + $0xac] sm:$0xf]  ;;  %v2742_v6 = vld [vmem:[%s4384_s1 + $0xb8] sm:$0xf0] }
 0x2b6   :  { %v3028_v1 = vpop.eup %3027  ;;  %v2745_v13 = vor.u32 %v2963_v11, %v2742_v6  ;;  %v2960_v10 = vld [vmem:[%s4384_s1 + $0x8c] sm:$0xf0] }
 0x2b7   :  { %v1289_v2 = vadd.f32 1.0, %v3028_v1  ;;  %v2732_v1 = vld [vmem:[%s4384_s1 + $0xa0] sm:$0xf]  ;;  %1873 = vmatpush.bf16.msrb.mxu3 %v2761_v0  ;;  %v2946_v0 = vld [vmem:[%s4384_s1 + $0x24] sm:$0xf] }
 0x2b8   :  { %v3030_v3 = vpop.eup %3029 }
 0x2b9   :  { %v3032_v5 = vpop.eup %3031  ;;  %v1252_v7 = vmul.f32 %v3030_v3, %v1250_v58  ;;  %3033 = vrcp.f32 %v1289_v2  ;;  %vm1257_vm4 = vweird.f32 %v3030_v3  ;;  %v1301_v33 = vand.u32 2147483648, %v1289_v2  ;;  %v2969_v58 = vld [vmem:[%s4384_s1 + $0xd4] sm:$0xf0] }
 0x2ba   :  { %v1271_v27 = vmul.f32 %v3032_v5, %v1269_v60  ;;  %3035 = vtanh.f32 %v1245_v4  ;;  %vm1276_vm5 = vweird.f32 %v3032_v5  ;;  %vm1258_vm8 = vmor %vm1256_vm6, %vm1257_vm4  ;;  %vm1295_vm13 = vweird.f32 %v1289_v2 }
 0x2bb   :  { %v1253_v8 = vsub.f32 1.0, %v1252_v7  ;;  %vm1277_vm9 = vmor %vm1275_vm7, %vm1276_vm5  ;;  %v1299_v35 = vand.u32 2147483647, %v1289_v2  ;;  %v1302_v37 = vor.u32 1.1754944e-38, %v1301_v33  ;;  %v2757_v60 = vor.u32 %v2969_v58, %v2756_v56  ;;  %v2740_v7 = vld [vmem:[%s4384_s1 + $0xa8] sm:$0xf]  ;;  %1874 = vmatpush.bf16.msrb.mxu3 %v2745_v13 }
 0x2bc   :  { %v1272_v9 = vsub.f32 1.0, %v1271_v27  ;;  %v2965_v27 = vld [vmem:[%s4384_s1 + $0xb4] sm:$0xf0]  ;;  %v2702_v33 = vld [vmem:[%s4384_s1 + $0x70] sm:$0xf0] }
 0x2bd   :  { %v1254_v12 = vmul.f32 %v3030_v3, %v1253_v8  ;;  %vm1300_vm15 = vcmp.eq.f32.partialorder %v1299_v35, 8.507059e+37  ;;  %1860 = vmatpush.bf16.msrb.mxu2 %v2757_v60  ;;  %v2708_v35 = vld [vmem:[%s4384_s1 + $0x68] sm:$0xf]  ;;  %v2694_v58 = vld [vmem:[%s4384_s1 + $0x58] sm:$0xf0] }
 0x2be   :  { %v1273_v14 = vmul.f32 %v3032_v5, %v1272_v9  ;;  %v2741_v9 = vor.u32 %v2965_v27, %v2740_v7  ;;  %v2948_v60 = vld [vmem:[%s4384_s1 + $0x2c] sm:$0xf0]  ;;  %v2697_v62 = vor.u32 %v2951_v55, %v2694_v58  ;;  %v2949_v7 = vld [vmem:[%s4384_s1 + $0x34] sm:$0xf0]  ;;  %v2947_v27 = vld [vmem:[%s4384_s1 + $0x2c] sm:$0xf] }
 0x2bf   :  { %v3034_v15 = vpop.eup %3033  ;;  %v1255_v16 = vadd.f32 %v3030_v3, %v1254_v12  ;;  %v2514_v12 = vld [vmem:[%s4383_s0 + $0x40] sm:$0xff]  ;;  %v2669_v63 = vor.u32 %v2948_v60, %v2668_v59 }
 0x2c0   :  { %v1274_v18 = vadd.f32 %v3032_v5, %v1273_v14  ;;  %v1291_v19 = vmul.f32 %v3034_v15, %v1289_v2  ;;  %v3036_v22 = vpop.eup %3035  ;;  %vm1296_vm12 = vweird.f32 %v3034_v15  ;;  %v2964_v2 = vld [vmem:[%s4384_s1 + $0xac] sm:$0xf0]  ;;  %v2716_v14 = vld [vmem:[%s4384_s1 + $0x80] sm:$0xf] }
 0x2c1   :  { %v1259_v21 = vsel %vm1258_vm8, %v3030_v3, %v1255_v16  ;;  %vm1297_vm14 = vmor %vm1295_vm13, %vm1296_vm12  ;;  %v2962_v3 = vld [vmem:[%s4384_s1 + $0xa4] sm:$0xf]  ;;  %v2733_v4 = vor.u32 %v2964_v2, %v2732_v1  ;;  %1861 = vmatpush.bf16.msrb.mxu2 %v2741_v9  ;;  %v2717_v16 = vor.u32 %v2960_v10, %v2716_v14  ;;  %v2670_v1 = vld [vmem:[%s4384_s1 + $0x30] sm:$0xf0] }
 0x2c2   :  { %v1264_v23 = vsel %vm1261_vm10, %v1263_v17, %v1259_v21  ;;  %v1278_v24 = vsel %vm1277_vm9, %v3032_v5, %v1274_v18  ;;  %v1292_v25 = vsub.f32 1.0, %v1291_v19  ;;  %v2734_v5 = vld [vmem:[%s4384_s1 + $0xb0] sm:$0xf0]  ;;  %v2724_v18 = vld [vmem:[%s4384_s1 + $0x88] sm:$0xf] }
 0x2c3   :  { %v1283_v26 = vsel %vm1280_vm11, %v1282_v20, %v1278_v24  ;;  %v1306_v28 = vmul.f32 %v3036_v22, %v1264_v23  ;;  %v2737_v8 = vor.u32 %v2962_v3, %v2734_v5  ;;  %v2718_v17 = vld [vmem:[%s4384_s1 + $0x90] sm:$0xf0]  ;;  %v2961_v19 = vld [vmem:[%s4384_s1 + $0x94] sm:$0xf0]  ;;  %v2959_v22 = vld [vmem:[%s4384_s1 + $0x8c] sm:$0xf]  ;;  %v1316_v24 = vunpack.c.l.bf16 %v2514_v12 }
 0x2c4   :  { %v1305_v29 = vmul.f32 %v1283_v26, %v3946_v61  ;;  %v1293_v30 = vmul.f32 %v3034_v15, %v1292_v25  ;;  %v2764_v61 = vld [vmem:[%s4384_s1 + $0xe0] sm:$0xf]  ;;  %v2725_v21 = vor.u32 %v2961_v19, %v2724_v18  ;;  %v2726_v23 = vld [vmem:[%s4384_s1 + $0x98] sm:$0xf0]  ;;  %v1317_v25 = vunpack.c.h.bf16 %v2514_v12  ;;  %v2676_v2 = vld [vmem:[%s4384_s1 + $0x28] sm:$0xf] }
 0x2c5   :  { %v2765_v43 = vor.u32 %v2972_v41, %v2764_v61  ;;  %1848 = vmatpush.bf16.msrb.mxu1 %v2737_v8  ;;  %v2729_v26 = vor.u32 %v2959_v22, %v2726_v23  ;;  %v2710_v61 = vld [vmem:[%s4384_s1 + $0x78] sm:$0xf0]  ;;  %v2673_v5 = vor.u32 %v2946_v0, %v2670_v1  ;;  %v2677_v12 = vor.u32 %v2949_v7, %v2676_v2  ;;  %v2652_v14 = vld [vmem:[%s4384_s1] sm:$0xf]  ;;  %v2944_v10 = vld [vmem:[%s4384_s1 + $0xc] sm:$0xf0] }
 0x2c6   :  { %v4155_v31 = vadd.f32 %v1306_v28, %v1305_v29  ;;  %v1294_v32 = vadd.f32 %v3034_v15, %v1293_v30  ;;  %1862 = vmatpush.bf16.msrb.mxu2 %v2725_v21  ;;  %v2700_v28 = vld [vmem:[%s4384_s1 + $0x60] sm:$0xf]  ;;  %v2956_v29 = vld [vmem:[%s4384_s1 + $0x6c] sm:$0xf0]  ;;  %v2954_v30 = vld [vmem:[%s4384_s1 + $0x64] sm:$0xf] }
 0x2c7   :  { %1833 = vmatpush.bf16.msrb.mxu0 %v2765_v43  ;;  %1875 = vmatpush.bf16.msrb.mxu3 %v2729_v26  ;;  %v4287_v43 = vld [vmem:[%s4383_s0 + $0x48] sm:$0xff]  ;;  %v2678_v8 = vld [vmem:[%s4384_s1 + $0x38] sm:$0xf0]  ;;  %v2945_v19 = vld [vmem:[%s4384_s1 + $0x14] sm:$0xf0] }
 0x2c8   :  { %3037 = vtanh.f32 %v4155_v31  ;;  %v1298_v36 = vsel %vm1297_vm14, %v3034_v15, %v1294_v32  ;;  %v2958_v15 = vld [vmem:[%s4384_s1 + $0x84] sm:$0xf]  ;;  %v2701_v32 = vor.u32 %v2956_v29, %v2700_v28  ;;  %v1319_v51 = vunpack.c.h.bf16 %v4287_v43  ;;  %v2660_v18 = vld [vmem:[%s4384_s1 + $0x8] sm:$0xf]  ;;  %v2943_v22 = vld [vmem:[%s4384_s1 + $0xc] sm:$0xf] }
 0x2c9   :  { %v1303_v34 = vsel %vm1300_vm15, %v1302_v37, %v1298_v36  ;;  %v2721_v20 = vor.u32 %v2958_v15, %v2718_v17  ;;  %v2957_v36 = vld [vmem:[%s4384_s1 + $0x74] sm:$0xf0]  ;;  %v2681_v13 = vor.u32 %v2947_v27, %v2678_v8  ;;  %v2942_v15 = vld [vmem:[%s4384_s1 + $0x4] sm:$0xf]  ;;  %v2654_v17 = vld [vmem:[%s4384_s1 + $0x10] sm:$0xf0] }
 0x2ca   :  { %v2657_v21 = vor.u32 %v2942_v15, %v2654_v17  ;;  %v2662_v23 = vld [vmem:[%s4384_s1 + $0x18] sm:$0xf0] }
 0x2cb   :  { %1834 = vmatpush.bf16.msrb.mxu0 %v2749_v54  ;;  %1849 = vmatpush.bf16.msrb.mxu1 %v2721_v20  ;;  %v2953_v54 = vld [vmem:[%s4384_s1 + $0x54] sm:$0xf0]  ;;  %v2665_v29 = vor.u32 %v2943_v22, %v2662_v23 }
 0x2cc   :  { %v2693_v56 = vor.u32 %v2953_v54, %v2692_v53 }
 0x2ce   :  { %v3038_v57 = vpop.eup %3037 }
 0x2cf   :  { %v1309_v38 = vmul.f32 %v3038_v57, %v1303_v34  ;;  %1835 = vmatpush.bf16.msrb.mxu0 %v2733_v4  ;;  %v2705_v34 = vor.u32 %v2954_v30, %v2702_v33 }
 0x2d1   :  { %v1310_v40 = vpack.c.bf16 %v1309_v38, %v1309_v38  ;;  %v2709_v38 = vor.u32 %v2957_v36, %v2708_v35  ;;  %1850 = vmatpush.bf16.msrb.mxu1 %v2705_v34  ;;  %v1318_v35 = vunpack.c.l.bf16 %v4287_v43 }
 0x2d3   :  { %2513 = vst [vmem:[%s4387_s4 + $0xc] sm:$0xf] %v1310_v40  ;;  %1520 = vmatmul.bf16.vlgmr.msra.gmra.mxu0 %v1310_v40  ;;  %1533 = vmatmul.bf16.vlgmr.msra.gmra.mxu1 %v1310_v40 }
 0x2d4   :  { %1546 = vmatmul.bf16.vlgmr.msra.gmra.mxu2 %v1310_v40  ;;  %1559 = vmatmul.bf16.vlgmr.msra.gmra.mxu3 %v1310_v40  ;;  %v2955_v40 = vld [vmem:[%s4384_s1 + $0x6c] sm:$0xf] }
 0x2d5   :  { %1836 = vmatpush.bf16.msrb.mxu0 %v2717_v16  ;;  %v2713_v44 = vor.u32 %v2955_v40, %v2710_v61  ;;  %1863 = vmatpush.bf16.msrb.mxu2 %v2709_v38  ;;  %v2653_v16 = vor.u32 %v2944_v10, %v2652_v14 }
 0x2d6   :  { %1851 = vmatpush.bf16.msrb.mxu1 %v2689_v52 }
 0x2d7   :  { %1876 = vmatpush.bf16.msrb.mxu3 %v2713_v44 }
 0x2d9   :  { %1837 = vmatpush.bf16.msrb.mxu0 %v2701_v32  ;;  %1864 = vmatpush.bf16.msrb.mxu2 %v2693_v56 }
 0x2da   :  { %1852 = vmatpush.bf16.msrb.mxu1 %v2673_v5 }
 0x2db   :  { %1877 = vmatpush.bf16.msrb.mxu3 %v2697_v62 }
 0x2dd   :  { %1838 = vmatpush.bf16.msrb.mxu0 %v2685_v49  ;;  %1865 = vmatpush.bf16.msrb.mxu2 %v2677_v12 }
 0x2de   :  { %1853 = vmatpush.bf16.msrb.mxu1 %v2657_v21 }
 0x2df   :  { %1878 = vmatpush.bf16.msrb.mxu3 %v2681_v13 }
 0x2e1   :  { %1839 = vmatpush.bf16.msrb.mxu0 %v2669_v63 }
 0x2e3   :  { %1879 = vmatpush.bf16.msrb.mxu3 %v2665_v29 }
 0x2e5   :  { %1840 = vmatpush.bf16.msrb.mxu0 %v2653_v16  ;;  %v2649_v16 = vld [vmem:[%s4383_s0 + $0x58] sm:$0xff] }
 0x350   :  { %v1521_v37 = vpop.f32.mrf.mxu0  ;;  %v1534_v57 = vpop.f32.mrf.mxu1 }
 0x351   :  { %v1564_v41 = vadd.f32 %v1521_v37, %v1316_v24  ;;  %v1565_v42 = vadd.f32 %v1534_v57, %v1317_v25  ;;  %v2661_v25 = vor.u32 %v2945_v19, %v2660_v18  ;;  %v1640_v19 = vunpack.c.h.bf16 %v2649_v16 }
 0x353   :  { %v2644_v47 = vmul.f32 -1.442695, %v1564_v41  ;;  %v2645_v48 = vmul.f32 -1.442695, %v1565_v42  ;;  %1866 = vmatpush.bf16.msrb.mxu2 %v2661_v25 }
 0x355   :  { %3039 = vpow2.f32 %v2644_v47 }
 0x356   :  { %3041 = vpow2.f32 %v2645_v48 }
 0x357   :  { %v1547_v3 = vpop.f32.mrf.mxu2  ;;  %v1560_v4 = vpop.f32.mrf.mxu3 }
 0x358   :  { %v1567_v9 = vadd.f32 %v1560_v4, %v1319_v51  ;;  %v1523_v11 = vpop.f32.mrf.mxu0  ;;  %v1536_v6 = vpop.f32.mrf.mxu1  ;;  %v1566_v34 = vadd.f32 %v1547_v3, %v1318_v35  ;;  %v1639_v35 = vunpack.c.l.bf16 %v2649_v16 }
 0x35a   :  { %v2646_v20 = vmul.f32 -1.442695, %v1567_v9 }
 0x35b   :  { %v3040_v24 = vpop.eup %3039 }
 0x35c   :  { %v3042_v26 = vpop.eup %3041  ;;  %v1571_v28 = vadd.f32 1.0, %v3040_v24  ;;  %3043 = vpow2.f32 %v2646_v20 }
 0x35d   :  { %v1590_v30 = vadd.f32 1.0, %v3042_v26 }
 0x35e   :  { %3045 = vrcp.f32 %v1571_v28  ;;  %v1583_v44 = vand.u32 2147483648, %v1571_v28  ;;  %v1581_v46 = vand.u32 2147483647, %v1571_v28  ;;  %vm1577_vm2 = vweird.f32 %v1571_v28 }
 0x35f   :  { %3047 = vrcp.f32 %v1590_v30  ;;  %v1549_v32 = vpop.f32.mrf.mxu2  ;;  %v1562_v33 = vpop.f32.mrf.mxu3  ;;  %v1602_v39 = vand.u32 2147483648, %v1590_v30  ;;  %v1600_v43 = vand.u32 2147483647, %v1590_v30  ;;  %vm1596_vm3 = vweird.f32 %v1590_v30 }
 0x360   :  { %v1584_v50 = vor.u32 1.1754944e-38, %v1583_v44  ;;  %vm1582_vm6 = vcmp.eq.f32.partialorder %v1581_v46, 8.507059e+37 }
 0x361   :  { %v1603_v53 = vor.u32 1.1754944e-38, %v1602_v39  ;;  %vm1601_vm7 = vcmp.eq.f32.partialorder %v1600_v43, 8.507059e+37 }
 0x362   :  { %v3044_v36 = vpop.eup %3043 }
 0x363   :  { %v1610_v37 = vadd.f32 1.0, %v3044_v36 }
 0x364   :  { %v3046_v57 = vpop.eup %3045 }
 0x365   :  { %v3048_v38 = vpop.eup %3047  ;;  %v1573_v40 = vmul.f32 %v3046_v57, %v1571_v28  ;;  %3049 = vrcp.f32 %v1610_v37  ;;  %vm1578_vm0 = vweird.f32 %v3046_v57  ;;  %v1622_v3 = vand.u32 2147483648, %v1610_v37 }
 0x366   :  { %v1592_v61 = vmul.f32 %v3048_v38, %v1590_v30  ;;  %3051 = vtanh.f32 %v1566_v34  ;;  %vm1597_vm1 = vweird.f32 %v3048_v38  ;;  %vm1579_vm4 = vmor %vm1577_vm2, %vm1578_vm0  ;;  %vm1616_vm9 = vweird.f32 %v1610_v37 }
 0x367   :  { %v1574_v41 = vsub.f32 1.0, %v1573_v40  ;;  %vm1598_vm5 = vmor %vm1596_vm3, %vm1597_vm1  ;;  %v1620_v4 = vand.u32 2147483647, %v1610_v37  ;;  %v1623_v7 = vor.u32 1.1754944e-38, %v1622_v3 }
 0x368   :  { %v1593_v42 = vsub.f32 1.0, %v1592_v61 }
 0x369   :  { %v1575_v45 = vmul.f32 %v3046_v57, %v1574_v41  ;;  %vm1621_vm11 = vcmp.eq.f32.partialorder %v1620_v4, 8.507059e+37 }
 0x36a   :  { %v1594_v47 = vmul.f32 %v3048_v38, %v1593_v42 }
 0x36b   :  { %v3050_v48 = vpop.eup %3049  ;;  %v1576_v49 = vadd.f32 %v3046_v57, %v1575_v45 }
 0x36c   :  { %v1595_v51 = vadd.f32 %v3048_v38, %v1594_v47  ;;  %v1612_v52 = vmul.f32 %v3050_v48, %v1610_v37  ;;  %v3052_v55 = vpop.eup %3051  ;;  %vm1617_vm8 = vweird.f32 %v3050_v48 }
 0x36d   :  { %v1580_v54 = vsel %vm1579_vm4, %v3046_v57, %v1576_v49  ;;  %vm1618_vm10 = vmor %vm1616_vm9, %vm1617_vm8 }
 0x36e   :  { %v1585_v56 = vsel %vm1582_vm6, %v1584_v50, %v1580_v54  ;;  %v1599_v58 = vsel %vm1598_vm5, %v3048_v38, %v1595_v51  ;;  %v1613_v59 = vsub.f32 1.0, %v1612_v52 }
 0x36f   :  { %v1604_v60 = vsel %vm1601_vm7, %v1603_v53, %v1599_v58  ;;  %v1627_v62 = vmul.f32 %v3052_v55, %v1585_v56 }
 0x370   :  { %v1626_v63 = vmul.f32 %v1604_v60, %v4155_v31  ;;  %v1614_v0 = vmul.f32 %v3050_v48, %v1613_v59  ;;  %v2648_v31 = vld [vmem:[%s4383_s0 + $0x50] sm:$0xff]  ;;  %s3097_s0 = smov [#allocation4]  }
 0x371   :  { %v1637_v6 = vunpack.c.l.bf16 %v2648_v31  ;;  %v1638_v12 = vunpack.c.h.bf16 %v2648_v31  ;;  %s1968_s26 = sshll.u32 %s3097_s0, 4  ;;  %s1969_s26 = int_to_ptr.vmem [resolvable:$true] %s1968_s26 }
 0x372   :  { %v4364_v1 = vadd.f32 %v1627_v62, %v1626_v63  ;;  %v1615_v2 = vadd.f32 %v3050_v48, %v1614_v0 }
 0x374   :  { %3053 = vtanh.f32 %v4364_v1  ;;  %v1619_v5 = vsel %vm1618_vm10, %v3050_v48, %v1615_v2 }
 0x375   :  { %v1624_v8 = vsel %vm1621_vm11, %v1623_v7, %v1619_v5 }
 0x37a   :  { %v3054_v27 = vpop.eup %3053 }
 0x37b   :  { %v1630_v9 = vmul.f32 %v3054_v27, %v1624_v8 }
 0x37d   :  { %v1631_v11 = vpack.c.bf16 %v1630_v9, %v1630_v9 }
 0x37f   :  { %2647 = vst [vmem:[%s4387_s4 + $0x10] sm:$0xf] %v1631_v11  ;;  %1841 = vmatmul.bf16.vlgmr.msrb.gmra.mxu0 %v1631_v11  ;;  %1854 = vmatmul.bf16.vlgmr.msrb.gmra.mxu1 %v1631_v11 }
 0x380   :  { %1867 = vmatmul.bf16.vlgmr.msrb.gmra.mxu2 %v1631_v11  ;;  %1880 = vmatmul.bf16.vlgmr.msrb.gmra.mxu3 %v1631_v11 }
 0x3fc   :  { %v1842_v13 = vpop.f32.mrf.mxu0  ;;  %v1855_v14 = vpop.f32.mrf.mxu1 }
 0x3fd   :  { %v1885_v10 = vadd.f32 %v1842_v13, %v1637_v6  ;;  %v1886_v15 = vadd.f32 %v1855_v14, %v1638_v12 }
 0x3ff   :  { %v2778_v17 = vmul.f32 -1.442695, %v1885_v10  ;;  %v2779_v18 = vmul.f32 -1.442695, %v1886_v15 }
 0x401   :  { %3055 = vpow2.f32 %v2778_v17 }
 0x402   :  { %3057 = vpow2.f32 %v2779_v18 }
 0x403   :  { %v1868_v20 = vpop.f32.mrf.mxu2  ;;  %v1881_v21 = vpop.f32.mrf.mxu3 }
 0x404   :  { %v1888_v22 = vadd.f32 %v1881_v21, %v1640_v19  ;;  %v1844_v23 = vpop.f32.mrf.mxu0  ;;  %v1857_v24 = vpop.f32.mrf.mxu1  ;;  %v1887_v34 = vadd.f32 %v1868_v20, %v1639_v35 }
 0x406   :  { %v2780_v25 = vmul.f32 -1.442695, %v1888_v22 }
 0x407   :  { %v3056_v26 = vpop.eup %3055 }
 0x408   :  { %v3058_v28 = vpop.eup %3057  ;;  %v1892_v29 = vadd.f32 1.0, %v3056_v26  ;;  %3059 = vpow2.f32 %v2780_v25 }
 0x409   :  { %v1911_v30 = vadd.f32 1.0, %v3058_v28 }
 0x40a   :  { %3061 = vrcp.f32 %v1892_v29  ;;  %v1904_v44 = vand.u32 2147483648, %v1892_v29  ;;  %v1902_v46 = vand.u32 2147483647, %v1892_v29  ;;  %vm1898_vm14 = vweird.f32 %v1892_v29 }
 0x40b   :  { %3063 = vrcp.f32 %v1911_v30  ;;  %v1870_v32 = vpop.f32.mrf.mxu2  ;;  %v1883_v33 = vpop.f32.mrf.mxu3  ;;  %v1923_v39 = vand.u32 2147483648, %v1911_v30  ;;  %v1921_v43 = vand.u32 2147483647, %v1911_v30  ;;  %vm1917_vm15 = vweird.f32 %v1911_v30 }
 0x40c   :  { %v1905_v50 = vor.u32 1.1754944e-38, %v1904_v44  ;;  %vm1903_vm2 = vcmp.eq.f32.partialorder %v1902_v46, 8.507059e+37 }
 0x40d   :  { %v1924_v53 = vor.u32 1.1754944e-38, %v1923_v39  ;;  %vm1922_vm3 = vcmp.eq.f32.partialorder %v1921_v43, 8.507059e+37 }
 0x40e   :  { %v3060_v36 = vpop.eup %3059 }
 0x40f   :  { %v1931_v37 = vadd.f32 1.0, %v3060_v36 }
 0x410   :  { %v3062_v57 = vpop.eup %3061 }
 0x411   :  { %v3064_v38 = vpop.eup %3063  ;;  %v1894_v40 = vmul.f32 %v3062_v57, %v1892_v29  ;;  %3065 = vrcp.f32 %v1931_v37  ;;  %vm1899_vm12 = vweird.f32 %v3062_v57  ;;  %v1943_v4 = vand.u32 2147483648, %v1931_v37 }
 0x412   :  { %v1913_v61 = vmul.f32 %v3064_v38, %v1911_v30  ;;  %3067 = vtanh.f32 %v1887_v34  ;;  %vm1918_vm13 = vweird.f32 %v3064_v38  ;;  %vm1900_vm0 = vmor %vm1898_vm14, %vm1899_vm12  ;;  %vm1937_vm5 = vweird.f32 %v1931_v37 }
 0x413   :  { %v1895_v41 = vsub.f32 1.0, %v1894_v40  ;;  %vm1919_vm1 = vmor %vm1917_vm15, %vm1918_vm13  ;;  %v1941_v5 = vand.u32 2147483647, %v1931_v37  ;;  %v1944_v27 = vor.u32 1.1754944e-38, %v1943_v4 }
 0x414   :  { %v1914_v42 = vsub.f32 1.0, %v1913_v61 }
 0x415   :  { %v1896_v45 = vmul.f32 %v3062_v57, %v1895_v41  ;;  %vm1942_vm7 = vcmp.eq.f32.partialorder %v1941_v5, 8.507059e+37 }
 0x416   :  { %v1915_v47 = vmul.f32 %v3064_v38, %v1914_v42 }
 0x417   :  { %v3066_v48 = vpop.eup %3065  ;;  %v1897_v49 = vadd.f32 %v3062_v57, %v1896_v45 }
 0x418   :  { %v1916_v51 = vadd.f32 %v3064_v38, %v1915_v47  ;;  %v1933_v52 = vmul.f32 %v3066_v48, %v1931_v37  ;;  %v3068_v55 = vpop.eup %3067  ;;  %vm1938_vm4 = vweird.f32 %v3066_v48 }
 0x419   :  { %v1901_v54 = vsel %vm1900_vm0, %v3062_v57, %v1897_v49  ;;  %vm1939_vm6 = vmor %vm1937_vm5, %vm1938_vm4 }
 0x41a   :  { %v1906_v56 = vsel %vm1903_vm2, %v1905_v50, %v1901_v54  ;;  %v1920_v58 = vsel %vm1919_vm1, %v3064_v38, %v1916_v51  ;;  %v1934_v59 = vsub.f32 1.0, %v1933_v52 }
 0x41b   :  { %v1925_v60 = vsel %vm1922_vm3, %v1924_v53, %v1920_v58  ;;  %v1948_v62 = vmul.f32 %v3068_v55, %v1906_v56 }
 0x41c   :  { %v1947_v63 = vmul.f32 %v1925_v60, %v4364_v1  ;;  %v1935_v0 = vmul.f32 %v3066_v48, %v1934_v59 }
 0x41e   :  { %v1949_v2 = vadd.f32 %v1948_v62, %v1947_v63  ;;  %v1936_v3 = vadd.f32 %v3066_v48, %v1935_v0 }
 0x420   :  { %3069 = vtanh.f32 %v1949_v2  ;;  %v1940_v7 = vsel %vm1939_vm6, %v3066_v48, %v1936_v3 }
 0x421   :  { %v1945_v1 = vsel %vm1942_vm7, %v1944_v27, %v1940_v7 }
 0x426   :  { %v3070_v8 = vpop.eup %3069 }
 0x427   :  { %v1951_v9 = vmul.f32 %v3070_v8, %v1945_v1 }
 0x429   :  { %v1952_v11 = vpack.c.bf16 %v1951_v9, %v1951_v9  ;;  %1960 = vst [vmem:[#allocation4] sm:$0xff] %v1951_v9 }
 0x42a   :  { %1973 = dma.vmem_to_hbm [thread:$0]  %s1969_s26, 128, %s1971_s29, [#allocation5]  }
 0x42b   :  { %2781 = vst [vmem:[%s4387_s4 + $0x14] sm:$0xf] %v1952_v11 }
 0x42c   :  { %3095 = dma.done.wait [#allocation5], 128  }
 0x42d   :  { %3096 = vsyncadd [#allocation5], 4294967168 }
 0x42e   :  { %1980 = vsyncpa [#allocation5], 1 }

// kernel: rnn_forward.16
= control target key start
LH: loop header
LB: loop body
LE: loop exit
PB: predicated region body
PF: predicated region fallthrough
CT: control target
= control target key end

     0   :  { %s5785_s0 = inlined_call_operand.vmem [shape: bf16[8,8,512], index: 0, kind: input, shape index: {}]   ;;  %s5786_s1 = inlined_call_operand.vmem [shape: bf16[128,512], index: 1, kind: input, shape index: {}]   ;;  %s5787_s2 = inlined_call_operand.vmem [shape: f32[8,128], index: 2, kind: input, shape index: {}, may-alias: {2,3}]   ;;  %s5788_s3 = inlined_call_operand.vmem [shape: f32[8,128], index: 3, kind: input, shape index: {}, may-alias: {2,3}]   ;;  %s5789_s4 = inlined_call_operand.hbm [shape: bf16[8,8,128], index: 4, kind: output, shape index: {0}]   ;;  %s5790_s5 = inlined_call_operand.vmem [shape: f32[8,128], index: 5, kind: output, shape index: {1}]  }
   0x1   :  { %v2739_v0 = vld [vmem:[%s5786_s1 + $0xe0] sm:$0xf]  ;;  %v3717_v1 = vld [vmem:[%s5786_s1 + $0xec] sm:$0xf0]  ;;  %v3715_v2 = vld [vmem:[%s5786_s1 + $0xe4] sm:$0xf] }
   0x2   :  { %v2740_v3 = vor.u32 %v3717_v1, %v2739_v0  ;;  %v2741_v4 = vld [vmem:[%s5786_s1 + $0xf0] sm:$0xf0]  ;;  %v3716_v5 = vld [vmem:[%s5786_s1 + $0xec] sm:$0xf]  ;;  %v2749_v6 = vld [vmem:[%s5786_s1 + $0xf8] sm:$0xf0] }
   0x3   :  { %v2744_v7 = vor.u32 %v3715_v2, %v2741_v4  ;;  %v2752_v8 = vor.u32 %v3716_v5, %v2749_v6  ;;  %v2723_v9 = vld [vmem:[%s5786_s1 + $0xc0] sm:$0xf]  ;;  %v3713_v10 = vld [vmem:[%s5786_s1 + $0xcc] sm:$0xf0]  ;;  %v3711_v11 = vld [vmem:[%s5786_s1 + $0xc4] sm:$0xf] }
   0x4   :  { %229 = vmatpush.bf16.msra.mxu0 %v2740_v3  ;;  %v2724_v12 = vor.u32 %v3713_v10, %v2723_v9  ;;  %v2725_v13 = vld [vmem:[%s5786_s1 + $0xd0] sm:$0xf0]  ;;  %v3712_v14 = vld [vmem:[%s5786_s1 + $0xcc] sm:$0xf]  ;;  %v2733_v15 = vld [vmem:[%s5786_s1 + $0xd8] sm:$0xf0] }
   0x5   :  { %242 = vmatpush.bf16.msra.mxu1 %v2744_v7  ;;  %268 = vmatpush.bf16.msra.mxu3 %v2752_v8  ;;  %v2728_v16 = vor.u32 %v3711_v11, %v2725_v13  ;;  %v2736_v17 = vor.u32 %v3712_v14, %v2733_v15  ;;  %v2747_v18 = vld [vmem:[%s5786_s1 + $0xe8] sm:$0xf]  ;;  %v3718_v19 = vld [vmem:[%s5786_s1 + $0xf4] sm:$0xf0]  ;;  %v2707_v20 = vld [vmem:[%s5786_s1 + $0xa0] sm:$0xf] }
   0x6   :  { %v2748_v21 = vor.u32 %v3718_v19, %v2747_v18  ;;  %v3709_v22 = vld [vmem:[%s5786_s1 + $0xac] sm:$0xf0]  ;;  %v3707_v23 = vld [vmem:[%s5786_s1 + $0xa4] sm:$0xf]  ;;  %v2709_v24 = vld [vmem:[%s5786_s1 + $0xb0] sm:$0xf0] }
   0x7   :  { %v3708_v25 = vld [vmem:[%s5786_s1 + $0xac] sm:$0xf]  ;;  %v2717_v26 = vld [vmem:[%s5786_s1 + $0xb8] sm:$0xf0]  ;;  %v2731_v27 = vld [vmem:[%s5786_s1 + $0xc8] sm:$0xf]  ;;  %v2708_v28 = vor.u32 %v3709_v22, %v2707_v20  ;;  %v2712_v32 = vor.u32 %v3707_v23, %v2709_v24 }
   0x8   :  { %230 = vmatpush.bf16.msra.mxu0 %v2724_v12  ;;  %255 = vmatpush.bf16.msra.mxu2 %v2748_v21  ;;  %v3714_v29 = vld [vmem:[%s5786_s1 + $0xd4] sm:$0xf0]  ;;  %v2691_v30 = vld [vmem:[%s5786_s1 + $0x80] sm:$0xf]  ;;  %v3705_v31 = vld [vmem:[%s5786_s1 + $0x8c] sm:$0xf0]  ;;  %v2720_v33 = vor.u32 %v3708_v25, %v2717_v26 }
   0x9   :  { %243 = vmatpush.bf16.msra.mxu1 %v2728_v16  ;;  %269 = vmatpush.bf16.msra.mxu3 %v2736_v17  ;;  %v2732_v34 = vor.u32 %v3714_v29, %v2731_v27  ;;  %v3703_v35 = vld [vmem:[%s5786_s1 + $0x84] sm:$0xf]  ;;  %v2693_v36 = vld [vmem:[%s5786_s1 + $0x90] sm:$0xf0]  ;;  %v3704_v37 = vld [vmem:[%s5786_s1 + $0x8c] sm:$0xf]  ;;  %v2692_v41 = vor.u32 %v3705_v31, %v2691_v30 }
   0xa   :  { %v2701_v38 = vld [vmem:[%s5786_s1 + $0x98] sm:$0xf0]  ;;  %v2715_v39 = vld [vmem:[%s5786_s1 + $0xa8] sm:$0xf]  ;;  %v3710_v40 = vld [vmem:[%s5786_s1 + $0xb4] sm:$0xf0]  ;;  %v2696_v45 = vor.u32 %v3703_v35, %v2693_v36 }
   0xb   :  { %v2716_v42 = vor.u32 %v3710_v40, %v2715_v39  ;;  %v2675_v43 = vld [vmem:[%s5786_s1 + $0x60] sm:$0xf]  ;;  %v3701_v44 = vld [vmem:[%s5786_s1 + $0x6c] sm:$0xf0]  ;;  %v2704_v46 = vor.u32 %v3704_v37, %v2701_v38  ;;  %v3699_v47 = vld [vmem:[%s5786_s1 + $0x64] sm:$0xf] }
   0xc   :  { %231 = vmatpush.bf16.msra.mxu0 %v2708_v28  ;;  %256 = vmatpush.bf16.msra.mxu2 %v2732_v34  ;;  %v2699_v48 = vld [vmem:[%s5786_s1 + $0x88] sm:$0xf]  ;;  %v3706_v49 = vld [vmem:[%s5786_s1 + $0x94] sm:$0xf0]  ;;  %v2677_v50 = vld [vmem:[%s5786_s1 + $0x70] sm:$0xf0]  ;;  %v2676_v53 = vor.u32 %v3701_v44, %v2675_v43 }
   0xd   :  { %244 = vmatpush.bf16.msra.mxu1 %v2712_v32  ;;  %270 = vmatpush.bf16.msra.mxu3 %v2720_v33  ;;  %v3700_v51 = vld [vmem:[%s5786_s1 + $0x6c] sm:$0xf]  ;;  %v2685_v52 = vld [vmem:[%s5786_s1 + $0x78] sm:$0xf0]  ;;  %v2700_v54 = vor.u32 %v3706_v49, %v2699_v48  ;;  %v2659_v55 = vld [vmem:[%s5786_s1 + $0x40] sm:$0xf]  ;;  %v2680_v57 = vor.u32 %v3699_v47, %v2677_v50 }
   0xe   :  { %v3697_v56 = vld [vmem:[%s5786_s1 + $0x4c] sm:$0xf0]  ;;  %v2688_v58 = vor.u32 %v3700_v51, %v2685_v52  ;;  %v3695_v59 = vld [vmem:[%s5786_s1 + $0x44] sm:$0xf]  ;;  %v2683_v60 = vld [vmem:[%s5786_s1 + $0x68] sm:$0xf] }
   0xf   :  { %v3702_v61 = vld [vmem:[%s5786_s1 + $0x74] sm:$0xf0]  ;;  %v2661_v62 = vld [vmem:[%s5786_s1 + $0x50] sm:$0xf0]  ;;  %v3696_v63 = vld [vmem:[%s5786_s1 + $0x4c] sm:$0xf]  ;;  %v2660_v1 = vor.u32 %v3697_v56, %v2659_v55 }
  0x10   :  { %232 = vmatpush.bf16.msra.mxu0 %v2692_v41  ;;  %257 = vmatpush.bf16.msra.mxu2 %v2716_v42  ;;  %v2669_v0 = vld [vmem:[%s5786_s1 + $0x58] sm:$0xf0]  ;;  %v2684_v2 = vor.u32 %v3702_v61, %v2683_v60  ;;  %v2643_v3 = vld [vmem:[%s5786_s1 + $0x20] sm:$0xf]  ;;  %v3693_v4 = vld [vmem:[%s5786_s1 + $0x2c] sm:$0xf0]  ;;  %v2664_v5 = vor.u32 %v3695_v59, %v2661_v62 }
  0x11   :  { %245 = vmatpush.bf16.msra.mxu1 %v2696_v45  ;;  %271 = vmatpush.bf16.msra.mxu3 %v2704_v46  ;;  %v2672_v6 = vor.u32 %v3696_v63, %v2669_v0  ;;  %v3691_v7 = vld [vmem:[%s5786_s1 + $0x24] sm:$0xf]  ;;  %v2667_v8 = vld [vmem:[%s5786_s1 + $0x48] sm:$0xf]  ;;  %v3698_v9 = vld [vmem:[%s5786_s1 + $0x54] sm:$0xf0] }
  0x12   :  { %v2645_v10 = vld [vmem:[%s5786_s1 + $0x30] sm:$0xf0]  ;;  %v3692_v11 = vld [vmem:[%s5786_s1 + $0x2c] sm:$0xf]  ;;  %v2653_v12 = vld [vmem:[%s5786_s1 + $0x38] sm:$0xf0] }
  0x14   :  { %233 = vmatpush.bf16.msra.mxu0 %v2676_v53  ;;  %258 = vmatpush.bf16.msra.mxu2 %v2700_v54 }
  0x15   :  { %246 = vmatpush.bf16.msra.mxu1 %v2680_v57  ;;  %272 = vmatpush.bf16.msra.mxu3 %v2688_v58 }
  0x16   :  { %11 = vsyncpa [#allocation5], 0  ;;  %v2644_v13 = vor.u32 %v3693_v4, %v2643_v3  ;;  %v2668_v14 = vor.u32 %v3698_v9, %v2667_v8  ;;  %v2627_v15 = vld [vmem:[%s5786_s1] sm:$0xf]  ;;  %v3689_v16 = vld [vmem:[%s5786_s1 + $0xc] sm:$0xf0]  ;;  %v2648_v17 = vor.u32 %v3691_v7, %v2645_v10  ;;  %v2656_v18 = vor.u32 %v3692_v11, %v2653_v12 }
  0x17   :  { %v3687_v19 = vld [vmem:[%s5786_s1 + $0x4] sm:$0xf]  ;;  %v2651_v20 = vld [vmem:[%s5786_s1 + $0x28] sm:$0xf]  ;;  %v3694_v21 = vld [vmem:[%s5786_s1 + $0x34] sm:$0xf0]  ;;  %v2628_v25 = vor.u32 %v3689_v16, %v2627_v15 }
  0x18   :  { %234 = vmatpush.bf16.msra.mxu0 %v2660_v1  ;;  %259 = vmatpush.bf16.msra.mxu2 %v2684_v2  ;;  %v2629_v22 = vld [vmem:[%s5786_s1 + $0x10] sm:$0xf0]  ;;  %v3688_v23 = vld [vmem:[%s5786_s1 + $0xc] sm:$0xf]  ;;  %v2637_v24 = vld [vmem:[%s5786_s1 + $0x18] sm:$0xf0]  ;;  %v2652_v27 = vor.u32 %v3694_v21, %v2651_v20 }
  0x19   :  { %247 = vmatpush.bf16.msra.mxu1 %v2664_v5  ;;  %273 = vmatpush.bf16.msra.mxu3 %v2672_v6  ;;  %v24_v26 = vld [vmem:[%s5787_s2] sm:$0xff]  ;;  %v2632_v28 = vor.u32 %v3687_v19, %v2629_v22  ;;  %v2640_v29 = vor.u32 %v3688_v23, %v2637_v24  ;;  %v2635_v30 = vld [vmem:[%s5786_s1 + $0x8] sm:$0xf]  ;;  %v3690_v31 = vld [vmem:[%s5786_s1 + $0x14] sm:$0xf0]  ;;  %s2609_s15 = sshll.u32 %s5789_s4, 4  ;;  %s2610_s15 = int_to_ptr.hbm [resolvable:$true] %s2609_s15 }
  0x1a   :  { %v36_v32 = vpack.c.bf16 %v24_v26, %v24_v26  ;;  %v2636_v33 = vor.u32 %v3690_v31, %v2635_v30  ;;  %v2872_v34 = vld [vmem:[%s5786_s1 + $0xe0] sm:$0xf]  ;;  %v3749_v35 = vld [vmem:[%s5786_s1 + $0xec] sm:$0xf0]  ;;  %v3747_v36 = vld [vmem:[%s5786_s1 + $0xe4] sm:$0xf] }
  0x1b   :  { %v2873_v37 = vor.u32 %v3749_v35, %v2872_v34  ;;  %v2874_v38 = vld [vmem:[%s5786_s1 + $0xf0] sm:$0xf0]  ;;  %v2880_v39 = vld [vmem:[%s5786_s1 + $0xe8] sm:$0xf]  ;;  %v3750_v40 = vld [vmem:[%s5786_s1 + $0xf4] sm:$0xf0] }
  0x1c   :  { %235 = vmatpush.bf16.msra.mxu0 %v2644_v13  ;;  %260 = vmatpush.bf16.msra.mxu2 %v2668_v14  ;;  %v2877_v41 = vor.u32 %v3747_v36, %v2874_v38  ;;  %v2881_v42 = vor.u32 %v3750_v40, %v2880_v39  ;;  %v3748_v43 = vld [vmem:[%s5786_s1 + $0xec] sm:$0xf]  ;;  %v2882_v44 = vld [vmem:[%s5786_s1 + $0xf8] sm:$0xf0]  ;;  %v2856_v46 = vld [vmem:[%s5786_s1 + $0xc0] sm:$0xf] }
  0x1d   :  { %248 = vmatpush.bf16.msra.mxu1 %v2648_v17  ;;  %274 = vmatpush.bf16.msra.mxu3 %v2656_v18  ;;  %v2885_v45 = vor.u32 %v3748_v43, %v2882_v44  ;;  %v3745_v47 = vld [vmem:[%s5786_s1 + $0xcc] sm:$0xf0]  ;;  %v3743_v48 = vld [vmem:[%s5786_s1 + $0xc4] sm:$0xf]  ;;  %v2858_v50 = vld [vmem:[%s5786_s1 + $0xd0] sm:$0xf0] }
  0x1e   :  { %v2857_v49 = vor.u32 %v3745_v47, %v2856_v46  ;;  %v2864_v51 = vld [vmem:[%s5786_s1 + $0xc8] sm:$0xf]  ;;  %v3746_v52 = vld [vmem:[%s5786_s1 + $0xd4] sm:$0xf0]  ;;  %v2861_v53 = vor.u32 %v3743_v48, %v2858_v50  ;;  %v3744_v55 = vld [vmem:[%s5786_s1 + $0xcc] sm:$0xf] }
  0x1f   :  { %v2865_v54 = vor.u32 %v3746_v52, %v2864_v51  ;;  %v2866_v56 = vld [vmem:[%s5786_s1 + $0xd8] sm:$0xf0]  ;;  %v2840_v58 = vld [vmem:[%s5786_s1 + $0xa0] sm:$0xf]  ;;  %v3741_v59 = vld [vmem:[%s5786_s1 + $0xac] sm:$0xf0] }
  0x20   :  { %236 = vmatpush.bf16.msra.mxu0 %v2628_v25  ;;  %261 = vmatpush.bf16.msra.mxu2 %v2652_v27  ;;  %v2869_v57 = vor.u32 %v3744_v55, %v2866_v56  ;;  %v3739_v60 = vld [vmem:[%s5786_s1 + $0xa4] sm:$0xf]  ;;  %v2841_v61 = vor.u32 %v3741_v59, %v2840_v58  ;;  %v2842_v62 = vld [vmem:[%s5786_s1 + $0xb0] sm:$0xf0]  ;;  %v2848_v63 = vld [vmem:[%s5786_s1 + $0xa8] sm:$0xf] }
  0x21   :  { %249 = vmatpush.bf16.msra.mxu1 %v2632_v28  ;;  %275 = vmatpush.bf16.msra.mxu3 %v2640_v29  ;;  %v3742_v0 = vld [vmem:[%s5786_s1 + $0xb4] sm:$0xf0]  ;;  %v2845_v1 = vor.u32 %v3739_v60, %v2842_v62  ;;  %v3740_v3 = vld [vmem:[%s5786_s1 + $0xac] sm:$0xf]  ;;  %v2850_v4 = vld [vmem:[%s5786_s1 + $0xb8] sm:$0xf0] }
  0x22   :  { %v2849_v2 = vor.u32 %v3742_v0, %v2848_v63  ;;  %v30_v5 = vld [vmem:[%s5785_s0] sm:$0xff]  ;;  %v2853_v6 = vor.u32 %v3740_v3, %v2850_v4  ;;  %v3737_v8 = vld [vmem:[%s5786_s1 + $0x8c] sm:$0xf0]  ;;  %v2826_v11 = vld [vmem:[%s5786_s1 + $0x90] sm:$0xf0]  ;;  %s4101_s18 = smov 64  }
  0x23   :  { %237 = vmatmul.bf16.vlgmr.msra.gmra.mxu0 %v36_v32  ;;  %v2824_v7 = vld [vmem:[%s5786_s1 + $0x80] sm:$0xf]  ;;  %v3735_v9 = vld [vmem:[%s5786_s1 + $0x84] sm:$0xf]  ;;  %v2832_v12 = vld [vmem:[%s5786_s1 + $0x88] sm:$0xf]  ;;  %v32_v18 = vunpack.c.l.bf16 %v30_v5  ;;  %v33_v20 = vunpack.c.h.bf16 %v30_v5 }
  0x24   :  { %250 = vmatmul.bf16.vlgmr.msra.gmra.mxu1 %v36_v32  ;;  %276 = vmatmul.bf16.vlgmr.msra.gmra.mxu3 %v36_v32  ;;  %v2825_v10 = vor.u32 %v3737_v8, %v2824_v7  ;;  %v3738_v13 = vld [vmem:[%s5786_s1 + $0x94] sm:$0xf0]  ;;  %v2829_v14 = vor.u32 %v3735_v9, %v2826_v11  ;;  %v3736_v16 = vld [vmem:[%s5786_s1 + $0x8c] sm:$0xf]  ;;  %v2834_v17 = vld [vmem:[%s5786_s1 + $0x98] sm:$0xf0] }
  0x25   :  { %262 = vmatpush.bf16.msra.mxu2 %v2636_v33  ;;  %549 = vmatpush.bf16.msrb.mxu0 %v2873_v37  ;;  %v2833_v15 = vor.u32 %v3738_v13, %v2832_v12  ;;  %v2837_v19 = vor.u32 %v3736_v16, %v2834_v17  ;;  %v2808_v21 = vld [vmem:[%s5786_s1 + $0x60] sm:$0xf]  ;;  %v3733_v22 = vld [vmem:[%s5786_s1 + $0x6c] sm:$0xf0]  ;;  %v3731_v23 = vld [vmem:[%s5786_s1 + $0x64] sm:$0xf] }
  0x26   :  { %562 = vmatpush.bf16.msrb.mxu1 %v2877_v41  ;;  %588 = vmatpush.bf16.msrb.mxu3 %v2885_v45  ;;  %v2809_v24 = vor.u32 %v3733_v22, %v2808_v21  ;;  %v2810_v25 = vld [vmem:[%s5786_s1 + $0x70] sm:$0xf0]  ;;  %v2816_v26 = vld [vmem:[%s5786_s1 + $0x68] sm:$0xf]  ;;  %v3734_v29 = vld [vmem:[%s5786_s1 + $0x74] sm:$0xf0] }
  0x27   :  { %v2813_v28 = vor.u32 %v3731_v23, %v2810_v25  ;;  %v3732_v30 = vld [vmem:[%s5786_s1 + $0x6c] sm:$0xf]  ;;  %v2818_v31 = vld [vmem:[%s5786_s1 + $0x78] sm:$0xf0]  ;;  %v2817_v35 = vor.u32 %v3734_v29, %v2816_v26  ;;  %v2792_v38 = vld [vmem:[%s5786_s1 + $0x40] sm:$0xf] }
  0x28   :  { %263 = vmatmul.bf16.vlgmr.msra.gmra.mxu2 %v36_v32  ;;  %v4454_v34 = vld [vmem:[%s5785_s0 + $0x8] sm:$0xff]  ;;  %v2821_v36 = vor.u32 %v3732_v30, %v2818_v31  ;;  %v3729_v39 = vld [vmem:[%s5786_s1 + $0x4c] sm:$0xf0]  ;;  %v3727_v40 = vld [vmem:[%s5786_s1 + $0x44] sm:$0xf]  ;;  %s4102_s19 = smov 4  }
  0x29   :  { %575 = vmatpush.bf16.msrb.mxu2 %v2881_v42  ;;  %550 = vmatpush.bf16.msrb.mxu0 %v2857_v49  ;;  %v2793_v42 = vor.u32 %v3729_v39, %v2792_v38  ;;  %v2794_v43 = vld [vmem:[%s5786_s1 + $0x50] sm:$0xf0]  ;;  %v2800_v44 = vld [vmem:[%s5786_s1 + $0x48] sm:$0xf]  ;;  %v35_v46 = vunpack.c.h.bf16 %v4454_v34  ;;  %v3730_v48 = vld [vmem:[%s5786_s1 + $0x54] sm:$0xf0]  ;;  %v34_v23 = vunpack.c.l.bf16 %v4454_v34 }
  0x2a   :  { %563 = vmatpush.bf16.msrb.mxu1 %v2861_v53  ;;  %589 = vmatpush.bf16.msrb.mxu3 %v2869_v57  ;;  %v2797_v47 = vor.u32 %v3727_v40, %v2794_v43  ;;  %v3728_v49 = vld [vmem:[%s5786_s1 + $0x4c] sm:$0xf]  ;;  %v2801_v50 = vor.u32 %v3730_v48, %v2800_v44  ;;  %v2802_v51 = vld [vmem:[%s5786_s1 + $0x58] sm:$0xf0]  ;;  %v2776_v52 = vld [vmem:[%s5786_s1 + $0x20] sm:$0xf] }
  0x2b   :  { %v3725_v53 = vld [vmem:[%s5786_s1 + $0x2c] sm:$0xf0]  ;;  %v3723_v56 = vld [vmem:[%s5786_s1 + $0x24] sm:$0xf]  ;;  %v2778_v57 = vld [vmem:[%s5786_s1 + $0x30] sm:$0xf0] }
  0x2c   :  { %v2777_v55 = vor.u32 %v3725_v53, %v2776_v52  ;;  %v2784_v58 = vld [vmem:[%s5786_s1 + $0x28] sm:$0xf]  ;;  %v2781_v60 = vor.u32 %v3723_v56, %v2778_v57  ;;  %v3724_v62 = vld [vmem:[%s5786_s1 + $0x2c] sm:$0xf]  ;;  %v2786_v63 = vld [vmem:[%s5786_s1 + $0x38] sm:$0xf0] }
  0x2d   :  { %576 = vmatpush.bf16.msrb.mxu2 %v2865_v54  ;;  %551 = vmatpush.bf16.msrb.mxu0 %v2841_v61  ;;  %v2805_v54 = vor.u32 %v3728_v49, %v2802_v51  ;;  %v3726_v61 = vld [vmem:[%s5786_s1 + $0x34] sm:$0xf0]  ;;  %v2789_v3 = vor.u32 %v3724_v62, %v2786_v63  ;;  %v2760_v4 = vld [vmem:[%s5786_s1] sm:$0xf]  ;;  %v3721_v5 = vld [vmem:[%s5786_s1 + $0xc] sm:$0xf0] }
  0x2e   :  { %564 = vmatpush.bf16.msrb.mxu1 %v2845_v1  ;;  %590 = vmatpush.bf16.msrb.mxu3 %v2853_v6  ;;  %v3719_v6 = vld [vmem:[%s5786_s1 + $0x4] sm:$0xf]  ;;  %v2761_v8 = vor.u32 %v3721_v5, %v2760_v4  ;;  %v2762_v9 = vld [vmem:[%s5786_s1 + $0x10] sm:$0xf0]  ;;  %v3722_v11 = vld [vmem:[%s5786_s1 + $0x14] sm:$0xf0] }
  0x2f   :  { %v2765_v13 = vor.u32 %v3719_v6, %v2762_v9  ;;  %v26_v48 = vld [vmem:[%s5788_s3] sm:$0xff]  ;;  %v3781_v4 = vld [vmem:[%s5786_s1 + $0xec] sm:$0xf0]  ;;  %v3782_v9 = vld [vmem:[%s5786_s1 + $0xf4] sm:$0xf0] }
  0x30   :  { %v3779_v5 = vld [vmem:[%s5786_s1 + $0xe4] sm:$0xf] }
  0x31   :  { %577 = vmatpush.bf16.msrb.mxu2 %v2849_v2  ;;  %552 = vmatpush.bf16.msrb.mxu0 %v2825_v10  ;;  %v2785_v2 = vor.u32 %v3726_v61, %v2784_v58  ;;  %v2768_v10 = vld [vmem:[%s5786_s1 + $0x8] sm:$0xf] }
  0x32   :  { %565 = vmatpush.bf16.msrb.mxu1 %v2829_v14  ;;  %591 = vmatpush.bf16.msrb.mxu3 %v2837_v19  ;;  %v3720_v14 = vld [vmem:[%s5786_s1 + $0xc] sm:$0xf] }
  0x35   :  { %578 = vmatpush.bf16.msrb.mxu2 %v2833_v15  ;;  %553 = vmatpush.bf16.msrb.mxu0 %v2809_v24  ;;  %v2770_v15 = vld [vmem:[%s5786_s1 + $0x18] sm:$0xf0] }
  0x36   :  { %566 = vmatpush.bf16.msrb.mxu1 %v2813_v28  ;;  %592 = vmatpush.bf16.msrb.mxu3 %v2821_v36  ;;  %v2773_v21 = vor.u32 %v3720_v14, %v2770_v15  ;;  %v2989_v15 = vld [vmem:[%s5786_s1 + $0xc0] sm:$0xf] }
  0x39   :  { %579 = vmatpush.bf16.msrb.mxu2 %v2817_v35  ;;  %554 = vmatpush.bf16.msrb.mxu0 %v2793_v42 }
  0x3a   :  { %567 = vmatpush.bf16.msrb.mxu1 %v2797_v47  ;;  %593 = vmatpush.bf16.msrb.mxu3 %v2805_v54 }
  0x3d   :  { %580 = vmatpush.bf16.msrb.mxu2 %v2801_v50  ;;  %555 = vmatpush.bf16.msrb.mxu0 %v2777_v55 }
  0x3e   :  { %568 = vmatpush.bf16.msrb.mxu1 %v2781_v60  ;;  %594 = vmatpush.bf16.msrb.mxu3 %v2789_v3  ;;  %v3005_v3 = vld [vmem:[%s5786_s1 + $0xe0] sm:$0xf] }
  0x3f   :  { %v3006_v6 = vor.u32 %v3781_v4, %v3005_v3  ;;  %v2951_v3 = vld [vmem:[%s5786_s1 + $0x78] sm:$0xf0] }
  0x41   :  { %581 = vmatpush.bf16.msrb.mxu2 %v2785_v2  ;;  %556 = vmatpush.bf16.msrb.mxu0 %v2761_v8  ;;  %v3013_v8 = vld [vmem:[%s5786_s1 + $0xe8] sm:$0xf] }
  0x42   :  { %569 = vmatpush.bf16.msrb.mxu1 %v2765_v13  ;;  %595 = vmatpush.bf16.msrb.mxu3 %v2773_v21  ;;  %v3015_v13 = vld [vmem:[%s5786_s1 + $0xf8] sm:$0xf0]  ;;  %v3778_v21 = vld [vmem:[%s5786_s1 + $0xd4] sm:$0xf0] }
  0x45   :  { %870 = vmatpush.bf16.msra.mxu0 %v3006_v6  ;;  %v4662_v6 = vld [vmem:[%s5785_s0 + $0x18] sm:$0xff] }
  0xa0   :  { %v238_v27 = vpop.f32.mrf.mxu0 }
  0xa1   :  { %v281_v32 = vadd.f32 %v238_v27, %v32_v18  ;;  %v251_v33 = vpop.f32.mrf.mxu1  ;;  %v2769_v18 = vor.u32 %v3722_v11, %v2768_v10  ;;  %v3014_v11 = vor.u32 %v3782_v9, %v3013_v8  ;;  %v2925_v8 = vld [vmem:[%s5786_s1 + $0x40] sm:$0xf]  ;;  %v3761_v9 = vld [vmem:[%s5786_s1 + $0x4c] sm:$0xf0] }
  0xa2   :  { %v282_v37 = vadd.f32 %v251_v33, %v33_v20 }
  0xa3   :  { %v2753_v41 = vmul.f32 -1.442695, %v281_v32  ;;  %582 = vmatpush.bf16.msrb.mxu2 %v2769_v18 }
  0xa4   :  { %v2754_v45 = vmul.f32 -1.442695, %v282_v37 }
  0xa5   :  { %3946 = vpow2.f32 %v2753_v41 }
  0xa6   :  { %3948 = vpow2.f32 %v2754_v45 }
  0xa7   :  { %v277_v59 = vpop.f32.mrf.mxu3  ;;  %896 = vmatpush.bf16.msra.mxu2 %v3014_v11 }
  0xa8   :  { %v284_v0 = vadd.f32 %v277_v59, %v35_v46  ;;  %v240_v1 = vpop.f32.mrf.mxu0 }
  0xa9   :  { %v253_v7 = vpop.f32.mrf.mxu1 }
  0xaa   :  { %v2755_v12 = vmul.f32 -1.442695, %v284_v0  ;;  %v3007_v7 = vld [vmem:[%s5786_s1 + $0xf0] sm:$0xf0] }
  0xab   :  { %v3947_v16 = vpop.eup %3946  ;;  %v264_v17 = vpop.f32.mrf.mxu2  ;;  %v3010_v10 = vor.u32 %v3779_v5, %v3007_v7 }
  0xac   :  { %v3949_v19 = vpop.eup %3948  ;;  %v288_v20 = vadd.f32 1.0, %v3947_v16  ;;  %3950 = vpow2.f32 %v2755_v12  ;;  %v283_v26 = vadd.f32 %v264_v17, %v34_v23  ;;  %v3780_v12 = vld [vmem:[%s5786_s1 + $0xec] sm:$0xf]  ;;  %v3777_v16 = vld [vmem:[%s5786_s1 + $0xcc] sm:$0xf0] }
  0xad   :  { %v307_v22 = vadd.f32 1.0, %v3949_v19  ;;  %v3018_v14 = vor.u32 %v3780_v12, %v3015_v13  ;;  %883 = vmatpush.bf16.msra.mxu1 %v3010_v10  ;;  %v3775_v17 = vld [vmem:[%s5786_s1 + $0xc4] sm:$0xf]  ;;  %v2990_v18 = vor.u32 %v3777_v16, %v2989_v15  ;;  %v2991_v19 = vld [vmem:[%s5786_s1 + $0xd0] sm:$0xf0]  ;;  %v2926_v13 = vor.u32 %v3761_v9, %v2925_v8 }
  0xae   :  { %3952 = vrcp.f32 %v288_v20  ;;  %v300_v36 = vand.u32 2147483648, %v288_v20  ;;  %v298_v38 = vand.u32 2147483647, %v288_v20  ;;  %vm294_vm2 = vweird.f32 %v288_v20  ;;  %v3759_v10 = vld [vmem:[%s5786_s1 + $0x44] sm:$0xf] }
  0xaf   :  { %3954 = vrcp.f32 %v307_v22  ;;  %v279_v24 = vpop.f32.mrf.mxu3  ;;  %v319_v37 = vand.u32 2147483648, %v307_v22  ;;  %v317_v40 = vand.u32 2147483647, %v307_v22  ;;  %vm313_vm3 = vweird.f32 %v307_v22  ;;  %909 = vmatpush.bf16.msra.mxu3 %v3018_v14  ;;  %871 = vmatpush.bf16.msra.mxu0 %v2990_v18  ;;  %v2927_v14 = vld [vmem:[%s5786_s1 + $0x50] sm:$0xf0] }
  0xb0   :  { %v301_v45 = vor.u32 1.1754944e-38, %v300_v36  ;;  %vm299_vm6 = vcmp.eq.f32.partialorder %v298_v38, 8.507059e+37  ;;  %v3776_v24 = vld [vmem:[%s5786_s1 + $0xcc] sm:$0xf]  ;;  %v2756_v38 = vld [vmem:[%s5785_s0 + $0x10] sm:$0xff]  ;;  %v356_v15 = vunpack.c.h.bf16 %v4662_v6  ;;  %v2930_v16 = vor.u32 %v3759_v10, %v2927_v14 }
  0xb1   :  { %v320_v47 = vor.u32 1.1754944e-38, %v319_v37  ;;  %vm318_vm7 = vcmp.eq.f32.partialorder %v317_v40, 8.507059e+37  ;;  %v3772_v37 = vld [vmem:[%s5786_s1 + $0xac] sm:$0xf]  ;;  %v2957_v40 = vld [vmem:[%s5786_s1 + $0x80] sm:$0xf] }
  0xb2   :  { %v3951_v25 = vpop.eup %3950  ;;  %v3762_v18 = vld [vmem:[%s5786_s1 + $0x54] sm:$0xf0] }
  0xb3   :  { %v327_v27 = vadd.f32 1.0, %v3951_v25  ;;  %v266_v28 = vpop.f32.mrf.mxu2  ;;  %v2999_v25 = vld [vmem:[%s5786_s1 + $0xd8] sm:$0xf0] }
  0xb4   :  { %v3953_v29 = vpop.eup %3952  ;;  %v3773_v28 = vld [vmem:[%s5786_s1 + $0xac] sm:$0xf0] }
  0xb5   :  { %v3955_v30 = vpop.eup %3954  ;;  %v290_v31 = vmul.f32 %v3953_v29, %v288_v20  ;;  %3956 = vrcp.f32 %v327_v27  ;;  %vm295_vm0 = vweird.f32 %v3953_v29  ;;  %v339_v59 = vand.u32 2147483648, %v327_v27  ;;  %v2997_v20 = vld [vmem:[%s5786_s1 + $0xc8] sm:$0xf] }
  0xb6   :  { %v309_v32 = vmul.f32 %v3955_v30, %v307_v22  ;;  %3958 = vtanh.f32 %v283_v26  ;;  %vm314_vm1 = vweird.f32 %v3955_v30  ;;  %vm296_vm4 = vmor %vm294_vm2, %vm295_vm0  ;;  %vm333_vm9 = vweird.f32 %v327_v27 }
  0xb7   :  { %v291_v33 = vsub.f32 1.0, %v290_v31  ;;  %vm315_vm5 = vmor %vm313_vm3, %vm314_vm1  ;;  %v337_v60 = vand.u32 2147483647, %v327_v27  ;;  %v340_v62 = vor.u32 1.1754944e-38, %v339_v59  ;;  %v2994_v22 = vor.u32 %v3775_v17, %v2991_v19  ;;  %v2975_v31 = vld [vmem:[%s5786_s1 + $0xb0] sm:$0xf0] }
  0xb8   :  { %v310_v35 = vsub.f32 1.0, %v309_v32  ;;  %v2998_v23 = vor.u32 %v3778_v21, %v2997_v20  ;;  %v3002_v26 = vor.u32 %v3776_v24, %v2999_v25  ;;  %v2981_v32 = vld [vmem:[%s5786_s1 + $0xa8] sm:$0xf]  ;;  %v2943_v59 = vld [vmem:[%s5786_s1 + $0x70] sm:$0xf0] }
  0xb9   :  { %v292_v34 = vmul.f32 %v3953_v29, %v291_v33  ;;  %vm338_vm11 = vcmp.eq.f32.partialorder %v337_v60, 8.507059e+37  ;;  %884 = vmatpush.bf16.msra.mxu1 %v2994_v22  ;;  %v3774_v33 = vld [vmem:[%s5786_s1 + $0xb4] sm:$0xf0]  ;;  %v2949_v60 = vld [vmem:[%s5786_s1 + $0x68] sm:$0xf] }
  0xba   :  { %v311_v39 = vmul.f32 %v3955_v30, %v310_v35  ;;  %897 = vmatpush.bf16.msra.mxu2 %v2998_v23  ;;  %910 = vmatpush.bf16.msra.mxu3 %v3002_v26  ;;  %v2982_v36 = vor.u32 %v3774_v33, %v2981_v32  ;;  %v2933_v17 = vld [vmem:[%s5786_s1 + $0x48] sm:$0xf]  ;;  %v3760_v19 = vld [vmem:[%s5786_s1 + $0x4c] sm:$0xf]  ;;  %v2935_v21 = vld [vmem:[%s5786_s1 + $0x58] sm:$0xf0] }
  0xbb   :  { %v3957_v41 = vpop.eup %3956  ;;  %v293_v42 = vadd.f32 %v3953_v29, %v292_v34  ;;  %v2983_v34 = vld [vmem:[%s5786_s1 + $0xb8] sm:$0xf0]  ;;  %v2934_v20 = vor.u32 %v3762_v18, %v2933_v17  ;;  %v2909_v22 = vld [vmem:[%s5786_s1 + $0x20] sm:$0xf]  ;;  %v3757_v23 = vld [vmem:[%s5786_s1 + $0x2c] sm:$0xf0]  ;;  %v2938_v24 = vor.u32 %v3760_v19, %v2935_v21 }
  0xbc   :  { %v3959_v43 = vpop.eup %3958  ;;  %v329_v44 = vmul.f32 %v3957_v41, %v327_v27  ;;  %v312_v46 = vadd.f32 %v3955_v30, %v311_v39  ;;  %vm334_vm8 = vweird.f32 %v3957_v41  ;;  %v2973_v27 = vld [vmem:[%s5786_s1 + $0xa0] sm:$0xf]  ;;  %v2986_v39 = vor.u32 %v3772_v37, %v2983_v34  ;;  %v3755_v26 = vld [vmem:[%s5786_s1 + $0x24] sm:$0xf]  ;;  %v3758_v32 = vld [vmem:[%s5786_s1 + $0x34] sm:$0xf0] }
  0xbd   :  { %v297_v49 = vsel %vm296_vm4, %v3953_v29, %v293_v42  ;;  %vm335_vm10 = vmor %vm333_vm9, %vm334_vm8  ;;  %v3771_v29 = vld [vmem:[%s5786_s1 + $0xa4] sm:$0xf]  ;;  %v2910_v25 = vor.u32 %v3757_v23, %v2909_v22  ;;  %v3756_v33 = vld [vmem:[%s5786_s1 + $0x2c] sm:$0xf] }
  0xbe   :  { %v330_v50 = vsub.f32 1.0, %v329_v44  ;;  %v302_v51 = vsel %vm299_vm6, %v301_v45, %v297_v49  ;;  %v316_v52 = vsel %vm315_vm5, %v3955_v30, %v312_v46  ;;  %v2974_v30 = vor.u32 %v3773_v28, %v2973_v27  ;;  %898 = vmatpush.bf16.msra.mxu2 %v2982_v36  ;;  %v3767_v42 = vld [vmem:[%s5786_s1 + $0x84] sm:$0xf]  ;;  %911 = vmatpush.bf16.msra.mxu3 %v2986_v39  ;;  %v2959_v44 = vld [vmem:[%s5786_s1 + $0x90] sm:$0xf0] }
  0xbf   :  { %v321_v53 = vsel %vm318_vm7, %v320_v47, %v316_v52  ;;  %v344_v54 = vmul.f32 %v3959_v43, %v302_v51  ;;  %v2978_v35 = vor.u32 %v3771_v29, %v2975_v31  ;;  %v2965_v45 = vld [vmem:[%s5786_s1 + $0x88] sm:$0xf]  ;;  %v3770_v46 = vld [vmem:[%s5786_s1 + $0x94] sm:$0xf0]  ;;  %v2962_v47 = vor.u32 %v3767_v42, %v2959_v44  ;;  %v3768_v49 = vld [vmem:[%s5786_s1 + $0x8c] sm:$0xf] }
  0xc0   :  { %v331_v55 = vmul.f32 %v3957_v41, %v330_v50  ;;  %v343_v56 = vmul.f32 %v321_v53, %v26_v48  ;;  %872 = vmatpush.bf16.msra.mxu0 %v2974_v30  ;;  %v2966_v48 = vor.u32 %v3770_v46, %v2965_v45  ;;  %v2967_v50 = vld [vmem:[%s5786_s1 + $0x98] sm:$0xf0]  ;;  %v353_v51 = vunpack.c.l.bf16 %v2756_v38  ;;  %v2911_v27 = vld [vmem:[%s5786_s1 + $0x30] sm:$0xf0]  ;;  %v2917_v28 = vld [vmem:[%s5786_s1 + $0x28] sm:$0xf] }
  0xc1   :  { %885 = vmatpush.bf16.msra.mxu1 %v2978_v35  ;;  %v354_v52 = vunpack.c.h.bf16 %v2756_v38  ;;  %v2970_v53 = vor.u32 %v3768_v49, %v2967_v50  ;;  %v2914_v31 = vor.u32 %v3755_v26, %v2911_v27  ;;  %v2919_v35 = vld [vmem:[%s5786_s1 + $0x38] sm:$0xf0]  ;;  %v2918_v38 = vor.u32 %v3758_v32, %v2917_v28  ;;  %v3751_v42 = vld [vmem:[%s5786_s1 + $0x4] sm:$0xf]  ;;  %v2895_v44 = vld [vmem:[%s5786_s1 + $0x10] sm:$0xf0] }
  0xc2   :  { %v4533_v57 = vadd.f32 %v344_v54, %v343_v56  ;;  %v332_v58 = vadd.f32 %v3957_v41, %v331_v55  ;;  %899 = vmatpush.bf16.msra.mxu2 %v2966_v48  ;;  %v2941_v54 = vld [vmem:[%s5786_s1 + $0x60] sm:$0xf]  ;;  %v3765_v55 = vld [vmem:[%s5786_s1 + $0x6c] sm:$0xf0]  ;;  %v3763_v56 = vld [vmem:[%s5786_s1 + $0x64] sm:$0xf]  ;;  %v2922_v39 = vor.u32 %v3756_v33, %v2919_v35  ;;  %v2898_v48 = vor.u32 %v3751_v42, %v2895_v44 }
  0xc3   :  { %912 = vmatpush.bf16.msra.mxu3 %v2970_v53  ;;  %v2901_v45 = vld [vmem:[%s5786_s1 + $0x8] sm:$0xf]  ;;  %v3754_v46 = vld [vmem:[%s5786_s1 + $0x14] sm:$0xf0]  ;;  %v3752_v49 = vld [vmem:[%s5786_s1 + $0xc] sm:$0xf] }
  0xc4   :  { %3960 = vtanh.f32 %v4533_v57  ;;  %v336_v61 = vsel %vm335_vm10, %v3957_v41, %v332_v58  ;;  %v3769_v41 = vld [vmem:[%s5786_s1 + $0x8c] sm:$0xf0]  ;;  %v2942_v58 = vor.u32 %v3765_v55, %v2941_v54  ;;  %v2903_v50 = vld [vmem:[%s5786_s1 + $0x18] sm:$0xf0]  ;;  %v3814_v42 = vld [vmem:[%s5786_s1 + $0xf4] sm:$0xf0] }
  0xc5   :  { %v341_v0 = vsel %vm338_vm11, %v340_v62, %v336_v61  ;;  %v2958_v43 = vor.u32 %v3769_v41, %v2957_v40  ;;  %886 = vmatpush.bf16.msra.mxu1 %v2962_v47  ;;  %v3766_v61 = vld [vmem:[%s5786_s1 + $0x74] sm:$0xf0]  ;;  %v2893_v40 = vld [vmem:[%s5786_s1] sm:$0xf]  ;;  %v3753_v41 = vld [vmem:[%s5786_s1 + $0xc] sm:$0xf0]  ;;  %v2906_v55 = vor.u32 %v3752_v49, %v2903_v50 }
  0xc6   :  { %v3809_v49 = vld [vmem:[%s5786_s1 + $0xcc] sm:$0xf0]  ;;  %v3807_v50 = vld [vmem:[%s5786_s1 + $0xc4] sm:$0xf] }
  0xc7   :  { %873 = vmatpush.bf16.msra.mxu0 %v2958_v43  ;;  %v2894_v43 = vor.u32 %v3753_v41, %v2893_v40  ;;  %v3140_v40 = vld [vmem:[%s5786_s1 + $0xf0] sm:$0xf0]  ;;  %v3146_v41 = vld [vmem:[%s5786_s1 + $0xe8] sm:$0xf] }
  0xc8   :  { %v3147_v44 = vor.u32 %v3814_v42, %v3146_v41  ;;  %v3058_v41 = vld [vmem:[%s5786_s1 + $0x40] sm:$0xf]  ;;  %v3793_v42 = vld [vmem:[%s5786_s1 + $0x4c] sm:$0xf0] }
  0xca   :  { %v3961_v63 = vpop.eup %3960 }
  0xcb   :  { %v347_v1 = vmul.f32 %v3961_v63, %v341_v0  ;;  %v2946_v0 = vor.u32 %v3763_v56, %v2943_v59  ;;  %874 = vmatpush.bf16.msra.mxu0 %v2942_v58 }
  0xcd   :  { %v348_v2 = vpack.c.bf16 %v347_v1, %v347_v1  ;;  %v2950_v1 = vor.u32 %v3766_v61, %v2949_v60  ;;  %887 = vmatpush.bf16.msra.mxu1 %v2946_v0  ;;  %v355_v60 = vunpack.c.l.bf16 %v4662_v6 }
  0xcf   :  { %349 = vst [vmem:[#allocation4] sm:$0xf] %v348_v2  ;;  %557 = vmatmul.bf16.vlgmr.msrb.gmra.mxu0 %v348_v2  ;;  %570 = vmatmul.bf16.vlgmr.msrb.gmra.mxu1 %v348_v2 }
  0xd0   :  { %583 = vmatmul.bf16.vlgmr.msrb.gmra.mxu2 %v348_v2  ;;  %596 = vmatmul.bf16.vlgmr.msrb.gmra.mxu3 %v348_v2  ;;  %v3764_v2 = vld [vmem:[%s5786_s1 + $0x6c] sm:$0xf] }
  0xd1   :  { %v2954_v7 = vor.u32 %v3764_v2, %v2951_v3  ;;  %900 = vmatpush.bf16.msra.mxu2 %v2950_v1  ;;  %875 = vmatpush.bf16.msra.mxu0 %v2926_v13 }
  0xd2   :  { %888 = vmatpush.bf16.msra.mxu1 %v2930_v16 }
  0xd3   :  { %913 = vmatpush.bf16.msra.mxu3 %v2954_v7 }
  0xd5   :  { %901 = vmatpush.bf16.msra.mxu2 %v2934_v20  ;;  %876 = vmatpush.bf16.msra.mxu0 %v2910_v25 }
  0xd6   :  { %889 = vmatpush.bf16.msra.mxu1 %v2914_v31 }
  0xd7   :  { %914 = vmatpush.bf16.msra.mxu3 %v2938_v24 }
  0xd9   :  { %902 = vmatpush.bf16.msra.mxu2 %v2918_v38  ;;  %877 = vmatpush.bf16.msra.mxu0 %v2894_v43  ;;  %v3811_v38 = vld [vmem:[%s5786_s1 + $0xe4] sm:$0xf] }
  0xda   :  { %890 = vmatpush.bf16.msra.mxu1 %v2898_v48  ;;  %v3143_v43 = vor.u32 %v3811_v38, %v3140_v40  ;;  %v3122_v48 = vld [vmem:[%s5786_s1 + $0xc0] sm:$0xf] }
  0xdb   :  { %915 = vmatpush.bf16.msra.mxu3 %v2922_v39 }
  0xde   :  { %1204 = vmatpush.bf16.msrb.mxu1 %v3143_v43  ;;  %v3791_v43 = vld [vmem:[%s5786_s1 + $0x44] sm:$0xf] }
  0xdf   :  { %916 = vmatpush.bf16.msra.mxu3 %v2906_v55 }
 0x14c   :  { %v558_v62 = vpop.f32.mrf.mxu0  ;;  %v571_v63 = vpop.f32.mrf.mxu1 }
 0x14d   :  { %v601_v4 = vadd.f32 %v558_v62, %v353_v51  ;;  %v602_v5 = vadd.f32 %v571_v63, %v354_v52  ;;  %v2902_v52 = vor.u32 %v3754_v46, %v2901_v45  ;;  %v3812_v45 = vld [vmem:[%s5786_s1 + $0xec] sm:$0xf]  ;;  %v3148_v46 = vld [vmem:[%s5786_s1 + $0xf8] sm:$0xf0] }
 0x14f   :  { %v2886_v11 = vmul.f32 -1.442695, %v601_v4  ;;  %v2887_v12 = vmul.f32 -1.442695, %v602_v5  ;;  %903 = vmatpush.bf16.msra.mxu2 %v2902_v52  ;;  %v3124_v52 = vld [vmem:[%s5786_s1 + $0xd0] sm:$0xf0] }
 0x150   :  { %v3127_v55 = vor.u32 %v3807_v50, %v3124_v52  ;;  %v3066_v50 = vld [vmem:[%s5786_s1 + $0x48] sm:$0xf]  ;;  %v3792_v52 = vld [vmem:[%s5786_s1 + $0x4c] sm:$0xf] }
 0x151   :  { %3962 = vpow2.f32 %v2886_v11 }
 0x152   :  { %3964 = vpow2.f32 %v2887_v12  ;;  %1205 = vmatpush.bf16.msrb.mxu1 %v3127_v55  ;;  %v3042_v55 = vld [vmem:[%s5786_s1 + $0x20] sm:$0xf] }
 0x153   :  { %v584_v29 = vpop.f32.mrf.mxu2  ;;  %v597_v30 = vpop.f32.mrf.mxu3  ;;  %1217 = vmatpush.bf16.msrb.mxu2 %v3147_v44 }
 0x154   :  { %v604_v36 = vadd.f32 %v597_v30, %v356_v15  ;;  %v560_v37 = vpop.f32.mrf.mxu0  ;;  %v573_v34 = vpop.f32.mrf.mxu1  ;;  %v603_v0 = vadd.f32 %v584_v29, %v355_v60 }
 0x155   :  { %v3813_v34 = vld [vmem:[%s5786_s1 + $0xec] sm:$0xf0] }
 0x156   :  { %v2888_v47 = vmul.f32 -1.442695, %v604_v36 }
 0x157   :  { %v3963_v51 = vpop.eup %3962 }
 0x158   :  { %v3965_v53 = vpop.eup %3964  ;;  %v608_v54 = vadd.f32 1.0, %v3963_v51  ;;  %3966 = vpow2.f32 %v2888_v47  ;;  %v3151_v47 = vor.u32 %v3812_v45, %v3148_v46  ;;  %v3123_v51 = vor.u32 %v3809_v49, %v3122_v48 }
 0x159   :  { %v627_v56 = vadd.f32 1.0, %v3965_v53  ;;  %v3130_v53 = vld [vmem:[%s5786_s1 + $0xc8] sm:$0xf]  ;;  %v3059_v46 = vor.u32 %v3793_v42, %v3058_v41 }
 0x15a   :  { %3968 = vrcp.f32 %v608_v54  ;;  %v620_v7 = vand.u32 2147483648, %v608_v54  ;;  %v618_v10 = vand.u32 2147483647, %v608_v54  ;;  %vm614_vm14 = vweird.f32 %v608_v54  ;;  %1230 = vmatpush.bf16.msrb.mxu3 %v3151_v47  ;;  %v3060_v47 = vld [vmem:[%s5786_s1 + $0x50] sm:$0xf0] }
 0x15b   :  { %3970 = vrcp.f32 %v627_v56  ;;  %v586_v58 = vpop.f32.mrf.mxu2  ;;  %v599_v59 = vpop.f32.mrf.mxu3  ;;  %v639_v8 = vand.u32 2147483648, %v627_v56  ;;  %v637_v6 = vand.u32 2147483647, %v627_v56  ;;  %vm633_vm15 = vweird.f32 %v627_v56 }
 0x15c   :  { %v621_v14 = vor.u32 1.1754944e-38, %v620_v7  ;;  %vm619_vm2 = vcmp.eq.f32.partialorder %v618_v10, 8.507059e+37  ;;  %v3808_v58 = vld [vmem:[%s5786_s1 + $0xcc] sm:$0xf]  ;;  %v3132_v59 = vld [vmem:[%s5786_s1 + $0xd8] sm:$0xf0]  ;;  %v3063_v49 = vor.u32 %v3791_v43, %v3060_v47 }
 0x15d   :  { %v640_v17 = vor.u32 1.1754944e-38, %v639_v8  ;;  %vm638_vm3 = vcmp.eq.f32.partialorder %v637_v6, 8.507059e+37  ;;  %v3135_v60 = vor.u32 %v3808_v58, %v3132_v59  ;;  %v3804_v7 = vld [vmem:[%s5786_s1 + $0xac] sm:$0xf]  ;;  %v3116_v8 = vld [vmem:[%s5786_s1 + $0xb8] sm:$0xf0] }
 0x15e   :  { %v3967_v61 = vpop.eup %3966  ;;  %v3119_v10 = vor.u32 %v3804_v7, %v3116_v8  ;;  %v3801_v6 = vld [vmem:[%s5786_s1 + $0x8c] sm:$0xf0] }
 0x15f   :  { %v647_v62 = vadd.f32 1.0, %v3967_v61  ;;  %v3106_v61 = vld [vmem:[%s5786_s1 + $0xa0] sm:$0xf]  ;;  %1231 = vmatpush.bf16.msrb.mxu3 %v3135_v60  ;;  %v3787_v60 = vld [vmem:[%s5786_s1 + $0x24] sm:$0xf] }
 0x160   :  { %v3969_v63 = vpop.eup %3968 }
 0x161   :  { %v3971_v1 = vpop.eup %3970  ;;  %v610_v2 = vmul.f32 %v3969_v63, %v608_v54  ;;  %3972 = vrcp.f32 %v647_v62  ;;  %vm615_vm12 = vweird.f32 %v3969_v63  ;;  %v659_v29 = vand.u32 2147483648, %v647_v62  ;;  %v3810_v54 = vld [vmem:[%s5786_s1 + $0xd4] sm:$0xf0] }
 0x162   :  { %v629_v3 = vmul.f32 %v3971_v1, %v627_v56  ;;  %3974 = vtanh.f32 %v603_v0  ;;  %vm634_vm13 = vweird.f32 %v3971_v1  ;;  %vm616_vm0 = vmor %vm614_vm14, %vm615_vm12  ;;  %vm653_vm5 = vweird.f32 %v647_v62 }
 0x163   :  { %v611_v4 = vsub.f32 1.0, %v610_v2  ;;  %vm635_vm1 = vmor %vm633_vm15, %vm634_vm13  ;;  %v657_v30 = vand.u32 2147483647, %v647_v62  ;;  %v660_v32 = vor.u32 1.1754944e-38, %v659_v29  ;;  %v3131_v56 = vor.u32 %v3810_v54, %v3130_v53  ;;  %v3114_v2 = vld [vmem:[%s5786_s1 + $0xa8] sm:$0xf]  ;;  %1232 = vmatpush.bf16.msrb.mxu3 %v3119_v10 }
 0x164   :  { %v630_v5 = vsub.f32 1.0, %v629_v3  ;;  %v3806_v3 = vld [vmem:[%s5786_s1 + $0xb4] sm:$0xf0]  ;;  %v3076_v29 = vld [vmem:[%s5786_s1 + $0x70] sm:$0xf0] }
 0x165   :  { %v612_v9 = vmul.f32 %v3969_v63, %v611_v4  ;;  %vm658_vm7 = vcmp.eq.f32.partialorder %v657_v30, 8.507059e+37  ;;  %1218 = vmatpush.bf16.msrb.mxu2 %v3131_v56  ;;  %v3082_v30 = vld [vmem:[%s5786_s1 + $0x68] sm:$0xf]  ;;  %v3068_v54 = vld [vmem:[%s5786_s1 + $0x58] sm:$0xf0] }
 0x166   :  { %v631_v11 = vmul.f32 %v3971_v1, %v630_v5  ;;  %v3115_v5 = vor.u32 %v3806_v3, %v3114_v2  ;;  %v3789_v56 = vld [vmem:[%s5786_s1 + $0x2c] sm:$0xf0]  ;;  %v3071_v58 = vor.u32 %v3792_v52, %v3068_v54  ;;  %v3790_v2 = vld [vmem:[%s5786_s1 + $0x34] sm:$0xf0]  ;;  %v3788_v3 = vld [vmem:[%s5786_s1 + $0x2c] sm:$0xf] }
 0x167   :  { %v3973_v12 = vpop.eup %3972  ;;  %v613_v13 = vadd.f32 %v3969_v63, %v612_v9  ;;  %v2889_v9 = vld [vmem:[%s5785_s0 + $0x20] sm:$0xff]  ;;  %v3043_v59 = vor.u32 %v3789_v56, %v3042_v55 }
 0x168   :  { %v632_v15 = vadd.f32 %v3971_v1, %v631_v11  ;;  %v649_v16 = vmul.f32 %v3973_v12, %v647_v62  ;;  %v3975_v19 = vpop.eup %3974  ;;  %vm654_vm4 = vweird.f32 %v3973_v12  ;;  %v3805_v62 = vld [vmem:[%s5786_s1 + $0xac] sm:$0xf0]  ;;  %v3090_v11 = vld [vmem:[%s5786_s1 + $0x80] sm:$0xf] }
 0x169   :  { %v617_v18 = vsel %vm616_vm0, %v3969_v63, %v613_v13  ;;  %vm655_vm6 = vmor %vm653_vm5, %vm654_vm4  ;;  %v3803_v63 = vld [vmem:[%s5786_s1 + $0xa4] sm:$0xf]  ;;  %v3107_v0 = vor.u32 %v3805_v62, %v3106_v61  ;;  %1219 = vmatpush.bf16.msrb.mxu2 %v3115_v5  ;;  %v3091_v13 = vor.u32 %v3801_v6, %v3090_v11  ;;  %v3044_v61 = vld [vmem:[%s5786_s1 + $0x30] sm:$0xf0] }
 0x16a   :  { %v622_v20 = vsel %vm619_vm2, %v621_v14, %v617_v18  ;;  %v636_v21 = vsel %vm635_vm1, %v3971_v1, %v632_v15  ;;  %v650_v22 = vsub.f32 1.0, %v649_v16  ;;  %v3108_v1 = vld [vmem:[%s5786_s1 + $0xb0] sm:$0xf0]  ;;  %v3098_v15 = vld [vmem:[%s5786_s1 + $0x88] sm:$0xf] }
 0x16b   :  { %v641_v23 = vsel %vm638_vm3, %v640_v17, %v636_v21  ;;  %v664_v24 = vmul.f32 %v3975_v19, %v622_v20  ;;  %v3111_v4 = vor.u32 %v3803_v63, %v3108_v1  ;;  %v3092_v14 = vld [vmem:[%s5786_s1 + $0x90] sm:$0xf0]  ;;  %v3802_v16 = vld [vmem:[%s5786_s1 + $0x94] sm:$0xf0]  ;;  %v3800_v19 = vld [vmem:[%s5786_s1 + $0x8c] sm:$0xf]  ;;  %v674_v21 = vunpack.c.l.bf16 %v2889_v9 }
 0x16c   :  { %v663_v25 = vmul.f32 %v641_v23, %v4533_v57  ;;  %v651_v26 = vmul.f32 %v3973_v12, %v650_v22  ;;  %v3138_v57 = vld [vmem:[%s5786_s1 + $0xe0] sm:$0xf]  ;;  %v3099_v18 = vor.u32 %v3802_v16, %v3098_v15  ;;  %v3100_v20 = vld [vmem:[%s5786_s1 + $0x98] sm:$0xf0]  ;;  %v675_v22 = vunpack.c.h.bf16 %v2889_v9  ;;  %v3050_v62 = vld [vmem:[%s5786_s1 + $0x28] sm:$0xf] }
 0x16d   :  { %v3139_v39 = vor.u32 %v3813_v34, %v3138_v57  ;;  %1206 = vmatpush.bf16.msrb.mxu1 %v3111_v4  ;;  %v3103_v23 = vor.u32 %v3800_v19, %v3100_v20  ;;  %v3084_v57 = vld [vmem:[%s5786_s1 + $0x78] sm:$0xf0]  ;;  %v3047_v1 = vor.u32 %v3787_v60, %v3044_v61  ;;  %v3051_v9 = vor.u32 %v3790_v2, %v3050_v62  ;;  %v3026_v11 = vld [vmem:[%s5786_s1] sm:$0xf]  ;;  %v3785_v6 = vld [vmem:[%s5786_s1 + $0xc] sm:$0xf0] }
 0x16e   :  { %v4739_v27 = vadd.f32 %v664_v24, %v663_v25  ;;  %v652_v28 = vadd.f32 %v3973_v12, %v651_v26  ;;  %1220 = vmatpush.bf16.msrb.mxu2 %v3099_v18  ;;  %v3074_v24 = vld [vmem:[%s5786_s1 + $0x60] sm:$0xf]  ;;  %v3797_v25 = vld [vmem:[%s5786_s1 + $0x6c] sm:$0xf0]  ;;  %v3795_v26 = vld [vmem:[%s5786_s1 + $0x64] sm:$0xf] }
 0x16f   :  { %1191 = vmatpush.bf16.msrb.mxu0 %v3139_v39  ;;  %1233 = vmatpush.bf16.msrb.mxu3 %v3103_v23  ;;  %v4868_v39 = vld [vmem:[%s5785_s0 + $0x28] sm:$0xff]  ;;  %v3052_v4 = vld [vmem:[%s5786_s1 + $0x38] sm:$0xf0]  ;;  %v3786_v16 = vld [vmem:[%s5786_s1 + $0x14] sm:$0xf0] }
 0x170   :  { %3976 = vtanh.f32 %v4739_v27  ;;  %v656_v31 = vsel %vm655_vm6, %v3973_v12, %v652_v28  ;;  %v3799_v12 = vld [vmem:[%s5786_s1 + $0x84] sm:$0xf]  ;;  %v3075_v28 = vor.u32 %v3797_v25, %v3074_v24  ;;  %v677_v48 = vunpack.c.h.bf16 %v4868_v39  ;;  %v3034_v15 = vld [vmem:[%s5786_s1 + $0x8] sm:$0xf]  ;;  %v3784_v19 = vld [vmem:[%s5786_s1 + $0xc] sm:$0xf] }
 0x171   :  { %v661_v35 = vsel %vm658_vm7, %v660_v32, %v656_v31  ;;  %v3095_v17 = vor.u32 %v3799_v12, %v3092_v14  ;;  %v3798_v31 = vld [vmem:[%s5786_s1 + $0x74] sm:$0xf0]  ;;  %v3055_v10 = vor.u32 %v3788_v3, %v3052_v4  ;;  %v3783_v12 = vld [vmem:[%s5786_s1 + $0x4] sm:$0xf]  ;;  %v3028_v14 = vld [vmem:[%s5786_s1 + $0x10] sm:$0xf0] }
 0x172   :  { %v3031_v18 = vor.u32 %v3783_v12, %v3028_v14  ;;  %v3036_v20 = vld [vmem:[%s5786_s1 + $0x18] sm:$0xf0]  ;;  %v3846_v12 = vld [vmem:[%s5786_s1 + $0xf4] sm:$0xf0] }
 0x173   :  { %1192 = vmatpush.bf16.msrb.mxu0 %v3123_v51  ;;  %1207 = vmatpush.bf16.msrb.mxu1 %v3095_v17  ;;  %v3794_v51 = vld [vmem:[%s5786_s1 + $0x54] sm:$0xf0]  ;;  %v3039_v25 = vor.u32 %v3784_v19, %v3036_v20  ;;  %v3841_v19 = vld [vmem:[%s5786_s1 + $0xcc] sm:$0xf0]  ;;  %v3839_v20 = vld [vmem:[%s5786_s1 + $0xc4] sm:$0xf] }
 0x174   :  { %v3067_v53 = vor.u32 %v3794_v51, %v3066_v50 }
 0x176   :  { %v3977_v33 = vpop.eup %3976 }
 0x177   :  { %v667_v36 = vmul.f32 %v3977_v33, %v661_v35  ;;  %1193 = vmatpush.bf16.msrb.mxu0 %v3107_v0  ;;  %v3079_v35 = vor.u32 %v3795_v26, %v3076_v29 }
 0x179   :  { %v668_v37 = vpack.c.bf16 %v667_v36, %v667_v36  ;;  %v3083_v36 = vor.u32 %v3798_v31, %v3082_v30  ;;  %1208 = vmatpush.bf16.msrb.mxu1 %v3079_v35  ;;  %v676_v30 = vunpack.c.l.bf16 %v4868_v39 }
 0x17b   :  { %670 = vst [vmem:[#allocation4 + $0x4] sm:$0xf] %v668_v37  ;;  %878 = vmatmul.bf16.vlgmr.msra.gmra.mxu0 %v668_v37  ;;  %891 = vmatmul.bf16.vlgmr.msra.gmra.mxu1 %v668_v37 }
 0x17c   :  { %904 = vmatmul.bf16.vlgmr.msra.gmra.mxu2 %v668_v37  ;;  %917 = vmatmul.bf16.vlgmr.msra.gmra.mxu3 %v668_v37  ;;  %v3796_v37 = vld [vmem:[%s5786_s1 + $0x6c] sm:$0xf] }
 0x17d   :  { %1194 = vmatpush.bf16.msrb.mxu0 %v3091_v13  ;;  %v3087_v40 = vor.u32 %v3796_v37, %v3084_v57  ;;  %1221 = vmatpush.bf16.msrb.mxu2 %v3083_v36  ;;  %v3027_v13 = vor.u32 %v3785_v6, %v3026_v11  ;;  %v3273_v11 = vld [vmem:[%s5786_s1 + $0xf0] sm:$0xf0]  ;;  %v3279_v6 = vld [vmem:[%s5786_s1 + $0xe8] sm:$0xf] }
 0x17e   :  { %1209 = vmatpush.bf16.msrb.mxu1 %v3063_v49  ;;  %v3280_v14 = vor.u32 %v3846_v12, %v3279_v6  ;;  %v3191_v6 = vld [vmem:[%s5786_s1 + $0x40] sm:$0xf]  ;;  %v3825_v12 = vld [vmem:[%s5786_s1 + $0x4c] sm:$0xf0] }
 0x17f   :  { %1234 = vmatpush.bf16.msrb.mxu3 %v3087_v40 }
 0x181   :  { %1195 = vmatpush.bf16.msrb.mxu0 %v3075_v28  ;;  %1222 = vmatpush.bf16.msrb.mxu2 %v3067_v53 }
 0x182   :  { %1210 = vmatpush.bf16.msrb.mxu1 %v3047_v1 }
 0x183   :  { %1235 = vmatpush.bf16.msrb.mxu3 %v3071_v58 }
 0x185   :  { %1196 = vmatpush.bf16.msrb.mxu0 %v3059_v46  ;;  %1223 = vmatpush.bf16.msrb.mxu2 %v3051_v9  ;;  %v3843_v9 = vld [vmem:[%s5786_s1 + $0xe4] sm:$0xf] }
 0x186   :  { %1211 = vmatpush.bf16.msrb.mxu1 %v3031_v18  ;;  %v3255_v18 = vld [vmem:[%s5786_s1 + $0xc0] sm:$0xf] }
 0x187   :  { %1236 = vmatpush.bf16.msrb.mxu3 %v3055_v10 }
 0x189   :  { %1197 = vmatpush.bf16.msrb.mxu0 %v3043_v59 }
 0x18b   :  { %1237 = vmatpush.bf16.msrb.mxu3 %v3039_v25 }
 0x18d   :  { %1198 = vmatpush.bf16.msrb.mxu0 %v3027_v13  ;;  %v3276_v13 = vor.u32 %v3843_v9, %v3273_v11 }
 0x18f   :  { %1525 = vmatpush.bf16.msra.mxu1 %v3276_v13  ;;  %v3823_v13 = vld [vmem:[%s5786_s1 + $0x44] sm:$0xf] }
 0x1f8   :  { %v879_v32 = vpop.f32.mrf.mxu0  ;;  %v892_v33 = vpop.f32.mrf.mxu1 }
 0x1f9   :  { %v922_v34 = vadd.f32 %v879_v32, %v674_v21  ;;  %v923_v38 = vadd.f32 %v892_v33, %v675_v22  ;;  %v3035_v22 = vor.u32 %v3786_v16, %v3034_v15  ;;  %v3844_v15 = vld [vmem:[%s5786_s1 + $0xec] sm:$0xf]  ;;  %v3281_v16 = vld [vmem:[%s5786_s1 + $0xf8] sm:$0xf0] }
 0x1fb   :  { %v3019_v44 = vmul.f32 -1.442695, %v922_v34  ;;  %v3020_v45 = vmul.f32 -1.442695, %v923_v38  ;;  %1224 = vmatpush.bf16.msrb.mxu2 %v3035_v22  ;;  %v3257_v22 = vld [vmem:[%s5786_s1 + $0xd0] sm:$0xf0] }
 0x1fc   :  { %v3260_v25 = vor.u32 %v3839_v20, %v3257_v22  ;;  %v3199_v20 = vld [vmem:[%s5786_s1 + $0x48] sm:$0xf]  ;;  %v3824_v22 = vld [vmem:[%s5786_s1 + $0x4c] sm:$0xf] }
 0x1fd   :  { %3978 = vpow2.f32 %v3019_v44 }
 0x1fe   :  { %3980 = vpow2.f32 %v3020_v45  ;;  %1526 = vmatpush.bf16.msra.mxu1 %v3260_v25  ;;  %v3175_v25 = vld [vmem:[%s5786_s1 + $0x20] sm:$0xf] }
 0x1ff   :  { %v905_v63 = vpop.f32.mrf.mxu2  ;;  %v918_v0 = vpop.f32.mrf.mxu3  ;;  %1538 = vmatpush.bf16.msra.mxu2 %v3280_v14 }
 0x200   :  { %v925_v5 = vadd.f32 %v918_v0, %v677_v48  ;;  %v881_v7 = vpop.f32.mrf.mxu0  ;;  %v894_v8 = vpop.f32.mrf.mxu1  ;;  %v924_v35 = vadd.f32 %v905_v63, %v676_v30 }
 0x201   :  { %v3845_v8 = vld [vmem:[%s5786_s1 + $0xec] sm:$0xf0] }
 0x202   :  { %v3021_v17 = vmul.f32 -1.442695, %v925_v5 }
 0x203   :  { %v3979_v21 = vpop.eup %3978 }
 0x204   :  { %v3981_v23 = vpop.eup %3980  ;;  %v929_v24 = vadd.f32 1.0, %v3979_v21  ;;  %3982 = vpow2.f32 %v3021_v17  ;;  %v3284_v17 = vor.u32 %v3844_v15, %v3281_v16  ;;  %v3256_v21 = vor.u32 %v3841_v19, %v3255_v18 }
 0x205   :  { %v948_v26 = vadd.f32 1.0, %v3981_v23  ;;  %v3263_v23 = vld [vmem:[%s5786_s1 + $0xc8] sm:$0xf]  ;;  %v3192_v16 = vor.u32 %v3825_v12, %v3191_v6 }
 0x206   :  { %3984 = vrcp.f32 %v929_v24  ;;  %v941_v40 = vand.u32 2147483648, %v929_v24  ;;  %v939_v43 = vand.u32 2147483647, %v929_v24  ;;  %vm935_vm10 = vweird.f32 %v929_v24  ;;  %1551 = vmatpush.bf16.msra.mxu3 %v3284_v17  ;;  %v3193_v17 = vld [vmem:[%s5786_s1 + $0x50] sm:$0xf0] }
 0x207   :  { %3986 = vrcp.f32 %v948_v26  ;;  %v907_v28 = vpop.f32.mrf.mxu2  ;;  %v920_v29 = vpop.f32.mrf.mxu3  ;;  %v960_v41 = vand.u32 2147483648, %v948_v26  ;;  %v958_v39 = vand.u32 2147483647, %v948_v26  ;;  %vm954_vm11 = vweird.f32 %v948_v26 }
 0x208   :  { %v942_v47 = vor.u32 1.1754944e-38, %v941_v40  ;;  %vm940_vm14 = vcmp.eq.f32.partialorder %v939_v43, 8.507059e+37  ;;  %v3840_v28 = vld [vmem:[%s5786_s1 + $0xcc] sm:$0xf]  ;;  %v3265_v29 = vld [vmem:[%s5786_s1 + $0xd8] sm:$0xf0]  ;;  %v3196_v19 = vor.u32 %v3823_v13, %v3193_v17 }
 0x209   :  { %v961_v50 = vor.u32 1.1754944e-38, %v960_v41  ;;  %vm959_vm15 = vcmp.eq.f32.partialorder %v958_v39, 8.507059e+37  ;;  %v3268_v30 = vor.u32 %v3840_v28, %v3265_v29  ;;  %v3836_v40 = vld [vmem:[%s5786_s1 + $0xac] sm:$0xf]  ;;  %v3249_v41 = vld [vmem:[%s5786_s1 + $0xb8] sm:$0xf0] }
 0x20a   :  { %v3983_v31 = vpop.eup %3982  ;;  %v3252_v43 = vor.u32 %v3836_v40, %v3249_v41  ;;  %v3833_v39 = vld [vmem:[%s5786_s1 + $0x8c] sm:$0xf0] }
 0x20b   :  { %v968_v32 = vadd.f32 1.0, %v3983_v31  ;;  %v3239_v31 = vld [vmem:[%s5786_s1 + $0xa0] sm:$0xf]  ;;  %1552 = vmatpush.bf16.msra.mxu3 %v3268_v30  ;;  %v3819_v30 = vld [vmem:[%s5786_s1 + $0x24] sm:$0xf] }
 0x20c   :  { %v3985_v33 = vpop.eup %3984 }
 0x20d   :  { %v3987_v36 = vpop.eup %3986  ;;  %v931_v37 = vmul.f32 %v3985_v33, %v929_v24  ;;  %3988 = vrcp.f32 %v968_v32  ;;  %vm936_vm8 = vweird.f32 %v3985_v33  ;;  %v980_v63 = vand.u32 2147483648, %v968_v32  ;;  %v3842_v24 = vld [vmem:[%s5786_s1 + $0xd4] sm:$0xf0] }
 0x20e   :  { %v950_v57 = vmul.f32 %v3987_v36, %v948_v26  ;;  %3990 = vtanh.f32 %v924_v35  ;;  %vm955_vm9 = vweird.f32 %v3987_v36  ;;  %vm937_vm12 = vmor %vm935_vm10, %vm936_vm8  ;;  %vm974_vm1 = vweird.f32 %v968_v32 }
 0x20f   :  { %v932_v34 = vsub.f32 1.0, %v931_v37  ;;  %vm956_vm13 = vmor %vm954_vm11, %vm955_vm9  ;;  %v978_v0 = vand.u32 2147483647, %v968_v32  ;;  %v981_v2 = vor.u32 1.1754944e-38, %v980_v63  ;;  %v3264_v26 = vor.u32 %v3842_v24, %v3263_v23  ;;  %v3247_v37 = vld [vmem:[%s5786_s1 + $0xa8] sm:$0xf]  ;;  %1553 = vmatpush.bf16.msra.mxu3 %v3252_v43 }
 0x210   :  { %v951_v38 = vsub.f32 1.0, %v950_v57  ;;  %v3838_v57 = vld [vmem:[%s5786_s1 + $0xb4] sm:$0xf0]  ;;  %v3209_v63 = vld [vmem:[%s5786_s1 + $0x70] sm:$0xf0] }
 0x211   :  { %v933_v42 = vmul.f32 %v3985_v33, %v932_v34  ;;  %vm979_vm3 = vcmp.eq.f32.partialorder %v978_v0, 8.507059e+37  ;;  %1539 = vmatpush.bf16.msra.mxu2 %v3264_v26  ;;  %v3215_v0 = vld [vmem:[%s5786_s1 + $0x68] sm:$0xf]  ;;  %v3201_v24 = vld [vmem:[%s5786_s1 + $0x58] sm:$0xf0] }
 0x212   :  { %v952_v44 = vmul.f32 %v3987_v36, %v951_v38  ;;  %v3248_v38 = vor.u32 %v3838_v57, %v3247_v37  ;;  %v3821_v26 = vld [vmem:[%s5786_s1 + $0x2c] sm:$0xf0]  ;;  %v3204_v28 = vor.u32 %v3824_v22, %v3201_v24  ;;  %v3822_v37 = vld [vmem:[%s5786_s1 + $0x34] sm:$0xf0]  ;;  %v3820_v57 = vld [vmem:[%s5786_s1 + $0x2c] sm:$0xf] }
 0x213   :  { %v3989_v45 = vpop.eup %3988  ;;  %v934_v46 = vadd.f32 %v3985_v33, %v933_v42  ;;  %v3022_v42 = vld [vmem:[%s5785_s0 + $0x30] sm:$0xff]  ;;  %v3176_v29 = vor.u32 %v3821_v26, %v3175_v25 }
 0x214   :  { %v953_v48 = vadd.f32 %v3987_v36, %v952_v44  ;;  %v970_v49 = vmul.f32 %v3989_v45, %v968_v32  ;;  %v3991_v52 = vpop.eup %3990  ;;  %vm975_vm0 = vweird.f32 %v3989_v45  ;;  %v3837_v32 = vld [vmem:[%s5786_s1 + $0xac] sm:$0xf0]  ;;  %v3223_v44 = vld [vmem:[%s5786_s1 + $0x80] sm:$0xf] }
 0x215   :  { %v938_v51 = vsel %vm937_vm12, %v3985_v33, %v934_v46  ;;  %vm976_vm2 = vmor %vm974_vm1, %vm975_vm0  ;;  %v3835_v33 = vld [vmem:[%s5786_s1 + $0xa4] sm:$0xf]  ;;  %v3240_v35 = vor.u32 %v3837_v32, %v3239_v31  ;;  %1540 = vmatpush.bf16.msra.mxu2 %v3248_v38  ;;  %v3224_v46 = vor.u32 %v3833_v39, %v3223_v44  ;;  %v3177_v31 = vld [vmem:[%s5786_s1 + $0x30] sm:$0xf0] }
 0x216   :  { %v943_v53 = vsel %vm940_vm14, %v942_v47, %v938_v51  ;;  %v957_v54 = vsel %vm956_vm13, %v3987_v36, %v953_v48  ;;  %v971_v55 = vsub.f32 1.0, %v970_v49  ;;  %v3241_v36 = vld [vmem:[%s5786_s1 + $0xb0] sm:$0xf0]  ;;  %v3231_v48 = vld [vmem:[%s5786_s1 + $0x88] sm:$0xf] }
 0x217   :  { %v962_v56 = vsel %vm959_vm15, %v961_v50, %v957_v54  ;;  %v985_v58 = vmul.f32 %v3991_v52, %v943_v53  ;;  %v3244_v34 = vor.u32 %v3835_v33, %v3241_v36  ;;  %v3225_v47 = vld [vmem:[%s5786_s1 + $0x90] sm:$0xf0]  ;;  %v3834_v49 = vld [vmem:[%s5786_s1 + $0x94] sm:$0xf0]  ;;  %v3832_v52 = vld [vmem:[%s5786_s1 + $0x8c] sm:$0xf]  ;;  %v995_v54 = vunpack.c.l.bf16 %v3022_v42 }
 0x218   :  { %v984_v59 = vmul.f32 %v962_v56, %v4739_v27  ;;  %v972_v60 = vmul.f32 %v3989_v45, %v971_v55  ;;  %v3271_v27 = vld [vmem:[%s5786_s1 + $0xe0] sm:$0xf]  ;;  %v3232_v51 = vor.u32 %v3834_v49, %v3231_v48  ;;  %v3233_v53 = vld [vmem:[%s5786_s1 + $0x98] sm:$0xf0]  ;;  %v996_v55 = vunpack.c.h.bf16 %v3022_v42  ;;  %v3183_v32 = vld [vmem:[%s5786_s1 + $0x28] sm:$0xf] }
 0x219   :  { %v3272_v10 = vor.u32 %v3845_v8, %v3271_v27  ;;  %1527 = vmatpush.bf16.msra.mxu1 %v3244_v34  ;;  %v3236_v56 = vor.u32 %v3832_v52, %v3233_v53  ;;  %v3217_v27 = vld [vmem:[%s5786_s1 + $0x78] sm:$0xf0]  ;;  %v3180_v36 = vor.u32 %v3819_v30, %v3177_v31  ;;  %v3184_v42 = vor.u32 %v3822_v37, %v3183_v32  ;;  %v3159_v44 = vld [vmem:[%s5786_s1] sm:$0xf]  ;;  %v3817_v39 = vld [vmem:[%s5786_s1 + $0xc] sm:$0xf0] }
 0x21a   :  { %v4945_v61 = vadd.f32 %v985_v58, %v984_v59  ;;  %v973_v62 = vadd.f32 %v3989_v45, %v972_v60  ;;  %1541 = vmatpush.bf16.msra.mxu2 %v3232_v51  ;;  %v3207_v58 = vld [vmem:[%s5786_s1 + $0x60] sm:$0xf]  ;;  %v3829_v59 = vld [vmem:[%s5786_s1 + $0x6c] sm:$0xf0]  ;;  %v3827_v60 = vld [vmem:[%s5786_s1 + $0x64] sm:$0xf] }
 0x21b   :  { %1512 = vmatpush.bf16.msra.mxu0 %v3272_v10  ;;  %1554 = vmatpush.bf16.msra.mxu3 %v3236_v56  ;;  %v5074_v10 = vld [vmem:[%s5785_s0 + $0x38] sm:$0xff]  ;;  %v3167_v48 = vld [vmem:[%s5786_s1 + $0x8] sm:$0xf]  ;;  %v3816_v52 = vld [vmem:[%s5786_s1 + $0xc] sm:$0xf] }
 0x21c   :  { %3992 = vtanh.f32 %v4945_v61  ;;  %v977_v1 = vsel %vm976_vm2, %v3989_v45, %v973_v62  ;;  %v3831_v45 = vld [vmem:[%s5786_s1 + $0x84] sm:$0xf]  ;;  %v3208_v62 = vor.u32 %v3829_v59, %v3207_v58  ;;  %v998_v18 = vunpack.c.h.bf16 %v5074_v10  ;;  %v3185_v34 = vld [vmem:[%s5786_s1 + $0x38] sm:$0xf0]  ;;  %v3818_v49 = vld [vmem:[%s5786_s1 + $0x14] sm:$0xf0] }
 0x21d   :  { %v982_v4 = vsel %vm979_vm3, %v981_v2, %v977_v1  ;;  %v3228_v50 = vor.u32 %v3831_v45, %v3225_v47  ;;  %v3830_v1 = vld [vmem:[%s5786_s1 + $0x74] sm:$0xf0]  ;;  %v3188_v43 = vor.u32 %v3820_v57, %v3185_v34  ;;  %v3815_v45 = vld [vmem:[%s5786_s1 + $0x4] sm:$0xf]  ;;  %v3161_v47 = vld [vmem:[%s5786_s1 + $0x10] sm:$0xf0] }
 0x21e   :  { %v3164_v51 = vor.u32 %v3815_v45, %v3161_v47  ;;  %v3169_v53 = vld [vmem:[%s5786_s1 + $0x18] sm:$0xf0]  ;;  %v3878_v45 = vld [vmem:[%s5786_s1 + $0xf4] sm:$0xf0] }
 0x21f   :  { %1513 = vmatpush.bf16.msra.mxu0 %v3256_v21  ;;  %1528 = vmatpush.bf16.msra.mxu1 %v3228_v50  ;;  %v3826_v21 = vld [vmem:[%s5786_s1 + $0x54] sm:$0xf0]  ;;  %v3172_v59 = vor.u32 %v3816_v52, %v3169_v53  ;;  %v3873_v52 = vld [vmem:[%s5786_s1 + $0xcc] sm:$0xf0]  ;;  %v3871_v53 = vld [vmem:[%s5786_s1 + $0xc4] sm:$0xf] }
 0x220   :  { %v3200_v23 = vor.u32 %v3826_v21, %v3199_v20 }
 0x222   :  { %v3993_v3 = vpop.eup %3992 }
 0x223   :  { %v988_v5 = vmul.f32 %v3993_v3, %v982_v4  ;;  %1514 = vmatpush.bf16.msra.mxu0 %v3240_v35  ;;  %v3212_v4 = vor.u32 %v3827_v60, %v3209_v63 }
 0x225   :  { %v989_v7 = vpack.c.bf16 %v988_v5, %v988_v5  ;;  %v3216_v5 = vor.u32 %v3830_v1, %v3215_v0  ;;  %1529 = vmatpush.bf16.msra.mxu1 %v3212_v4  ;;  %v997_v0 = vunpack.c.l.bf16 %v5074_v10 }
 0x227   :  { %991 = vst [vmem:[#allocation4 + $0x8] sm:$0xf] %v989_v7  ;;  %1199 = vmatmul.bf16.vlgmr.msrb.gmra.mxu0 %v989_v7  ;;  %1212 = vmatmul.bf16.vlgmr.msrb.gmra.mxu1 %v989_v7 }
 0x228   :  { %1225 = vmatmul.bf16.vlgmr.msrb.gmra.mxu2 %v989_v7  ;;  %1238 = vmatmul.bf16.vlgmr.msrb.gmra.mxu3 %v989_v7  ;;  %v3828_v7 = vld [vmem:[%s5786_s1 + $0x6c] sm:$0xf] }
 0x229   :  { %1515 = vmatpush.bf16.msra.mxu0 %v3224_v46  ;;  %v3220_v11 = vor.u32 %v3828_v7, %v3217_v27  ;;  %1542 = vmatpush.bf16.msra.mxu2 %v3216_v5  ;;  %v3160_v46 = vor.u32 %v3817_v39, %v3159_v44  ;;  %v3406_v44 = vld [vmem:[%s5786_s1 + $0xf0] sm:$0xf0]  ;;  %v3412_v39 = vld [vmem:[%s5786_s1 + $0xe8] sm:$0xf] }
 0x22a   :  { %1530 = vmatpush.bf16.msra.mxu1 %v3196_v19  ;;  %v3413_v47 = vor.u32 %v3878_v45, %v3412_v39  ;;  %v3324_v39 = vld [vmem:[%s5786_s1 + $0x40] sm:$0xf]  ;;  %v3857_v45 = vld [vmem:[%s5786_s1 + $0x4c] sm:$0xf0] }
 0x22b   :  { %1555 = vmatpush.bf16.msra.mxu3 %v3220_v11 }
 0x22d   :  { %1516 = vmatpush.bf16.msra.mxu0 %v3208_v62  ;;  %1543 = vmatpush.bf16.msra.mxu2 %v3200_v23 }
 0x22e   :  { %1531 = vmatpush.bf16.msra.mxu1 %v3180_v36 }
 0x22f   :  { %1556 = vmatpush.bf16.msra.mxu3 %v3204_v28 }
 0x231   :  { %1517 = vmatpush.bf16.msra.mxu0 %v3192_v16  ;;  %1544 = vmatpush.bf16.msra.mxu2 %v3184_v42  ;;  %v3875_v42 = vld [vmem:[%s5786_s1 + $0xe4] sm:$0xf] }
 0x232   :  { %1532 = vmatpush.bf16.msra.mxu1 %v3164_v51  ;;  %v3388_v51 = vld [vmem:[%s5786_s1 + $0xc0] sm:$0xf] }
 0x233   :  { %1557 = vmatpush.bf16.msra.mxu3 %v3188_v43 }
 0x235   :  { %1518 = vmatpush.bf16.msra.mxu0 %v3176_v29 }
 0x237   :  { %1558 = vmatpush.bf16.msra.mxu3 %v3172_v59 }
 0x239   :  { %1519 = vmatpush.bf16.msra.mxu0 %v3160_v46  ;;  %v3409_v46 = vor.u32 %v3875_v42, %v3406_v44 }
 0x23b   :  { %1846 = vmatpush.bf16.msrb.mxu1 %v3409_v46  ;;  %v3855_v46 = vld [vmem:[%s5786_s1 + $0x44] sm:$0xf] }
 0x2a4   :  { %v1200_v2 = vpop.f32.mrf.mxu0  ;;  %v1213_v3 = vpop.f32.mrf.mxu1 }
 0x2a5   :  { %v1243_v8 = vadd.f32 %v1200_v2, %v995_v54  ;;  %v1244_v9 = vadd.f32 %v1213_v3, %v996_v55  ;;  %v3168_v55 = vor.u32 %v3818_v49, %v3167_v48  ;;  %v3876_v48 = vld [vmem:[%s5786_s1 + $0xec] sm:$0xf]  ;;  %v3414_v49 = vld [vmem:[%s5786_s1 + $0xf8] sm:$0xf0] }
 0x2a7   :  { %v3152_v14 = vmul.f32 -1.442695, %v1243_v8  ;;  %v3153_v15 = vmul.f32 -1.442695, %v1244_v9  ;;  %1545 = vmatpush.bf16.msra.mxu2 %v3168_v55  ;;  %v3390_v55 = vld [vmem:[%s5786_s1 + $0xd0] sm:$0xf0] }
 0x2a8   :  { %v3393_v59 = vor.u32 %v3871_v53, %v3390_v55  ;;  %v3332_v53 = vld [vmem:[%s5786_s1 + $0x48] sm:$0xf]  ;;  %v3856_v55 = vld [vmem:[%s5786_s1 + $0x4c] sm:$0xf] }
 0x2a9   :  { %3994 = vpow2.f32 %v3152_v14 }
 0x2aa   :  { %3996 = vpow2.f32 %v3153_v15  ;;  %1847 = vmatpush.bf16.msrb.mxu1 %v3393_v59  ;;  %v3308_v59 = vld [vmem:[%s5786_s1 + $0x20] sm:$0xf] }
 0x2ab   :  { %v1226_v33 = vpop.f32.mrf.mxu2  ;;  %v1239_v35 = vpop.f32.mrf.mxu3  ;;  %1859 = vmatpush.bf16.msrb.mxu2 %v3413_v47 }
 0x2ac   :  { %v1246_v38 = vadd.f32 %v1239_v35, %v998_v18  ;;  %v1202_v40 = vpop.f32.mrf.mxu0  ;;  %v1215_v41 = vpop.f32.mrf.mxu1  ;;  %v1245_v4 = vadd.f32 %v1226_v33, %v997_v0 }
 0x2ad   :  { %v3877_v41 = vld [vmem:[%s5786_s1 + $0xec] sm:$0xf0] }
 0x2ae   :  { %v3154_v50 = vmul.f32 -1.442695, %v1246_v38 }
 0x2af   :  { %v3995_v54 = vpop.eup %3994 }
 0x2b0   :  { %v3997_v56 = vpop.eup %3996  ;;  %v1250_v58 = vadd.f32 1.0, %v3995_v54  ;;  %3998 = vpow2.f32 %v3154_v50  ;;  %v3417_v50 = vor.u32 %v3876_v48, %v3414_v49  ;;  %v3389_v54 = vor.u32 %v3873_v52, %v3388_v51 }
 0x2b1   :  { %v1269_v60 = vadd.f32 1.0, %v3997_v56  ;;  %v3396_v56 = vld [vmem:[%s5786_s1 + $0xc8] sm:$0xf]  ;;  %v3325_v49 = vor.u32 %v3857_v45, %v3324_v39 }
 0x2b2   :  { %4000 = vrcp.f32 %v1250_v58  ;;  %v1262_v11 = vand.u32 2147483648, %v1250_v58  ;;  %v1260_v13 = vand.u32 2147483647, %v1250_v58  ;;  %vm1256_vm6 = vweird.f32 %v1250_v58  ;;  %1872 = vmatpush.bf16.msrb.mxu3 %v3417_v50  ;;  %v3326_v50 = vld [vmem:[%s5786_s1 + $0x50] sm:$0xf0] }
 0x2b3   :  { %4002 = vrcp.f32 %v1269_v60  ;;  %v1228_v62 = vpop.f32.mrf.mxu2  ;;  %v1241_v63 = vpop.f32.mrf.mxu3  ;;  %v1281_v6 = vand.u32 2147483648, %v1269_v60  ;;  %v1279_v10 = vand.u32 2147483647, %v1269_v60  ;;  %vm1275_vm7 = vweird.f32 %v1269_v60 }
 0x2b4   :  { %v1263_v17 = vor.u32 1.1754944e-38, %v1262_v11  ;;  %vm1261_vm10 = vcmp.eq.f32.partialorder %v1260_v13, 8.507059e+37  ;;  %v3872_v62 = vld [vmem:[%s5786_s1 + $0xcc] sm:$0xf]  ;;  %v3398_v63 = vld [vmem:[%s5786_s1 + $0xd8] sm:$0xf0]  ;;  %v3329_v52 = vor.u32 %v3855_v46, %v3326_v50 }
 0x2b5   :  { %v1282_v20 = vor.u32 1.1754944e-38, %v1281_v6  ;;  %vm1280_vm11 = vcmp.eq.f32.partialorder %v1279_v10, 8.507059e+37  ;;  %v3401_v0 = vor.u32 %v3872_v62, %v3398_v63  ;;  %v3868_v11 = vld [vmem:[%s5786_s1 + $0xac] sm:$0xf]  ;;  %v3382_v6 = vld [vmem:[%s5786_s1 + $0xb8] sm:$0xf0] }
 0x2b6   :  { %v3999_v1 = vpop.eup %3998  ;;  %v3385_v13 = vor.u32 %v3868_v11, %v3382_v6  ;;  %v3865_v10 = vld [vmem:[%s5786_s1 + $0x8c] sm:$0xf0] }
 0x2b7   :  { %v1289_v2 = vadd.f32 1.0, %v3999_v1  ;;  %v3372_v1 = vld [vmem:[%s5786_s1 + $0xa0] sm:$0xf]  ;;  %1873 = vmatpush.bf16.msrb.mxu3 %v3401_v0  ;;  %v3851_v0 = vld [vmem:[%s5786_s1 + $0x24] sm:$0xf] }
 0x2b8   :  { %v4001_v3 = vpop.eup %4000 }
 0x2b9   :  { %v4003_v5 = vpop.eup %4002  ;;  %v1252_v7 = vmul.f32 %v4001_v3, %v1250_v58  ;;  %4004 = vrcp.f32 %v1289_v2  ;;  %vm1257_vm4 = vweird.f32 %v4001_v3  ;;  %v1301_v33 = vand.u32 2147483648, %v1289_v2  ;;  %v3874_v58 = vld [vmem:[%s5786_s1 + $0xd4] sm:$0xf0] }
 0x2ba   :  { %v1271_v27 = vmul.f32 %v4003_v5, %v1269_v60  ;;  %4006 = vtanh.f32 %v1245_v4  ;;  %vm1276_vm5 = vweird.f32 %v4003_v5  ;;  %vm1258_vm8 = vmor %vm1256_vm6, %vm1257_vm4  ;;  %vm1295_vm13 = vweird.f32 %v1289_v2 }
 0x2bb   :  { %v1253_v8 = vsub.f32 1.0, %v1252_v7  ;;  %vm1277_vm9 = vmor %vm1275_vm7, %vm1276_vm5  ;;  %v1299_v35 = vand.u32 2147483647, %v1289_v2  ;;  %v1302_v37 = vor.u32 1.1754944e-38, %v1301_v33  ;;  %v3397_v60 = vor.u32 %v3874_v58, %v3396_v56  ;;  %v3380_v7 = vld [vmem:[%s5786_s1 + $0xa8] sm:$0xf]  ;;  %1874 = vmatpush.bf16.msrb.mxu3 %v3385_v13 }
 0x2bc   :  { %v1272_v9 = vsub.f32 1.0, %v1271_v27  ;;  %v3870_v27 = vld [vmem:[%s5786_s1 + $0xb4] sm:$0xf0]  ;;  %v3342_v33 = vld [vmem:[%s5786_s1 + $0x70] sm:$0xf0] }
 0x2bd   :  { %v1254_v12 = vmul.f32 %v4001_v3, %v1253_v8  ;;  %vm1300_vm15 = vcmp.eq.f32.partialorder %v1299_v35, 8.507059e+37  ;;  %1860 = vmatpush.bf16.msrb.mxu2 %v3397_v60  ;;  %v3348_v35 = vld [vmem:[%s5786_s1 + $0x68] sm:$0xf]  ;;  %v3334_v58 = vld [vmem:[%s5786_s1 + $0x58] sm:$0xf0] }
 0x2be   :  { %v1273_v14 = vmul.f32 %v4003_v5, %v1272_v9  ;;  %v3381_v9 = vor.u32 %v3870_v27, %v3380_v7  ;;  %v3853_v60 = vld [vmem:[%s5786_s1 + $0x2c] sm:$0xf0]  ;;  %v3337_v62 = vor.u32 %v3856_v55, %v3334_v58  ;;  %v3854_v7 = vld [vmem:[%s5786_s1 + $0x34] sm:$0xf0]  ;;  %v3852_v27 = vld [vmem:[%s5786_s1 + $0x2c] sm:$0xf] }
 0x2bf   :  { %v4005_v15 = vpop.eup %4004  ;;  %v1255_v16 = vadd.f32 %v4001_v3, %v1254_v12  ;;  %v3155_v12 = vld [vmem:[%s5785_s0 + $0x40] sm:$0xff]  ;;  %v3309_v63 = vor.u32 %v3853_v60, %v3308_v59 }
 0x2c0   :  { %v1274_v18 = vadd.f32 %v4003_v5, %v1273_v14  ;;  %v1291_v19 = vmul.f32 %v4005_v15, %v1289_v2  ;;  %v4007_v22 = vpop.eup %4006  ;;  %vm1296_vm12 = vweird.f32 %v4005_v15  ;;  %v3869_v2 = vld [vmem:[%s5786_s1 + $0xac] sm:$0xf0]  ;;  %v3356_v14 = vld [vmem:[%s5786_s1 + $0x80] sm:$0xf] }
 0x2c1   :  { %v1259_v21 = vsel %vm1258_vm8, %v4001_v3, %v1255_v16  ;;  %vm1297_vm14 = vmor %vm1295_vm13, %vm1296_vm12  ;;  %v3867_v3 = vld [vmem:[%s5786_s1 + $0xa4] sm:$0xf]  ;;  %v3373_v4 = vor.u32 %v3869_v2, %v3372_v1  ;;  %1861 = vmatpush.bf16.msrb.mxu2 %v3381_v9  ;;  %v3357_v16 = vor.u32 %v3865_v10, %v3356_v14  ;;  %v3310_v1 = vld [vmem:[%s5786_s1 + $0x30] sm:$0xf0] }
 0x2c2   :  { %v1264_v23 = vsel %vm1261_vm10, %v1263_v17, %v1259_v21  ;;  %v1278_v24 = vsel %vm1277_vm9, %v4003_v5, %v1274_v18  ;;  %v1292_v25 = vsub.f32 1.0, %v1291_v19  ;;  %v3374_v5 = vld [vmem:[%s5786_s1 + $0xb0] sm:$0xf0]  ;;  %v3364_v18 = vld [vmem:[%s5786_s1 + $0x88] sm:$0xf] }
 0x2c3   :  { %v1283_v26 = vsel %vm1280_vm11, %v1282_v20, %v1278_v24  ;;  %v1306_v28 = vmul.f32 %v4007_v22, %v1264_v23  ;;  %v3377_v8 = vor.u32 %v3867_v3, %v3374_v5  ;;  %v3358_v17 = vld [vmem:[%s5786_s1 + $0x90] sm:$0xf0]  ;;  %v3866_v19 = vld [vmem:[%s5786_s1 + $0x94] sm:$0xf0]  ;;  %v3864_v22 = vld [vmem:[%s5786_s1 + $0x8c] sm:$0xf]  ;;  %v1316_v24 = vunpack.c.l.bf16 %v3155_v12 }
 0x2c4   :  { %v1305_v29 = vmul.f32 %v1283_v26, %v4945_v61  ;;  %v1293_v30 = vmul.f32 %v4005_v15, %v1292_v25  ;;  %v3404_v61 = vld [vmem:[%s5786_s1 + $0xe0] sm:$0xf]  ;;  %v3365_v21 = vor.u32 %v3866_v19, %v3364_v18  ;;  %v3366_v23 = vld [vmem:[%s5786_s1 + $0x98] sm:$0xf0]  ;;  %v1317_v25 = vunpack.c.h.bf16 %v3155_v12  ;;  %v3316_v2 = vld [vmem:[%s5786_s1 + $0x28] sm:$0xf] }
 0x2c5   :  { %v3405_v43 = vor.u32 %v3877_v41, %v3404_v61  ;;  %1848 = vmatpush.bf16.msrb.mxu1 %v3377_v8  ;;  %v3369_v26 = vor.u32 %v3864_v22, %v3366_v23  ;;  %v3350_v61 = vld [vmem:[%s5786_s1 + $0x78] sm:$0xf0]  ;;  %v3313_v5 = vor.u32 %v3851_v0, %v3310_v1  ;;  %v3317_v12 = vor.u32 %v3854_v7, %v3316_v2  ;;  %v3292_v14 = vld [vmem:[%s5786_s1] sm:$0xf]  ;;  %v3849_v10 = vld [vmem:[%s5786_s1 + $0xc] sm:$0xf0] }
 0x2c6   :  { %v5151_v31 = vadd.f32 %v1306_v28, %v1305_v29  ;;  %v1294_v32 = vadd.f32 %v4005_v15, %v1293_v30  ;;  %1862 = vmatpush.bf16.msrb.mxu2 %v3365_v21  ;;  %v3340_v28 = vld [vmem:[%s5786_s1 + $0x60] sm:$0xf]  ;;  %v3861_v29 = vld [vmem:[%s5786_s1 + $0x6c] sm:$0xf0]  ;;  %v3859_v30 = vld [vmem:[%s5786_s1 + $0x64] sm:$0xf] }
 0x2c7   :  { %1833 = vmatpush.bf16.msrb.mxu0 %v3405_v43  ;;  %1875 = vmatpush.bf16.msrb.mxu3 %v3369_v26  ;;  %v5280_v43 = vld [vmem:[%s5785_s0 + $0x48] sm:$0xff]  ;;  %v3318_v8 = vld [vmem:[%s5786_s1 + $0x38] sm:$0xf0]  ;;  %v3850_v19 = vld [vmem:[%s5786_s1 + $0x14] sm:$0xf0] }
 0x2c8   :  { %4008 = vtanh.f32 %v5151_v31  ;;  %v1298_v36 = vsel %vm1297_vm14, %v4005_v15, %v1294_v32  ;;  %v3863_v15 = vld [vmem:[%s5786_s1 + $0x84] sm:$0xf]  ;;  %v3341_v32 = vor.u32 %v3861_v29, %v3340_v28  ;;  %v1319_v51 = vunpack.c.h.bf16 %v5280_v43  ;;  %v3300_v18 = vld [vmem:[%s5786_s1 + $0x8] sm:$0xf]  ;;  %v3848_v22 = vld [vmem:[%s5786_s1 + $0xc] sm:$0xf] }
 0x2c9   :  { %v1303_v34 = vsel %vm1300_vm15, %v1302_v37, %v1298_v36  ;;  %v3361_v20 = vor.u32 %v3863_v15, %v3358_v17  ;;  %v3862_v36 = vld [vmem:[%s5786_s1 + $0x74] sm:$0xf0]  ;;  %v3321_v13 = vor.u32 %v3852_v27, %v3318_v8  ;;  %v3847_v15 = vld [vmem:[%s5786_s1 + $0x4] sm:$0xf]  ;;  %v3294_v17 = vld [vmem:[%s5786_s1 + $0x10] sm:$0xf0] }
 0x2ca   :  { %v3297_v21 = vor.u32 %v3847_v15, %v3294_v17  ;;  %v3302_v23 = vld [vmem:[%s5786_s1 + $0x18] sm:$0xf0]  ;;  %v3910_v15 = vld [vmem:[%s5786_s1 + $0xf4] sm:$0xf0] }
 0x2cb   :  { %1834 = vmatpush.bf16.msrb.mxu0 %v3389_v54  ;;  %1849 = vmatpush.bf16.msrb.mxu1 %v3361_v20  ;;  %v3858_v54 = vld [vmem:[%s5786_s1 + $0x54] sm:$0xf0]  ;;  %v3305_v29 = vor.u32 %v3848_v22, %v3302_v23  ;;  %v3905_v22 = vld [vmem:[%s5786_s1 + $0xcc] sm:$0xf0]  ;;  %v3903_v23 = vld [vmem:[%s5786_s1 + $0xc4] sm:$0xf] }
 0x2cc   :  { %v3333_v56 = vor.u32 %v3858_v54, %v3332_v53 }
 0x2ce   :  { %v4009_v57 = vpop.eup %4008 }
 0x2cf   :  { %v1309_v38 = vmul.f32 %v4009_v57, %v1303_v34  ;;  %1835 = vmatpush.bf16.msrb.mxu0 %v3373_v4  ;;  %v3345_v34 = vor.u32 %v3859_v30, %v3342_v33 }
 0x2d1   :  { %v1310_v40 = vpack.c.bf16 %v1309_v38, %v1309_v38  ;;  %v3349_v38 = vor.u32 %v3862_v36, %v3348_v35  ;;  %1850 = vmatpush.bf16.msrb.mxu1 %v3345_v34  ;;  %v1318_v35 = vunpack.c.l.bf16 %v5280_v43 }
 0x2d3   :  { %1312 = vst [vmem:[#allocation4 + $0xc] sm:$0xf] %v1310_v40  ;;  %1520 = vmatmul.bf16.vlgmr.msra.gmra.mxu0 %v1310_v40  ;;  %1533 = vmatmul.bf16.vlgmr.msra.gmra.mxu1 %v1310_v40 }
 0x2d4   :  { %1546 = vmatmul.bf16.vlgmr.msra.gmra.mxu2 %v1310_v40  ;;  %1559 = vmatmul.bf16.vlgmr.msra.gmra.mxu3 %v1310_v40  ;;  %v3860_v40 = vld [vmem:[%s5786_s1 + $0x6c] sm:$0xf] }
 0x2d5   :  { %1836 = vmatpush.bf16.msrb.mxu0 %v3357_v16  ;;  %v3353_v44 = vor.u32 %v3860_v40, %v3350_v61  ;;  %1863 = vmatpush.bf16.msrb.mxu2 %v3349_v38  ;;  %v3293_v16 = vor.u32 %v3849_v10, %v3292_v14  ;;  %v3539_v14 = vld [vmem:[%s5786_s1 + $0xf0] sm:$0xf0]  ;;  %v3545_v10 = vld [vmem:[%s5786_s1 + $0xe8] sm:$0xf] }
 0x2d6   :  { %1851 = vmatpush.bf16.msrb.mxu1 %v3329_v52  ;;  %v3546_v17 = vor.u32 %v3910_v15, %v3545_v10  ;;  %v3457_v10 = vld [vmem:[%s5786_s1 + $0x40] sm:$0xf]  ;;  %v3889_v15 = vld [vmem:[%s5786_s1 + $0x4c] sm:$0xf0] }
 0x2d7   :  { %1876 = vmatpush.bf16.msrb.mxu3 %v3353_v44 }
 0x2d9   :  { %1837 = vmatpush.bf16.msrb.mxu0 %v3341_v32  ;;  %1864 = vmatpush.bf16.msrb.mxu2 %v3333_v56 }
 0x2da   :  { %1852 = vmatpush.bf16.msrb.mxu1 %v3313_v5 }
 0x2db   :  { %1877 = vmatpush.bf16.msrb.mxu3 %v3337_v62 }
 0x2dd   :  { %1838 = vmatpush.bf16.msrb.mxu0 %v3325_v49  ;;  %1865 = vmatpush.bf16.msrb.mxu2 %v3317_v12  ;;  %v3907_v12 = vld [vmem:[%s5786_s1 + $0xe4] sm:$0xf] }
 0x2de   :  { %1853 = vmatpush.bf16.msrb.mxu1 %v3297_v21  ;;  %v3521_v21 = vld [vmem:[%s5786_s1 + $0xc0] sm:$0xf] }
 0x2df   :  { %1878 = vmatpush.bf16.msrb.mxu3 %v3321_v13 }
 0x2e1   :  { %1839 = vmatpush.bf16.msrb.mxu0 %v3309_v63 }
 0x2e3   :  { %1879 = vmatpush.bf16.msrb.mxu3 %v3305_v29 }
 0x2e5   :  { %1840 = vmatpush.bf16.msrb.mxu0 %v3293_v16  ;;  %v3542_v16 = vor.u32 %v3907_v12, %v3539_v14 }
 0x2e7   :  { %2167 = vmatpush.bf16.msra.mxu1 %v3542_v16  ;;  %v3887_v16 = vld [vmem:[%s5786_s1 + $0x44] sm:$0xf] }
 0x350   :  { %v1521_v37 = vpop.f32.mrf.mxu0  ;;  %v1534_v57 = vpop.f32.mrf.mxu1 }
 0x351   :  { %v1564_v41 = vadd.f32 %v1521_v37, %v1316_v24  ;;  %v1565_v42 = vadd.f32 %v1534_v57, %v1317_v25  ;;  %v3301_v25 = vor.u32 %v3850_v19, %v3300_v18  ;;  %v3908_v18 = vld [vmem:[%s5786_s1 + $0xec] sm:$0xf]  ;;  %v3547_v19 = vld [vmem:[%s5786_s1 + $0xf8] sm:$0xf0] }
 0x353   :  { %v3285_v47 = vmul.f32 -1.442695, %v1564_v41  ;;  %v3286_v48 = vmul.f32 -1.442695, %v1565_v42  ;;  %1866 = vmatpush.bf16.msrb.mxu2 %v3301_v25  ;;  %v3523_v25 = vld [vmem:[%s5786_s1 + $0xd0] sm:$0xf0] }
 0x354   :  { %v3526_v29 = vor.u32 %v3903_v23, %v3523_v25  ;;  %v3465_v23 = vld [vmem:[%s5786_s1 + $0x48] sm:$0xf]  ;;  %v3888_v25 = vld [vmem:[%s5786_s1 + $0x4c] sm:$0xf] }
 0x355   :  { %4010 = vpow2.f32 %v3285_v47 }
 0x356   :  { %4012 = vpow2.f32 %v3286_v48  ;;  %2168 = vmatpush.bf16.msra.mxu1 %v3526_v29  ;;  %v3441_v29 = vld [vmem:[%s5786_s1 + $0x20] sm:$0xf] }
 0x357   :  { %v1547_v3 = vpop.f32.mrf.mxu2  ;;  %v1560_v4 = vpop.f32.mrf.mxu3  ;;  %2180 = vmatpush.bf16.msra.mxu2 %v3546_v17 }
 0x358   :  { %v1567_v9 = vadd.f32 %v1560_v4, %v1319_v51  ;;  %v1523_v11 = vpop.f32.mrf.mxu0  ;;  %v1536_v6 = vpop.f32.mrf.mxu1  ;;  %v1566_v34 = vadd.f32 %v1547_v3, %v1318_v35 }
 0x359   :  { %v3909_v6 = vld [vmem:[%s5786_s1 + $0xec] sm:$0xf0] }
 0x35a   :  { %v3287_v20 = vmul.f32 -1.442695, %v1567_v9 }
 0x35b   :  { %v4011_v24 = vpop.eup %4010 }
 0x35c   :  { %v4013_v26 = vpop.eup %4012  ;;  %v1571_v28 = vadd.f32 1.0, %v4011_v24  ;;  %4014 = vpow2.f32 %v3287_v20  ;;  %v3550_v20 = vor.u32 %v3908_v18, %v3547_v19  ;;  %v3522_v24 = vor.u32 %v3905_v22, %v3521_v21 }
 0x35d   :  { %v1590_v30 = vadd.f32 1.0, %v4013_v26  ;;  %v3529_v26 = vld [vmem:[%s5786_s1 + $0xc8] sm:$0xf]  ;;  %v3458_v19 = vor.u32 %v3889_v15, %v3457_v10 }
 0x35e   :  { %4016 = vrcp.f32 %v1571_v28  ;;  %v1583_v44 = vand.u32 2147483648, %v1571_v28  ;;  %v1581_v46 = vand.u32 2147483647, %v1571_v28  ;;  %vm1577_vm2 = vweird.f32 %v1571_v28  ;;  %2193 = vmatpush.bf16.msra.mxu3 %v3550_v20  ;;  %v3459_v20 = vld [vmem:[%s5786_s1 + $0x50] sm:$0xf0] }
 0x35f   :  { %4018 = vrcp.f32 %v1590_v30  ;;  %v1549_v32 = vpop.f32.mrf.mxu2  ;;  %v1562_v33 = vpop.f32.mrf.mxu3  ;;  %v1602_v39 = vand.u32 2147483648, %v1590_v30  ;;  %v1600_v43 = vand.u32 2147483647, %v1590_v30  ;;  %vm1596_vm3 = vweird.f32 %v1590_v30 }
 0x360   :  { %v1584_v50 = vor.u32 1.1754944e-38, %v1583_v44  ;;  %vm1582_vm6 = vcmp.eq.f32.partialorder %v1581_v46, 8.507059e+37  ;;  %v3904_v32 = vld [vmem:[%s5786_s1 + $0xcc] sm:$0xf]  ;;  %v3531_v33 = vld [vmem:[%s5786_s1 + $0xd8] sm:$0xf0]  ;;  %v3462_v22 = vor.u32 %v3887_v16, %v3459_v20 }
 0x361   :  { %v1603_v53 = vor.u32 1.1754944e-38, %v1602_v39  ;;  %vm1601_vm7 = vcmp.eq.f32.partialorder %v1600_v43, 8.507059e+37  ;;  %v3534_v35 = vor.u32 %v3904_v32, %v3531_v33  ;;  %v3900_v44 = vld [vmem:[%s5786_s1 + $0xac] sm:$0xf]  ;;  %v3515_v39 = vld [vmem:[%s5786_s1 + $0xb8] sm:$0xf0] }
 0x362   :  { %v4015_v36 = vpop.eup %4014  ;;  %v3518_v46 = vor.u32 %v3900_v44, %v3515_v39  ;;  %v3897_v43 = vld [vmem:[%s5786_s1 + $0x8c] sm:$0xf0] }
 0x363   :  { %v1610_v37 = vadd.f32 1.0, %v4015_v36  ;;  %v3505_v36 = vld [vmem:[%s5786_s1 + $0xa0] sm:$0xf]  ;;  %2194 = vmatpush.bf16.msra.mxu3 %v3534_v35  ;;  %v3883_v35 = vld [vmem:[%s5786_s1 + $0x24] sm:$0xf] }
 0x364   :  { %v4017_v57 = vpop.eup %4016 }
 0x365   :  { %v4019_v38 = vpop.eup %4018  ;;  %v1573_v40 = vmul.f32 %v4017_v57, %v1571_v28  ;;  %4020 = vrcp.f32 %v1610_v37  ;;  %vm1578_vm0 = vweird.f32 %v4017_v57  ;;  %v1622_v3 = vand.u32 2147483648, %v1610_v37  ;;  %v3906_v28 = vld [vmem:[%s5786_s1 + $0xd4] sm:$0xf0] }
 0x366   :  { %v1592_v61 = vmul.f32 %v4019_v38, %v1590_v30  ;;  %4022 = vtanh.f32 %v1566_v34  ;;  %vm1597_vm1 = vweird.f32 %v4019_v38  ;;  %vm1579_vm4 = vmor %vm1577_vm2, %vm1578_vm0  ;;  %vm1616_vm9 = vweird.f32 %v1610_v37 }
 0x367   :  { %v1574_v41 = vsub.f32 1.0, %v1573_v40  ;;  %vm1598_vm5 = vmor %vm1596_vm3, %vm1597_vm1  ;;  %v1620_v4 = vand.u32 2147483647, %v1610_v37  ;;  %v1623_v7 = vor.u32 1.1754944e-38, %v1622_v3  ;;  %v3530_v30 = vor.u32 %v3906_v28, %v3529_v26  ;;  %v3513_v40 = vld [vmem:[%s5786_s1 + $0xa8] sm:$0xf]  ;;  %2195 = vmatpush.bf16.msra.mxu3 %v3518_v46 }
 0x368   :  { %v1593_v42 = vsub.f32 1.0, %v1592_v61  ;;  %v3902_v61 = vld [vmem:[%s5786_s1 + $0xb4] sm:$0xf0]  ;;  %v3475_v3 = vld [vmem:[%s5786_s1 + $0x70] sm:$0xf0] }
 0x369   :  { %v1575_v45 = vmul.f32 %v4017_v57, %v1574_v41  ;;  %vm1621_vm11 = vcmp.eq.f32.partialorder %v1620_v4, 8.507059e+37  ;;  %2181 = vmatpush.bf16.msra.mxu2 %v3530_v30  ;;  %v3481_v4 = vld [vmem:[%s5786_s1 + $0x68] sm:$0xf]  ;;  %v3467_v28 = vld [vmem:[%s5786_s1 + $0x58] sm:$0xf0] }
 0x36a   :  { %v1594_v47 = vmul.f32 %v4019_v38, %v1593_v42  ;;  %v3514_v42 = vor.u32 %v3902_v61, %v3513_v40  ;;  %v3885_v30 = vld [vmem:[%s5786_s1 + $0x2c] sm:$0xf0]  ;;  %v3470_v32 = vor.u32 %v3888_v25, %v3467_v28  ;;  %v3886_v40 = vld [vmem:[%s5786_s1 + $0x34] sm:$0xf0]  ;;  %v3884_v61 = vld [vmem:[%s5786_s1 + $0x2c] sm:$0xf] }
 0x36b   :  { %v4021_v48 = vpop.eup %4020  ;;  %v1576_v49 = vadd.f32 %v4017_v57, %v1575_v45  ;;  %v3288_v45 = vld [vmem:[%s5785_s0 + $0x50] sm:$0xff]  ;;  %v3442_v33 = vor.u32 %v3885_v30, %v3441_v29 }
 0x36c   :  { %v1595_v51 = vadd.f32 %v4019_v38, %v1594_v47  ;;  %v1612_v52 = vmul.f32 %v4021_v48, %v1610_v37  ;;  %v4023_v55 = vpop.eup %4022  ;;  %vm1617_vm8 = vweird.f32 %v4021_v48  ;;  %v3901_v37 = vld [vmem:[%s5786_s1 + $0xac] sm:$0xf0]  ;;  %v3489_v47 = vld [vmem:[%s5786_s1 + $0x80] sm:$0xf] }
 0x36d   :  { %v1580_v54 = vsel %vm1579_vm4, %v4017_v57, %v1576_v49  ;;  %vm1618_vm10 = vmor %vm1616_vm9, %vm1617_vm8  ;;  %v3899_v57 = vld [vmem:[%s5786_s1 + $0xa4] sm:$0xf]  ;;  %v3506_v34 = vor.u32 %v3901_v37, %v3505_v36  ;;  %2182 = vmatpush.bf16.msra.mxu2 %v3514_v42  ;;  %v3490_v49 = vor.u32 %v3897_v43, %v3489_v47  ;;  %v3443_v36 = vld [vmem:[%s5786_s1 + $0x30] sm:$0xf0] }
 0x36e   :  { %v1585_v56 = vsel %vm1582_vm6, %v1584_v50, %v1580_v54  ;;  %v1599_v58 = vsel %vm1598_vm5, %v4019_v38, %v1595_v51  ;;  %v1613_v59 = vsub.f32 1.0, %v1612_v52  ;;  %v3507_v38 = vld [vmem:[%s5786_s1 + $0xb0] sm:$0xf0]  ;;  %v3497_v51 = vld [vmem:[%s5786_s1 + $0x88] sm:$0xf] }
 0x36f   :  { %v1604_v60 = vsel %vm1601_vm7, %v1603_v53, %v1599_v58  ;;  %v1627_v62 = vmul.f32 %v4023_v55, %v1585_v56  ;;  %v3510_v41 = vor.u32 %v3899_v57, %v3507_v38  ;;  %v3491_v50 = vld [vmem:[%s5786_s1 + $0x90] sm:$0xf0]  ;;  %v3898_v52 = vld [vmem:[%s5786_s1 + $0x94] sm:$0xf0]  ;;  %v3896_v55 = vld [vmem:[%s5786_s1 + $0x8c] sm:$0xf]  ;;  %v1637_v58 = vunpack.c.l.bf16 %v3288_v45 }
 0x370   :  { %v1626_v63 = vmul.f32 %v1604_v60, %v5151_v31  ;;  %v1614_v0 = vmul.f32 %v4021_v48, %v1613_v59  ;;  %v3537_v31 = vld [vmem:[%s5786_s1 + $0xe0] sm:$0xf]  ;;  %v3498_v54 = vor.u32 %v3898_v52, %v3497_v51  ;;  %v3499_v56 = vld [vmem:[%s5786_s1 + $0x98] sm:$0xf0]  ;;  %v1638_v59 = vunpack.c.h.bf16 %v3288_v45  ;;  %v3449_v37 = vld [vmem:[%s5786_s1 + $0x28] sm:$0xf] }
 0x371   :  { %v3538_v13 = vor.u32 %v3909_v6, %v3537_v31  ;;  %2169 = vmatpush.bf16.msra.mxu1 %v3510_v41  ;;  %v3502_v60 = vor.u32 %v3896_v55, %v3499_v56  ;;  %v3483_v31 = vld [vmem:[%s5786_s1 + $0x78] sm:$0xf0]  ;;  %v3446_v38 = vor.u32 %v3883_v35, %v3443_v36  ;;  %v3450_v45 = vor.u32 %v3886_v40, %v3449_v37  ;;  %v3425_v47 = vld [vmem:[%s5786_s1] sm:$0xf]  ;;  %v3881_v43 = vld [vmem:[%s5786_s1 + $0xc] sm:$0xf0] }
 0x372   :  { %v5357_v1 = vadd.f32 %v1627_v62, %v1626_v63  ;;  %v1615_v2 = vadd.f32 %v4021_v48, %v1614_v0  ;;  %2183 = vmatpush.bf16.msra.mxu2 %v3498_v54  ;;  %v3473_v62 = vld [vmem:[%s5786_s1 + $0x60] sm:$0xf]  ;;  %v3893_v63 = vld [vmem:[%s5786_s1 + $0x6c] sm:$0xf0]  ;;  %v3891_v0 = vld [vmem:[%s5786_s1 + $0x64] sm:$0xf] }
 0x373   :  { %2154 = vmatpush.bf16.msra.mxu0 %v3538_v13  ;;  %2196 = vmatpush.bf16.msra.mxu3 %v3502_v60  ;;  %v5486_v13 = vld [vmem:[%s5785_s0 + $0x58] sm:$0xff]  ;;  %v3433_v51 = vld [vmem:[%s5786_s1 + $0x8] sm:$0xf]  ;;  %v3880_v55 = vld [vmem:[%s5786_s1 + $0xc] sm:$0xf] }
 0x374   :  { %4024 = vtanh.f32 %v5357_v1  ;;  %v1619_v5 = vsel %vm1618_vm10, %v4021_v48, %v1615_v2  ;;  %v3895_v48 = vld [vmem:[%s5786_s1 + $0x84] sm:$0xf]  ;;  %v3474_v2 = vor.u32 %v3893_v63, %v3473_v62  ;;  %v1640_v21 = vunpack.c.h.bf16 %v5486_v13  ;;  %v3451_v41 = vld [vmem:[%s5786_s1 + $0x38] sm:$0xf0]  ;;  %v3882_v52 = vld [vmem:[%s5786_s1 + $0x14] sm:$0xf0] }
 0x375   :  { %v1624_v8 = vsel %vm1621_vm11, %v1623_v7, %v1619_v5  ;;  %v3494_v53 = vor.u32 %v3895_v48, %v3491_v50  ;;  %v3894_v5 = vld [vmem:[%s5786_s1 + $0x74] sm:$0xf0]  ;;  %v3454_v46 = vor.u32 %v3884_v61, %v3451_v41  ;;  %v3879_v48 = vld [vmem:[%s5786_s1 + $0x4] sm:$0xf]  ;;  %v3427_v50 = vld [vmem:[%s5786_s1 + $0x10] sm:$0xf0] }
 0x376   :  { %v3430_v54 = vor.u32 %v3879_v48, %v3427_v50  ;;  %v3435_v56 = vld [vmem:[%s5786_s1 + $0x18] sm:$0xf0]  ;;  %v3942_v48 = vld [vmem:[%s5786_s1 + $0xf4] sm:$0xf0] }
 0x377   :  { %2155 = vmatpush.bf16.msra.mxu0 %v3522_v24  ;;  %2170 = vmatpush.bf16.msra.mxu1 %v3494_v53  ;;  %v3890_v24 = vld [vmem:[%s5786_s1 + $0x54] sm:$0xf0]  ;;  %v3438_v63 = vor.u32 %v3880_v55, %v3435_v56  ;;  %v3937_v55 = vld [vmem:[%s5786_s1 + $0xcc] sm:$0xf0]  ;;  %v3935_v56 = vld [vmem:[%s5786_s1 + $0xc4] sm:$0xf] }
 0x378   :  { %v3466_v26 = vor.u32 %v3890_v24, %v3465_v23 }
 0x37a   :  { %v4025_v27 = vpop.eup %4024 }
 0x37b   :  { %v1630_v9 = vmul.f32 %v4025_v27, %v1624_v8  ;;  %2156 = vmatpush.bf16.msra.mxu0 %v3506_v34  ;;  %v3478_v8 = vor.u32 %v3891_v0, %v3475_v3 }
 0x37d   :  { %v1631_v11 = vpack.c.bf16 %v1630_v9, %v1630_v9  ;;  %v3482_v9 = vor.u32 %v3894_v5, %v3481_v4  ;;  %2171 = vmatpush.bf16.msra.mxu1 %v3478_v8  ;;  %v1639_v4 = vunpack.c.l.bf16 %v5486_v13 }
 0x37f   :  { %1633 = vst [vmem:[#allocation4 + $0x10] sm:$0xf] %v1631_v11  ;;  %1841 = vmatmul.bf16.vlgmr.msrb.gmra.mxu0 %v1631_v11  ;;  %1854 = vmatmul.bf16.vlgmr.msrb.gmra.mxu1 %v1631_v11 }
 0x380   :  { %1867 = vmatmul.bf16.vlgmr.msrb.gmra.mxu2 %v1631_v11  ;;  %1880 = vmatmul.bf16.vlgmr.msrb.gmra.mxu3 %v1631_v11  ;;  %v3892_v11 = vld [vmem:[%s5786_s1 + $0x6c] sm:$0xf] }
 0x381   :  { %2157 = vmatpush.bf16.msra.mxu0 %v3490_v49  ;;  %v3486_v14 = vor.u32 %v3892_v11, %v3483_v31  ;;  %2184 = vmatpush.bf16.msra.mxu2 %v3482_v9  ;;  %v3426_v49 = vor.u32 %v3881_v43, %v3425_v47  ;;  %v3672_v47 = vld [vmem:[%s5786_s1 + $0xf0] sm:$0xf0]  ;;  %v3678_v43 = vld [vmem:[%s5786_s1 + $0xe8] sm:$0xf] }
 0x382   :  { %2172 = vmatpush.bf16.msra.mxu1 %v3462_v22  ;;  %v3679_v50 = vor.u32 %v3942_v48, %v3678_v43  ;;  %v3590_v43 = vld [vmem:[%s5786_s1 + $0x40] sm:$0xf]  ;;  %v3921_v48 = vld [vmem:[%s5786_s1 + $0x4c] sm:$0xf0] }
 0x383   :  { %2197 = vmatpush.bf16.msra.mxu3 %v3486_v14 }
 0x385   :  { %2158 = vmatpush.bf16.msra.mxu0 %v3474_v2  ;;  %2185 = vmatpush.bf16.msra.mxu2 %v3466_v26 }
 0x386   :  { %2173 = vmatpush.bf16.msra.mxu1 %v3446_v38 }
 0x387   :  { %2198 = vmatpush.bf16.msra.mxu3 %v3470_v32 }
 0x389   :  { %2159 = vmatpush.bf16.msra.mxu0 %v3458_v19  ;;  %2186 = vmatpush.bf16.msra.mxu2 %v3450_v45  ;;  %v3939_v45 = vld [vmem:[%s5786_s1 + $0xe4] sm:$0xf] }
 0x38a   :  { %2174 = vmatpush.bf16.msra.mxu1 %v3430_v54  ;;  %v3654_v54 = vld [vmem:[%s5786_s1 + $0xc0] sm:$0xf] }
 0x38b   :  { %2199 = vmatpush.bf16.msra.mxu3 %v3454_v46 }
 0x38d   :  { %2160 = vmatpush.bf16.msra.mxu0 %v3442_v33 }
 0x38f   :  { %2200 = vmatpush.bf16.msra.mxu3 %v3438_v63 }
 0x391   :  { %2161 = vmatpush.bf16.msra.mxu0 %v3426_v49  ;;  %v3675_v49 = vor.u32 %v3939_v45, %v3672_v47 }
 0x393   :  { %2488 = vmatpush.bf16.msrb.mxu1 %v3675_v49  ;;  %v3919_v49 = vld [vmem:[%s5786_s1 + $0x44] sm:$0xf] }
 0x3fc   :  { %v1842_v7 = vpop.f32.mrf.mxu0  ;;  %v1855_v27 = vpop.f32.mrf.mxu1 }
 0x3fd   :  { %v1885_v6 = vadd.f32 %v1842_v7, %v1637_v58  ;;  %v1886_v12 = vadd.f32 %v1855_v27, %v1638_v59  ;;  %v3434_v59 = vor.u32 %v3882_v52, %v3433_v51  ;;  %v3940_v51 = vld [vmem:[%s5786_s1 + $0xec] sm:$0xf]  ;;  %v3680_v52 = vld [vmem:[%s5786_s1 + $0xf8] sm:$0xf0] }
 0x3ff   :  { %v3418_v17 = vmul.f32 -1.442695, %v1885_v6  ;;  %v3419_v18 = vmul.f32 -1.442695, %v1886_v12  ;;  %2187 = vmatpush.bf16.msra.mxu2 %v3434_v59  ;;  %v3656_v59 = vld [vmem:[%s5786_s1 + $0xd0] sm:$0xf0] }
 0x400   :  { %v3659_v63 = vor.u32 %v3935_v56, %v3656_v59  ;;  %v3598_v56 = vld [vmem:[%s5786_s1 + $0x48] sm:$0xf]  ;;  %v3920_v59 = vld [vmem:[%s5786_s1 + $0x4c] sm:$0xf] }
 0x401   :  { %4026 = vpow2.f32 %v3418_v17 }
 0x402   :  { %4028 = vpow2.f32 %v3419_v18  ;;  %2489 = vmatpush.bf16.msrb.mxu1 %v3659_v63  ;;  %v3574_v63 = vld [vmem:[%s5786_s1 + $0x20] sm:$0xf] }
 0x403   :  { %v1868_v57 = vpop.f32.mrf.mxu2  ;;  %v1881_v34 = vpop.f32.mrf.mxu3  ;;  %2501 = vmatpush.bf16.msrb.mxu2 %v3679_v50 }
 0x404   :  { %v1888_v42 = vadd.f32 %v1881_v34, %v1640_v21  ;;  %v1844_v44 = vpop.f32.mrf.mxu0  ;;  %v1857_v39 = vpop.f32.mrf.mxu1  ;;  %v1887_v8 = vadd.f32 %v1868_v57, %v1639_v4 }
 0x405   :  { %v3941_v39 = vld [vmem:[%s5786_s1 + $0xec] sm:$0xf0] }
 0x406   :  { %v3420_v53 = vmul.f32 -1.442695, %v1888_v42 }
 0x407   :  { %v4027_v58 = vpop.eup %4026 }
 0x408   :  { %v4029_v60 = vpop.eup %4028  ;;  %v1892_v62 = vadd.f32 1.0, %v4027_v58  ;;  %4030 = vpow2.f32 %v3420_v53  ;;  %v3683_v53 = vor.u32 %v3940_v51, %v3680_v52  ;;  %v3655_v58 = vor.u32 %v3937_v55, %v3654_v54 }
 0x409   :  { %v1911_v0 = vadd.f32 1.0, %v4029_v60  ;;  %v3662_v60 = vld [vmem:[%s5786_s1 + $0xc8] sm:$0xf]  ;;  %v3591_v52 = vor.u32 %v3921_v48, %v3590_v43 }
 0x40a   :  { %4032 = vrcp.f32 %v1892_v62  ;;  %v1904_v14 = vand.u32 2147483648, %v1892_v62  ;;  %v1902_v16 = vand.u32 2147483647, %v1892_v62  ;;  %vm1898_vm14 = vweird.f32 %v1892_v62  ;;  %2514 = vmatpush.bf16.msrb.mxu3 %v3683_v53  ;;  %v3592_v53 = vld [vmem:[%s5786_s1 + $0x50] sm:$0xf0] }
 0x40b   :  { %4034 = vrcp.f32 %v1911_v0  ;;  %v1870_v2 = vpop.f32.mrf.mxu2  ;;  %v1883_v3 = vpop.f32.mrf.mxu3  ;;  %v1923_v10 = vand.u32 2147483648, %v1911_v0  ;;  %v1921_v13 = vand.u32 2147483647, %v1911_v0  ;;  %vm1917_vm15 = vweird.f32 %v1911_v0 }
 0x40c   :  { %v1905_v20 = vor.u32 1.1754944e-38, %v1904_v14  ;;  %vm1903_vm2 = vcmp.eq.f32.partialorder %v1902_v16, 8.507059e+37  ;;  %v3936_v2 = vld [vmem:[%s5786_s1 + $0xcc] sm:$0xf]  ;;  %v3664_v3 = vld [vmem:[%s5786_s1 + $0xd8] sm:$0xf0]  ;;  %v3595_v55 = vor.u32 %v3919_v49, %v3592_v53 }
 0x40d   :  { %v1924_v23 = vor.u32 1.1754944e-38, %v1923_v10  ;;  %vm1922_vm3 = vcmp.eq.f32.partialorder %v1921_v13, 8.507059e+37  ;;  %v3667_v4 = vor.u32 %v3936_v2, %v3664_v3  ;;  %v3932_v14 = vld [vmem:[%s5786_s1 + $0xac] sm:$0xf]  ;;  %v3648_v10 = vld [vmem:[%s5786_s1 + $0xb8] sm:$0xf0] }
 0x40e   :  { %v4031_v5 = vpop.eup %4030  ;;  %v3651_v16 = vor.u32 %v3932_v14, %v3648_v10  ;;  %v3929_v13 = vld [vmem:[%s5786_s1 + $0x8c] sm:$0xf0] }
 0x40f   :  { %v1931_v7 = vadd.f32 1.0, %v4031_v5  ;;  %v3638_v5 = vld [vmem:[%s5786_s1 + $0xa0] sm:$0xf]  ;;  %2515 = vmatpush.bf16.msrb.mxu3 %v3667_v4  ;;  %v3915_v4 = vld [vmem:[%s5786_s1 + $0x24] sm:$0xf] }
 0x410   :  { %v4033_v27 = vpop.eup %4032 }
 0x411   :  { %v4035_v9 = vpop.eup %4034  ;;  %v1894_v11 = vmul.f32 %v4033_v27, %v1892_v62  ;;  %4036 = vrcp.f32 %v1931_v7  ;;  %vm1899_vm12 = vweird.f32 %v4033_v27  ;;  %v1943_v57 = vand.u32 2147483648, %v1931_v7  ;;  %v3938_v62 = vld [vmem:[%s5786_s1 + $0xd4] sm:$0xf0] }
 0x412   :  { %v1913_v31 = vmul.f32 %v4035_v9, %v1911_v0  ;;  %4038 = vtanh.f32 %v1887_v8  ;;  %vm1918_vm13 = vweird.f32 %v4035_v9  ;;  %vm1900_vm0 = vmor %vm1898_vm14, %vm1899_vm12  ;;  %vm1937_vm5 = vweird.f32 %v1931_v7 }
 0x413   :  { %v1895_v6 = vsub.f32 1.0, %v1894_v11  ;;  %vm1919_vm1 = vmor %vm1917_vm15, %vm1918_vm13  ;;  %v1941_v34 = vand.u32 2147483647, %v1931_v7  ;;  %v1944_v40 = vor.u32 1.1754944e-38, %v1943_v57  ;;  %v3663_v0 = vor.u32 %v3938_v62, %v3662_v60  ;;  %v3646_v11 = vld [vmem:[%s5786_s1 + $0xa8] sm:$0xf]  ;;  %2516 = vmatpush.bf16.msrb.mxu3 %v3651_v16 }
 0x414   :  { %v1914_v12 = vsub.f32 1.0, %v1913_v31  ;;  %v3934_v31 = vld [vmem:[%s5786_s1 + $0xb4] sm:$0xf0]  ;;  %v3608_v57 = vld [vmem:[%s5786_s1 + $0x70] sm:$0xf0] }
 0x415   :  { %v1896_v15 = vmul.f32 %v4033_v27, %v1895_v6  ;;  %vm1942_vm7 = vcmp.eq.f32.partialorder %v1941_v34, 8.507059e+37  ;;  %2502 = vmatpush.bf16.msrb.mxu2 %v3663_v0  ;;  %v3614_v34 = vld [vmem:[%s5786_s1 + $0x68] sm:$0xf]  ;;  %v3600_v62 = vld [vmem:[%s5786_s1 + $0x58] sm:$0xf0] }
 0x416   :  { %v1915_v17 = vmul.f32 %v4035_v9, %v1914_v12  ;;  %v3647_v12 = vor.u32 %v3934_v31, %v3646_v11  ;;  %v3917_v0 = vld [vmem:[%s5786_s1 + $0x2c] sm:$0xf0]  ;;  %v3603_v2 = vor.u32 %v3920_v59, %v3600_v62  ;;  %v3918_v11 = vld [vmem:[%s5786_s1 + $0x34] sm:$0xf0]  ;;  %v3916_v31 = vld [vmem:[%s5786_s1 + $0x2c] sm:$0xf] }
 0x417   :  { %v4037_v18 = vpop.eup %4036  ;;  %v1897_v19 = vadd.f32 %v4033_v27, %v1896_v15  ;;  %v3421_v15 = vld [vmem:[%s5785_s0 + $0x60] sm:$0xff]  ;;  %v3575_v3 = vor.u32 %v3917_v0, %v3574_v63 }
 0x418   :  { %v1916_v21 = vadd.f32 %v4035_v9, %v1915_v17  ;;  %v1933_v22 = vmul.f32 %v4037_v18, %v1931_v7  ;;  %v4039_v25 = vpop.eup %4038  ;;  %vm1938_vm4 = vweird.f32 %v4037_v18  ;;  %v3933_v7 = vld [vmem:[%s5786_s1 + $0xac] sm:$0xf0]  ;;  %v3622_v17 = vld [vmem:[%s5786_s1 + $0x80] sm:$0xf] }
 0x419   :  { %v1901_v24 = vsel %vm1900_vm0, %v4033_v27, %v1897_v19  ;;  %vm1939_vm6 = vmor %vm1937_vm5, %vm1938_vm4  ;;  %v3931_v27 = vld [vmem:[%s5786_s1 + $0xa4] sm:$0xf]  ;;  %v3639_v8 = vor.u32 %v3933_v7, %v3638_v5  ;;  %2503 = vmatpush.bf16.msrb.mxu2 %v3647_v12  ;;  %v3623_v19 = vor.u32 %v3929_v13, %v3622_v17  ;;  %v3576_v5 = vld [vmem:[%s5786_s1 + $0x30] sm:$0xf0] }
 0x41a   :  { %v1906_v26 = vsel %vm1903_vm2, %v1905_v20, %v1901_v24  ;;  %v1920_v28 = vsel %vm1919_vm1, %v4035_v9, %v1916_v21  ;;  %v1934_v29 = vsub.f32 1.0, %v1933_v22  ;;  %v3640_v9 = vld [vmem:[%s5786_s1 + $0xb0] sm:$0xf0]  ;;  %v3630_v21 = vld [vmem:[%s5786_s1 + $0x88] sm:$0xf] }
 0x41b   :  { %v1925_v30 = vsel %vm1922_vm3, %v1924_v23, %v1920_v28  ;;  %v1948_v32 = vmul.f32 %v4039_v25, %v1906_v26  ;;  %v3643_v6 = vor.u32 %v3931_v27, %v3640_v9  ;;  %v3624_v20 = vld [vmem:[%s5786_s1 + $0x90] sm:$0xf0]  ;;  %v3930_v22 = vld [vmem:[%s5786_s1 + $0x94] sm:$0xf0]  ;;  %v3928_v25 = vld [vmem:[%s5786_s1 + $0x8c] sm:$0xf]  ;;  %v1958_v28 = vunpack.c.l.bf16 %v3421_v15 }
 0x41c   :  { %v1947_v33 = vmul.f32 %v1925_v30, %v5357_v1  ;;  %v1935_v35 = vmul.f32 %v4037_v18, %v1934_v29  ;;  %v3670_v1 = vld [vmem:[%s5786_s1 + $0xe0] sm:$0xf]  ;;  %v3631_v24 = vor.u32 %v3930_v22, %v3630_v21  ;;  %v3632_v26 = vld [vmem:[%s5786_s1 + $0x98] sm:$0xf0]  ;;  %v1959_v29 = vunpack.c.h.bf16 %v3421_v15  ;;  %v3582_v7 = vld [vmem:[%s5786_s1 + $0x28] sm:$0xf] }
 0x41d   :  { %v3671_v46 = vor.u32 %v3941_v39, %v3670_v1  ;;  %2490 = vmatpush.bf16.msrb.mxu1 %v3643_v6  ;;  %v3635_v30 = vor.u32 %v3928_v25, %v3632_v26  ;;  %v3616_v1 = vld [vmem:[%s5786_s1 + $0x78] sm:$0xf0]  ;;  %v3579_v9 = vor.u32 %v3915_v4, %v3576_v5  ;;  %v3583_v15 = vor.u32 %v3918_v11, %v3582_v7  ;;  %v3558_v17 = vld [vmem:[%s5786_s1] sm:$0xf]  ;;  %v3913_v13 = vld [vmem:[%s5786_s1 + $0xc] sm:$0xf0] }
 0x41e   :  { %v5563_v36 = vadd.f32 %v1948_v32, %v1947_v33  ;;  %v1936_v37 = vadd.f32 %v4037_v18, %v1935_v35  ;;  %2504 = vmatpush.bf16.msrb.mxu2 %v3631_v24  ;;  %v3606_v32 = vld [vmem:[%s5786_s1 + $0x60] sm:$0xf]  ;;  %v3925_v33 = vld [vmem:[%s5786_s1 + $0x6c] sm:$0xf0]  ;;  %v3923_v35 = vld [vmem:[%s5786_s1 + $0x64] sm:$0xf] }
 0x41f   :  { %2475 = vmatpush.bf16.msrb.mxu0 %v3671_v46  ;;  %2517 = vmatpush.bf16.msrb.mxu3 %v3635_v30  ;;  %v5692_v46 = vld [vmem:[%s5785_s0 + $0x68] sm:$0xff]  ;;  %v3584_v6 = vld [vmem:[%s5786_s1 + $0x38] sm:$0xf0]  ;;  %v3914_v22 = vld [vmem:[%s5786_s1 + $0x14] sm:$0xf0] }
 0x420   :  { %4040 = vtanh.f32 %v5563_v36  ;;  %v1940_v38 = vsel %vm1939_vm6, %v4037_v18, %v1936_v37  ;;  %v3927_v18 = vld [vmem:[%s5786_s1 + $0x84] sm:$0xf]  ;;  %v3607_v37 = vor.u32 %v3925_v33, %v3606_v32  ;;  %v1961_v54 = vunpack.c.h.bf16 %v5692_v46  ;;  %v3566_v21 = vld [vmem:[%s5786_s1 + $0x8] sm:$0xf]  ;;  %v3912_v25 = vld [vmem:[%s5786_s1 + $0xc] sm:$0xf] }
 0x421   :  { %v1945_v41 = vsel %vm1942_vm7, %v1944_v40, %v1940_v38  ;;  %v3627_v23 = vor.u32 %v3927_v18, %v3624_v20  ;;  %v3926_v38 = vld [vmem:[%s5786_s1 + $0x74] sm:$0xf0]  ;;  %v3587_v16 = vor.u32 %v3916_v31, %v3584_v6  ;;  %v3911_v18 = vld [vmem:[%s5786_s1 + $0x4] sm:$0xf]  ;;  %v3560_v20 = vld [vmem:[%s5786_s1 + $0x10] sm:$0xf0] }
 0x422   :  { %v3563_v24 = vor.u32 %v3911_v18, %v3560_v20  ;;  %v3568_v26 = vld [vmem:[%s5786_s1 + $0x18] sm:$0xf0] }
 0x423   :  { %2476 = vmatpush.bf16.msrb.mxu0 %v3655_v58  ;;  %2491 = vmatpush.bf16.msrb.mxu1 %v3627_v23  ;;  %v3922_v58 = vld [vmem:[%s5786_s1 + $0x54] sm:$0xf0]  ;;  %v3571_v33 = vor.u32 %v3912_v25, %v3568_v26 }
 0x424   :  { %v3599_v60 = vor.u32 %v3922_v58, %v3598_v56 }
 0x426   :  { %v4041_v61 = vpop.eup %4040 }
 0x427   :  { %v1951_v42 = vmul.f32 %v4041_v61, %v1945_v41  ;;  %2477 = vmatpush.bf16.msrb.mxu0 %v3639_v8  ;;  %v3611_v41 = vor.u32 %v3923_v35, %v3608_v57 }
 0x429   :  { %v1952_v44 = vpack.c.bf16 %v1951_v42, %v1951_v42  ;;  %v3615_v42 = vor.u32 %v3926_v38, %v3614_v34  ;;  %2492 = vmatpush.bf16.msrb.mxu1 %v3611_v41  ;;  %v1960_v34 = vunpack.c.l.bf16 %v5692_v46 }
 0x42b   :  { %1954 = vst [vmem:[#allocation4 + $0x14] sm:$0xf] %v1952_v44  ;;  %2162 = vmatmul.bf16.vlgmr.msra.gmra.mxu0 %v1952_v44  ;;  %2175 = vmatmul.bf16.vlgmr.msra.gmra.mxu1 %v1952_v44 }
 0x42c   :  { %2188 = vmatmul.bf16.vlgmr.msra.gmra.mxu2 %v1952_v44  ;;  %2201 = vmatmul.bf16.vlgmr.msra.gmra.mxu3 %v1952_v44  ;;  %v3924_v44 = vld [vmem:[%s5786_s1 + $0x6c] sm:$0xf] }
 0x42d   :  { %2478 = vmatpush.bf16.msrb.mxu0 %v3623_v19  ;;  %v3619_v47 = vor.u32 %v3924_v44, %v3616_v1  ;;  %2505 = vmatpush.bf16.msrb.mxu2 %v3615_v42  ;;  %v3559_v19 = vor.u32 %v3913_v13, %v3558_v17 }
 0x42e   :  { %2493 = vmatpush.bf16.msrb.mxu1 %v3595_v55 }
 0x42f   :  { %2518 = vmatpush.bf16.msrb.mxu3 %v3619_v47 }
 0x431   :  { %2479 = vmatpush.bf16.msrb.mxu0 %v3607_v37  ;;  %2506 = vmatpush.bf16.msrb.mxu2 %v3599_v60 }
 0x432   :  { %2494 = vmatpush.bf16.msrb.mxu1 %v3579_v9 }
 0x433   :  { %2519 = vmatpush.bf16.msrb.mxu3 %v3603_v2 }
 0x435   :  { %2480 = vmatpush.bf16.msrb.mxu0 %v3591_v52  ;;  %2507 = vmatpush.bf16.msrb.mxu2 %v3583_v15 }
 0x436   :  { %2495 = vmatpush.bf16.msrb.mxu1 %v3563_v24 }
 0x437   :  { %2520 = vmatpush.bf16.msrb.mxu3 %v3587_v16 }
 0x439   :  { %2481 = vmatpush.bf16.msrb.mxu0 %v3575_v3 }
 0x43b   :  { %2521 = vmatpush.bf16.msrb.mxu3 %v3571_v33 }
 0x43d   :  { %2482 = vmatpush.bf16.msrb.mxu0 %v3559_v19  ;;  %v3555_v19 = vld [vmem:[%s5785_s0 + $0x78] sm:$0xff] }
 0x4a8   :  { %v2163_v40 = vpop.f32.mrf.mxu0  ;;  %v2176_v61 = vpop.f32.mrf.mxu1 }
 0x4a9   :  { %v2206_v39 = vadd.f32 %v2163_v40, %v1958_v28  ;;  %v2207_v45 = vadd.f32 %v2176_v61, %v1959_v29  ;;  %v3567_v29 = vor.u32 %v3914_v22, %v3566_v21  ;;  %v2282_v22 = vunpack.c.h.bf16 %v3555_v19 }
 0x4ab   :  { %v3551_v50 = vmul.f32 -1.442695, %v2206_v39  ;;  %v3552_v51 = vmul.f32 -1.442695, %v2207_v45  ;;  %2508 = vmatpush.bf16.msrb.mxu2 %v3567_v29 }
 0x4ad   :  { %4042 = vpow2.f32 %v3551_v50 }
 0x4ae   :  { %4044 = vpow2.f32 %v3552_v51 }
 0x4af   :  { %v2189_v27 = vpop.f32.mrf.mxu2  ;;  %v2202_v8 = vpop.f32.mrf.mxu3 }
 0x4b0   :  { %v2209_v12 = vadd.f32 %v2202_v8, %v1961_v54  ;;  %v2165_v14 = vpop.f32.mrf.mxu0  ;;  %v2178_v10 = vpop.f32.mrf.mxu1  ;;  %v2208_v41 = vadd.f32 %v2189_v27, %v1960_v34  ;;  %v2281_v34 = vunpack.c.l.bf16 %v3555_v19 }
 0x4b2   :  { %v3553_v23 = vmul.f32 -1.442695, %v2209_v12 }
 0x4b3   :  { %v4043_v28 = vpop.eup %4042 }
 0x4b4   :  { %v4045_v30 = vpop.eup %4044  ;;  %v2213_v32 = vadd.f32 1.0, %v4043_v28  ;;  %4046 = vpow2.f32 %v3553_v23 }
 0x4b5   :  { %v2232_v35 = vadd.f32 1.0, %v4045_v30 }
 0x4b6   :  { %4048 = vrcp.f32 %v2213_v32  ;;  %v2225_v47 = vand.u32 2147483648, %v2213_v32  ;;  %v2223_v49 = vand.u32 2147483647, %v2213_v32  ;;  %vm2219_vm10 = vweird.f32 %v2213_v32 }
 0x4b7   :  { %4050 = vrcp.f32 %v2232_v35  ;;  %v2191_v37 = vpop.f32.mrf.mxu2  ;;  %v2204_v57 = vpop.f32.mrf.mxu3  ;;  %v2244_v43 = vand.u32 2147483648, %v2232_v35  ;;  %v2242_v46 = vand.u32 2147483647, %v2232_v35  ;;  %vm2238_vm11 = vweird.f32 %v2232_v35 }
 0x4b8   :  { %v2226_v53 = vor.u32 1.1754944e-38, %v2225_v47  ;;  %vm2224_vm14 = vcmp.eq.f32.partialorder %v2223_v49, 8.507059e+37 }
 0x4b9   :  { %v2245_v56 = vor.u32 1.1754944e-38, %v2244_v43  ;;  %vm2243_vm15 = vcmp.eq.f32.partialorder %v2242_v46, 8.507059e+37 }
 0x4ba   :  { %v4047_v38 = vpop.eup %4046 }
 0x4bb   :  { %v2252_v40 = vadd.f32 1.0, %v4047_v38 }
 0x4bc   :  { %v4049_v61 = vpop.eup %4048 }
 0x4bd   :  { %v4051_v42 = vpop.eup %4050  ;;  %v2215_v44 = vmul.f32 %v4049_v61, %v2213_v32  ;;  %4052 = vrcp.f32 %v2252_v40  ;;  %vm2220_vm8 = vweird.f32 %v4049_v61  ;;  %v2264_v27 = vand.u32 2147483648, %v2252_v40 }
 0x4be   :  { %v2234_v1 = vmul.f32 %v4051_v42, %v2232_v35  ;;  %4054 = vtanh.f32 %v2208_v41  ;;  %vm2239_vm9 = vweird.f32 %v4051_v42  ;;  %vm2221_vm12 = vmor %vm2219_vm10, %vm2220_vm8  ;;  %vm2258_vm1 = vweird.f32 %v2252_v40 }
 0x4bf   :  { %v2216_v39 = vsub.f32 1.0, %v2215_v44  ;;  %vm2240_vm13 = vmor %vm2238_vm11, %vm2239_vm9  ;;  %v2262_v8 = vand.u32 2147483647, %v2252_v40  ;;  %v2265_v11 = vor.u32 1.1754944e-38, %v2264_v27 }
 0x4c0   :  { %v2235_v45 = vsub.f32 1.0, %v2234_v1 }
 0x4c1   :  { %v2217_v48 = vmul.f32 %v4049_v61, %v2216_v39  ;;  %vm2263_vm3 = vcmp.eq.f32.partialorder %v2262_v8, 8.507059e+37 }
 0x4c2   :  { %v2236_v50 = vmul.f32 %v4051_v42, %v2235_v45 }
 0x4c3   :  { %v4053_v51 = vpop.eup %4052  ;;  %v2218_v52 = vadd.f32 %v4049_v61, %v2217_v48 }
 0x4c4   :  { %v2237_v54 = vadd.f32 %v4051_v42, %v2236_v50  ;;  %v2254_v55 = vmul.f32 %v4053_v51, %v2252_v40  ;;  %v4055_v59 = vpop.eup %4054  ;;  %vm2259_vm0 = vweird.f32 %v4053_v51 }
 0x4c5   :  { %v2222_v58 = vsel %vm2221_vm12, %v4049_v61, %v2218_v52  ;;  %vm2260_vm2 = vmor %vm2258_vm1, %vm2259_vm0 }
 0x4c6   :  { %v2227_v60 = vsel %vm2224_vm14, %v2226_v53, %v2222_v58  ;;  %v2241_v62 = vsel %vm2240_vm13, %v4051_v42, %v2237_v54  ;;  %v2255_v63 = vsub.f32 1.0, %v2254_v55 }
 0x4c7   :  { %v2246_v0 = vsel %vm2243_vm15, %v2245_v56, %v2241_v62  ;;  %v2269_v2 = vmul.f32 %v4055_v59, %v2227_v60 }
 0x4c8   :  { %v2268_v3 = vmul.f32 %v2246_v0, %v5563_v36  ;;  %v2256_v4 = vmul.f32 %v4053_v51, %v2255_v63  ;;  %v3554_v36 = vld [vmem:[%s5785_s0 + $0x70] sm:$0xff]  ;;  %s4100_s0 = smov [#allocation4]  }
 0x4c9   :  { %v2279_v10 = vunpack.c.l.bf16 %v3554_v36  ;;  %v2280_v15 = vunpack.c.h.bf16 %v3554_v36  ;;  %s2607_s12 = sshll.u32 %s4100_s0, 4  ;;  %s2608_s12 = int_to_ptr.vmem [resolvable:$true] %s2607_s12 }
 0x4ca   :  { %v5769_v5 = vadd.f32 %v2269_v2, %v2268_v3  ;;  %v2257_v7 = vadd.f32 %v4053_v51, %v2256_v4 }
 0x4cc   :  { %4056 = vtanh.f32 %v5769_v5  ;;  %v2261_v9 = vsel %vm2260_vm2, %v4053_v51, %v2257_v7 }
 0x4cd   :  { %v2266_v6 = vsel %vm2263_vm3, %v2265_v11, %v2261_v9 }
 0x4d2   :  { %v4057_v31 = vpop.eup %4056 }
 0x4d3   :  { %v2272_v12 = vmul.f32 %v4057_v31, %v2266_v6 }
 0x4d5   :  { %v2273_v14 = vpack.c.bf16 %v2272_v12, %v2272_v12 }
 0x4d7   :  { %2275 = vst [vmem:[#allocation4 + $0x18] sm:$0xf] %v2273_v14  ;;  %2483 = vmatmul.bf16.vlgmr.msrb.gmra.mxu0 %v2273_v14  ;;  %2496 = vmatmul.bf16.vlgmr.msrb.gmra.mxu1 %v2273_v14 }
 0x4d8   :  { %2509 = vmatmul.bf16.vlgmr.msrb.gmra.mxu2 %v2273_v14  ;;  %2522 = vmatmul.bf16.vlgmr.msrb.gmra.mxu3 %v2273_v14 }
 0x554   :  { %v2484_v16 = vpop.f32.mrf.mxu0  ;;  %v2497_v17 = vpop.f32.mrf.mxu1 }
 0x555   :  { %v2527_v13 = vadd.f32 %v2484_v16, %v2279_v10  ;;  %v2528_v18 = vadd.f32 %v2497_v17, %v2280_v15 }
 0x557   :  { %v3684_v20 = vmul.f32 -1.442695, %v2527_v13  ;;  %v3685_v21 = vmul.f32 -1.442695, %v2528_v18 }
 0x559   :  { %4058 = vpow2.f32 %v3684_v20 }
 0x55a   :  { %4060 = vpow2.f32 %v3685_v21 }
 0x55b   :  { %v2510_v23 = vpop.f32.mrf.mxu2  ;;  %v2523_v24 = vpop.f32.mrf.mxu3 }
 0x55c   :  { %v2530_v25 = vadd.f32 %v2523_v24, %v2282_v22  ;;  %v2486_v26 = vpop.f32.mrf.mxu0  ;;  %v2499_v28 = vpop.f32.mrf.mxu1  ;;  %v2529_v41 = vadd.f32 %v2510_v23, %v2281_v34 }
 0x55e   :  { %v3686_v29 = vmul.f32 -1.442695, %v2530_v25 }
 0x55f   :  { %v4059_v30 = vpop.eup %4058 }
 0x560   :  { %v4061_v32 = vpop.eup %4060  ;;  %v2534_v33 = vadd.f32 1.0, %v4059_v30  ;;  %4062 = vpow2.f32 %v3686_v29 }
 0x561   :  { %v2553_v35 = vadd.f32 1.0, %v4061_v32 }
 0x562   :  { %4064 = vrcp.f32 %v2534_v33  ;;  %v2546_v47 = vand.u32 2147483648, %v2534_v33  ;;  %v2544_v49 = vand.u32 2147483647, %v2534_v33  ;;  %vm2540_vm6 = vweird.f32 %v2534_v33 }
 0x563   :  { %4066 = vrcp.f32 %v2553_v35  ;;  %v2512_v37 = vpop.f32.mrf.mxu2  ;;  %v2525_v57 = vpop.f32.mrf.mxu3  ;;  %v2565_v43 = vand.u32 2147483648, %v2553_v35  ;;  %v2563_v46 = vand.u32 2147483647, %v2553_v35  ;;  %vm2559_vm7 = vweird.f32 %v2553_v35 }
 0x564   :  { %v2547_v53 = vor.u32 1.1754944e-38, %v2546_v47  ;;  %vm2545_vm10 = vcmp.eq.f32.partialorder %v2544_v49, 8.507059e+37 }
 0x565   :  { %v2566_v56 = vor.u32 1.1754944e-38, %v2565_v43  ;;  %vm2564_vm11 = vcmp.eq.f32.partialorder %v2563_v46, 8.507059e+37 }
 0x566   :  { %v4063_v38 = vpop.eup %4062 }
 0x567   :  { %v2573_v40 = vadd.f32 1.0, %v4063_v38 }
 0x568   :  { %v4065_v61 = vpop.eup %4064 }
 0x569   :  { %v4067_v42 = vpop.eup %4066  ;;  %v2536_v44 = vmul.f32 %v4065_v61, %v2534_v33  ;;  %4068 = vrcp.f32 %v2573_v40  ;;  %vm2541_vm4 = vweird.f32 %v4065_v61  ;;  %v2585_v8 = vand.u32 2147483648, %v2573_v40 }
 0x56a   :  { %v2555_v1 = vmul.f32 %v4067_v42, %v2553_v35  ;;  %4070 = vtanh.f32 %v2529_v41  ;;  %vm2560_vm5 = vweird.f32 %v4067_v42  ;;  %vm2542_vm8 = vmor %vm2540_vm6, %vm2541_vm4  ;;  %vm2579_vm13 = vweird.f32 %v2573_v40 }
 0x56b   :  { %v2537_v39 = vsub.f32 1.0, %v2536_v44  ;;  %vm2561_vm9 = vmor %vm2559_vm7, %vm2560_vm5  ;;  %v2583_v9 = vand.u32 2147483647, %v2573_v40  ;;  %v2586_v31 = vor.u32 1.1754944e-38, %v2585_v8 }
 0x56c   :  { %v2556_v45 = vsub.f32 1.0, %v2555_v1 }
 0x56d   :  { %v2538_v48 = vmul.f32 %v4065_v61, %v2537_v39  ;;  %vm2584_vm15 = vcmp.eq.f32.partialorder %v2583_v9, 8.507059e+37 }
 0x56e   :  { %v2557_v50 = vmul.f32 %v4067_v42, %v2556_v45 }
 0x56f   :  { %v4069_v51 = vpop.eup %4068  ;;  %v2539_v52 = vadd.f32 %v4065_v61, %v2538_v48 }
 0x570   :  { %v2558_v54 = vadd.f32 %v4067_v42, %v2557_v50  ;;  %v2575_v55 = vmul.f32 %v4069_v51, %v2573_v40  ;;  %v4071_v59 = vpop.eup %4070  ;;  %vm2580_vm12 = vweird.f32 %v4069_v51 }
 0x571   :  { %v2543_v58 = vsel %vm2542_vm8, %v4065_v61, %v2539_v52  ;;  %vm2581_vm14 = vmor %vm2579_vm13, %vm2580_vm12 }
 0x572   :  { %v2548_v60 = vsel %vm2545_vm10, %v2547_v53, %v2543_v58  ;;  %v2562_v62 = vsel %vm2561_vm9, %v4067_v42, %v2558_v54  ;;  %v2576_v63 = vsub.f32 1.0, %v2575_v55 }
 0x573   :  { %v2567_v0 = vsel %vm2564_vm11, %v2566_v56, %v2562_v62  ;;  %v2590_v2 = vmul.f32 %v4071_v59, %v2548_v60 }
 0x574   :  { %v2589_v3 = vmul.f32 %v2567_v0, %v5769_v5  ;;  %v2577_v4 = vmul.f32 %v4069_v51, %v2576_v63 }
 0x576   :  { %v2591_v7 = vadd.f32 %v2590_v2, %v2589_v3  ;;  %v2578_v27 = vadd.f32 %v4069_v51, %v2577_v4 }
 0x578   :  { %4072 = vtanh.f32 %v2591_v7  ;;  %v2582_v11 = vsel %vm2581_vm14, %v4069_v51, %v2578_v27 }
 0x579   :  { %v2587_v5 = vsel %vm2584_vm15, %v2586_v31, %v2582_v11 }
 0x57e   :  { %v4073_v6 = vpop.eup %4072 }
 0x57f   :  { %v2593_v12 = vmul.f32 %v4073_v6, %v2587_v5 }
 0x581   :  { %v2594_v14 = vpack.c.bf16 %v2593_v12, %v2593_v12  ;;  %2602 = vst [vmem:[%s5790_s5] sm:$0xff] %v2593_v12 }
 0x583   :  { %2596 = vst [vmem:[#allocation4 + $0x1c] sm:$0xf] %v2594_v14 }
 0x584   :  { %2615 = dma.vmem_to_hbm [thread:$0]  %s2608_s12, 512, %s2610_s15, [#allocation5], %s4101_s18, %s4101_s18, %s4102_s19  }
 0x585   :  { %4098 = dma.done.wait [#allocation5], 512  }
 0x586   :  { %4099 = vsyncadd [#allocation5], 4294966784 }
 0x587   :  { %2624 = vsyncpa [#allocation5], 1 }

// kernel: rnn_forward.21
= control target key start
LH: loop header
LB: loop body
LE: loop exit
PB: predicated region body
PF: predicated region fallthrough
CT: control target
= control target key end

     0   :  { %s329_s1 = inlined_call_operand.vmem [shape: bf16[128,128], index: 1, kind: input, shape index: {}]   ;;  %s330_s2 = inlined_call_operand.vmem [shape: f32[1,128], index: 2, kind: input, shape index: {}]   ;;  %s331_s0 = inlined_call_operand.vmem [shape: bf16[48,128], index: 0, kind: input, shape index: {}]   ;;  %s332_s3 = inlined_call_operand.vmem [shape: f32[48,128], index: 3, kind: output, shape index: {}]  }
   0x1   :  { %v237_v0 = vld [vmem:[%s329_s1 + $0x38] sm:$0xff]  ;;  %v236_v1 = vld [vmem:[%s329_s1 + $0x30] sm:$0xff]  ;;  %v235_v2 = vld [vmem:[%s329_s1 + $0x28] sm:$0xff] }
   0x2   :  { %118 = vmatpush.bf16.msra.mxu0 %v237_v0  ;;  %238 = vmatpush.bf16.msra.mxu1 %v237_v0  ;;  %v234_v3 = vld [vmem:[%s329_s1 + $0x20] sm:$0xff]  ;;  %v233_v4 = vld [vmem:[%s329_s1 + $0x18] sm:$0xff]  ;;  %v232_v5 = vld [vmem:[%s329_s1 + $0x10] sm:$0xff] }
   0x3   :  { %239 = vmatpush.bf16.msra.mxu2 %v237_v0  ;;  %v231_v6 = vld [vmem:[%s329_s1 + $0x8] sm:$0xff]  ;;  %v230_v7 = vld [vmem:[%s329_s1] sm:$0xff]  ;;  %v229_v10 = vld [vmem:[%s331_s0 + $0x10] sm:$0xff] }
   0x4   :  { %v227_v8 = vld [vmem:[%s331_s0] sm:$0xff]  ;;  %v228_v9 = vld [vmem:[%s331_s0 + $0x8] sm:$0xff] }
   0x5   :  { %v254_v11 = vld [vmem:[%s330_s2] ss:$0 sm:$0xff] }
   0x6   :  { %119 = vmatpush.bf16.msra.mxu0 %v236_v1  ;;  %240 = vmatpush.bf16.msra.mxu1 %v236_v1 }
   0x7   :  { %241 = vmatpush.bf16.msra.mxu2 %v236_v1 }
   0xa   :  { %120 = vmatpush.bf16.msra.mxu0 %v235_v2  ;;  %242 = vmatpush.bf16.msra.mxu1 %v235_v2 }
   0xb   :  { %243 = vmatpush.bf16.msra.mxu2 %v235_v2 }
   0xe   :  { %121 = vmatpush.bf16.msra.mxu0 %v234_v3  ;;  %244 = vmatpush.bf16.msra.mxu1 %v234_v3 }
   0xf   :  { %245 = vmatpush.bf16.msra.mxu2 %v234_v3 }
  0x12   :  { %122 = vmatpush.bf16.msra.mxu0 %v233_v4  ;;  %246 = vmatpush.bf16.msra.mxu1 %v233_v4 }
  0x13   :  { %247 = vmatpush.bf16.msra.mxu2 %v233_v4 }
  0x16   :  { %123 = vmatpush.bf16.msra.mxu0 %v232_v5  ;;  %248 = vmatpush.bf16.msra.mxu1 %v232_v5 }
  0x17   :  { %249 = vmatpush.bf16.msra.mxu2 %v232_v5 }
  0x1a   :  { %124 = vmatpush.bf16.msra.mxu0 %v231_v6  ;;  %250 = vmatpush.bf16.msra.mxu1 %v231_v6 }
  0x1b   :  { %251 = vmatpush.bf16.msra.mxu2 %v231_v6 }
  0x1e   :  { %125 = vmatpush.bf16.msra.mxu0 %v230_v7  ;;  %252 = vmatpush.bf16.msra.mxu1 %v230_v7 }
  0x1f   :  { %253 = vmatpush.bf16.msra.mxu2 %v230_v7 }
  0x21   :  { %126 = vmatmul.bf16.vlgmr.msra.gmra.mxu0 %v227_v8  ;;  %131 = vmatmul.bf16.vlgmr.msra.gmra.mxu1 %v228_v9 }
  0x22   :  { %136 = vmatmul.bf16.vlgmr.msra.gmra.mxu2 %v229_v10 }
  0x9e   :  { %v127_v12 = vpop.f32.mrf.mxu0  ;;  %v132_v13 = vpop.f32.mrf.mxu1 }
  0x9f   :  { %v167_v14 = vadd.f32 %v254_v11, %v127_v12  ;;  %v169_v15 = vadd.f32 %v254_v11, %v132_v13 }
  0xa1   :  { %173 = vst [vmem:[%s332_s3] sm:$0xff] %v167_v14 }
  0xa2   :  { %175 = vst [vmem:[%s332_s3 + $0x10] sm:$0xff] %v169_v15 }
  0xa5   :  { %v137_v16 = vpop.f32.mrf.mxu2 }
  0xa6   :  { %v171_v17 = vadd.f32 %v254_v11, %v137_v16  ;;  %v129_v18 = vpop.f32.mrf.mxu0  ;;  %v134_v19 = vpop.f32.mrf.mxu1 }
  0xa7   :  { %v168_v20 = vadd.f32 %v254_v11, %v129_v18  ;;  %v170_v21 = vadd.f32 %v254_v11, %v134_v19 }
  0xa8   :  { %177 = vst [vmem:[%s332_s3 + $0x20] sm:$0xff] %v171_v17 }
  0xa9   :  { %174 = vst [vmem:[%s332_s3 + $0x8] sm:$0xff] %v168_v20 }
  0xaa   :  { %176 = vst [vmem:[%s332_s3 + $0x18] sm:$0xff] %v170_v21 }
  0xad   :  { %v139_v22 = vpop.f32.mrf.mxu2 }
  0xae   :  { %v172_v23 = vadd.f32 %v254_v11, %v139_v22 }
  0xb0   :  { %178 = vst [vmem:[%s332_s3 + $0x28] sm:$0xff] %v172_v23 }

</bundles_post_ra>
